<compile_context>
chip_gen: v7x
topology: tpu7x:2x2x1
jax: 0.10.0
libtpu: 0.0.40
codegen_flags: <defaults>
</compile_context>

<pallas_src>
import functools
import math

import jax
import jax.numpy as jnp
from jax import lax
from jax.experimental import pallas as pl
from jax.experimental.pallas import tpu as pltpu

EPS = 1e-8


def _temporal_encoder_kernel(x_ref, te_ref, wqkv_ref, bqkv_ref, hmask_ref,
                             wot_ref, bo_ref, w2g_ref, b2_ref, o_ref,
                             *, approx_recip=True):
    bt, L, D = x_ref.shape
    H = hmask_ref.shape[0]
    dh = D // H
    N = bt * L
    cdt = wqkv_ref.dtype                      # MXU operand dtype (bf16 or f32)

    def mm(a, w_ref):
        return jnp.dot(a.astype(cdt), w_ref[...],
                       preferred_element_type=jnp.float32)

    # ---- temporal (positional) embedding + RMSNorm #1 (gain folded offline) ----
    x = x_ref[...].astype(jnp.float32) + te_ref[...]      # (bt, L, D)
    x = x.reshape(N, D)
    x = x * lax.rsqrt(jnp.mean(x * x, axis=-1, keepdims=True) + EPS)

    # ---- fused (Linear#1 . Q/K/V): single (N, D) @ (D, 3D) MXU matmul -----------
    qkv = mm(x, wqkv_ref) + bqkv_ref[...]
    q = qkv[:, :D] * (dh ** -0.5)             # fold softmax scale once into Q
    k = qkv[:, D:2 * D]
    v = qkv[:, 2 * D:]

    # ---- multi-head attention: heads folded into the matmul M dimension ---------
    # No broadcast of K/V across heads; masked-out Q columns contribute exact 0s.
    mask = hmask_ref[...]                      # (H, D) {0,1} per-head column mask
    q3 = q.reshape(bt, L, D)
    k3 = k.reshape(bt, L, D)
    v3 = v.reshape(bt, L, D)

    qh = (q3[:, None, :, :] * mask[None, :, None, :]).reshape(bt, H * L, D)
    s = jnp.einsum('bnd,bkd->bnk', qh.astype(cdt), k3.astype(cdt),
                   preferred_element_type=jnp.float32)           # (bt, H*L, L)
    s = s - jnp.max(s, axis=-1, keepdims=True)
    p = jnp.exp(s)
    p = p * pl.reciprocal(jnp.sum(p, axis=-1, keepdims=True), approx=approx_recip)
    pv = jnp.einsum('bnk,bkd->bnd', p.astype(cdt), v3.astype(cdt),
                    preferred_element_type=jnp.float32)           # (bt, H*L, D)
    # keep each head's own columns and merge heads by summation (no lane concat)
    attn = jnp.sum(pv.reshape(bt, H, L, D) * mask[None, :, None, :], axis=1)
    attn = attn.reshape(N, D)

    # ---- attention output projection --------------------------------------------
    attn = mm(attn, wot_ref) + bo_ref[...]

    # ---- RMSNorm #2 (gain folded into W2) + Linear #2 ----------------------------
    y = attn * lax.rsqrt(jnp.mean(attn * attn, axis=-1, keepdims=True) + EPS)
    y = mm(y, w2g_ref) + b2_ref[...]

    o_ref[...] = y.reshape(bt, L, D).astype(o_ref.dtype)


def temporal_encoder(x, params, *, num_heads, block_b=None,
                     matmul_dtype=jnp.bfloat16, exact_softmax=False):
    """Fused temporalEncoder forward.  x: (B, L, D) f32; params: see init_params."""
    B, L, D = x.shape
    assert D % num_heads == 0
    dh = D // num_heads
    f32 = jnp.float32

    # ----- offline weight folding (host/XLA side, once per parameter set) --------
    g1 = params["g1"].reshape(D).astype(f32)
    g2 = params["g2"].reshape(D).astype(f32)
    w1g = params["w1"].T.astype(f32) * g1[:, None]           # g1 folded into Linear#1
    b1 = params["b1"].reshape(1, D).astype(f32)
    wqkv_t = jnp.concatenate(
        [params["wq"].T, params["wk"].T, params["wv"].T], axis=1).astype(f32)   # (D,3D)
    bqkv = jnp.concatenate(
        [params["bq"], params["bk"], params["bv"]]).reshape(1, 3 * D).astype(f32)
    wqkv_fold = (w1g @ wqkv_t).astype(matmul_dtype)          # Linear#1 folded into QKV
    bqkv_fold = (b1 @ wqkv_t + bqkv).astype(f32)
    wot = params["wo"].T.astype(matmul_dtype)
    bo = params["bo"].reshape(1, D).astype(f32)
    w2g = (params["w2"].T.astype(f32) * g2[:, None]).astype(matmul_dtype)   # g2 folded
    b2 = params["b2"].reshape(1, D).astype(f32)
    te = params["temp_embedding"].reshape(L, D).astype(f32)
    hmask = (jnp.arange(D)[None, :] // dh
             == jnp.arange(num_heads)[:, None]).astype(f32)  # (H, D) {0,1}

    # ----- batch tiling: MXU-sized M = bt*L rows per step, grid >= 2 (v7x dual TC)
    if block_b is None:
        block_b = max(8, 512 // L)            # target ~512 matmul rows per grid step
    bt = max(1, min(block_b, -(-B // 2)))     # keep at least 2 grid steps when B >= 2
    grid_b = -(-B // bt)
    Bp = grid_b * bt
    xp = jnp.pad(x, ((0, Bp - B), (0, 0), (0, 0))) if Bp != B else x

    wspec3 = pl.BlockSpec((D, 3 * D), lambda b: (0, 0))
    wspec = pl.BlockSpec((D, D), lambda b: (0, 0))
    rowspec = lambda n: pl.BlockSpec((1, n), lambda b: (0, 0))

    in_specs = [
        pl.BlockSpec((bt, L, D), lambda b: (b, 0, 0)),       # x batch tile
        pl.BlockSpec((L, D), lambda b: (0, 0)),              # temporal embedding
        wspec3, rowspec(3 * D),                              # fused QKV weight/bias
        pl.BlockSpec((num_heads, D), lambda b: (0, 0)),      # per-head column mask
        wspec, rowspec(D),                                   # Wo^T, bo
        wspec, rowspec(D),                                   # (g2 * W2)^T, b2
    ]
    out_spec = pl.BlockSpec((bt, L, D), lambda b: (b, 0, 0))

    # ----- advisory cost estimate + VMEM budget -----------------------------------
    n_rows = Bp * L
    const_bytes = sum(int(a.size) * a.dtype.itemsize
                      for a in (te, wqkv_fold, bqkv_fold, hmask, wot, bo, w2g, b2))
    cost = pl.CostEstimate(
        flops=int(2 * n_rows * 5 * D * D + 4 * Bp * num_heads * L * L * D),
        transcendentals=int(Bp * num_heads * L * (L + 1) + 2 * n_rows),
        bytes_accessed=int(2 * n_rows * D * 4 + const_bytes),
    )
    w_itemsize = jnp.finfo(matmul_dtype).bits // 8
    est_vmem = (2 * 2 * bt * L * D * 4          # x & out tiles, double-buffered
                + 2 * 5 * D * D * w_itemsize    # resident weights, double-buffered
                + 16 * bt * L * D * 4)          # live f32 activations (headroom)
    cp_kwargs = dict(dimension_semantics=("parallel",))
    if est_vmem > 30 * 1024 * 1024:
        # TODO(synk): for very large D also single-buffer the grid-invariant weights
        # (pipeline_mode=pl.Buffered(1)) to halve their VMEM footprint on v7x.
        cp_kwargs["vmem_limit_bytes"] = int(min(est_vmem * 1.25, 96 * 1024 * 1024))

    kernel = functools.partial(_temporal_encoder_kernel,
                               approx_recip=not exact_softmax)
    out = pl.pallas_call(
        kernel,
        out_shape=jax.ShapeDtypeStruct((Bp, L, D), x.dtype),
        grid_spec=pltpu.PrefetchScalarGridSpec(
            num_scalar_prefetch=0,
            grid=(grid_b,),
            in_specs=in_specs,
            out_specs=out_spec,
        ),
        compiler_params=pltpu.CompilerParams(**cp_kwargs),
        cost_estimate=cost,
    )(xp, te, wqkv_fold, bqkv_fold, hmask, wot, bo, w2g, b2)
    return out if Bp == B else out[:B]


# ----------------------------- parameter init (PyTorch layout) --------------------
def _linear_params(key, d_in, d_out):
    """PyTorch nn.Linear default init: U(-1/sqrt(in), 1/sqrt(in)); w: (out, in)."""
    kw, kb = jax.random.split(key)
    bound = 1.0 / math.sqrt(d_in)
    w = jax.random.uniform(kw, (d_out, d_in), jnp.float32, -bound, bound)
    b = jax.random.uniform(kb, (d_out,), jnp.float32, -bound, bound)
    return w, b


def init_params(key, dim, lag):
    keys = jax.random.split(key, 7)
    w1, b1 = _linear_params(keys[1], dim, dim)
    wq, bq = _linear_params(keys[2], dim, dim)
    wk, bk = _linear_params(keys[3], dim, dim)
    wv, bv = _linear_params(keys[4], dim, dim)
    wo, bo = _linear_params(keys[5], dim, dim)
    w2, b2 = _linear_params(keys[6], dim, dim)
    return dict(
        temp_embedding=jax.random.normal(keys[0], (1, lag, dim), jnp.float32),
        g1=jnp.ones((dim,), jnp.float32), w1=w1, b1=b1,
        wq=wq, bq=bq, wk=wk, bk=bk, wv=wv, bv=bv, wo=wo, bo=bo,
        g2=jnp.ones((dim,), jnp.float32), w2=w2, b2=b2,
    )


# ------------------------------ pure-JAX reference (unfused) ----------------------
def reference(x, p, *, num_heads):
    B, L, D = x.shape
    dh = D // num_heads

    def rms(v, g):
        return v * lax.rsqrt(jnp.mean(v * v, axis=-1, keepdims=True) + EPS) * g

    x = x + p["temp_embedding"]
    x = rms(x, p["g1"])
    x = x @ p["w1"].T + p["b1"]
    q = (x @ p["wq"].T + p["bq"]).reshape(B, L, num_heads, dh).transpose(0, 2, 1, 3)
    k = (x @ p["wk"].T + p["bk"]).reshape(B, L, num_heads, dh).transpose(0, 2, 1, 3)
    v = (x @ p["wv"].T + p["bv"]).reshape(B, L, num_heads, dh).transpose(0, 2, 1, 3)
    s = jnp.einsum("bhqd,bhkd->bhqk", q, k) * (dh ** -0.5)
    a = jax.nn.softmax(s, axis=-1)
    o = jnp.einsum("bhqk,bhkd->bhqd", a, v).transpose(0, 2, 1, 3).reshape(B, L, D)
    o = o @ p["wo"].T + p["bo"]
    o = rms(o, p["g2"])
    return o @ p["w2"].T + p["b2"]


if __name__ == "__main__":
    # D=128 keeps every store lane-dense; B=64, L=8 -> bt=32, grid=2, M=bt*L=256.
    B, LAG, DIM, HEADS = 64, 8, 128, 4
    key = jax.random.PRNGKey(0)
    kx, kp = jax.random.split(key)
    x = jax.random.normal(kx, (B, LAG, DIM), jnp.float32)
    params = init_params(kp, DIM, LAG)

    ref = jax.block_until_ready(reference(x, params, num_heads=HEADS))

    # (1) f32 MXU operands + exact softmax reciprocal: near-exact parity path.
    out_f32 = jax.block_until_ready(
        temporal_encoder(x, params, num_heads=HEADS,
                         matmul_dtype=jnp.float32, exact_softmax=True))
    assert out_f32.shape == (B, LAG, DIM)
    err_f32 = jnp.linalg.norm(out_f32 - ref) / jnp.linalg.norm(ref)
    assert bool(err_f32 < 2e-2), f"f32 path mismatch: rel L2 err {err_f32}"

    # (2) production config (v6e/v7x): bf16 MXU operands (f32 accumulate) + approx
    #     EUP reciprocal.  Tolerance re-derived for bf16 operand rounding.
    out_bf16 = jax.block_until_ready(temporal_encoder(x, params, num_heads=HEADS))
    assert out_bf16.shape == (B, LAG, DIM)
    err_bf16 = jnp.linalg.norm(out_bf16 - ref) / jnp.linalg.norm(ref)
    assert bool(err_bf16 < 5e-2), f"bf16 path mismatch: rel L2 err {err_bf16}"

    print("KERNEL_OK")
</pallas_src>

<mosaic_0001>
module attributes {stable_mosaic.version = 11 : i64} {
  func.func @_temporal_encoder_kernel(%arg0: i32, %arg1: memref<32x8x128xf32, #tpu.memory_space<vmem>>, %arg2: memref<8x128xf32, #tpu.memory_space<vmem>>, %arg3: memref<128x384xf32, #tpu.memory_space<vmem>>, %arg4: memref<1x384xf32, #tpu.memory_space<vmem>>, %arg5: memref<4x128xf32, #tpu.memory_space<vmem>>, %arg6: memref<128x128xf32, #tpu.memory_space<vmem>>, %arg7: memref<1x128xf32, #tpu.memory_space<vmem>>, %arg8: memref<128x128xf32, #tpu.memory_space<vmem>>, %arg9: memref<1x128xf32, #tpu.memory_space<vmem>>, %arg10: memref<32x8x128xf32, #tpu.memory_space<vmem>>) attributes {dimension_semantics = [#tpu.dimension_semantics<parallel>], iteration_bounds = array<i64: 2>, scalar_prefetch = 0 : i64, scratch_operands = 0 : i64, tpu.core_type = #tpu.core_type<tc>, window_params = [{transform_indices = @transform_0, window_bounds = array<i64: 32, 8, 128>}, {pipeline_mode = #tpu.pipeline_mode<synchronous>, transform_indices = @transform_1, window_bounds = array<i64: 8, 128>}, {pipeline_mode = #tpu.pipeline_mode<synchronous>, transform_indices = @transform_2, window_bounds = array<i64: 128, 384>}, {pipeline_mode = #tpu.pipeline_mode<synchronous>, transform_indices = @transform_3, window_bounds = array<i64: 1, 384>}, {pipeline_mode = #tpu.pipeline_mode<synchronous>, transform_indices = @transform_4, window_bounds = array<i64: 4, 128>}, {pipeline_mode = #tpu.pipeline_mode<synchronous>, transform_indices = @transform_5, window_bounds = array<i64: 128, 128>}, {pipeline_mode = #tpu.pipeline_mode<synchronous>, transform_indices = @transform_6, window_bounds = array<i64: 1, 128>}, {pipeline_mode = #tpu.pipeline_mode<synchronous>, transform_indices = @transform_7, window_bounds = array<i64: 128, 128>}, {pipeline_mode = #tpu.pipeline_mode<synchronous>, transform_indices = @transform_8, window_bounds = array<i64: 1, 128>}, {transform_indices = @transform_9, window_bounds = array<i64: 32, 8, 128>}]} {
    %c0 = arith.constant 0 : index
    %c0_0 = arith.constant 0 : index
    %c0_1 = arith.constant 0 : index
    %0 = vector.load %arg1[%c0, %c0_0, %c0_1] : memref<32x8x128xf32, #tpu.memory_space<vmem>>, vector<32x8x128xf32>
    %c0_2 = arith.constant 0 : index
    %c0_3 = arith.constant 0 : index
    %1 = vector.load %arg2[%c0_2, %c0_3] : memref<8x128xf32, #tpu.memory_space<vmem>>, vector<8x128xf32>
    %2 = vector.shape_cast %1 : vector<8x128xf32> to vector<1x8x128xf32>
    %3 = vector.broadcast %2 : vector<1x8x128xf32> to vector<32x8x128xf32>
    %4 = arith.addf %0, %3 : vector<32x8x128xf32>
    %5 = vector.shape_cast %4 : vector<32x8x128xf32> to vector<256x128xf32>
    %6 = arith.mulf %5, %5 : vector<256x128xf32>
    %cst = arith.constant dense<0.000000e+00> : vector<256xf32>
    %7 = vector.multi_reduction <add>, %6, %cst [1] : vector<256x128xf32> to vector<256xf32>
    %8 = vector.shape_cast %7 : vector<256xf32> to vector<256x1xf32>
    %cst_4 = arith.constant 1.280000e+02 : f32
    %9 = vector.broadcast %cst_4 : f32 to vector<256x1xf32>
    %10 = arith.divf %8, %9 : vector<256x1xf32>
    %cst_5 = arith.constant 9.99999993E-9 : f32
    %11 = vector.broadcast %cst_5 : f32 to vector<256x1xf32>
    %12 = arith.addf %10, %11 : vector<256x1xf32>
    %13 = math.rsqrt %12 : vector<256x1xf32>
    %14 = vector.broadcast %13 : vector<256x1xf32> to vector<256x128xf32>
    %15 = arith.mulf %5, %14 : vector<256x128xf32>
    %c0_6 = arith.constant 0 : index
    %c0_7 = arith.constant 0 : index
    %16 = vector.load %arg3[%c0_6, %c0_7] : memref<128x384xf32, #tpu.memory_space<vmem>>, vector<128x384xf32>
    %cst_8 = arith.constant dense<0.000000e+00> : vector<256x384xf32>
    %17 = tpu.matmul %15, %16, %cst_8 {dimension_numbers = #tpu.dot_dimension_numbers<[1], [0], [0], [1], [0, 0, 1, 1], [], []>} : vector<256x128xf32>, vector<128x384xf32>, vector<256x384xf32> -> vector<256x384xf32>
    %c0_9 = arith.constant 0 : index
    %c0_10 = arith.constant 0 : index
    %18 = vector.load %arg4[%c0_9, %c0_10] : memref<1x384xf32, #tpu.memory_space<vmem>>, vector<1x384xf32>
    %19 = vector.broadcast %18 : vector<1x384xf32> to vector<256x384xf32>
    %20 = arith.addf %17, %19 : vector<256x384xf32>
    %21 = vector.extract_strided_slice %20 {offsets = [0, 0], sizes = [256, 128], strides = [1, 1]} : vector<256x384xf32> to vector<256x128xf32>
    %cst_11 = arith.constant 0.176776692 : f32
    %22 = vector.broadcast %cst_11 : f32 to vector<256x128xf32>
    %23 = arith.mulf %21, %22 : vector<256x128xf32>
    %24 = vector.extract_strided_slice %20 {offsets = [0, 128], sizes = [256, 128], strides = [1, 1]} : vector<256x384xf32> to vector<256x128xf32>
    %25 = vector.extract_strided_slice %20 {offsets = [0, 256], sizes = [256, 128], strides = [1, 1]} : vector<256x384xf32> to vector<256x128xf32>
    %c0_12 = arith.constant 0 : index
    %c0_13 = arith.constant 0 : index
    %26 = vector.load %arg5[%c0_12, %c0_13] : memref<4x128xf32, #tpu.memory_space<vmem>>, vector<4x128xf32>
    %27 = vector.shape_cast %23 : vector<256x128xf32> to vector<32x8x128xf32>
    %28 = vector.shape_cast %24 : vector<256x128xf32> to vector<32x8x128xf32>
    %29 = vector.shape_cast %25 : vector<256x128xf32> to vector<32x8x128xf32>
    %30 = vector.shape_cast %27 : vector<32x8x128xf32> to vector<32x1x8x128xf32>
    %31 = vector.shape_cast %26 : vector<4x128xf32> to vector<1x4x1x128xf32>
    %32 = vector.broadcast %30 : vector<32x1x8x128xf32> to vector<32x4x8x128xf32>
    %33 = vector.broadcast %31 : vector<1x4x1x128xf32> to vector<32x4x8x128xf32>
    %34 = arith.mulf %32, %33 : vector<32x4x8x128xf32>
    %35 = vector.shape_cast %34 : vector<32x4x8x128xf32> to vector<32x32x128xf32>
    "tpu.trace_start"() <{level = 10 : i32, message = "bnd,bkd->bnk"}> : () -> ()
    %cst_14 = arith.constant dense<0.000000e+00> : vector<32x32x8xf32>
    %36 = tpu.matmul %35, %28, %cst_14 {dimension_numbers = #tpu.dot_dimension_numbers<[2], [2], [1], [1], [0, 0, 0, 1, 1, 1], [0], [0]>} : vector<32x32x128xf32>, vector<32x8x128xf32>, vector<32x32x8xf32> -> vector<32x32x8xf32>
    "tpu.trace_stop"() : () -> ()
    %cst_15 = arith.constant dense<0xFF800000> : vector<32x32xf32>
    %37 = vector.multi_reduction <maximumf>, %36, %cst_15 [2] : vector<32x32x8xf32> to vector<32x32xf32>
    %38 = vector.shape_cast %37 : vector<32x32xf32> to vector<32x32x1xf32>
    %39 = vector.broadcast %38 : vector<32x32x1xf32> to vector<32x32x8xf32>
    %40 = arith.subf %36, %39 : vector<32x32x8xf32>
    %41 = math.exp %40 : vector<32x32x8xf32>
    %cst_16 = arith.constant dense<0.000000e+00> : vector<32x32xf32>
    %42 = vector.multi_reduction <add>, %41, %cst_16 [2] : vector<32x32x8xf32> to vector<32x32xf32>
    %43 = vector.shape_cast %42 : vector<32x32xf32> to vector<32x32x1xf32>
    %44 = tpu.reciprocal %43 : vector<32x32x1xf32> -> vector<32x32x1xf32>
    %45 = vector.broadcast %44 : vector<32x32x1xf32> to vector<32x32x8xf32>
    %46 = arith.mulf %41, %45 : vector<32x32x8xf32>
    "tpu.trace_start"() <{level = 10 : i32, message = "bnk,bkd->bnd"}> : () -> ()
    %cst_17 = arith.constant dense<0.000000e+00> : vector<32x32x128xf32>
    %47 = tpu.matmul %46, %29, %cst_17 {dimension_numbers = #tpu.dot_dimension_numbers<[2], [1], [1], [2], [0, 0, 0, 1, 1, 2], [0], [0]>} : vector<32x32x8xf32>, vector<32x8x128xf32>, vector<32x32x128xf32> -> vector<32x32x128xf32>
    "tpu.trace_stop"() : () -> ()
    %48 = vector.shape_cast %47 : vector<32x32x128xf32> to vector<32x4x8x128xf32>
    %49 = vector.shape_cast %26 : vector<4x128xf32> to vector<1x4x1x128xf32>
    %50 = vector.broadcast %49 : vector<1x4x1x128xf32> to vector<32x4x8x128xf32>
    %51 = arith.mulf %48, %50 : vector<32x4x8x128xf32>
    %cst_18 = arith.constant dense<0.000000e+00> : vector<32x8x128xf32>
    %52 = vector.multi_reduction <add>, %51, %cst_18 [1] : vector<32x4x8x128xf32> to vector<32x8x128xf32>
    %53 = vector.shape_cast %52 : vector<32x8x128xf32> to vector<256x128xf32>
    %c0_19 = arith.constant 0 : index
    %c0_20 = arith.constant 0 : index
    %54 = vector.load %arg6[%c0_19, %c0_20] : memref<128x128xf32, #tpu.memory_space<vmem>>, vector<128x128xf32>
    %cst_21 = arith.constant dense<0.000000e+00> : vector<256x128xf32>
    %55 = tpu.matmul %53, %54, %cst_21 {dimension_numbers = #tpu.dot_dimension_numbers<[1], [0], [0], [1], [0, 0, 1, 1], [], []>} : vector<256x128xf32>, vector<128x128xf32>, vector<256x128xf32> -> vector<256x128xf32>
    %c0_22 = arith.constant 0 : index
    %c0_23 = arith.constant 0 : index
    %56 = vector.load %arg7[%c0_22, %c0_23] : memref<1x128xf32, #tpu.memory_space<vmem>>, vector<1x128xf32>
    %57 = vector.broadcast %56 : vector<1x128xf32> to vector<256x128xf32>
    %58 = arith.addf %55, %57 : vector<256x128xf32>
    %59 = arith.mulf %58, %58 : vector<256x128xf32>
    %cst_24 = arith.constant dense<0.000000e+00> : vector<256xf32>
    %60 = vector.multi_reduction <add>, %59, %cst_24 [1] : vector<256x128xf32> to vector<256xf32>
    %61 = vector.shape_cast %60 : vector<256xf32> to vector<256x1xf32>
    %cst_25 = arith.constant 1.280000e+02 : f32
    %62 = vector.broadcast %cst_25 : f32 to vector<256x1xf32>
    %63 = arith.divf %61, %62 : vector<256x1xf32>
    %cst_26 = arith.constant 9.99999993E-9 : f32
    %64 = vector.broadcast %cst_26 : f32 to vector<256x1xf32>
    %65 = arith.addf %63, %64 : vector<256x1xf32>
    %66 = math.rsqrt %65 : vector<256x1xf32>
    %67 = vector.broadcast %66 : vector<256x1xf32> to vector<256x128xf32>
    %68 = arith.mulf %58, %67 : vector<256x128xf32>
    %c0_27 = arith.constant 0 : index
    %c0_28 = arith.constant 0 : index
    %69 = vector.load %arg8[%c0_27, %c0_28] : memref<128x128xf32, #tpu.memory_space<vmem>>, vector<128x128xf32>
    %cst_29 = arith.constant dense<0.000000e+00> : vector<256x128xf32>
    %70 = tpu.matmul %68, %69, %cst_29 {dimension_numbers = #tpu.dot_dimension_numbers<[1], [0], [0], [1], [0, 0, 1, 1], [], []>} : vector<256x128xf32>, vector<128x128xf32>, vector<256x128xf32> -> vector<256x128xf32>
    %c0_30 = arith.constant 0 : index
    %c0_31 = arith.constant 0 : index
    %71 = vector.load %arg9[%c0_30, %c0_31] : memref<1x128xf32, #tpu.memory_space<vmem>>, vector<1x128xf32>
    %72 = vector.broadcast %71 : vector<1x128xf32> to vector<256x128xf32>
    %73 = arith.addf %70, %72 : vector<256x128xf32>
    %74 = vector.shape_cast %73 : vector<256x128xf32> to vector<32x8x128xf32>
    %c0_32 = arith.constant 0 : index
    %c0_33 = arith.constant 0 : index
    %c0_34 = arith.constant 0 : index
    %75 = vector.load %arg10[%c0_32, %c0_33, %c0_34] : memref<32x8x128xf32, #tpu.memory_space<vmem>>, vector<32x8x128xf32>
    tpu.vector_store %arg10[%c0_32, %c0_33, %c0_34], %74 {strides = array<i32>} : memref<32x8x128xf32, #tpu.memory_space<vmem>>, vector<32x8x128xf32>,
    return
  }
  func.func @transform_0(%arg0: i32) -> (i32, i32, i32) {
    %c0_i32 = arith.constant 0 : i32
    %c0_i32_0 = arith.constant 0 : i32
    %c0_i32_1 = arith.constant 0 : i32
    return %arg0, %c0_i32, %c0_i32_0 : i32, i32, i32
  }
  func.func @transform_1(%arg0: i32) -> (i32, i32) {
    %c0_i32 = arith.constant 0 : i32
    %c0_i32_0 = arith.constant 0 : i32
    %c0_i32_1 = arith.constant 0 : i32
    return %c0_i32, %c0_i32_0 : i32, i32
  }
  func.func @transform_2(%arg0: i32) -> (i32, i32) {
    %c0_i32 = arith.constant 0 : i32
    %c0_i32_0 = arith.constant 0 : i32
    %c0_i32_1 = arith.constant 0 : i32
    return %c0_i32, %c0_i32_0 : i32, i32
  }
  func.func @transform_3(%arg0: i32) -> (i32, i32) {
    %c0_i32 = arith.constant 0 : i32
    %c0_i32_0 = arith.constant 0 : i32
    %c0_i32_1 = arith.constant 0 : i32
    return %c0_i32, %c0_i32_0 : i32, i32
  }
  func.func @transform_4(%arg0: i32) -> (i32, i32) {
    %c0_i32 = arith.constant 0 : i32
    %c0_i32_0 = arith.constant 0 : i32
    %c0_i32_1 = arith.constant 0 : i32
    return %c0_i32, %c0_i32_0 : i32, i32
  }
  func.func @transform_5(%arg0: i32) -> (i32, i32) {
    %c0_i32 = arith.constant 0 : i32
    %c0_i32_0 = arith.constant 0 : i32
    %c0_i32_1 = arith.constant 0 : i32
    return %c0_i32, %c0_i32_0 : i32, i32
  }
  func.func @transform_6(%arg0: i32) -> (i32, i32) {
    %c0_i32 = arith.constant 0 : i32
    %c0_i32_0 = arith.constant 0 : i32
    %c0_i32_1 = arith.constant 0 : i32
    return %c0_i32, %c0_i32_0 : i32, i32
  }
  func.func @transform_7(%arg0: i32) -> (i32, i32) {
    %c0_i32 = arith.constant 0 : i32
    %c0_i32_0 = arith.constant 0 : i32
    %c0_i32_1 = arith.constant 0 : i32
    return %c0_i32, %c0_i32_0 : i32, i32
  }
  func.func @transform_8(%arg0: i32) -> (i32, i32) {
    %c0_i32 = arith.constant 0 : i32
    %c0_i32_0 = arith.constant 0 : i32
    %c0_i32_1 = arith.constant 0 : i32
    return %c0_i32, %c0_i32_0 : i32, i32
  }
  func.func @transform_9(%arg0: i32) -> (i32, i32, i32) {
    %c0_i32 = arith.constant 0 : i32
    %c0_i32_0 = arith.constant 0 : i32
    %c0_i32_1 = arith.constant 0 : i32
    return %arg0, %c0_i32, %c0_i32_0 : i32, i32, i32
  }
}

</mosaic_0001>

<bundles_post_ra>
// kernel: tpu_custom_call.1
= control target key start
LH: loop header
LB: loop body
LE: loop exit
PB: predicated region body
PF: predicated region fallthrough
CT: control target
= control target key end

     0   :  { %s15970_s0 = inlined_call_operand.hbm [shape: f32[64,8,128], index: 0, kind: input, shape index: {}]   ;;  %s15971_s1 = inlined_call_operand.hbm [shape: f32[8,128], index: 1, kind: input, shape index: {}]   ;;  %s15972_s2 = inlined_call_operand.hbm [shape: f32[128,384], index: 2, kind: input, shape index: {}]   ;;  %s15973_s3 = inlined_call_operand.vmem [shape: f32[1,384], index: 3, kind: input, shape index: {}]   ;;  %s15974_s4 = inlined_call_operand.vmem [shape: f32[4,128], index: 4, kind: input, shape index: {}]   ;;  %s15975_s5 = inlined_call_operand.hbm [shape: f32[128,128], index: 5, kind: input, shape index: {}]   ;;  %s15976_s6 = inlined_call_operand.vmem [shape: f32[1,128], index: 6, kind: input, shape index: {}]   ;;  %s15977_s7 = inlined_call_operand.hbm [shape: f32[128,128], index: 7, kind: input, shape index: {}]   ;;  %s15978_s8 = inlined_call_operand.vmem [shape: f32[1,128], index: 8, kind: input, shape index: {}]   ;;  %s15979_s9 = inlined_call_operand.hbm [shape: f32[64,8,128], index: 9, kind: output, shape index: {}]  }
   0x1   :  { %16367 = sst [smem:[#allocation178_spill]] %s15971_s1 }
   0x2   :  { %16368 = sst [smem:[#allocation179_spill]] %s15975_s5 }
   0x3   :  { %14 = vsyncpa [#allocation3], 0 }
   0x4   :  { %16 = vsyncpa [#allocation3 + $0x1], 0 }
   0x5   :  { %17 = vsyncpa [#allocation6], 0 }
   0x6   :  { %18 = vsyncpa [#allocation9], 0 }
   0x7   :  { %19 = vsyncpa [#allocation4], 0 }
   0x8   :  { %21 = vsyncpa [#allocation4 + $0x1], 0  ;;  %s12302_s30 = smov 0   ;;  %s12304_s10 = smov 0  }
   0x9   :  { %s12306_s11 = smov 0   ;;  %s12308_s12 = smov 0  }
   0xa LB: > { %s12323_s13 = sadd.s32 4294967295, %s12236_s12   ;;  %s9786_s14 = sadd.s32 4294967294, %s12236_s12   ;;  %s12236_s12 = sphi %s12308_s12, %s17140_s12   ;;  %s12232_s11 = sphi %s12306_s11, %s17139_s11   ;;  %s12228_s10 = sphi %s12304_s10, %s17138_s10   ;;  %s12224_s30 = sphi %s12302_s30, %s17137_s30  }
   0xb   : > { %p47_p0 = scmp.ne.s32.totalorder %s12228_s10, %s12224_s30  ;;  %p15980_p1 = scmp.eq.s32.totalorder %s12323_s13, 0 }
   0xc   : > { %p245_p3 = scmp.eq.s32.totalorder %s9786_s14, 1  ;;  %p9787_p5 = scmp.ge.s32.totalorder %s12236_s12, 1 }
   0xd   : > { %p12332_p4 = por %p15980_p1, %p47_p0  ;;  %p252_p7 = scmp.lt.s32.totalorder %s12236_s12, 3 }
   0xe   : > { %p12337_p6 = por %p245_p3, %p47_p0  ;;  %s12238_s18 = smov [#allocation5]  }
   0xf   : > { %s16369_s15 = scalar_select %p12332_p4, 1, 0 }
  0x10   : > { %s16370_s16 = scalar_select %p12337_p6, 1, 0 }
  0x11   : > { %p12342_p8 = pnand %p9787_p5, %p252_p7  ;;  %s265_s19 = sshll.u32 %s12238_s18, 4  ;;  %s266_s19 = int_to_ptr.vmem [resolvable:$true] %s265_s19 }
  0x12   : > { %16371 = sst [smem:[#allocation16_spill]] %s16370_s16  ;;  %s12239_s20 = smov [#allocation8]  }
  0x13   : > { %s16372_s17 = scalar_select %p12342_p8, 1, 0 }
  0x14   : > { %p11305_p10 = pneg %p12342_p8  ;;  %s294_s21 = sshll.u32 %s12239_s20, 4  ;;  %s12355_s21 = int_to_ptr.vmem [resolvable:$true] %s294_s21 }
  0x15   : > { %s12240_s23 = smov [#allocation7]   ;;  %s16374_s1 = sld [smem:[#allocation178_spill]] }
  0x16   : > { %p12351_p11 = pnand %p11305_p10, %p15980_p1  ;;  %s12357_s24 = sshll.u32 %s12240_s23, 4  ;;  %s276_s24 = int_to_ptr.vmem [resolvable:$true] %s12357_s24 }
  0x18   : > { %p12367_p13 = pneg %p12351_p11 }
  0x1b   : > { %s12020_s27 = scalar_lea.hbm %s16374_s1, 128 }
  0x1c   : > { %p12021_p12 = scmp.ne.s32.totalorder %s16374_s1, %s12020_s27  ;;  %p12027_p5 = scmp.lt.u32.totalorder %s12020_s27, %s16374_s1 }
  0x1e   : > { %p12023_p0 = pnand %p12367_p13, %p12021_p12 }
  0x20   : > { %p12024_p3 = pneg %p12023_p0 }
  0x22   : > { %p12029_p7 = pnand %p12027_p5, %p12024_p3 }
  0x24   : > { %12032 = shalt.err (!%p12029_p7)
}
  0x25   : > { %s12033_s23 = scalar_lea.vmem %s266_s19, 128  ;;  %p12041_p2 = scmp.lt.s32.totalorder %s266_s19, %s266_s19 }
  0x26   : > { %p12034_p10 = scmp.ne.s32.totalorder %s266_s19, %s12033_s23  ;;  %p12042_p6 = scmp.lt.s32.totalorder %s12033_s23, %s12033_s23 }
  0x28   : > { %p12036_p9 = pnand %p12034_p10, %p12367_p13  ;;  %p12043_p4 = por %p12042_p6, %p12041_p2 }
  0x2a   : > { %p12037_p1 = pneg %p12036_p9 }
  0x2c   : > { %p12044_p8 = pnand %p12043_p4, %p12037_p1 }
  0x2e   : > { %12047 = shalt.err (!%p12044_p8)
}
  0x2f   : > { %11308 = dma.hbm_to_vmem [thread:$0]  (!%p12351_p11), %s16374_s1, 128, %s266_s19, [#allocation6]  }
  0x30   : > { %s16376_s5 = sld [smem:[#allocation179_spill]] }
  0x36   : > { %s12048_s29 = scalar_lea.hbm %s16376_s5, 2048 }
  0x37   : > { %p12049_p9 = scmp.ne.s32.totalorder %s16376_s5, %s12048_s29  ;;  %p12055_p1 = scmp.lt.u32.totalorder %s12048_s29, %s16376_s5 }
  0x39   : > { %p12051_p12 = pnand %p12049_p9, %p12367_p13 }
  0x3b   : > { %p12052_p2 = pneg %p12051_p12 }
  0x3d   : > { %p12057_p4 = pnand %p12055_p1, %p12052_p2 }
  0x3f   : > { %12060 = shalt.err (!%p12057_p4)
}
  0x40   : > { %s12061_s19 = scalar_lea.vmem %s12355_s21, 2048  ;;  %p12069_p3 = scmp.lt.s32.totalorder %s12355_s21, %s12355_s21 }
  0x41   : > { %p12062_p6 = scmp.ne.s32.totalorder %s12355_s21, %s12061_s19  ;;  %p12070_p5 = scmp.lt.s32.totalorder %s12061_s19, %s12061_s19 }
  0x43   : > { %p12064_p8 = pnand %p12062_p6, %p12367_p13  ;;  %p12071_p7 = por %p12070_p5, %p12069_p3 }
  0x45   : > { %p12065_p0 = pneg %p12064_p8 }
  0x47   : > { %p12072_p10 = pnand %p12071_p7, %p12065_p0 }
  0x49   : > { %12075 = shalt.err (!%p12072_p10)
}
  0x4a   : > { %s15984_s25 = smov 128   ;;  %s15986_s16 = smov 8  }
  0x4b   : > { %11314 = dma.hbm_to_vmem [thread:$0]  (!%p12351_p11), %s16376_s5, 2048, %s12355_s21, [#allocation9], %s15984_s25, %s15984_s25, %s15986_s16  }
  0x4c   : > { %s12076_s18 = scalar_lea.hbm %s15972_s2, 6144 }
  0x4d   : > { %p12077_p9 = scmp.ne.s32.totalorder %s15972_s2, %s12076_s18  ;;  %p12083_p1 = scmp.lt.u32.totalorder %s12076_s18, %s15972_s2 }
  0x4f   : > { %p12079_p12 = pnand %p12077_p9, %p12367_p13 }
  0x51   : > { %p12080_p2 = pneg %p12079_p12 }
  0x53   : > { %p12085_p4 = pnand %p12083_p1, %p12080_p2 }
  0x55   : > { %12088 = shalt.err (!%p12085_p4)
}
  0x56   : > { %s12089_s26 = scalar_lea.vmem %s276_s24, 6144  ;;  %p12097_p3 = scmp.lt.s32.totalorder %s276_s24, %s276_s24 }
  0x57   : > { %p12090_p6 = scmp.ne.s32.totalorder %s276_s24, %s12089_s26  ;;  %p12098_p5 = scmp.lt.s32.totalorder %s12089_s26, %s12089_s26 }
  0x59   : > { %p12092_p8 = pnand %p12090_p6, %p12367_p13  ;;  %p12099_p7 = por %p12098_p5, %p12097_p3 }
  0x5b   : > { %p12093_p0 = pneg %p12092_p8 }
  0x5d   : > { %p12100_p10 = pnand %p12099_p7, %p12093_p0 }
  0x5f   : > { %12103 = shalt.err (!%p12100_p10)
}
  0x60   : > { %s12243_s21 = smov 384   ;;  %s12244_s27 = smov 24  }
  0x61   : > { %11311 = dma.hbm_to_vmem [thread:$0]  (!%p12351_p11), %s15972_s2, 6144, %s276_s24, [#allocation6], %s12243_s21, %s12243_s21, %s12244_s27  }
  0x62   : > { %s12245_s29 = smov [#allocation10]   ;;  %s12104_s19 = scalar_lea.hbm %s15977_s7, 2048 }
  0x63   : > { %s310_s18 = sshll.u32 %s12245_s29, 4  ;;  %p12105_p9 = scmp.ne.s32.totalorder %s15977_s7, %s12104_s19  ;;  %s311_s18 = int_to_ptr.vmem [resolvable:$true] %s310_s18 }
  0x64   : > { %p12111_p1 = scmp.lt.u32.totalorder %s12104_s19, %s15977_s7 }
  0x65   : > { %p12107_p12 = pnand %p12105_p9, %p12367_p13 }
  0x67   : > { %p12108_p2 = pneg %p12107_p12 }
  0x69   : > { %p12113_p4 = pnand %p12111_p1, %p12108_p2 }
  0x6b   : > { %12116 = shalt.err (!%p12113_p4)
}
  0x6c   : > { %s12117_s24 = scalar_lea.vmem %s311_s18, 2048  ;;  %p12125_p3 = scmp.lt.s32.totalorder %s311_s18, %s311_s18 }
  0x6d   : > { %p12118_p6 = scmp.ne.s32.totalorder %s311_s18, %s12117_s24  ;;  %p12126_p5 = scmp.lt.s32.totalorder %s12117_s24, %s12117_s24 }
  0x6f   : > { %p12120_p8 = pnand %p12118_p6, %p12367_p13  ;;  %p12127_p7 = por %p12126_p5, %p12125_p3 }
  0x71   : > { %p12121_p0 = pneg %p12120_p8 }
  0x73   : > { %p12128_p10 = pnand %p12127_p7, %p12121_p0 }
  0x75   : > { %12131 = shalt.err (!%p12128_p10)
}
  0x76   : > { %s16377_s25 = smov 8   ;;  %s16378_s21 = smov 128  }
  0x77   : > { %11317 = dma.hbm_to_vmem [thread:$0]  (!%p12351_p11), %s15977_s7, 2048, %s311_s18, [#allocation9], %s16378_s21, %s16378_s21, %s16377_s25  }
  0x78   : > { %s12450_s14 = sadd.s32 1, %s12236_s12   ;;  %s34_s22 = sadd.s32 1, %s12232_s11 }
  0x79   : > { %s31_s27 = ssub.s32 %s12236_s12, %s12450_s14  ;;  %p41_p13 = scmp.ne.s32.totalorder %s12232_s11, %s12228_s10 }
  0x7a   : > { %p32_p9 = scmp.eq.s32.totalorder %s31_s27, 0  ;;  %p42_p12 = scmp.eq.s32.totalorder %s12236_s12, 0 }
  0x7b   : > { %p16379_p2 = scmp.eq.s32.totalorder %s12323_s13, 1  ;;  %p11330_p4 = scmp.lt.s32.totalorder %s12236_s12, 2 }
  0x7c   : > { %s12466_s28 = scalar_select %p32_p9, %s12232_s11, %s34_s22  }
  0x7d   : > { %p12460_p1 = por %p16379_p2, %p41_p13  ;;  %p43_p6 = por %p42_p12, %p41_p13 }
  0x7e   : > { %s327_s29 = sand.u32 1, %s12232_s11   ;;  %s9939_s18 = sshll.u32 %s12236_s12, 12 }
  0x7f   : > { %s9793_s20 = sshll.u32 %s327_s29, 8  ;;  %s12473_s26 = scalar_lea.hbm %s15970_s0, %s9939_s18 }
  0x80   : > { %s331_s24 = scalar_lea.vmem [#allocation2], %s9793_s20  ;;  %p12477_p11 = pnand %p11330_p4, %p43_p6 }
  0x81   : > { %s338_s5 = sshll.u32 %s331_s24, 4  ;;  %s12481_s22 = scalar_lea.sflag [#allocation3], %s327_s29  ;;  %s12475_s5 = int_to_ptr.vmem [resolvable:$true] %s338_s5 }
  0x82   : > { %s12132_s27 = scalar_lea.hbm %s12473_s26, 4096  ;;  %p12134_p0 = pneg %p12477_p11 }
  0x83   : > { %p12133_p8 = scmp.ne.s32.totalorder %s12473_s26, %s12132_s27  ;;  %s12137_s23 = scalar_lea.hbm %s15970_s0, 8192 }
  0x84   : > { %p12138_p7 = scmp.lt.u32.totalorder %s12473_s26, %s15970_s0  ;;  %p12139_p10 = scmp.lt.u32.totalorder %s12137_s23, %s12132_s27 }
  0x85   : > { %p12135_p3 = pnand %p12134_p0, %p12133_p8  ;;  %p12141_p9 = scmp.lt.u32.totalorder %s12132_s27, %s12473_s26 }
  0x86   : > { %p12140_p13 = por %p12139_p10, %p12138_p7 }
  0x87   : > { %p12136_p5 = pneg %p12135_p3 }
  0x88   : > { %p12142_p12 = por %p12141_p9, %p12140_p13 }
  0x8a   : > { %p12143_p2 = pnand %p12142_p12, %p12136_p5 }
  0x8c   : > { %12146 = shalt.err (!%p12143_p2)
}
  0x8d   : > { %s12147_s29 = scalar_lea.vmem %s12475_s5, 4096  ;;  %s12246_s20 = smov [#allocation2]  }
  0x8e   : > { %p12148_p4 = scmp.ne.s32.totalorder %s12475_s5, %s12147_s29  ;;  %s12152_s18 = sshll.u32 %s12246_s20, 4  ;;  %s12153_s18 = int_to_ptr.vmem [resolvable:$false] %s12152_s18 }
  0x8f   : > { %s12154_s19 = scalar_lea.vmem %s12153_s18, 8192  ;;  %p12155_p3 = scmp.lt.s32.totalorder %s12475_s5, %s12153_s18 }
  0x90   : > { %p12150_p6 = pnand %p12148_p4, %p12134_p0  ;;  %p12156_p7 = scmp.lt.s32.totalorder %s12154_s19, %s12147_s29 }
  0x92   : > { %p12151_p8 = pneg %p12150_p6  ;;  %p12157_p10 = por %p12156_p7, %p12155_p3 }
  0x94   : > { %p12158_p13 = pnand %p12157_p10, %p12151_p8 }
  0x96   : > { %12161 = shalt.err (!%p12158_p13)
}
  0x97   : > { %11321 = dma.hbm_to_vmem [thread:$0]  (!%p12477_p11), %s12473_s26, 4096, %s12475_s5, %s12481_s22, %s16378_s21, %s16378_s21, %s16377_s25  }
  0x98   : > { %p16382_p0 = scmp.ne.s32.totalorder %s16372_s17, 0 }
  0x9a   : > { %350 = sbr.rel (%p16382_p0) target bundleno = 2261 (0x8d5), region = 56 }
  0xa1   : > { %s12515_s27 = sand.u32 1, %s12228_s10   ;;  %p16383_p5 = scmp.ne.s32.totalorder %s16369_s15, 0 }
  0xa2   : > { %s9797_s23 = sshll.u32 %s12515_s27, 8  ;;  %s353_s24 = scalar_lea.sflag [#allocation3], %s12515_s27 }
  0xa3   : > { %s12521_s16 = scalar_lea.vmem [#allocation2], %s9797_s23 }
  0xa4   : > { %12207 = dma.done.wait (%p16383_p5), %s353_s24, 4096  }
  0xa5   : > { %12209 = vsyncadd (%p16383_p5), %s353_s24, 4294963200  ;;  %p16384_p11 = scmp.eq.s32.totalorder %s12323_s13, 0 }
  0xa7   : > { %12211 = dma.done.wait (%p16384_p11), [#allocation6], 6272   ;;  %p16385_p9 = pmov %p16384_p11 }
  0xa9   : > { %12213 = vsyncadd (%p16385_p9), [#allocation6], 4294961024  ;;  %p16386_p12 = pmov %p16385_p9 }
  0xaa   : > { %p16387_p2 = pmov %p16385_p9 }
  0xab   : > { %12215 = dma.done.wait (%p16386_p12), [#allocation9], 4096  }
  0xac   : > { %12217 = vsyncadd (%p16387_p2), [#allocation9], 4294963200  ;;  %v409_v0 = vld [vmem:[%s12521_s16] sm:$0xff]  ;;  %v410_v2 = vld [vmem:[%s12521_s16 + $0x8] sm:$0xff]  ;;  %vm4172_vm0 = vcmask 64512   ;;  %s15855_s20 = scalar_lea.vmem [#allocation11], %s9797_s23 }
  0xad   : > { %v12536_v1 = vld [vmem:[#allocation5] sm:$0xff]  ;;  %v411_v5 = vld [vmem:[%s12521_s16 + $0x10] sm:$0xff]  ;;  %v412_v6 = vld [vmem:[%s12521_s16 + $0x18] sm:$0xff]  ;;  %s9940_s18 = sshll.u32 %s12323_s13, 12  ;;  %s9675_s19 = sshll.u32 %s15855_s20, 4  ;;  %s15923_s19 = int_to_ptr.vmem [resolvable:$true] %s9675_s19 }
  0xae   : > { %v12540_v3 = vadd.f32 %v12536_v1, %v409_v0  ;;  %v12543_v4 = vadd.f32 %v12536_v1, %v410_v2  ;;  %v12548_v7 = vadd.f32 %v12536_v1, %v411_v5  ;;  %v12551_v8 = vadd.f32 %v12536_v1, %v412_v6  ;;  %v413_v9 = vld [vmem:[%s12521_s16 + $0x20] sm:$0xff]  ;;  %v414_v11 = vld [vmem:[%s12521_s16 + $0x28] sm:$0xff]  ;;  %v415_v17 = vld [vmem:[%s12521_s16 + $0x30] sm:$0xff]  ;;  %s9662_s13 = scalar_lea.sflag [#allocation4], %s12515_s27  ;;  %s12162_s15 = scalar_lea.vmem %s15923_s19, 4096 }
  0xaf   : > { %v12562_v14 = vadd.f32 %v12536_v1, %v413_v9  ;;  %v12567_v16 = vadd.f32 %v12536_v1, %v414_v11  ;;  %v416_v18 = vld [vmem:[%s12521_s16 + $0x38] sm:$0xff]  ;;  %v12574_v20 = vadd.f32 %v12536_v1, %v415_v17  ;;  %v417_v23 = vld [vmem:[%s12521_s16 + $0x40] sm:$0xff]  ;;  %v418_v24 = vld [vmem:[%s12521_s16 + $0x48] sm:$0xff]  ;;  %p12163_p4 = scmp.ne.s32.totalorder %s15923_s19, %s12162_s15  ;;  %s12249_s17 = smov [#allocation11]  }
  0xb0   : > { %v474_v10 = vmul.f32 %v12540_v3, %v12540_v3  ;;  %v476_v12 = vmul.f32 %v12548_v7, %v12548_v7  ;;  %v475_v13 = vmul.f32 %v12543_v4, %v12543_v4  ;;  %v477_v15 = vmul.f32 %v12551_v8, %v12551_v8  ;;  %v419_v25 = vld [vmem:[%s12521_s16 + $0x50] sm:$0xff]  ;;  %v420_v28 = vld [vmem:[%s12521_s16 + $0x58] sm:$0xff]  ;;  %v703_v30 = vld [vmem:[#allocation7 + $0x20] sm:$0xff]  ;;  %s12166_s25 = sshll.u32 %s12249_s17, 4  ;;  %s12167_s25 = int_to_ptr.vmem [resolvable:$false] %s12166_s25 }
  0xb1   : > { %v478_v19 = vmul.f32 %v12562_v14, %v12562_v14  ;;  %v479_v21 = vmul.f32 %v12567_v16, %v12567_v16  ;;  %v12579_v22 = vadd.f32 %v12536_v1, %v416_v18  ;;  %v480_v26 = vmul.f32 %v12574_v20, %v12574_v20  ;;  %v700_v29 = vld [vmem:[#allocation7 + $0x8] sm:$0xff]  ;;  %v699_v31 = vld [vmem:[#allocation7] sm:$0xff]  ;;  %v702_v34 = vld [vmem:[#allocation7 + $0x18] sm:$0xff]  ;;  %p12164_p6 = pnand %p12163_p4, %p12460_p1  ;;  %s12168_s21 = scalar_lea.vmem %s12167_s25, 8192 }
  0xb2   : > { %506 = vadd.xlane.f32.xlu0 %v474_v10  ;;  %510 = vadd.xlane.f32.xlu1 %v476_v12  ;;  %v12587_v27 = vadd.f32 %v12536_v1, %v417_v23  ;;  %v12593_v33 = vadd.f32 %v12536_v1, %v418_v24  ;;  %v706_v35 = vld [vmem:[#allocation7 + $0x38] sm:$0xff]  ;;  %v709_v36 = vld [vmem:[#allocation7 + $0x50] sm:$0xff]  ;;  %v704_v38 = vld [vmem:[#allocation7 + $0x28] sm:$0xff]  ;;  %v11157_v40 = vpack.c.bf16 %v703_v30, %v700_v29  ;;  %p12169_p3 = scmp.lt.s32.totalorder %s15923_s19, %s12167_s25  ;;  %p12170_p7 = scmp.lt.s32.totalorder %s12168_s21, %s12162_s15 }
  0xb3   : > { %v481_v32 = vmul.f32 %v12579_v22, %v12579_v22  ;;  %v701_v37 = vld [vmem:[#allocation7 + $0x10] sm:$0xff]  ;;  %v708_v41 = vld [vmem:[#allocation7 + $0x48] sm:$0xff]  ;;  %v707_v42 = vld [vmem:[#allocation7 + $0x40] sm:$0xff]  ;;  %v12598_v45 = vadd.f32 %v12536_v1, %v419_v25  ;;  %v11159_v46 = vpack.c.bf16 %v702_v34, %v699_v31  ;;  %v11161_v47 = vpack.c.bf16 %v709_v36, %v706_v35  ;;  %p12165_p8 = pneg %p12164_p6 }
  0xb4   : > { %v705_v39 = vld [vmem:[#allocation7 + $0x30] sm:$0xff]  ;;  %v710_v43 = vld [vmem:[#allocation7 + $0x58] sm:$0xff]  ;;  %v482_v44 = vmul.f32 %v12587_v27, %v12587_v27  ;;  %v712_v48 = vld [vmem:[#allocation7 + $0x68] sm:$0xff]  ;;  %v483_v50 = vmul.f32 %v12593_v33, %v12593_v33  ;;  %v12603_v51 = vadd.f32 %v12536_v1, %v420_v28  ;;  %11158 = vmatprep.subr.bf16.mxu0 %v11157_v40  ;;  %v11189_v53 = vpack.c.bf16 %v704_v38, %v701_v37  ;;  %p12171_p10 = por %p12170_p7, %p12169_p3 }
  0xb5   : > { %v715_v49 = vld [vmem:[#allocation7 + $0x80] sm:$0xff]  ;;  %v421_v52 = vld [vmem:[%s12521_s16 + $0x60] sm:$0xff]  ;;  %11160 = vmatpush1.bf16.msra.mxu0 %v11159_v46  ;;  %v11163_v55 = vpack.c.bf16 %v708_v41, %v705_v39  ;;  %v11193_v56 = vpack.c.bf16 %v710_v43, %v707_v42  ;;  %v713_v57 = vld [vmem:[#allocation7 + $0x70] sm:$0xff]  ;;  %v484_v62 = vmul.f32 %v12598_v45, %v12598_v45 }
  0xb6   : > { %508 = vadd.xlane.f32.xlu0 %v475_v13  ;;  %512 = vadd.xlane.f32.xlu1 %v477_v15  ;;  %v422_v54 = vld [vmem:[%s12521_s16 + $0x68] sm:$0xff]  ;;  %v716_v58 = vld [vmem:[#allocation7 + $0x88] sm:$0xff]  ;;  %v11165_v59 = vpack.c.bf16 %v715_v49, %v712_v48  ;;  %v714_v61 = vld [vmem:[#allocation7 + $0x78] sm:$0xff]  ;;  %v12610_v63 = vadd.f32 %v12536_v1, %v421_v52  ;;  %v485_v5 = vmul.f32 %v12603_v51, %v12603_v51  ;;  %p12172_p13 = pnand %p12171_p10, %p12165_p8 }
  0xb7   : > { %11162 = vmatprep.subr.bf16.mxu0 %v11161_v47  ;;  %11190 = vmatprep.subr.bf16.mxu1 %v11189_v53  ;;  %v711_v60 = vld [vmem:[#allocation7 + $0x60] sm:$0xff]  ;;  %v718_v0 = vld [vmem:[#allocation7 + $0x98] sm:$0xff]  ;;  %v721_v2 = vld [vmem:[#allocation7 + $0xb0] sm:$0xff]  ;;  %v12615_v6 = vadd.f32 %v12536_v1, %v422_v54  ;;  %v11197_v10 = vpack.c.bf16 %v716_v58, %v713_v57 }
  0xb8   : > { %11192 = vmatpush3.bf16.msra.mxu1 %v11189_v53  ;;  %v423_v9 = vld [vmem:[%s12521_s16 + $0x70] sm:$0xff]  ;;  %v424_v11 = vld [vmem:[%s12521_s16 + $0x78] sm:$0xff]  ;;  %v11167_v12 = vpack.c.bf16 %v714_v61, %v711_v60  ;;  %v719_v13 = vld [vmem:[#allocation7 + $0xa0] sm:$0xff]  ;;  %v11169_v17 = vpack.c.bf16 %v721_v2, %v718_v0 }
  0xb9   : > { %11194 = vmatprep.subr.bf16.mxu1 %v11193_v56  ;;  %11164 = vmatpush1.bf16.msra.mxu0 %v11163_v55  ;;  %v722_v15 = vld [vmem:[#allocation7 + $0xb8] sm:$0xff]  ;;  %v717_v18 = vld [vmem:[#allocation7 + $0x90] sm:$0xff]  ;;  %v12622_v23 = vadd.f32 %v12536_v1, %v423_v9  ;;  %v724_v24 = vld [vmem:[#allocation7 + $0xc8] sm:$0xff]  ;;  %v12627_v28 = vadd.f32 %v12536_v1, %v424_v11 }
  0xba   : > { %514 = vadd.xlane.f32.xlu0 %v478_v19  ;;  %516 = vadd.xlane.f32.xlu1 %v479_v21  ;;  %v720_v19 = vld [vmem:[#allocation7 + $0xa8] sm:$0xff]  ;;  %v486_v21 = vmul.f32 %v12610_v63, %v12610_v63  ;;  %v727_v25 = vld [vmem:[#allocation7 + $0xe0] sm:$0xff]  ;;  %v425_v29 = vld [vmem:[%s12521_s16 + $0x80] sm:$0xff]  ;;  %v11201_v30 = vpack.c.bf16 %v722_v15, %v719_v13 }
  0xbb   : > { %11166 = vmatprep.subr.bf16.mxu0 %v11165_v59  ;;  %v426_v31 = vld [vmem:[%s12521_s16 + $0x88] sm:$0xff]  ;;  %v725_v34 = vld [vmem:[#allocation7 + $0xd0] sm:$0xff]  ;;  %v728_v35 = vld [vmem:[#allocation7 + $0xe8] sm:$0xff]  ;;  %v11173_v36 = vpack.c.bf16 %v727_v25, %v724_v24  ;;  %v488_v39 = vmul.f32 %v12622_v23, %v12622_v23  ;;  %v12634_v40 = vadd.f32 %v12536_v1, %v425_v29  ;;  %v489_v43 = vmul.f32 %v12627_v28, %v12627_v28 }
  0xbc   : > { %11196 = vmatpush3.bf16.msra.mxu1 %v11193_v56  ;;  %v723_v37 = vld [vmem:[#allocation7 + $0xc0] sm:$0xff]  ;;  %v726_v38 = vld [vmem:[#allocation7 + $0xd8] sm:$0xff]  ;;  %v733_v42 = vld [vmem:[#allocation7 + $0x110] sm:$0xff]  ;;  %v11205_v47 = vpack.c.bf16 %v728_v35, %v725_v34  ;;  %v12247_v56 = vmov 0.0  }
  0xbd   : > { %11198 = vmatprep.subr.bf16.mxu1 %v11197_v10  ;;  %11168 = vmatpush1.bf16.msra.mxu0 %v11167_v12  ;;  %v730_v41 = vld [vmem:[#allocation7 + $0xf8] sm:$0xff]  ;;  %v427_v46 = vld [vmem:[%s12521_s16 + $0x90] sm:$0xff]  ;;  %v428_v48 = vld [vmem:[%s12521_s16 + $0x98] sm:$0xff]  ;;  %v11175_v49 = vpack.c.bf16 %v726_v38, %v723_v37  ;;  %v490_v57 = vmul.f32 %v12634_v40, %v12634_v40 }
  0xbe   : > { %518 = vadd.xlane.f32.xlu0 %v480_v26  ;;  %520 = vadd.xlane.f32.xlu1 %v481_v32  ;;  %v487_v26 = vmul.f32 %v12615_v6, %v12615_v6  ;;  %v11171_v32 = vpack.c.bf16 %v720_v19, %v717_v18  ;;  %v734_v52 = vld [vmem:[#allocation7 + $0x118] sm:$0xff]  ;;  %v11177_v53 = vpack.c.bf16 %v733_v42, %v730_v41  ;;  %v729_v54 = vld [vmem:[#allocation7 + $0xf0] sm:$0xff]  ;;  %v732_v55 = vld [vmem:[#allocation7 + $0x108] sm:$0xff] }
  0xbf   : > { %11170 = vmatprep.subr.bf16.mxu0 %v11169_v17  ;;  %828 = vmatprep.mubr.f32.mxu0 %v12247_v56  ;;  %v12647_v58 = vadd.f32 %v12536_v1, %v427_v46  ;;  %v736_v59 = vld [vmem:[#allocation7 + $0x128] sm:$0xff]  ;;  %v739_v60 = vld [vmem:[#allocation7 + $0x140] sm:$0xff]  ;;  %v429_v0 = vld [vmem:[%s12521_s16 + $0xa0] sm:$0xff]  ;;  %v11179_v9 = vpack.c.bf16 %v732_v55, %v729_v54 }
  0xc0   : > { %11200 = vmatpush3.bf16.msra.mxu1 %v11197_v10  ;;  %v737_v10 = vld [vmem:[#allocation7 + $0x130] sm:$0xff]  ;;  %v740_v11 = vld [vmem:[#allocation7 + $0x148] sm:$0xff]  ;;  %v11181_v12 = vpack.c.bf16 %v739_v60, %v736_v59  ;;  %v735_v13 = vld [vmem:[#allocation7 + $0x120] sm:$0xff]  ;;  %v12659_v18 = vadd.f32 %v12536_v1, %v429_v0 }
  0xc1   : > { %11202 = vmatprep.subr.bf16.mxu1 %v11201_v30  ;;  %11172 = vmatpush1.bf16.msra.mxu0 %v11171_v32  ;;  %v738_v15 = vld [vmem:[#allocation7 + $0x138] sm:$0xff]  ;;  %v492_v17 = vmul.f32 %v12647_v58, %v12647_v58  ;;  %v11213_v29 = vpack.c.bf16 %v740_v11, %v737_v10  ;;  %v743_v32 = vld [vmem:[#allocation7 + $0x160] sm:$0xff]  ;;  %v744_v37 = vld [vmem:[#allocation7 + $0x168] sm:$0xff] }
  0xc2   : > { %522 = vadd.xlane.f32.xlu0 %v482_v44  ;;  %524 = vadd.xlane.f32.xlu1 %v483_v50  ;;  %v12639_v44 = vadd.f32 %v12536_v1, %v426_v31  ;;  %v731_v50 = vld [vmem:[#allocation7 + $0x100] sm:$0xff]  ;;  %v742_v19 = vld [vmem:[#allocation7 + $0x158] sm:$0xff]  ;;  %v11183_v31 = vpack.c.bf16 %v738_v15, %v735_v13  ;;  %v494_v38 = vmul.f32 %v12659_v18, %v12659_v18  ;;  %v435_v54 = vld [vmem:[%s12521_s16 + $0xd0] sm:$0xff] }
  0xc3   : > { %11174 = vmatprep.subr.bf16.mxu0 %v11173_v36  ;;  %v11209_v2 = vpack.c.bf16 %v734_v52, %v731_v50  ;;  %v746_v34 = vld [vmem:[#allocation7 + $0x178] sm:$0xff]  ;;  %v741_v36 = vld [vmem:[#allocation7 + $0x150] sm:$0xff]  ;;  %v12695_v59 = vadd.f32 %v12536_v1, %v435_v54 }
  0xc4   : > { %11204 = vmatpush3.bf16.msra.mxu1 %v11201_v30  ;;  %v491_v61 = vmul.f32 %v12639_v44, %v12639_v44  ;;  %v432_v30 = vld [vmem:[%s12521_s16 + $0xb8] sm:$0xff]  ;;  %v11217_v46 = vpack.c.bf16 %v746_v34, %v743_v32  ;;  %v437_v0 = vld [vmem:[%s12521_s16 + $0xe0] sm:$0xff] }
  0xc5   : > { %11206 = vmatprep.subr.bf16.mxu1 %v11205_v47  ;;  %11176 = vmatpush1.bf16.msra.mxu0 %v11175_v49  ;;  %v12676_v42 = vadd.f32 %v12536_v1, %v432_v30  ;;  %v436_v55 = vld [vmem:[%s12521_s16 + $0xd8] sm:$0xff] }
  0xc6   : > { %526 = vadd.xlane.f32.xlu0 %v484_v62  ;;  %528 = vadd.xlane.f32.xlu1 %v485_v5  ;;  %v12652_v62 = vadd.f32 %v12536_v1, %v428_v48  ;;  %v430_v5 = vld [vmem:[%s12521_s16 + $0xa8] sm:$0xff]  ;;  %v11187_v48 = vpack.c.bf16 %v744_v37, %v741_v36  ;;  %v440_v13 = vld [vmem:[%s12521_s16 + $0xf8] sm:$0xff] }
  0xc7   : > { %11178 = vmatprep.subr.bf16.mxu0 %v11177_v53  ;;  %v12664_v25 = vadd.f32 %v12536_v1, %v430_v5  ;;  %v497_v52 = vmul.f32 %v12676_v42, %v12676_v42  ;;  %v500_v5 = vmul.f32 %v12695_v59, %v12695_v59 }
  0xc8   : > { %11208 = vmatpush3.bf16.msra.mxu1 %v11205_v47  ;;  %v493_v24 = vmul.f32 %v12652_v62, %v12652_v62  ;;  %v434_v47 = vld [vmem:[%s12521_s16 + $0xc8] sm:$0xff] }
  0xc9   : > { %11210 = vmatprep.subr.bf16.mxu1 %v11209_v2  ;;  %11180 = vmatpush1.bf16.msra.mxu0 %v11179_v9  ;;  %v495_v41 = vmul.f32 %v12664_v25, %v12664_v25  ;;  %v12688_v53 = vadd.f32 %v12536_v1, %v434_v47  ;;  %v12707_v9 = vadd.f32 %v12536_v1, %v437_v0 }
  0xca   : > { %530 = vadd.xlane.f32.xlu0 %v486_v21  ;;  %532 = vadd.xlane.f32.xlu1 %v487_v26  ;;  %v745_v21 = vld [vmem:[#allocation7 + $0x170] sm:$0xff]  ;;  %v431_v26 = vld [vmem:[%s12521_s16 + $0xb0] sm:$0xff] }
  0xcb   : > { %11182 = vmatprep.subr.bf16.mxu0 %v11181_v12  ;;  %v11185_v35 = vpack.c.bf16 %v745_v21, %v742_v19  ;;  %v499_v60 = vmul.f32 %v12688_v53, %v12688_v53  ;;  %v439_v12 = vld [vmem:[%s12521_s16 + $0xf0] sm:$0xff]  ;;  %v502_v15 = vmul.f32 %v12707_v9, %v12707_v9  ;;  %v12724_v21 = vadd.f32 %v12536_v1, %v440_v13 }
  0xcc   : > { %11212 = vmatpush3.bf16.msra.mxu1 %v11209_v2  ;;  %v438_v2 = vld [vmem:[%s12521_s16 + $0xe8] sm:$0xff] }
  0xcd   : > { %11214 = vmatprep.subr.bf16.mxu1 %v11213_v29  ;;  %11184 = vmatpush1.bf16.msra.mxu0 %v11183_v31  ;;  %v12712_v11 = vadd.f32 %v12536_v1, %v438_v2 }
  0xce   : > { %534 = vadd.xlane.f32.xlu0 %v488_v39  ;;  %536 = vadd.xlane.f32.xlu1 %v489_v43  ;;  %v12671_v39 = vadd.f32 %v12536_v1, %v431_v26  ;;  %v433_v43 = vld [vmem:[%s12521_s16 + $0xc0] sm:$0xff]  ;;  %v505_v26 = vmul.f32 %v12724_v21, %v12724_v21  ;;  %s15921_s16 = scalar_lea.hbm %s15979_s9, %s9940_s18 }
  0xcf   : > { %11186 = vmatprep.subr.bf16.mxu0 %v11185_v35  ;;  %v12683_v50 = vadd.f32 %v12536_v1, %v433_v43  ;;  %v503_v19 = vmul.f32 %v12712_v11, %v12712_v11 }
  0xd0   : > { %v496_v49 = vmul.f32 %v12671_v39, %v12671_v39  ;;  %11216 = vmatpush3.bf16.msra.mxu1 %v11213_v29 }
  0xd1   : > { %11218 = vmatprep.subr.bf16.mxu1 %v11217_v46  ;;  %11188 = vmatpush1.bf16.msra.mxu0 %v11187_v48 }
  0xd2   : > { %538 = vadd.xlane.f32.xlu0 %v490_v57  ;;  %540 = vadd.xlane.f32.xlu1 %v491_v61  ;;  %v498_v57 = vmul.f32 %v12683_v50, %v12683_v50  ;;  %v12700_v61 = vadd.f32 %v12536_v1, %v436_v55 }
  0xd4   : > { %11220 = vmatpush3.bf16.msra.mxu1 %v11217_v46  ;;  %v501_v10 = vmul.f32 %v12700_v61, %v12700_v61 }
  0xd6   : > { %542 = vadd.xlane.f32.xlu0 %v492_v17  ;;  %544 = vadd.xlane.f32.xlu1 %v493_v24  ;;  %v12719_v17 = vadd.f32 %v12536_v1, %v439_v12 }
  0xd8   : > { %v504_v24 = vmul.f32 %v12719_v17, %v12719_v17 }
  0xda   : > { %546 = vadd.xlane.f32.xlu0 %v494_v38  ;;  %548 = vadd.xlane.f32.xlu1 %v495_v41 }
  0xde   : > { %550 = vadd.xlane.f32.xlu0 %v496_v49  ;;  %552 = vadd.xlane.f32.xlu1 %v497_v52 }
  0xe2   : > { %554 = vadd.xlane.f32.xlu0 %v498_v57  ;;  %556 = vadd.xlane.f32.xlu1 %v499_v60 }
  0xe6   : > { %558 = vadd.xlane.f32.xlu0 %v500_v5  ;;  %560 = vadd.xlane.f32.xlu1 %v501_v10 }
  0xea   : > { %562 = vadd.xlane.f32.xlu0 %v502_v15  ;;  %564 = vadd.xlane.f32.xlu1 %v503_v19 }
  0xee   : > { %566 = vadd.xlane.f32.xlu0 %v504_v24  ;;  %568 = vadd.xlane.f32.xlu1 %v505_v26 }
 0x13f   : > { %v507_v29 = vpop.xlane.xlu0 %506  ;;  %v511_v31 = vpop.xlane.xlu1 %510 }
 0x140   : > { %v571_v30 = vmul.f32 0.0078125, %v507_v29  ;;  %v573_v32 = vmul.f32 0.0078125, %v511_v31 }
 0x142   : > { %v603_v34 = vadd.f32 1e-08, %v571_v30  ;;  %v605_v36 = vadd.f32 1e-08, %v573_v32 }
 0x143   : > { %v509_v35 = vpop.xlane.xlu0 %508  ;;  %v513_v37 = vpop.xlane.xlu1 %512 }
 0x144   : > { %11380 = vrsqrt.f32 %v603_v34  ;;  %v572_v1 = vmul.f32 0.0078125, %v509_v35  ;;  %v574_v38 = vmul.f32 0.0078125, %v513_v37 }
 0x145   : > { %11382 = vrsqrt.f32 %v605_v36 }
 0x146   : > { %v604_v41 = vadd.f32 1e-08, %v572_v1  ;;  %v606_v43 = vadd.f32 1e-08, %v574_v38 }
 0x147   : > { %v515_v46 = vpop.xlane.xlu0 %514  ;;  %v517_v48 = vpop.xlane.xlu1 %516 }
 0x148   : > { %11384 = vrsqrt.f32 %v604_v41  ;;  %v575_v47 = vmul.f32 0.0078125, %v515_v46  ;;  %v576_v49 = vmul.f32 0.0078125, %v517_v48 }
 0x149   : > { %11386 = vrsqrt.f32 %v606_v43 }
 0x14a   : > { %v607_v52 = vadd.f32 1e-08, %v575_v47  ;;  %v608_v54 = vadd.f32 1e-08, %v576_v49 }
 0x14b   : > { %v519_v55 = vpop.xlane.xlu0 %518  ;;  %v521_v60 = vpop.xlane.xlu1 %520 }
 0x14c   : > { %11388 = vrsqrt.f32 %v607_v52  ;;  %v577_v57 = vmul.f32 0.0078125, %v519_v55  ;;  %v578_v0 = vmul.f32 0.0078125, %v521_v60 }
 0x14d   : > { %11390 = vrsqrt.f32 %v608_v54 }
 0x14e   : > { %v11381_v2 = vpop.eup %11380  ;;  %v609_v5 = vadd.f32 1e-08, %v577_v57  ;;  %v610_v12 = vadd.f32 1e-08, %v578_v0 }
 0x14f   : > { %v667_v10 = vmul.f32 %v11381_v2, %v12540_v3  ;;  %v523_v13 = vpop.xlane.xlu0 %522  ;;  %v525_v19 = vpop.xlane.xlu1 %524 }
 0x150   : > { %11392 = vrsqrt.f32 %v609_v5  ;;  %v579_v15 = vmul.f32 0.0078125, %v523_v13  ;;  %v11383_v24 = vpop.eup %11382  ;;  %v580_v26 = vmul.f32 0.0078125, %v525_v19 }
 0x151   : > { %829 = vmatmul.mubr.f32.vlgmr.msra.gmra.mrb[0].mxu0 %v667_v10  ;;  %10437 = vmatprep.mubr.f32.mxu1 %v667_v10  ;;  %11394 = vrsqrt.f32 %v610_v12  ;;  %v669_v3 = vmul.f32 %v11383_v24, %v12548_v7 }
 0x152   : > { %v11385_v29 = vpop.eup %11384  ;;  %834 = vmatprep.mubr.f32.mxu0 %v12247_v56  ;;  %v611_v30 = vadd.f32 1e-08, %v579_v15  ;;  %v612_v32 = vadd.f32 1e-08, %v580_v26 }
 0x153   : > { %v668_v31 = vmul.f32 %v11385_v29, %v12543_v4  ;;  %v527_v34 = vpop.xlane.xlu0 %526  ;;  %v11387_v35 = vpop.eup %11386 }
 0x154   : > { %11396 = vrsqrt.f32 %v611_v30  ;;  %v581_v36 = vmul.f32 0.0078125, %v527_v34  ;;  %v529_v1 = vpop.xlane.xlu1 %528  ;;  %v670_v43 = vmul.f32 %v11387_v35, %v12551_v8 }
 0x155   : > { %835 = vmatmul.mubr.f32.gmra.mrb[2].mxu0 %v668_v31  ;;  %10438 = vmatmul.mubr.f32.vlgmr.msra.gmra.mrb[0].mxu1 %v668_v31  ;;  %v582_v37 = vmul.f32 0.0078125, %v529_v1  ;;  %11398 = vrsqrt.f32 %v612_v32 }
 0x156   : > { %v11389_v38 = vpop.eup %11388  ;;  %840 = vmatprep.mubr.f32.mxu0 %v12247_v56  ;;  %10440 = vmatprep.mubr.f32.mxu1 %v669_v3  ;;  %v613_v41 = vadd.f32 1e-08, %v581_v36 }
 0x157   : > { %v614_v4 = vadd.f32 1e-08, %v582_v37  ;;  %v531_v46 = vpop.xlane.xlu0 %530  ;;  %v11391_v47 = vpop.eup %11390  ;;  %v671_v48 = vmul.f32 %v11389_v38, %v12562_v14 }
 0x158   : > { %11400 = vrsqrt.f32 %v613_v41  ;;  %v583_v7 = vmul.f32 0.0078125, %v531_v46  ;;  %v533_v49 = vpop.xlane.xlu1 %532  ;;  %v672_v57 = vmul.f32 %v11391_v47, %v12567_v16 }
 0x159   : > { %841 = vmatmul.mubr.f32.gmra.mrb[4].mxu0 %v669_v3  ;;  %10441 = vmatmul.mubr.f32.gmra.mrb[2].mxu1 %v670_v43  ;;  %v584_v52 = vmul.f32 0.0078125, %v533_v49  ;;  %11402 = vrsqrt.f32 %v614_v4 }
 0x15a   : > { %v11393_v54 = vpop.eup %11392  ;;  %846 = vmatprep.mubr.f32.mxu0 %v12247_v56  ;;  %10443 = vmatprep.mubr.f32.mxu1 %v671_v48  ;;  %v615_v55 = vadd.f32 1e-08, %v583_v7 }
 0x15b   : > { %v616_v8 = vadd.f32 1e-08, %v584_v52  ;;  %v535_v60 = vpop.xlane.xlu0 %534  ;;  %v11395_v0 = vpop.eup %11394  ;;  %v673_v2 = vmul.f32 %v11393_v54, %v12574_v20 }
 0x15c   : > { %11404 = vrsqrt.f32 %v615_v55  ;;  %v585_v14 = vmul.f32 0.0078125, %v535_v60  ;;  %v537_v5 = vpop.xlane.xlu1 %536  ;;  %v674_v15 = vmul.f32 %v11395_v0, %v12579_v22 }
 0x15d   : > { %847 = vmatmul.mubr.f32.gmra.mrb[6].mxu0 %v670_v43  ;;  %10444 = vmatmul.mubr.f32.gmra.mrb[4].mxu1 %v672_v57  ;;  %v586_v10 = vmul.f32 0.0078125, %v537_v5  ;;  %11406 = vrsqrt.f32 %v616_v8 }
 0x15e   : > { %v11397_v12 = vpop.eup %11396  ;;  %852 = vmatprep.mubr.f32.mxu0 %v12247_v56  ;;  %10446 = vmatprep.mubr.f32.mxu1 %v673_v2  ;;  %v617_v13 = vadd.f32 1e-08, %v585_v14 }
 0x15f   : > { %v618_v16 = vadd.f32 1e-08, %v586_v10  ;;  %v539_v19 = vpop.xlane.xlu0 %538  ;;  %v11399_v24 = vpop.eup %11398  ;;  %v12743_v26 = vmul.f32 %v11397_v12, %v12587_v27 }
 0x160   : > { %11408 = vrsqrt.f32 %v617_v13  ;;  %v587_v20 = vmul.f32 0.0078125, %v539_v19  ;;  %v541_v29 = vpop.xlane.xlu1 %540  ;;  %v12748_v22 = vmul.f32 %v11399_v24, %v12593_v33 }
 0x161   : > { %853 = vmatmul.mubr.f32.gmra.mrb[8].mxu0 %v671_v48  ;;  %10447 = vmatmul.mubr.f32.gmra.mrb[6].mxu1 %v674_v15  ;;  %v588_v30 = vmul.f32 0.0078125, %v541_v29  ;;  %11410 = vrsqrt.f32 %v618_v16 }
 0x162   : > { %v11401_v31 = vpop.eup %11400  ;;  %858 = vmatprep.mubr.f32.mxu0 %v12247_v56  ;;  %10449 = vmatprep.mubr.f32.mxu1 %v12743_v26  ;;  %v619_v32 = vadd.f32 1e-08, %v587_v20 }
 0x163   : > { %v620_v34 = vadd.f32 1e-08, %v588_v30  ;;  %v543_v35 = vpop.xlane.xlu0 %542  ;;  %v11403_v27 = vpop.eup %11402  ;;  %v12751_v3 = vmul.f32 %v11401_v31, %v12598_v45 }
 0x164   : > { %11412 = vrsqrt.f32 %v619_v32  ;;  %v589_v36 = vmul.f32 0.0078125, %v543_v35  ;;  %v545_v1 = vpop.xlane.xlu1 %544  ;;  %v12757_v33 = vmul.f32 %v11403_v27, %v12603_v51 }
 0x165   : > { %859 = vmatmul.mubr.f32.gmra.mrb[10].mxu0 %v672_v57  ;;  %v590_v37 = vmul.f32 0.0078125, %v545_v1  ;;  %10450 = vmatmul.mubr.f32.gmra.mrb[8].mxu1 %v12748_v22  ;;  %11414 = vrsqrt.f32 %v620_v34 }
 0x166   : > { %v11405_v38 = vpop.eup %11404  ;;  %864 = vmatprep.mubr.f32.mxu0 %v12247_v56  ;;  %v621_v41 = vadd.f32 1e-08, %v589_v36  ;;  %10452 = vmatprep.mubr.f32.mxu1 %v12751_v3 }
 0x167   : > { %v622_v43 = vadd.f32 1e-08, %v590_v37  ;;  %v547_v45 = vpop.xlane.xlu0 %546  ;;  %v11407_v4 = vpop.eup %11406  ;;  %v12760_v46 = vmul.f32 %v11405_v38, %v12610_v63 }
 0x168   : > { %11416 = vrsqrt.f32 %v621_v41  ;;  %v591_v47 = vmul.f32 0.0078125, %v547_v45  ;;  %v549_v48 = vpop.xlane.xlu1 %548  ;;  %v12766_v51 = vmul.f32 %v11407_v4, %v12615_v6 }
 0x169   : > { %865 = vmatmul.mubr.f32.gmra.mrb[12].mxu0 %v673_v2  ;;  %v592_v7 = vmul.f32 0.0078125, %v549_v48  ;;  %10453 = vmatmul.mubr.f32.gmra.mrb[10].mxu1 %v12757_v33  ;;  %11418 = vrsqrt.f32 %v622_v43 }
 0x16a   : > { %v11409_v49 = vpop.eup %11408  ;;  %870 = vmatprep.mubr.f32.mxu0 %v12247_v56  ;;  %v623_v52 = vadd.f32 1e-08, %v591_v47  ;;  %10455 = vmatprep.mubr.f32.mxu1 %v12760_v46 }
 0x16b   : > { %v624_v54 = vadd.f32 1e-08, %v592_v7  ;;  %v551_v63 = vpop.xlane.xlu0 %550  ;;  %v11411_v55 = vpop.eup %11410  ;;  %v12769_v57 = vmul.f32 %v11409_v49, %v12622_v23 }
 0x16c   : > { %11420 = vrsqrt.f32 %v623_v52  ;;  %v593_v8 = vmul.f32 0.0078125, %v551_v63  ;;  %v553_v60 = vpop.xlane.xlu1 %552  ;;  %v12775_v6 = vmul.f32 %v11411_v55, %v12627_v28 }
 0x16d   : > { %871 = vmatmul.mubr.f32.gmra.mrb[14].mxu0 %v674_v15  ;;  %v594_v0 = vmul.f32 0.0078125, %v553_v60  ;;  %10456 = vmatmul.mubr.f32.gmra.mrb[12].mxu1 %v12766_v51  ;;  %11422 = vrsqrt.f32 %v624_v54 }
 0x16e   : > { %v11413_v2 = vpop.eup %11412  ;;  %876 = vmatprep.mubr.f32.mxu0 %v12247_v56  ;;  %v625_v14 = vadd.f32 1e-08, %v593_v8  ;;  %10458 = vmatprep.mubr.f32.mxu1 %v12769_v57 }
 0x16f   : > { %v626_v5 = vadd.f32 1e-08, %v594_v0  ;;  %v555_v23 = vpop.xlane.xlu0 %554  ;;  %v11415_v10 = vpop.eup %11414  ;;  %v12778_v12 = vmul.f32 %v11413_v2, %v12634_v40 }
 0x170   : > { %11424 = vrsqrt.f32 %v625_v14  ;;  %v595_v13 = vmul.f32 0.0078125, %v555_v23  ;;  %v557_v15 = vpop.xlane.xlu1 %556  ;;  %v12785_v24 = vmul.f32 %v11415_v10, %v12639_v44  ;;  %v9803_v14 = vld.sshfl [vmem:[%s15974_s4] sm:$0x33 pattern:$0x75316420] }
 0x171   : > { %877 = vmatmul.mubr.f32.gmra.mrb[16].mxu0 %v12743_v26  ;;  %v596_v16 = vmul.f32 0.0078125, %v557_v15  ;;  %10459 = vmatmul.mubr.f32.gmra.mrb[14].mxu1 %v12775_v6  ;;  %11426 = vrsqrt.f32 %v626_v5  ;;  %v747_v23 = vld [vmem:[%s15973_s3] sm:$0x7]  ;;  %v1287_v10 = vcombine.high %v9803_v14, %v9803_v14 }
 0x172   : > { %v11417_v19 = vpop.eup %11416  ;;  %882 = vmatprep.mubr.f32.mxu0 %v12247_v56  ;;  %v627_v28 = vadd.f32 1e-08, %v595_v13  ;;  %10461 = vmatprep.mubr.f32.mxu1 %v12778_v12 }
 0x173   : > { %v628_v40 = vadd.f32 1e-08, %v596_v16  ;;  %v559_v20 = vpop.xlane.xlu0 %558  ;;  %v11419_v29 = vpop.eup %11418  ;;  %v12788_v30 = vmul.f32 %v11417_v19, %v12647_v58 }
 0x174   : > { %11428 = vrsqrt.f32 %v627_v28  ;;  %v597_v26 = vmul.f32 0.0078125, %v559_v20  ;;  %v561_v31 = vpop.xlane.xlu1 %560  ;;  %v12795_v35 = vmul.f32 %v11419_v29, %v12652_v62 }
 0x175   : > { %883 = vmatmul.mubr.f32.gmra.mrb[18].mxu0 %v12748_v22  ;;  %v598_v32 = vmul.f32 0.0078125, %v561_v31  ;;  %10462 = vmatmul.mubr.f32.gmra.mrb[16].mxu1 %v12785_v24  ;;  %11430 = vrsqrt.f32 %v628_v40 }
 0x176   : > { %v11421_v34 = vpop.eup %11420  ;;  %888 = vmatprep.mubr.f32.mxu0 %v12247_v56  ;;  %v629_v44 = vadd.f32 1e-08, %v597_v26  ;;  %10464 = vmatprep.mubr.f32.mxu1 %v12788_v30 }
 0x177   : > { %v630_v58 = vadd.f32 1e-08, %v598_v32  ;;  %v563_v27 = vpop.xlane.xlu0 %562  ;;  %v11423_v36 = vpop.eup %11422  ;;  %v12798_v1 = vmul.f32 %v11421_v34, %v12659_v18 }
 0x178   : > { %11432 = vrsqrt.f32 %v629_v44  ;;  %v599_v22 = vmul.f32 0.0078125, %v563_v27  ;;  %v565_v37 = vpop.xlane.xlu1 %564  ;;  %v688_v43 = vmul.f32 %v11423_v36, %v12664_v25 }
 0x179   : > { %889 = vmatmul.mubr.f32.gmra.mrb[20].mxu0 %v12751_v3  ;;  %v600_v38 = vmul.f32 0.0078125, %v565_v37  ;;  %10465 = vmatmul.mubr.f32.gmra.mrb[18].mxu1 %v12795_v35  ;;  %11434 = vrsqrt.f32 %v630_v58 }
 0x17a   : > { %v11425_v41 = vpop.eup %11424  ;;  %894 = vmatprep.mubr.f32.mxu0 %v12247_v56  ;;  %v631_v62 = vadd.f32 1e-08, %v599_v22  ;;  %10467 = vmatprep.mubr.f32.mxu1 %v12798_v1 }
 0x17b   : > { %v632_v45 = vadd.f32 1e-08, %v600_v38  ;;  %v567_v18 = vpop.xlane.xlu0 %566  ;;  %v11427_v4 = vpop.eup %11426  ;;  %v689_v47 = vmul.f32 %v11425_v41, %v12671_v39 }
 0x17c   : > { %11436 = vrsqrt.f32 %v631_v62  ;;  %v601_v48 = vmul.f32 0.0078125, %v567_v18  ;;  %v569_v3 = vpop.xlane.xlu1 %568  ;;  %v690_v25 = vmul.f32 %v11427_v4, %v12676_v42 }
 0x17d   : > { %895 = vmatmul.mubr.f32.gmra.mrb[22].mxu0 %v12757_v33  ;;  %v602_v7 = vmul.f32 0.0078125, %v569_v3  ;;  %10468 = vmatmul.mubr.f32.gmra.mrb[20].mxu1 %v688_v43  ;;  %11438 = vrsqrt.f32 %v632_v45 }
 0x17e   : > { %v11429_v49 = vpop.eup %11428  ;;  %900 = vmatprep.mubr.f32.mxu0 %v12247_v56  ;;  %v633_v52 = vadd.f32 1e-08, %v601_v48  ;;  %10470 = vmatprep.mubr.f32.mxu1 %v689_v47 }
 0x17f   : > { %v634_v54 = vadd.f32 1e-08, %v602_v7  ;;  %v11431_v63 = vpop.eup %11430  ;;  %v691_v55 = vmul.f32 %v11429_v49, %v12683_v50 }
 0x180   : > { %11440 = vrsqrt.f32 %v633_v52  ;;  %v692_v33 = vmul.f32 %v11431_v63, %v12688_v53 }
 0x181   : > { %901 = vmatmul.mubr.f32.gmra.mrb[24].mxu0 %v12760_v46  ;;  %10471 = vmatmul.mubr.f32.gmra.mrb[22].mxu1 %v690_v25  ;;  %11442 = vrsqrt.f32 %v634_v54 }
 0x182   : > { %v11433_v39 = vpop.eup %11432  ;;  %906 = vmatprep.mubr.f32.mxu0 %v12247_v56  ;;  %10473 = vmatprep.mubr.f32.mxu1 %v691_v55 }
 0x183   : > { %v11435_v8 = vpop.eup %11434  ;;  %v693_v60 = vmul.f32 %v11433_v39, %v12695_v59 }
 0x184   : > { %v694_v50 = vmul.f32 %v11435_v8, %v12700_v61 }
 0x185   : > { %907 = vmatmul.mubr.f32.gmra.mrb[26].mxu0 %v12766_v51  ;;  %10474 = vmatmul.mubr.f32.gmra.mrb[24].mxu1 %v692_v33 }
 0x186   : > { %v11437_v42 = vpop.eup %11436  ;;  %912 = vmatprep.mubr.f32.mxu0 %v12247_v56  ;;  %10476 = vmatprep.mubr.f32.mxu1 %v693_v60 }
 0x187   : > { %v11439_v46 = vpop.eup %11438  ;;  %v695_v0 = vmul.f32 %v11437_v42, %v12707_v9  ;;  %v749_v9 = vlaneseq }
 0x188   : > { %v696_v53 = vmul.f32 %v11439_v46, %v12712_v11  ;;  %v12248_v11 = vmov 1966171168  }
 0x189   : > { %913 = vmatmul.mubr.f32.gmra.mrb[28].mxu0 %v12769_v57  ;;  %10477 = vmatmul.mubr.f32.gmra.mrb[26].mxu1 %v694_v50 }
 0x18a   : > { %v11441_v2 = vpop.eup %11440  ;;  %918 = vmatprep.mubr.f32.mxu0 %v12247_v56  ;;  %10479 = vmatprep.mubr.f32.mxu1 %v695_v0 }
 0x18b   : > { %v11443_v59 = vpop.eup %11442  ;;  %v697_v51 = vmul.f32 %v11441_v2, %v12719_v17  ;;  %v1289_v17 = vunpack.c.l.s4 %v12248_v11 }
 0x18c   : > { %v698_v61 = vmul.f32 %v11443_v59, %v12724_v21  ;;  %v750_v21 = vshrl.u32 %v749_v9, 7 }
 0x18d   : > { %919 = vmatmul.mubr.f32.gmra.mrb[30].mxu0 %v12775_v6  ;;  %10480 = vmatmul.mubr.f32.gmra.mrb[28].mxu1 %v696_v53  ;;  %v1290_v57 = vunpack.c.0.s8 %v1289_v17 }
 0x18e   : > { %924 = vmatprep.mubr.f32.mxu0 %v12247_v56  ;;  %10482 = vmatprep.mubr.f32.mxu1 %v697_v51  ;;  %v751_v5 = vsub.s32 0, %v750_v21  ;;  %v759_v41 = vsub.s32 2, %v750_v21 }
 0x18f   : > { %v1293_v6 = vsub.s32 %v1290_v57, %v750_v21 }
 0x190   : > { %v12881_v7 = vrot.slane %v747_v23, %v759_v41 }
 0x191   : > { %925 = vmatmul.mubr.f32.gmra.mrb[32].mxu0 %v12778_v12  ;;  %10483 = vmatmul.mubr.f32.gmra.mrb[30].mxu1 %v698_v61  ;;  %v755_v12 = vsub.s32 1, %v750_v21  ;;  %v1294_v13 = vrot.slane %v9803_v14, %v1293_v6  ;;  %v1301_v15 = vrot.slane %v1287_v10, %v1293_v6 }
 0x192   : > { %930 = vmatprep.mubr.f32.mxu0 %v12247_v56 }
 0x193   : > { %v12853_v16 = vrot.slane %v747_v23, %v755_v12  ;;  %v1302_v19 = vcombine.high %v1294_v13, %v1294_v13  ;;  %v12856_v40 = vrot.slane %v1301_v15, %v751_v5  ;;  %v12858_v29 = vrot.slane %v1294_v13, %v751_v5 }
 0x194   : > { %v1303_v26 = vcombine.high %v1301_v15, %v1301_v15 }
 0x195   : > { %931 = vmatmul.mubr.f32.gmra.mrb[34].mxu0 %v12785_v24  ;;  %16388 = vst [vmem:[#allocation17_spill] sm:$0xff] %v12856_v40  ;;  %16389 = vst [vmem:[#allocation18_spill] sm:$0xff] %v12858_v29  ;;  %v12861_v32 = vrot.slane %v1302_v19, %v751_v5 }
 0x196   : > { %936 = vmatprep.mubr.f32.mxu0 %v12247_v56  ;;  %v12870_v22 = vrot.slane %v1303_v26, %v751_v5 }
 0x197   : > { %16390 = vst [vmem:[#allocation19_spill] sm:$0xff] %v12861_v32 }
 0x198   : > { %16391 = vst [vmem:[#allocation20_spill] sm:$0xff] %v12870_v22 }
 0x199   : > { %937 = vmatmul.mubr.f32.gmra.mrb[36].mxu0 %v12788_v30 }
 0x19a   : > { %942 = vmatprep.mubr.f32.mxu0 %v12247_v56 }
 0x19d   : > { %943 = vmatmul.mubr.f32.gmra.mrb[38].mxu0 %v12795_v35 }
 0x19e   : > { %948 = vmatprep.mubr.f32.mxu0 %v12247_v56 }
 0x1a1   : > { %949 = vmatmul.mubr.f32.gmra.mrb[40].mxu0 %v12798_v1 }
 0x1a2   : > { %954 = vmatprep.mubr.f32.mxu0 %v12247_v56 }
 0x1a5   : > { %955 = vmatmul.mubr.f32.gmra.mrb[42].mxu0 %v688_v43 }
 0x1a6   : > { %960 = vmatprep.mubr.f32.mxu0 %v12247_v56 }
 0x1a9   : > { %961 = vmatmul.mubr.f32.gmra.mrb[44].mxu0 %v689_v47 }
 0x1aa   : > { %966 = vmatprep.mubr.f32.mxu0 %v12247_v56 }
 0x1ad   : > { %967 = vmatmul.mubr.f32.gmra.mrb[46].mxu0 %v690_v25 }
 0x1ae   : > { %972 = vmatprep.mubr.f32.mxu0 %v12247_v56 }
 0x1b1   : > { %973 = vmatmul.mubr.f32.gmra.mrb[48].mxu0 %v691_v55 }
 0x1b2   : > { %978 = vmatprep.mubr.f32.mxu0 %v12247_v56 }
 0x1b5   : > { %979 = vmatmul.mubr.f32.gmra.mrb[50].mxu0 %v692_v33 }
 0x1b6   : > { %984 = vmatprep.mubr.f32.mxu0 %v12247_v56 }
 0x1b9   : > { %985 = vmatmul.mubr.f32.gmra.mrb[52].mxu0 %v693_v60 }
 0x1ba   : > { %990 = vmatprep.mubr.f32.mxu0 %v12247_v56 }
 0x1bd   : > { %991 = vmatmul.mubr.f32.gmra.mrb[54].mxu0 %v694_v50 }
 0x1be   : > { %996 = vmatprep.mubr.f32.mxu0 %v12247_v56 }
 0x1c1   : > { %997 = vmatmul.mubr.f32.gmra.mrb[56].mxu0 %v695_v0 }
 0x1c2   : > { %1002 = vmatprep.mubr.f32.mxu0 %v12247_v56 }
 0x1c5   : > { %1003 = vmatmul.mubr.f32.gmra.mrb[58].mxu0 %v696_v53 }
 0x1c6   : > { %1008 = vmatprep.mubr.f32.mxu0 %v12247_v56 }
 0x1c9   : > { %1009 = vmatmul.mubr.f32.gmra.mrb[60].mxu0 %v697_v51 }
 0x1ca   : > { %1014 = vmatprep.mubr.f32.mxu0 %v12247_v56  ;;  %v12851_v56 = vrot.slane %v747_v23, %v751_v5 }
 0x1cd   : > { %1015 = vmatmul.mubr.f32.gmra.mrb[62].mxu0 %v698_v61 }
 0x224   : > { %v830_v28 = vpop.f32.mrb[0].mxu0 }
 0x225   : > { %v831_v24 = vadd.f32 %v830_v28, %v12851_v56  ;;  %v832_v20 = vpop.f32.mrb[1].mxu0 }
 0x226   : > { %v833_v30 = vadd.f32 %v832_v20, %v12853_v16 }
 0x227   : > { %v1246_v31 = vmul.f32 0.17677669, %v831_v24 }
 0x228   : > { %v836_v34 = vpop.f32.mrb[2].mxu0  ;;  %v12863_v44 = vpop.f32.mrb[0].mxu1  ;;  %10485 = vmatprep.subr.mxu1 %v833_v30 }
 0x229   : > { %v1325_v35 = vmul.f32 %v12856_v40, %v1246_v31  ;;  %v837_v58 = vadd.f32 %v836_v34, %v12851_v56  ;;  %v838_v27 = vpop.f32.mrb[3].mxu0  ;;  %v12867_v36 = vpop.f32.mrb[1].mxu1  ;;  %10486 = vmatpush3.xpose.msra.mxu1 %v833_v30  ;;  %v1324_v1 = vmul.f32 %v12858_v29, %v1246_v31  ;;  %v1326_v62 = vmul.f32 %v12861_v32, %v1246_v31 }
 0x22a   : > { %v839_v37 = vadd.f32 %v838_v27, %v12853_v16  ;;  %v1327_v48 = vmul.f32 %v12870_v22, %v1246_v31 }
 0x22b   : > { %v1247_v38 = vmul.f32 0.17677669, %v837_v58  ;;  %10487 = vmatprep.mubr.f32.mxu1 %v1324_v1 }
 0x22c   : > { %v842_v43 = vpop.f32.mrb[4].mxu0  ;;  %10488 = vmatmul.mubr.f32.vlgmr.msra.gmra.mrb[32].mxu1 %v1325_v35  ;;  %10493 = vmatprep.subr.mxu1 %v839_v37  ;;  %v12874_v45 = vpop.f32.mrb[2].mxu1 }
 0x22d   : > { %v844_v18 = vpop.f32.mrb[5].mxu0  ;;  %10490 = vmatprep.mubr.f32.mxu1 %v1326_v62  ;;  %10494 = vmatpush3.xpose.msra.mxu1 %v839_v37  ;;  %v12876_v4 = vpop.f32.mrb[3].mxu1  ;;  %v1328_v3 = vmul.f32 %v12858_v29, %v1247_v38  ;;  %v843_v49 = vadd.f32 %v842_v43, %v12851_v56  ;;  %v1329_v52 = vmul.f32 %v12856_v40, %v1247_v38 }
 0x22e   : > { %v845_v47 = vadd.f32 %v844_v18, %v12853_v16  ;;  %v1330_v42 = vmul.f32 %v12861_v32, %v1247_v38  ;;  %v1331_v59 = vmul.f32 %v12870_v22, %v1247_v38 }
 0x22f   : > { %v1248_v60 = vmul.f32 0.17677669, %v843_v49 }
 0x230   : > { %v848_v25 = vpop.f32.mrb[6].mxu0  ;;  %10491 = vmatmul.mubr.f32.gmra.mrb[34].mxu1 %v1327_v48  ;;  %10501 = vmatprep.subr.mxu1 %v845_v47  ;;  %v10445_v54 = vpop.f32.mrb[4].mxu1 }
 0x231   : > { %v850_v63 = vpop.f32.mrb[7].mxu0  ;;  %10495 = vmatprep.mubr.f32.mxu1 %v1328_v3  ;;  %v12886_v55 = vadd.f32 %v10445_v54, %v12881_v7  ;;  %v1107_v39 = vpop.f32.mrb[5].mxu1  ;;  %v849_v61 = vadd.f32 %v848_v25, %v12851_v56  ;;  %v1332_v9 = vmul.f32 %v12858_v29, %v1248_v60  ;;  %v1333_v14 = vmul.f32 %v12856_v40, %v1248_v60 }
 0x232   : > { %v851_v33 = vadd.f32 %v850_v63, %v12853_v16  ;;  %v12890_v8 = vadd.f32 %v1107_v39, %v12881_v7  ;;  %v1334_v10 = vmul.f32 %v12861_v32, %v1248_v60  ;;  %v1335_v24 = vmul.f32 %v12870_v22, %v1248_v60 }
 0x233   : > { %16392 = vst [vmem:[#allocation21_spill] sm:$0xff] %v12886_v55  ;;  %v1249_v23 = vmul.f32 0.17677669, %v849_v61 }
 0x234   : > { %16393 = vst [vmem:[#allocation22_spill] sm:$0xff] %v12890_v8  ;;  %v854_v50 = vpop.f32.mrb[8].mxu0  ;;  %10496 = vmatmul.mubr.f32.vlgmr.msra.gmra.mrb[36].mxu1 %v1329_v52  ;;  %v10448_v46 = vpop.f32.mrb[6].mxu1 }
 0x235   : > { %10502 = vmatpush3.xpose.msra.mxu1 %v845_v47  ;;  %v856_v0 = vpop.f32.mrb[9].mxu0  ;;  %10498 = vmatprep.mubr.f32.mxu1 %v1330_v42  ;;  %v12894_v2 = vadd.f32 %v10448_v46, %v12881_v7  ;;  %v1117_v53 = vpop.f32.mrb[7].mxu1  ;;  %v855_v30 = vadd.f32 %v854_v50, %v12851_v56  ;;  %v1336_v26 = vmul.f32 %v12858_v29, %v1249_v23 }
 0x236   : > { %10509 = vmatprep.subr.mxu1 %v851_v33  ;;  %v12898_v51 = vadd.f32 %v1117_v53, %v12881_v7  ;;  %v857_v12 = vadd.f32 %v856_v0, %v12853_v16  ;;  %v1337_v1 = vmul.f32 %v12856_v40, %v1249_v23  ;;  %v1338_v62 = vmul.f32 %v12861_v32, %v1249_v23 }
 0x237   : > { %16394 = vst [vmem:[#allocation23_spill] sm:$0xff] %v12894_v2  ;;  %v1250_v41 = vmul.f32 0.17677669, %v855_v30  ;;  %v1339_v25 = vmul.f32 %v12870_v22, %v1249_v23 }
 0x238   : > { %16395 = vst [vmem:[#allocation24_spill] sm:$0xff] %v12898_v51  ;;  %v860_v11 = vpop.f32.mrb[10].mxu0  ;;  %10499 = vmatmul.mubr.f32.gmra.mrb[38].mxu1 %v1331_v59  ;;  %v10451_v17 = vpop.f32.mrb[8].mxu1 }
 0x239   : > { %v862_v21 = vpop.f32.mrb[11].mxu0  ;;  %10503 = vmatprep.mubr.f32.mxu1 %v1332_v9  ;;  %v1127_v57 = vpop.f32.mrb[9].mxu1  ;;  %v12904_v6 = vadd.f32 %v10451_v17, %v12881_v7  ;;  %v861_v63 = vadd.f32 %v860_v11, %v12851_v56  ;;  %v1341_v61 = vmul.f32 %v12856_v40, %v1250_v41 }
 0x23a   : > { %v12907_v5 = vadd.f32 %v1127_v57, %v12881_v7  ;;  %v863_v43 = vadd.f32 %v862_v21, %v12853_v16  ;;  %v1342_v21 = vmul.f32 %v12861_v32, %v1250_v41 }
 0x23b   : > { %16396 = vst [vmem:[#allocation25_spill] sm:$0xff] %v12904_v6  ;;  %v1251_v17 = vmul.f32 0.17677669, %v861_v63 }
 0x23c   : > { %16397 = vst [vmem:[#allocation26_spill] sm:$0xff] %v12907_v5  ;;  %v12911_v13 = vpop.f32.mrb[12].mxu0  ;;  %10504 = vmatmul.mubr.f32.vlgmr.msra.gmra.mrb[40].mxu1 %v1333_v14  ;;  %v10454_v15 = vpop.f32.mrb[10].mxu1 }
 0x23d   : > { %10510 = vmatpush3.xpose.msra.mxu1 %v851_v33  ;;  %v868_v19 = vpop.f32.mrb[13].mxu0  ;;  %10506 = vmatprep.mubr.f32.mxu1 %v1334_v10  ;;  %v1137_v28 = vpop.f32.mrb[11].mxu1  ;;  %v12915_v20 = vadd.f32 %v10454_v15, %v12881_v7  ;;  %v1340_v33 = vmul.f32 %v12858_v29, %v1250_v41  ;;  %v867_v30 = vadd.f32 %v12911_v13, %v12851_v56 }
 0x23e   : > { %10517 = vmatprep.subr.mxu1 %v857_v12  ;;  %v12920_v31 = vadd.f32 %v1137_v28, %v12881_v7  ;;  %v869_v14 = vadd.f32 %v868_v19, %v12853_v16  ;;  %v1343_v19 = vmul.f32 %v12870_v22, %v1250_v41 }
 0x23f   : > { %16398 = vst [vmem:[#allocation27_spill] sm:$0xff] %v12915_v20 }
 0x240   : > { %16399 = vst [vmem:[#allocation28_spill] sm:$0xff] %v12920_v31  ;;  %v12922_v34 = vpop.f32.mrb[14].mxu0  ;;  %10507 = vmatmul.mubr.f32.gmra.mrb[42].mxu1 %v1335_v24  ;;  %v10457_v35 = vpop.f32.mrb[12].mxu1 }
 0x241   : > { %v12924_v58 = vpop.f32.mrb[15].mxu0  ;;  %10511 = vmatprep.mubr.f32.mxu1 %v1336_v26  ;;  %v1147_v27 = vpop.f32.mrb[13].mxu1  ;;  %v12928_v37 = vadd.f32 %v10457_v35, %v12881_v7 }
 0x242   : > { %v12931_v38 = vadd.f32 %v1147_v27, %v12881_v7  ;;  %v1344_v27 = vmul.f32 %v12858_v29, %v1251_v17 }
 0x243   : > { %16400 = vst [vmem:[#allocation29_spill] sm:$0xff] %v12928_v37 }
 0x244   : > { %16401 = vst [vmem:[#allocation30_spill] sm:$0xff] %v12931_v38  ;;  %v878_v18 = vpop.f32.mrb[16].mxu0  ;;  %10512 = vmatmul.mubr.f32.vlgmr.msra.gmra.mrb[44].mxu1 %v1337_v1  ;;  %v10460_v47 = vpop.f32.mrb[14].mxu1 }
 0x245   : > { %v879_v48 = vadd.f32 %v878_v18, %v12851_v56  ;;  %10518 = vmatpush3.xpose.msra.mxu1 %v857_v12  ;;  %v880_v3 = vpop.f32.mrb[17].mxu0  ;;  %10514 = vmatprep.mubr.f32.mxu1 %v1338_v62  ;;  %v1157_v49 = vpop.f32.mrb[15].mxu1  ;;  %v12939_v54 = vadd.f32 %v10460_v47, %v12881_v7 }
 0x246   : > { %v881_v52 = vadd.f32 %v880_v3, %v12853_v16  ;;  %10525 = vmatprep.subr.mxu1 %v863_v43  ;;  %v12944_v60 = vadd.f32 %v1157_v49, %v12881_v7 }
 0x247   : > { %16402 = vst [vmem:[#allocation31_spill] sm:$0xff] %v12939_v54  ;;  %v1254_v39 = vmul.f32 0.17677669, %v879_v48  ;;  %v1345_v48 = vmul.f32 %v12856_v40, %v1251_v17 }
 0x248   : > { %16403 = vst [vmem:[#allocation32_spill] sm:$0xff] %v12944_v60  ;;  %10515 = vmatmul.mubr.f32.gmra.mrb[46].mxu1 %v1339_v25  ;;  %10549 = vmatprep.subr.mxu0 %v881_v52  ;;  %v12946_v42 = vpop.f32.mrb[18].mxu0  ;;  %v10463_v50 = vpop.f32.mrb[16].mxu1  ;;  %v1346_v25 = vmul.f32 %v12861_v32, %v1251_v17 }
 0x249   : > { %v1357_v46 = vmul.f32 %v12856_v40, %v1254_v39  ;;  %10519 = vmatprep.mubr.f32.mxu1 %v1340_v33  ;;  %10550 = vmatpush3.xpose.msra.mxu0 %v881_v52  ;;  %v1356_v0 = vmul.f32 %v12858_v29, %v1254_v39  ;;  %v12950_v53 = vpop.f32.mrb[19].mxu0  ;;  %v1167_v59 = vpop.f32.mrb[17].mxu1  ;;  %v1358_v9 = vmul.f32 %v12861_v32, %v1254_v39  ;;  %v1252_v52 = vmul.f32 0.17677669, %v867_v30 }
 0x24a   : > { %v12955_v11 = vadd.f32 %v10463_v50, %v12881_v7  ;;  %v12959_v57 = vadd.f32 %v1167_v59, %v12881_v7  ;;  %v1359_v10 = vmul.f32 %v12870_v22, %v1254_v39  ;;  %v875_v33 = vadd.f32 %v12924_v58, %v12853_v16 }
 0x24b   : > { %10551 = vmatprep.mubr.f32.mxu0 %v1356_v0 }
 0x24c   : > { %16404 = vst [vmem:[#allocation33_spill] sm:$0xff] %v12955_v11  ;;  %16405 = vst [vmem:[#allocation34_spill] sm:$0xff] %v12959_v57  ;;  %10520 = vmatmul.mubr.f32.vlgmr.msra.gmra.mrb[48].mxu1 %v1341_v61  ;;  %10552 = vmatmul.mubr.f32.vlgmr.msra.gmra.mrb[64].mxu0 %v1357_v46  ;;  %v890_v23 = vpop.f32.mrb[20].mxu0  ;;  %v10466_v12 = vpop.f32.mrb[18].mxu1  ;;  %v1347_v61 = vmul.f32 %v12870_v22, %v1251_v17 }
 0x24d   : > { %10526 = vmatpush3.xpose.msra.mxu1 %v863_v43  ;;  %v891_v15 = vadd.f32 %v890_v23, %v12851_v56  ;;  %10522 = vmatprep.mubr.f32.mxu1 %v1342_v21  ;;  %v892_v28 = vpop.f32.mrb[21].mxu0  ;;  %v1177_v24 = vpop.f32.mrb[19].mxu1  ;;  %v12970_v1 = vadd.f32 %v10466_v12, %v12881_v7  ;;  %v873_v21 = vadd.f32 %v12922_v34, %v12851_v56 }
 0x24e   : > { %10533 = vmatprep.subr.mxu1 %v869_v14  ;;  %10554 = vmatprep.mubr.f32.mxu0 %v1358_v9  ;;  %v893_v26 = vadd.f32 %v892_v28, %v12853_v16  ;;  %v12973_v62 = vadd.f32 %v1177_v24, %v12881_v7 }
 0x24f   : > { %v1256_v35 = vmul.f32 0.17677669, %v891_v15  ;;  %16406 = vst [vmem:[#allocation35_spill] sm:$0xff] %v12970_v1 }
 0x250   : > { %16407 = vst [vmem:[#allocation36_spill] sm:$0xff] %v12973_v62  ;;  %10523 = vmatmul.mubr.f32.gmra.mrb[50].mxu1 %v1343_v19  ;;  %10555 = vmatmul.mubr.f32.gmra.mrb[66].mxu0 %v1359_v10  ;;  %v12975_v43 = vpop.f32.mrb[22].mxu0  ;;  %v10469_v13 = vpop.f32.mrb[20].mxu1 }
 0x251   : > { %10527 = vmatprep.mubr.f32.mxu1 %v1344_v27  ;;  %10565 = vmatprep.subr.mxu0 %v893_v26  ;;  %v12977_v18 = vpop.f32.mrb[23].mxu0  ;;  %v1364_v41 = vmul.f32 %v12858_v29, %v1256_v35  ;;  %v1187_v47 = vpop.f32.mrb[21].mxu1  ;;  %v1365_v3 = vmul.f32 %v12856_v40, %v1256_v35  ;;  %v12983_v49 = vadd.f32 %v10469_v13, %v12881_v7  ;;  %v1253_v27 = vmul.f32 0.17677669, %v873_v21 }
 0x252   : > { %10566 = vmatpush3.xpose.msra.mxu0 %v893_v26  ;;  %v1366_v63 = vmul.f32 %v12861_v32, %v1256_v35  ;;  %v12988_v39 = vadd.f32 %v1187_v47, %v12881_v7  ;;  %v1367_v58 = vmul.f32 %v12870_v22, %v1256_v35  ;;  %v1349_v26 = vmul.f32 %v12856_v40, %v1252_v52 }
 0x253   : > { %16408 = vst [vmem:[#allocation37_spill] sm:$0xff] %v12983_v49  ;;  %10567 = vmatprep.mubr.f32.mxu0 %v1364_v41  ;;  %v1350_v13 = vmul.f32 %v12861_v32, %v1252_v52 }
 0x254   : > { %16409 = vst [vmem:[#allocation38_spill] sm:$0xff] %v12988_v39  ;;  %10528 = vmatmul.mubr.f32.vlgmr.msra.gmra.mrb[52].mxu1 %v1345_v48  ;;  %v902_v50 = vpop.f32.mrb[24].mxu0  ;;  %v10472_v46 = vpop.f32.mrb[22].mxu1  ;;  %v887_v48 = vadd.f32 %v12950_v53, %v12853_v16 }
 0x255   : > { %10534 = vmatpush3.xpose.msra.mxu1 %v869_v14  ;;  %v903_v0 = vadd.f32 %v902_v50, %v12851_v56  ;;  %10530 = vmatprep.mubr.f32.mxu1 %v1346_v25  ;;  %v904_v59 = vpop.f32.mrb[25].mxu0  ;;  %v1197_v9 = vpop.f32.mrb[23].mxu1  ;;  %v1348_v14 = vmul.f32 %v12858_v29, %v1252_v52  ;;  %v13000_v12 = vadd.f32 %v10472_v46, %v12881_v7 }
 0x256   : > { %10541 = vmatprep.subr.mxu1 %v875_v33  ;;  %10568 = vmatmul.mubr.f32.vlgmr.msra.gmra.mrb[68].mxu0 %v1365_v3  ;;  %v905_v23 = vadd.f32 %v904_v59, %v12853_v16  ;;  %v13003_v15 = vadd.f32 %v1197_v9, %v12881_v7  ;;  %v1351_v46 = vmul.f32 %v12870_v22, %v1252_v52 }
 0x257   : > { %v1258_v10 = vmul.f32 0.17677669, %v903_v0  ;;  %10570 = vmatprep.mubr.f32.mxu0 %v1366_v63  ;;  %16410 = vst [vmem:[#allocation39_spill] sm:$0xff] %v13000_v12  ;;  %v885_v59 = vadd.f32 %v12946_v42, %v12851_v56 }
 0x258   : > { %16411 = vst [vmem:[#allocation40_spill] sm:$0xff] %v13003_v15  ;;  %10531 = vmatmul.mubr.f32.gmra.mrb[54].mxu1 %v1347_v61  ;;  %10581 = vmatprep.subr.mxu0 %v905_v23  ;;  %v13005_v17 = vpop.f32.mrb[26].mxu0  ;;  %v10475_v34 = vpop.f32.mrb[24].mxu1 }
 0x259   : > { %10535 = vmatprep.mubr.f32.mxu1 %v1348_v14  ;;  %10582 = vmatpush3.xpose.msra.mxu0 %v905_v23  ;;  %v13007_v28 = vpop.f32.mrb[27].mxu0  ;;  %v1372_v24 = vmul.f32 %v12858_v29, %v1258_v10  ;;  %v1207_v30 = vpop.f32.mrb[25].mxu1  ;;  %v1373_v19 = vmul.f32 %v12856_v40, %v1258_v10  ;;  %v13013_v35 = vadd.f32 %v10475_v34, %v12881_v7 }
 0x25a   : > { %10571 = vmatmul.mubr.f32.gmra.mrb[70].mxu0 %v1367_v58  ;;  %v1374_v41 = vmul.f32 %v12861_v32, %v1258_v10  ;;  %v13018_v47 = vadd.f32 %v1207_v30, %v12881_v7  ;;  %v1375_v9 = vmul.f32 %v12870_v22, %v1258_v10  ;;  %v1353_v58 = vmul.f32 %v12856_v40, %v1253_v27 }
 0x25b   : > { %16412 = vst [vmem:[#allocation41_spill] sm:$0xff] %v13013_v35  ;;  %10583 = vmatprep.mubr.f32.mxu0 %v1372_v24  ;;  %v1255_v24 = vmul.f32 0.17677669, %v885_v59  ;;  %v899_v30 = vadd.f32 %v12977_v18, %v12853_v16 }
 0x25c   : > { %16413 = vst [vmem:[#allocation42_spill] sm:$0xff] %v13018_v47  ;;  %10536 = vmatmul.mubr.f32.vlgmr.msra.gmra.mrb[56].mxu1 %v1349_v26  ;;  %v914_v3 = vpop.f32.mrb[28].mxu0  ;;  %v10478_v25 = vpop.f32.mrb[26].mxu1 }
 0x25d   : > { %10542 = vmatpush3.xpose.msra.mxu1 %v875_v33  ;;  %v915_v63 = vadd.f32 %v914_v3, %v12851_v56  ;;  %10538 = vmatprep.mubr.f32.mxu1 %v1350_v13  ;;  %v916_v50 = vpop.f32.mrb[29].mxu0  ;;  %v1217_v0 = vpop.f32.mrb[27].mxu1  ;;  %v1352_v33 = vmul.f32 %v12858_v29, %v1253_v27  ;;  %v13030_v21 = vadd.f32 %v10478_v25, %v12881_v7 }
 0x25e   : > { %10584 = vmatmul.mubr.f32.vlgmr.msra.gmra.mrb[72].mxu0 %v1373_v19  ;;  %v917_v61 = vadd.f32 %v916_v50, %v12853_v16  ;;  %10557 = vmatprep.subr.mxu1 %v887_v48  ;;  %v13033_v23 = vadd.f32 %v1217_v0, %v12881_v7  ;;  %v1354_v13 = vmul.f32 %v12861_v32, %v1253_v27 }
 0x25f   : > { %v1260_v53 = vmul.f32 0.17677669, %v915_v63  ;;  %10586 = vmatprep.mubr.f32.mxu0 %v1374_v41  ;;  %16414 = vst [vmem:[#allocation43_spill] sm:$0xff] %v13030_v21 }
 0x260   : > { %16415 = vst [vmem:[#allocation44_spill] sm:$0xff] %v13033_v23  ;;  %10539 = vmatmul.mubr.f32.gmra.mrb[58].mxu1 %v1351_v46  ;;  %10597 = vmatprep.subr.mxu0 %v917_v61  ;;  %v13035_v52 = vpop.f32.mrb[30].mxu0  ;;  %v10481_v42 = vpop.f32.mrb[28].mxu1  ;;  %v1355_v46 = vmul.f32 %v12870_v22, %v1253_v27 }
 0x261   : > { %10543 = vmatprep.mubr.f32.mxu1 %v1352_v33  ;;  %10598 = vmatpush3.xpose.msra.mxu0 %v917_v61  ;;  %v13038_v10 = vpop.f32.mrb[31].mxu0  ;;  %v1380_v14 = vmul.f32 %v12858_v29, %v1260_v53  ;;  %v1227_v34 = vpop.f32.mrb[29].mxu1  ;;  %v1381_v26 = vmul.f32 %v12856_v40, %v1260_v53  ;;  %v13045_v19 = vadd.f32 %v10481_v42, %v12881_v7 }
 0x262   : > { %10587 = vmatmul.mubr.f32.gmra.mrb[74].mxu0 %v1375_v9  ;;  %v1382_v41 = vmul.f32 %v12861_v32, %v1260_v53  ;;  %v13050_v3 = vadd.f32 %v1227_v34, %v12881_v7  ;;  %v1383_v61 = vmul.f32 %v12870_v22, %v1260_v53  ;;  %v1360_v9 = vmul.f32 %v12858_v29, %v1255_v24 }
 0x263   : > { %16416 = vst [vmem:[#allocation45_spill] sm:$0xff] %v13045_v19  ;;  %10599 = vmatprep.mubr.f32.mxu0 %v1380_v14  ;;  %v897_v33 = vadd.f32 %v12975_v43, %v12851_v56  ;;  %v1361_v43 = vmul.f32 %v12856_v40, %v1255_v24  ;;  %v911_v34 = vadd.f32 %v13007_v28, %v12853_v16 }
 0x264   : > { %16417 = vst [vmem:[#allocation46_spill] sm:$0xff] %v13050_v3  ;;  %10544 = vmatmul.mubr.f32.vlgmr.msra.gmra.mrb[60].mxu1 %v1353_v58  ;;  %v926_v25 = vpop.f32.mrb[32].mxu0  ;;  %v10484_v63 = vpop.f32.mrb[30].mxu1 }
 0x265   : > { %v927_v50 = vadd.f32 %v926_v25, %v12851_v56  ;;  %10546 = vmatprep.mubr.f32.mxu1 %v1354_v13  ;;  %v928_v18 = vpop.f32.mrb[33].mxu0  ;;  %10558 = vmatpush3.xpose.msra.mxu1 %v887_v48  ;;  %v1237_v0 = vpop.f32.mrb[31].mxu1  ;;  %v13060_v58 = vadd.f32 %v10484_v63, %v12881_v7  ;;  %v1257_v13 = vmul.f32 0.17677669, %v897_v33 }
 0x266   : > { %10600 = vmatmul.mubr.f32.vlgmr.msra.gmra.mrb[76].mxu0 %v1381_v26  ;;  %v929_v59 = vadd.f32 %v928_v18, %v12853_v16  ;;  %10573 = vmatprep.subr.mxu1 %v899_v30  ;;  %v13063_v27 = vadd.f32 %v1237_v0, %v12881_v7  ;;  %v1363_v0 = vmul.f32 %v12870_v22, %v1255_v24 }
 0x267   : > { %v1262_v42 = vmul.f32 0.17677669, %v927_v50  ;;  %10602 = vmatprep.mubr.f32.mxu0 %v1382_v41  ;;  %16418 = vst [vmem:[#allocation47_spill] sm:$0xff] %v13060_v58  ;;  %v1362_v41 = vmul.f32 %v12861_v32, %v1255_v24  ;;  %v909_v50 = vadd.f32 %v13005_v17, %v12851_v56  ;;  %v1369_v24 = vmul.f32 %v12856_v40, %v1257_v13 }
 0x268   : > { %16419 = vst [vmem:[#allocation48_spill] sm:$0xff] %v13063_v27  ;;  %10547 = vmatmul.mubr.f32.gmra.mrb[62].mxu1 %v1355_v46  ;;  %10613 = vmatprep.subr.mxu0 %v929_v59  ;;  %v13065_v48 = vpop.f32.mrb[34].mxu0 }
 0x269   : > { %10614 = vmatpush3.xpose.msra.mxu0 %v929_v59  ;;  %10559 = vmatprep.mubr.f32.mxu1 %v1360_v9  ;;  %v13067_v53 = vpop.f32.mrb[35].mxu0  ;;  %v1388_v14 = vmul.f32 %v12858_v29, %v1262_v42  ;;  %v1389_v26 = vmul.f32 %v12856_v40, %v1262_v42  ;;  %v1390_v25 = vmul.f32 %v12861_v32, %v1262_v42  ;;  %v1259_v33 = vmul.f32 0.17677669, %v909_v50 }
 0x26a   : > { %10603 = vmatmul.mubr.f32.gmra.mrb[78].mxu0 %v1383_v61  ;;  %v1391_v59 = vmul.f32 %v12870_v22, %v1262_v42  ;;  %v1368_v9 = vmul.f32 %v12858_v29, %v1257_v13  ;;  %v923_v42 = vadd.f32 %v13038_v10, %v12853_v16 }
 0x26b   : > { %10615 = vmatprep.mubr.f32.mxu0 %v1388_v14  ;;  %v1376_v10 = vmul.f32 %v12858_v29, %v1259_v33 }
 0x26c   : > { %10560 = vmatmul.mubr.f32.vlgmr.msra.gmra.mrb[64].mxu1 %v1361_v43  ;;  %v938_v63 = vpop.f32.mrb[36].mxu0 }
 0x26d   : > { %v939_v18 = vadd.f32 %v938_v63, %v12851_v56  ;;  %v940_v46 = vpop.f32.mrb[37].mxu0  ;;  %10562 = vmatprep.mubr.f32.mxu1 %v1362_v41  ;;  %10574 = vmatpush3.xpose.msra.mxu1 %v899_v30  ;;  %v921_v63 = vadd.f32 %v13035_v52, %v12851_v56 }
 0x26e   : > { %10616 = vmatmul.mubr.f32.vlgmr.msra.gmra.mrb[80].mxu0 %v1389_v26  ;;  %v941_v28 = vadd.f32 %v940_v46, %v12853_v16  ;;  %10589 = vmatprep.subr.mxu1 %v911_v34  ;;  %v1370_v26 = vmul.f32 %v12861_v32, %v1257_v13 }
 0x26f   : > { %v1264_v61 = vmul.f32 0.17677669, %v939_v18  ;;  %10618 = vmatprep.mubr.f32.mxu0 %v1390_v25 }
 0x270   : > { %10563 = vmatmul.mubr.f32.gmra.mrb[66].mxu1 %v1363_v0  ;;  %10629 = vmatprep.subr.mxu0 %v941_v28  ;;  %v13083_v17 = vpop.f32.mrb[38].mxu0 }
 0x271   : > { %10630 = vmatpush3.xpose.msra.mxu0 %v941_v28  ;;  %10575 = vmatprep.mubr.f32.mxu1 %v1368_v9  ;;  %v13085_v30 = vpop.f32.mrb[39].mxu0  ;;  %v1396_v14 = vmul.f32 %v12858_v29, %v1264_v61  ;;  %v1397_v43 = vmul.f32 %v12856_v40, %v1264_v61  ;;  %v1398_v41 = vmul.f32 %v12861_v32, %v1264_v61 }
 0x272   : > { %10619 = vmatmul.mubr.f32.gmra.mrb[82].mxu0 %v1391_v59  ;;  %v1371_v28 = vmul.f32 %v12870_v22, %v1257_v13  ;;  %v1399_v0 = vmul.f32 %v12870_v22, %v1264_v61  ;;  %v1377_v9 = vmul.f32 %v12856_v40, %v1259_v33  ;;  %v935_v13 = vadd.f32 %v13067_v53, %v12853_v16 }
 0x273   : > { %10631 = vmatprep.mubr.f32.mxu0 %v1396_v14  ;;  %v1261_v14 = vmul.f32 0.17677669, %v921_v63 }
 0x274   : > { %10576 = vmatmul.mubr.f32.vlgmr.msra.gmra.mrb[68].mxu1 %v1369_v24  ;;  %v950_v25 = vpop.f32.mrb[40].mxu0 }
 0x275   : > { %v951_v50 = vadd.f32 %v950_v25, %v12851_v56  ;;  %v952_v18 = vpop.f32.mrb[41].mxu0  ;;  %10578 = vmatprep.mubr.f32.mxu1 %v1370_v26  ;;  %10590 = vmatpush3.xpose.msra.mxu1 %v911_v34  ;;  %v933_v25 = vadd.f32 %v13065_v48, %v12851_v56  ;;  %v1384_v53 = vmul.f32 %v12858_v29, %v1261_v14 }
 0x276   : > { %10632 = vmatmul.mubr.f32.vlgmr.msra.gmra.mrb[84].mxu0 %v1397_v43  ;;  %v953_v46 = vadd.f32 %v952_v18, %v12853_v16  ;;  %10605 = vmatprep.subr.mxu1 %v923_v42  ;;  %v1378_v43 = vmul.f32 %v12861_v32, %v1259_v33 }
 0x277   : > { %v1266_v59 = vmul.f32 0.17677669, %v951_v50  ;;  %10634 = vmatprep.mubr.f32.mxu0 %v1398_v41 }
 0x278   : > { %10579 = vmatmul.mubr.f32.gmra.mrb[70].mxu1 %v1371_v28  ;;  %10645 = vmatprep.subr.mxu0 %v953_v46  ;;  %v13102_v52 = vpop.f32.mrb[42].mxu0 }
 0x279   : > { %10646 = vmatpush3.xpose.msra.mxu0 %v953_v46  ;;  %10591 = vmatprep.mubr.f32.mxu1 %v1376_v10  ;;  %v13104_v34 = vpop.f32.mrb[43].mxu0  ;;  %v1404_v24 = vmul.f32 %v12858_v29, %v1266_v59  ;;  %v1405_v61 = vmul.f32 %v12856_v40, %v1266_v59  ;;  %v1406_v26 = vmul.f32 %v12861_v32, %v1266_v59 }
 0x27a   : > { %10635 = vmatmul.mubr.f32.gmra.mrb[86].mxu0 %v1399_v0  ;;  %v1379_v10 = vmul.f32 %v12870_v22, %v1259_v33  ;;  %v1407_v46 = vmul.f32 %v12870_v22, %v1266_v59  ;;  %v1385_v0 = vmul.f32 %v12856_v40, %v1261_v14  ;;  %v1386_v33 = vmul.f32 %v12861_v32, %v1261_v14 }
 0x27b   : > { %10647 = vmatprep.mubr.f32.mxu0 %v1404_v24  ;;  %v947_v59 = vadd.f32 %v13085_v30, %v12853_v16 }
 0x27c   : > { %10592 = vmatmul.mubr.f32.vlgmr.msra.gmra.mrb[72].mxu1 %v1377_v9  ;;  %v962_v41 = vpop.f32.mrb[44].mxu0  ;;  %v1263_v9 = vmul.f32 0.17677669, %v933_v25  ;;  %v945_v25 = vadd.f32 %v13083_v17, %v12851_v56 }
 0x27d   : > { %v963_v63 = vadd.f32 %v962_v41, %v12851_v56  ;;  %v964_v50 = vpop.f32.mrb[45].mxu0  ;;  %10594 = vmatprep.mubr.f32.mxu1 %v1378_v43  ;;  %10606 = vmatpush3.xpose.msra.mxu1 %v923_v42  ;;  %v1387_v41 = vmul.f32 %v12870_v22, %v1261_v14 }
 0x27e   : > { %10648 = vmatmul.mubr.f32.vlgmr.msra.gmra.mrb[88].mxu0 %v1405_v61  ;;  %v965_v18 = vadd.f32 %v964_v50, %v12853_v16  ;;  %10621 = vmatprep.subr.mxu1 %v935_v13  ;;  %v1392_v30 = vmul.f32 %v12858_v29, %v1263_v9  ;;  %v1393_v14 = vmul.f32 %v12856_v40, %v1263_v9 }
 0x27f   : > { %v1268_v28 = vmul.f32 0.17677669, %v963_v63  ;;  %10650 = vmatprep.mubr.f32.mxu0 %v1406_v26 }
 0x280   : > { %10595 = vmatmul.mubr.f32.gmra.mrb[74].mxu1 %v1379_v10  ;;  %10661 = vmatprep.subr.mxu0 %v965_v18  ;;  %v13120_v48 = vpop.f32.mrb[46].mxu0 }
 0x281   : > { %10662 = vmatpush3.xpose.msra.mxu0 %v965_v18  ;;  %10607 = vmatprep.mubr.f32.mxu1 %v1384_v53  ;;  %v13122_v42 = vpop.f32.mrb[47].mxu0  ;;  %v1412_v24 = vmul.f32 %v12858_v29, %v1268_v28  ;;  %v1413_v61 = vmul.f32 %v12856_v40, %v1268_v28  ;;  %v1414_v43 = vmul.f32 %v12861_v32, %v1268_v28 }
 0x282   : > { %10651 = vmatmul.mubr.f32.gmra.mrb[90].mxu0 %v1407_v46  ;;  %v1415_v18 = vmul.f32 %v12870_v22, %v1268_v28  ;;  %v1265_v46 = vmul.f32 0.17677669, %v945_v25  ;;  %v959_v28 = vadd.f32 %v13104_v34, %v12853_v16 }
 0x283   : > { %10663 = vmatprep.mubr.f32.mxu0 %v1412_v24  ;;  %v1394_v24 = vmul.f32 %v12861_v32, %v1263_v9 }
 0x284   : > { %10608 = vmatmul.mubr.f32.vlgmr.msra.gmra.mrb[76].mxu1 %v1385_v0  ;;  %v974_v26 = vpop.f32.mrb[48].mxu0  ;;  %v1400_v34 = vmul.f32 %v12858_v29, %v1265_v46 }
 0x285   : > { %v975_v63 = vadd.f32 %v974_v26, %v12851_v56  ;;  %v976_v50 = vpop.f32.mrb[49].mxu0  ;;  %10610 = vmatprep.mubr.f32.mxu1 %v1386_v33  ;;  %10622 = vmatpush3.xpose.msra.mxu1 %v935_v13  ;;  %v1395_v26 = vmul.f32 %v12870_v22, %v1263_v9  ;;  %v1401_v9 = vmul.f32 %v12856_v40, %v1265_v46 }
 0x286   : > { %10664 = vmatmul.mubr.f32.vlgmr.msra.gmra.mrb[92].mxu0 %v1413_v61  ;;  %v977_v53 = vadd.f32 %v976_v50, %v12853_v16  ;;  %10637 = vmatprep.subr.mxu1 %v947_v59 }
 0x287   : > { %v1270_v10 = vmul.f32 0.17677669, %v975_v63  ;;  %10666 = vmatprep.mubr.f32.mxu0 %v1414_v43 }
 0x288   : > { %10611 = vmatmul.mubr.f32.gmra.mrb[78].mxu1 %v1387_v41  ;;  %10677 = vmatprep.subr.mxu0 %v977_v53  ;;  %v13138_v17 = vpop.f32.mrb[50].mxu0  ;;  %v957_v41 = vadd.f32 %v13102_v52, %v12851_v56 }
 0x289   : > { %10678 = vmatpush3.xpose.msra.mxu0 %v977_v53  ;;  %10623 = vmatprep.mubr.f32.mxu1 %v1392_v30  ;;  %v13140_v13 = vpop.f32.mrb[51].mxu0  ;;  %v1420_v0 = vmul.f32 %v12858_v29, %v1270_v10  ;;  %v1421_v33 = vmul.f32 %v12856_v40, %v1270_v10  ;;  %v1422_v61 = vmul.f32 %v12861_v32, %v1270_v10 }
 0x28a   : > { %10667 = vmatmul.mubr.f32.gmra.mrb[94].mxu0 %v1415_v18  ;;  %v1423_v30 = vmul.f32 %v12870_v22, %v1270_v10  ;;  %v1267_v18 = vmul.f32 0.17677669, %v957_v41  ;;  %v971_v10 = vadd.f32 %v13122_v42, %v12853_v16 }
 0x28b   : > { %10679 = vmatprep.mubr.f32.mxu0 %v1420_v0  ;;  %v1402_v0 = vmul.f32 %v12861_v32, %v1265_v46 }
 0x28c   : > { %10624 = vmatmul.mubr.f32.vlgmr.msra.gmra.mrb[80].mxu1 %v1393_v14  ;;  %v986_v43 = vpop.f32.mrb[52].mxu0  ;;  %v1408_v42 = vmul.f32 %v12858_v29, %v1267_v18 }
 0x28d   : > { %v987_v25 = vadd.f32 %v986_v43, %v12851_v56  ;;  %v988_v63 = vpop.f32.mrb[53].mxu0  ;;  %10626 = vmatprep.mubr.f32.mxu1 %v1394_v24  ;;  %10638 = vmatpush3.xpose.msra.mxu1 %v947_v59  ;;  %v1403_v43 = vmul.f32 %v12870_v22, %v1265_v46  ;;  %v1409_v46 = vmul.f32 %v12856_v40, %v1267_v18 }
 0x28e   : > { %10680 = vmatmul.mubr.f32.vlgmr.msra.gmra.mrb[96].mxu0 %v1421_v33  ;;  %v989_v50 = vadd.f32 %v988_v63, %v12853_v16  ;;  %10653 = vmatprep.subr.mxu1 %v959_v28 }
 0x28f   : > { %v1272_v53 = vmul.f32 0.17677669, %v987_v25  ;;  %10682 = vmatprep.mubr.f32.mxu0 %v1422_v61 }
 0x290   : > { %10627 = vmatmul.mubr.f32.gmra.mrb[82].mxu1 %v1395_v26  ;;  %10693 = vmatprep.subr.mxu0 %v989_v50  ;;  %v13156_v52 = vpop.f32.mrb[54].mxu0  ;;  %v969_v26 = vadd.f32 %v13120_v48, %v12851_v56 }
 0x291   : > { %10694 = vmatpush3.xpose.msra.mxu0 %v989_v50  ;;  %10639 = vmatprep.mubr.f32.mxu1 %v1400_v34  ;;  %v13158_v59 = vpop.f32.mrb[55].mxu0  ;;  %v1428_v14 = vmul.f32 %v12858_v29, %v1272_v53  ;;  %v1429_v24 = vmul.f32 %v12856_v40, %v1272_v53  ;;  %v1430_v33 = vmul.f32 %v12861_v32, %v1272_v53 }
 0x292   : > { %10683 = vmatmul.mubr.f32.gmra.mrb[98].mxu0 %v1423_v30  ;;  %v1431_v34 = vmul.f32 %v12870_v22, %v1272_v53  ;;  %v1269_v30 = vmul.f32 0.17677669, %v969_v26  ;;  %v983_v53 = vadd.f32 %v13140_v13, %v12853_v16 }
 0x293   : > { %10695 = vmatprep.mubr.f32.mxu0 %v1428_v14  ;;  %v1410_v14 = vmul.f32 %v12861_v32, %v1267_v18 }
 0x294   : > { %10640 = vmatmul.mubr.f32.vlgmr.msra.gmra.mrb[84].mxu1 %v1401_v9  ;;  %v998_v61 = vpop.f32.mrb[56].mxu0  ;;  %v1416_v13 = vmul.f32 %v12858_v29, %v1269_v30 }
 0x295   : > { %v999_v41 = vadd.f32 %v998_v61, %v12851_v56  ;;  %v1000_v25 = vpop.f32.mrb[57].mxu0  ;;  %10642 = vmatprep.mubr.f32.mxu1 %v1402_v0  ;;  %10654 = vmatpush3.xpose.msra.mxu1 %v959_v28  ;;  %v1411_v61 = vmul.f32 %v12870_v22, %v1267_v18  ;;  %v1088_v18 = vadd.f32 %v12867_v36, %v12881_v7 }
 0x296   : > { %10696 = vmatmul.mubr.f32.vlgmr.msra.gmra.mrb[100].mxu0 %v1429_v24  ;;  %v1001_v63 = vadd.f32 %v1000_v25, %v12853_v16  ;;  %10669 = vmatprep.subr.mxu1 %v971_v10 }
 0x297   : > { %v1274_v50 = vmul.f32 0.17677669, %v999_v41  ;;  %10698 = vmatprep.mubr.f32.mxu0 %v1430_v33 }
 0x298   : > { %10643 = vmatmul.mubr.f32.gmra.mrb[86].mxu1 %v1403_v43  ;;  %10709 = vmatprep.subr.mxu0 %v1001_v63  ;;  %v13174_v48 = vpop.f32.mrb[58].mxu0  ;;  %v981_v43 = vadd.f32 %v13138_v17, %v12851_v56  ;;  %v1417_v17 = vmul.f32 %v12856_v40, %v1269_v30 }
 0x299   : > { %10710 = vmatpush3.xpose.msra.mxu0 %v1001_v63  ;;  %v1006_v9 = vpop.f32.mrb[59].mxu0  ;;  %10655 = vmatprep.mubr.f32.mxu1 %v1408_v42  ;;  %v1436_v28 = vmul.f32 %v12858_v29, %v1274_v50  ;;  %v1437_v0 = vmul.f32 %v12856_v40, %v1274_v50  ;;  %v1438_v24 = vmul.f32 %v12861_v32, %v1274_v50 }
 0x29a   : > { %10699 = vmatmul.mubr.f32.gmra.mrb[102].mxu0 %v1431_v34  ;;  %v1439_v42 = vmul.f32 %v12870_v22, %v1274_v50  ;;  %v995_v50 = vadd.f32 %v13158_v59, %v12853_v16  ;;  %v13204_v59 = vadd.f32 %v12876_v4, %v12881_v7 }
 0x29b   : > { %10711 = vmatprep.mubr.f32.mxu0 %v1436_v28  ;;  %v1418_v28 = vmul.f32 %v12861_v32, %v1269_v30 }
 0x29c   : > { %v1010_v33 = vpop.f32.mrb[60].mxu0  ;;  %10656 = vmatmul.mubr.f32.vlgmr.msra.gmra.mrb[88].mxu1 %v1409_v46  ;;  %v1271_v46 = vmul.f32 0.17677669, %v981_v43  ;;  %16420 = vst [vmem:[#allocation49_spill] sm:$0xff] %v13204_v59 }
 0x29d   : > { %v1011_v26 = vadd.f32 %v1010_v33, %v12851_v56  ;;  %v1012_v41 = vpop.f32.mrb[61].mxu0  ;;  %10658 = vmatprep.mubr.f32.mxu1 %v1410_v14  ;;  %10670 = vmatpush3.xpose.msra.mxu1 %v971_v10  ;;  %v993_v33 = vadd.f32 %v13156_v52, %v12851_v56 }
 0x29e   : > { %v1013_v25 = vadd.f32 %v1012_v41, %v12853_v16  ;;  %10712 = vmatmul.mubr.f32.vlgmr.msra.gmra.mrb[104].mxu0 %v1437_v0  ;;  %10685 = vmatprep.subr.mxu1 %v983_v53  ;;  %v1427_v4 = vmul.f32 %v12870_v22, %v1271_v46  ;;  %v1005_v41 = vadd.f32 %v13174_v48, %v12851_v56 }
 0x29f   : > { %v1276_v63 = vmul.f32 0.17677669, %v1011_v26  ;;  %10714 = vmatprep.mubr.f32.mxu0 %v1438_v24  ;;  %v1419_v24 = vmul.f32 %v12870_v22, %v1269_v30  ;;  %v1425_v26 = vmul.f32 %v12856_v40, %v1271_v46  ;;  %v1273_v52 = vmul.f32 0.17677669, %v993_v33 }
 0x2a0   : > { %10659 = vmatmul.mubr.f32.gmra.mrb[90].mxu1 %v1411_v61  ;;  %10725 = vmatprep.subr.mxu0 %v1013_v25  ;;  %v1016_v34 = vpop.f32.mrb[62].mxu0  ;;  %v1424_v61 = vmul.f32 %v12858_v29, %v1271_v46  ;;  %v1426_v30 = vmul.f32 %v12861_v32, %v1271_v46 }
 0x2a1   : > { %10726 = vmatpush3.xpose.msra.mxu0 %v1013_v25  ;;  %10671 = vmatprep.mubr.f32.mxu1 %v1416_v13  ;;  %v1444_v10 = vmul.f32 %v12858_v29, %v1276_v63  ;;  %v1018_v14 = vpop.f32.mrb[63].mxu0  ;;  %v1445_v0 = vmul.f32 %v12856_v40, %v1276_v63  ;;  %v1446_v36 = vmul.f32 %v12861_v32, %v1276_v63 }
 0x2a2   : > { %10715 = vmatmul.mubr.f32.gmra.mrb[106].mxu0 %v1439_v42  ;;  %10741 = vmatprep.subr.mxu0 %v1088_v18  ;;  %v1447_v43 = vmul.f32 %v12870_v22, %v1276_v63  ;;  %v1432_v13 = vmul.f32 %v12858_v29, %v1273_v52  ;;  %v1433_v25 = vmul.f32 %v12856_v40, %v1273_v52  ;;  %v1275_v42 = vmul.f32 0.17677669, %v1005_v41 }
 0x2a3   : > { %10727 = vmatprep.mubr.f32.mxu0 %v1444_v10  ;;  %v1434_v63 = vmul.f32 %v12861_v32, %v1273_v52 }
 0x2a4   : > { %10672 = vmatmul.mubr.f32.vlgmr.msra.gmra.mrb[92].mxu1 %v1417_v17  ;;  %v1017_v17 = vadd.f32 %v1016_v34, %v12851_v56  ;;  %v1440_v48 = vmul.f32 %v12858_v29, %v1275_v42  ;;  %v1441_v46 = vmul.f32 %v12856_v40, %v1275_v42 }
 0x2a5   : > { %10674 = vmatprep.mubr.f32.mxu1 %v1418_v28  ;;  %10686 = vmatpush3.xpose.msra.mxu1 %v983_v53  ;;  %v1007_v53 = vadd.f32 %v1006_v9, %v12853_v16  ;;  %v1019_v9 = vadd.f32 %v1018_v14, %v12853_v16  ;;  %v1442_v28 = vmul.f32 %v12861_v32, %v1275_v42 }
 0x2a6   : > { %10728 = vmatmul.mubr.f32.vlgmr.msra.gmra.mrb[108].mxu0 %v1445_v0  ;;  %10701 = vmatprep.subr.mxu1 %v995_v50  ;;  %v1277_v10 = vmul.f32 0.17677669, %v1017_v17  ;;  %v1093_v16 = vadd.f32 %v12863_v44, %v12881_v7  ;;  %v1443_v14 = vmul.f32 %v12870_v22, %v1275_v42  ;;  %v13231_v0 = vadd.f32 %v12874_v45, %v12881_v7 }
 0x2a7   : > { %10742 = vmatpush3.msra.mxu0 %v1088_v18  ;;  %10730 = vmatprep.mubr.f32.mxu0 %v1446_v36  ;;  %v1435_v18 = vmul.f32 %v12870_v22, %v1273_v52 }
 0x2a8   : > { %10757 = vmatprep.subr.mxu0 %v13204_v59  ;;  %10675 = vmatmul.mubr.f32.gmra.mrb[94].mxu1 %v1419_v24  ;;  %v1448_v56 = vmul.f32 %v12858_v29, %v1277_v10  ;;  %v1449_v34 = vmul.f32 %v12856_v40, %v1277_v10  ;;  %16421 = vst [vmem:[#allocation50_spill] sm:$0xff] %v13231_v0 }
 0x2a9   : > { %10687 = vmatprep.mubr.f32.mxu1 %v1424_v61  ;;  %v1451_v44 = vmul.f32 %v12870_v22, %v1277_v10 }
 0x2aa   : > { %10731 = vmatmul.mubr.f32.gmra.mrb[110].mxu0 %v1447_v43 }
 0x2ac   : > { %10688 = vmatmul.mubr.f32.vlgmr.msra.gmra.mrb[96].mxu1 %v1425_v26 }
 0x2ad   : > { %10690 = vmatprep.mubr.f32.mxu1 %v1426_v30  ;;  %10702 = vmatpush3.xpose.msra.mxu1 %v995_v50  ;;  %v1450_v50 = vmul.f32 %v12861_v32, %v1277_v10 }
 0x2ae   : > { %10717 = vmatprep.subr.mxu1 %v1007_v53 }
 0x2b0   : > { %10691 = vmatmul.mubr.f32.gmra.mrb[98].mxu1 %v1427_v4 }
 0x2b1   : > { %10703 = vmatprep.mubr.f32.mxu1 %v1432_v13 }
 0x2b4   : > { %10704 = vmatmul.mubr.f32.vlgmr.msra.gmra.mrb[100].mxu1 %v1433_v25 }
 0x2b5   : > { %10706 = vmatprep.mubr.f32.mxu1 %v1434_v63  ;;  %10718 = vmatpush3.xpose.msra.mxu1 %v1007_v53 }
 0x2b6   : > { %10733 = vmatprep.subr.mxu1 %v1019_v9 }
 0x2b8   : > { %10707 = vmatmul.mubr.f32.gmra.mrb[102].mxu1 %v1435_v18 }
 0x2b9   : > { %10719 = vmatprep.mubr.f32.mxu1 %v1440_v48 }
 0x2bc   : > { %10720 = vmatmul.mubr.f32.vlgmr.msra.gmra.mrb[104].mxu1 %v1441_v46 }
 0x2bd   : > { %10734 = vmatpush3.xpose.msra.mxu1 %v1019_v9  ;;  %10722 = vmatprep.mubr.f32.mxu1 %v1442_v28 }
 0x2be   : > { %10749 = vmatprep.subr.mxu1 %v1093_v16 }
 0x2c0   : > { %10723 = vmatmul.mubr.f32.gmra.mrb[106].mxu1 %v1443_v14 }
 0x2c1   : > { %10735 = vmatprep.mubr.f32.mxu1 %v1448_v56 }
 0x2c4   : > { %10736 = vmatmul.mubr.f32.vlgmr.msra.gmra.mrb[108].mxu1 %v1449_v34 }
 0x2c5   : > { %10750 = vmatpush3.msra.mxu1 %v1093_v16  ;;  %10738 = vmatprep.mubr.f32.mxu1 %v1450_v50 }
 0x2c6   : > { %10765 = vmatprep.subr.mxu1 %v13231_v0 }
 0x2c8   : > { %10739 = vmatmul.mubr.f32.gmra.mrb[110].mxu1 %v1451_v44 }
 0x2ff   : > { %v13235_v36 = vpop.f32.mrb[32].mxu1 }
 0x300   : > { %16422 = vst [vmem:[#allocation51_spill] sm:$0xff] %v13235_v36  ;;  %v13237_v24 = vpop.f32.mrb[33].mxu1  ;;  %v4176_v33 = vsel %vm4172_vm0, %v13235_v36, -inf }
 0x301   : > { %16423 = vst [vmem:[#allocation52_spill] sm:$0xff] %v13237_v24  ;;  %4177 = vmax.xlane.f32.xlu1 %v4176_v33  ;;  %v4173_v45 = vsel %vm4172_vm0, %v13237_v24, -inf }
 0x302   : > { %4174 = vmax.xlane.f32.xlu0 %v4173_v45 }
 0x303   : > { %v13243_v7 = vpop.f32.mrb[34].mxu1 }
 0x304   : > { %16424 = vst [vmem:[#allocation53_spill] sm:$0xff] %v13243_v7  ;;  %v13245_v61 = vpop.f32.mrb[35].mxu1  ;;  %v4182_v43 = vsel %vm4172_vm0, %v13243_v7, -inf }
 0x305   : > { %16425 = vst [vmem:[#allocation54_spill] sm:$0xff] %v13245_v61  ;;  %4183 = vmax.xlane.f32.xlu1 %v4182_v43  ;;  %v4179_v26 = vsel %vm4172_vm0, %v13245_v61, -inf }
 0x306   : > { %4180 = vmax.xlane.f32.xlu0 %v4179_v26 }
 0x307   : > { %v13251_v52 = vpop.f32.mrb[36].mxu1 }
 0x308   : > { %16426 = vst [vmem:[#allocation55_spill] sm:$0xff] %v13251_v52  ;;  %v13253_v30 = vpop.f32.mrb[37].mxu1  ;;  %v4188_v53 = vsel %vm4172_vm0, %v13251_v52, -inf }
 0x309   : > { %16427 = vst [vmem:[#allocation56_spill] sm:$0xff] %v13253_v30  ;;  %4189 = vmax.xlane.f32.xlu1 %v4188_v53  ;;  %v4185_v4 = vsel %vm4172_vm0, %v13253_v30, -inf }
 0x30a   : > { %4186 = vmax.xlane.f32.xlu0 %v4185_v4 }
 0x30b   : > { %v13259_v41 = vpop.f32.mrb[38].mxu1 }
 0x30c   : > { %16428 = vst [vmem:[#allocation57_spill] sm:$0xff] %v13259_v41  ;;  %v13261_v13 = vpop.f32.mrb[39].mxu1  ;;  %v4194_v25 = vsel %vm4172_vm0, %v13259_v41, -inf }
 0x30d   : > { %4195 = vmax.xlane.f32.xlu1 %v4194_v25  ;;  %v4191_v42 = vsel %vm4172_vm0, %v13261_v13, -inf }
 0x30e   : > { %4192 = vmax.xlane.f32.xlu0 %v4191_v42 }
 0x30f   : > { %v13267_v63 = vpop.f32.mrb[40].mxu1 }
 0x310   : > { %v13269_v9 = vpop.f32.mrb[41].mxu1  ;;  %v4200_v18 = vsel %vm4172_vm0, %v13267_v63, -inf }
 0x311   : > { %4201 = vmax.xlane.f32.xlu1 %v4200_v18  ;;  %v4197_v17 = vsel %vm4172_vm0, %v13269_v9, -inf }
 0x312   : > { %4198 = vmax.xlane.f32.xlu0 %v4197_v17 }
 0x313   : > { %v13275_v48 = vpop.f32.mrb[42].mxu1 }
 0x314   : > { %v13277_v46 = vpop.f32.mrb[43].mxu1  ;;  %v4206_v10 = vsel %vm4172_vm0, %v13275_v48, -inf }
 0x315   : > { %4207 = vmax.xlane.f32.xlu1 %v4206_v10  ;;  %v4203_v28 = vsel %vm4172_vm0, %v13277_v46, -inf }
 0x316   : > { %4204 = vmax.xlane.f32.xlu0 %v4203_v28 }
 0x317   : > { %v13283_v16 = vpop.f32.mrb[44].mxu1 }
 0x318   : > { %v13285_v14 = vpop.f32.mrb[45].mxu1  ;;  %v4212_v56 = vsel %vm4172_vm0, %v13283_v16, -inf }
 0x319   : > { %4213 = vmax.xlane.f32.xlu1 %v4212_v56  ;;  %v4209_v34 = vsel %vm4172_vm0, %v13285_v14, -inf }
 0x31a   : > { %4210 = vmax.xlane.f32.xlu0 %v4209_v34 }
 0x31b   : > { %v13291_v50 = vpop.f32.mrb[46].mxu1 }
 0x31c   : > { %v13293_v44 = vpop.f32.mrb[47].mxu1  ;;  %v4218_v33 = vsel %vm4172_vm0, %v13291_v50, -inf }
 0x31d   : > { %4219 = vmax.xlane.f32.xlu1 %v4218_v33  ;;  %v4215_v45 = vsel %vm4172_vm0, %v13293_v44, -inf }
 0x31e   : > { %4216 = vmax.xlane.f32.xlu0 %v4215_v45 }
 0x31f   : > { %v13299_v43 = vpop.f32.mrb[48].mxu1  ;;  %v13301_v26 = vpop.f32.mrb[64].mxu0 }
 0x320   : > { %16429 = vst [vmem:[#allocation58_spill] sm:$0xff] %v13299_v43  ;;  %16430 = vst [vmem:[#allocation59_spill] sm:$0xff] %v13301_v26  ;;  %v13303_v53 = vpop.f32.mrb[49].mxu1  ;;  %v13305_v4 = vpop.f32.mrb[65].mxu0  ;;  %v4224_v25 = vsel %vm4172_vm0, %v13299_v43, -inf  ;;  %v4272_v18 = vsel %vm4172_vm0, %v13301_v26, -inf }
 0x321   : > { %4225 = vmax.xlane.f32.xlu1 %v4224_v25  ;;  %v4221_v42 = vsel %vm4172_vm0, %v13303_v53, -inf  ;;  %v4269_v34 = vsel %vm4172_vm0, %v13305_v4, -inf }
 0x322   : > { %4222 = vmax.xlane.f32.xlu0 %v4221_v42 }
 0x323   : > { %v13313_v17 = vpop.f32.mrb[50].mxu1  ;;  %v13315_v10 = vpop.f32.mrb[66].mxu0 }
 0x324   : > { %16431 = vst [vmem:[#allocation60_spill] sm:$0xff] %v13313_v17  ;;  %16432 = vst [vmem:[#allocation61_spill] sm:$0xff] %v13315_v10  ;;  %v13317_v28 = vpop.f32.mrb[51].mxu1  ;;  %v13319_v56 = vpop.f32.mrb[67].mxu0  ;;  %v4230_v25 = vsel %vm4172_vm0, %v13313_v17, -inf }
 0x325   : > { %4273 = vmax.xlane.f32.xlu1 %v4272_v18  ;;  %v4227_v42 = vsel %vm4172_vm0, %v13317_v28, -inf  ;;  %v4275_v35 = vsel %vm4172_vm0, %v13319_v56, -inf }
 0x326   : > { %4270 = vmax.xlane.f32.xlu0 %v4269_v34  ;;  %v4278_v34 = vsel %vm4172_vm0, %v13315_v10, -inf }
 0x327   : > { %v13323_v33 = vpop.f32.mrb[52].mxu1 }
 0x328   : > { %16433 = vst [vmem:[#allocation62_spill] sm:$0xff] %v13323_v33  ;;  %v13325_v45 = vpop.f32.mrb[53].mxu1  ;;  %v4236_v29 = vsel %vm4172_vm0, %v13323_v33, -inf }
 0x329   : > { %16434 = vst [vmem:[#allocation63_spill] sm:$0xff] %v13325_v45  ;;  %4231 = vmax.xlane.f32.xlu1 %v4230_v25  ;;  %v13331_v58 = vpop.f32.mrb[68].mxu0  ;;  %v4233_v40 = vsel %vm4172_vm0, %v13325_v45, -inf }
 0x32a   : > { %16435 = vst [vmem:[#allocation64_spill] sm:$0xff] %v13331_v58  ;;  %4228 = vmax.xlane.f32.xlu0 %v4227_v42  ;;  %v13333_v19 = vpop.f32.mrb[69].mxu0  ;;  %v4296_v27 = vsel %vm4172_vm0, %v13331_v58, -inf }
 0x32b   : > { %16436 = vst [vmem:[#allocation65_spill] sm:$0xff] %v13333_v19  ;;  %v13335_v18 = vpop.f32.mrb[54].mxu1  ;;  %v4293_v49 = vsel %vm4172_vm0, %v13333_v19, -inf }
 0x32c   : > { %16437 = vst [vmem:[#allocation66_spill] sm:$0xff] %v13335_v18  ;;  %v13337_v21 = vpop.f32.mrb[55].mxu1  ;;  %v4242_v47 = vsel %vm4172_vm0, %v13335_v18, -inf }
 0x32d   : > { %16438 = vst [vmem:[#allocation67_spill] sm:$0xff] %v13337_v21  ;;  %4279 = vmax.xlane.f32.xlu1 %v4278_v34  ;;  %v13343_v25 = vpop.f32.mrb[70].mxu0  ;;  %v4239_v15 = vsel %vm4172_vm0, %v13337_v21, -inf }
 0x32e   : > { %16439 = vst [vmem:[#allocation68_spill] sm:$0xff] %v13343_v25  ;;  %4276 = vmax.xlane.f32.xlu0 %v4275_v35  ;;  %v13345_v22 = vpop.f32.mrb[71].mxu0  ;;  %v4302_v62 = vsel %vm4172_vm0, %v13343_v25, -inf }
 0x32f   : > { %16440 = vst [vmem:[#allocation69_spill] sm:$0xff] %v13345_v22  ;;  %v13347_v32 = vpop.f32.mrb[56].mxu1  ;;  %v4299_v54 = vsel %vm4172_vm0, %v13345_v22, -inf }
 0x330   : > { %16441 = vst [vmem:[#allocation70_spill] sm:$0xff] %v13347_v32  ;;  %v13349_v42 = vpop.f32.mrb[57].mxu1 }
 0x331   : > { %16442 = vst [vmem:[#allocation71_spill] sm:$0xff] %v13349_v42  ;;  %4237 = vmax.xlane.f32.xlu1 %v4236_v29  ;;  %v13355_v34 = vpop.f32.mrb[72].mxu0  ;;  %v4245_v38 = vsel %vm4172_vm0, %v13349_v42, -inf }
 0x332   : > { %16443 = vst [vmem:[#allocation72_spill] sm:$0xff] %v13355_v34  ;;  %4234 = vmax.xlane.f32.xlu0 %v4233_v40  ;;  %v13359_v35 = vpop.f32.mrb[73].mxu0  ;;  %v4320_v31 = vsel %vm4172_vm0, %v13355_v34, -inf }
 0x333   : > { %16444 = vst [vmem:[#allocation73_spill] sm:$0xff] %v13359_v35  ;;  %v13361_v12 = vpop.f32.mrb[58].mxu1  ;;  %v4317_v51 = vsel %vm4172_vm0, %v13359_v35, -inf }
 0x334   : > { %16445 = vst [vmem:[#allocation74_spill] sm:$0xff] %v13361_v12  ;;  %v13363_v3 = vpop.f32.mrb[59].mxu1 }
 0x335   : > { %16446 = vst [vmem:[#allocation75_spill] sm:$0xff] %v13363_v3  ;;  %4297 = vmax.xlane.f32.xlu1 %v4296_v27  ;;  %v13367_v29 = vpop.f32.mrb[74].mxu0  ;;  %v4251_v2 = vsel %vm4172_vm0, %v13363_v3, -inf }
 0x336   : > { %16447 = vst [vmem:[#allocation76_spill] sm:$0xff] %v13367_v29  ;;  %4294 = vmax.xlane.f32.xlu0 %v4293_v49  ;;  %v13369_v23 = vpop.f32.mrb[75].mxu0 }
 0x337   : > { %16448 = vst [vmem:[#allocation77_spill] sm:$0xff] %v13369_v23  ;;  %v13371_v1 = vpop.f32.mrb[60].mxu1 }
 0x338   : > { %16449 = vst [vmem:[#allocation78_spill] sm:$0xff] %v13371_v1  ;;  %v13373_v40 = vpop.f32.mrb[61].mxu1 }
 0x339   : > { %16450 = vst [vmem:[#allocation79_spill] sm:$0xff] %v13373_v40  ;;  %4243 = vmax.xlane.f32.xlu1 %v4242_v47  ;;  %v13379_v27 = vpop.f32.mrb[76].mxu0 }
 0x33a   : > { %16451 = vst [vmem:[#allocation80_spill] sm:$0xff] %v13379_v27  ;;  %4240 = vmax.xlane.f32.xlu0 %v4239_v15  ;;  %v13381_v11 = vpop.f32.mrb[77].mxu0  ;;  %v4248_v15 = vsel %vm4172_vm0, %v13347_v32, -inf }
 0x33b   : > { %16452 = vst [vmem:[#allocation81_spill] sm:$0xff] %v13381_v11  ;;  %v13383_v39 = vpop.f32.mrb[62].mxu1 }
 0x33c   : > { %16453 = vst [vmem:[#allocation82_spill] sm:$0xff] %v13383_v39  ;;  %v13385_v49 = vpop.f32.mrb[63].mxu1 }
 0x33d   : > { %16454 = vst [vmem:[#allocation83_spill] sm:$0xff] %v13385_v49  ;;  %4303 = vmax.xlane.f32.xlu1 %v4302_v62  ;;  %v13391_v47 = vpop.f32.mrb[78].mxu0  ;;  %v4263_v22 = vsel %vm4172_vm0, %v13385_v49, -inf }
 0x33e   : > { %16455 = vst [vmem:[#allocation84_spill] sm:$0xff] %v13391_v47  ;;  %4300 = vmax.xlane.f32.xlu0 %v4299_v54  ;;  %v13393_v57 = vpop.f32.mrb[79].mxu0 }
 0x33f   : > { %16456 = vst [vmem:[#allocation85_spill] sm:$0xff] %v13393_v57  ;;  %v13395_v60 = vpop.f32.mrb[64].mxu1 }
 0x340   : > { %16457 = vst [vmem:[#allocation86_spill] sm:$0xff] %v13395_v60  ;;  %v13399_v37 = vpop.f32.mrb[65].mxu1 }
 0x341   : > { %16458 = vst [vmem:[#allocation87_spill] sm:$0xff] %v13399_v37  ;;  %4249 = vmax.xlane.f32.xlu1 %v4248_v15  ;;  %v13403_v62 = vpop.f32.mrb[80].mxu0 }
 0x342   : > { %16459 = vst [vmem:[#allocation88_spill] sm:$0xff] %v13403_v62  ;;  %4246 = vmax.xlane.f32.xlu0 %v4245_v38  ;;  %v13407_v54 = vpop.f32.mrb[81].mxu0  ;;  %v4254_v38 = vsel %vm4172_vm0, %v13361_v12, -inf  ;;  %v4323_v12 = vsel %vm4172_vm0, %v13369_v23, -inf  ;;  %v4344_v23 = vsel %vm4172_vm0, %v13379_v27, -inf }
 0x343   : > { %16460 = vst [vmem:[#allocation89_spill] sm:$0xff] %v13407_v54  ;;  %v13409_v20 = vpop.f32.mrb[66].mxu1 }
 0x344   : > { %16461 = vst [vmem:[#allocation90_spill] sm:$0xff] %v13409_v20  ;;  %v13411_v5 = vpop.f32.mrb[67].mxu1 }
 0x345   : > { %16462 = vst [vmem:[#allocation91_spill] sm:$0xff] %v13411_v5  ;;  %4321 = vmax.xlane.f32.xlu1 %v4320_v31  ;;  %v13415_v15 = vpop.f32.mrb[82].mxu0  ;;  %v4287_v24 = vsel %vm4172_vm0, %v13411_v5, -inf }
 0x346   : > { %16463 = vst [vmem:[#allocation92_spill] sm:$0xff] %v13415_v15  ;;  %4318 = vmax.xlane.f32.xlu0 %v4317_v51  ;;  %v13417_v8 = vpop.f32.mrb[83].mxu0  ;;  %v4326_v51 = vsel %vm4172_vm0, %v13367_v29, -inf  ;;  %v4257_v29 = vsel %vm4172_vm0, %v13373_v40, -inf }
 0x347   : > { %16464 = vst [vmem:[#allocation93_spill] sm:$0xff] %v13417_v8  ;;  %v13419_v59 = vpop.f32.mrb[68].mxu1 }
 0x348   : > { %16465 = vst [vmem:[#allocation94_spill] sm:$0xff] %v13419_v59  ;;  %v13423_v6 = vpop.f32.mrb[69].mxu1 }
 0x349   : > { %16466 = vst [vmem:[#allocation95_spill] sm:$0xff] %v13423_v6  ;;  %4255 = vmax.xlane.f32.xlu1 %v4254_v38  ;;  %v13427_v31 = vpop.f32.mrb[84].mxu0 }
 0x34a   : > { %16467 = vst [vmem:[#allocation96_spill] sm:$0xff] %v13427_v31  ;;  %4252 = vmax.xlane.f32.xlu0 %v4251_v2  ;;  %v13429_v55 = vpop.f32.mrb[85].mxu0  ;;  %v4260_v2 = vsel %vm4172_vm0, %v13371_v1, -inf  ;;  %v4341_v1 = vsel %vm4172_vm0, %v13381_v11, -inf }
 0x34b   : > { %16468 = vst [vmem:[#allocation97_spill] sm:$0xff] %v13429_v55  ;;  %v13431_v0 = vpop.f32.mrb[70].mxu1 }
 0x34c   : > { %16469 = vst [vmem:[#allocation98_spill] sm:$0xff] %v13431_v0  ;;  %v13435_v35 = vpop.f32.mrb[71].mxu1 }
 0x34d   : > { %16470 = vst [vmem:[#allocation99_spill] sm:$0xff] %v13435_v35  ;;  %4327 = vmax.xlane.f32.xlu1 %v4326_v51  ;;  %v13439_v38 = vpop.f32.mrb[86].mxu0 }
 0x34e   : > { %16471 = vst [vmem:[#allocation100_spill] sm:$0xff] %v13439_v38  ;;  %4324 = vmax.xlane.f32.xlu0 %v4323_v12  ;;  %v13441_v3 = vpop.f32.mrb[87].mxu0 }
 0x34f   : > { %16472 = vst [vmem:[#allocation101_spill] sm:$0xff] %v13441_v3  ;;  %v13443_v34 = vpop.f32.mrb[72].mxu1 }
 0x350   : > { %16473 = vst [vmem:[#allocation102_spill] sm:$0xff] %v13443_v34  ;;  %v13447_v41 = vpop.f32.mrb[73].mxu1 }
 0x351   : > { %16474 = vst [vmem:[#allocation103_spill] sm:$0xff] %v13447_v41  ;;  %4261 = vmax.xlane.f32.xlu1 %v4260_v2  ;;  %v13451_v51 = vpop.f32.mrb[88].mxu0 }
 0x352   : > { %16475 = vst [vmem:[#allocation104_spill] sm:$0xff] %v13451_v51  ;;  %4258 = vmax.xlane.f32.xlu0 %v4257_v29  ;;  %v13455_v12 = vpop.f32.mrb[89].mxu0  ;;  %v4266_v29 = vsel %vm4172_vm0, %v13383_v39, -inf  ;;  %v4347_v39 = vsel %vm4172_vm0, %v13393_v57, -inf  ;;  %v4368_v57 = vsel %vm4172_vm0, %v13403_v62, -inf }
 0x353   : > { %16476 = vst [vmem:[#allocation105_spill] sm:$0xff] %v13455_v12  ;;  %v13457_v42 = vpop.f32.mrb[74].mxu1 }
 0x354   : > { %16477 = vst [vmem:[#allocation106_spill] sm:$0xff] %v13457_v42  ;;  %v13459_v32 = vpop.f32.mrb[75].mxu1 }
 0x355   : > { %16478 = vst [vmem:[#allocation107_spill] sm:$0xff] %v13459_v32  ;;  %4345 = vmax.xlane.f32.xlu1 %v4344_v23  ;;  %v13463_v2 = vpop.f32.mrb[90].mxu0 }
 0x356   : > { %16479 = vst [vmem:[#allocation108_spill] sm:$0xff] %v13463_v2  ;;  %4342 = vmax.xlane.f32.xlu0 %v4341_v1  ;;  %v13465_v40 = vpop.f32.mrb[91].mxu0  ;;  %v4350_v1 = vsel %vm4172_vm0, %v13391_v47, -inf  ;;  %v4281_v47 = vsel %vm4172_vm0, %v13399_v37, -inf }
 0x357   : > { %16480 = vst [vmem:[#allocation109_spill] sm:$0xff] %v13465_v40  ;;  %v13467_v30 = vpop.f32.mrb[76].mxu1 }
 0x358   : > { %16481 = vst [vmem:[#allocation110_spill] sm:$0xff] %v13467_v30  ;;  %v13471_v27 = vpop.f32.mrb[77].mxu1 }
 0x359   : > { %16482 = vst [vmem:[#allocation111_spill] sm:$0xff] %v13471_v27  ;;  %4267 = vmax.xlane.f32.xlu1 %v4266_v29  ;;  %v13475_v23 = vpop.f32.mrb[92].mxu0 }
 0x35a   : > { %16483 = vst [vmem:[#allocation112_spill] sm:$0xff] %v13475_v23  ;;  %4264 = vmax.xlane.f32.xlu0 %v4263_v22  ;;  %v13477_v11 = vpop.f32.mrb[93].mxu0  ;;  %v4284_v22 = vsel %vm4172_vm0, %v13395_v60, -inf  ;;  %v4365_v60 = vsel %vm4172_vm0, %v13407_v54, -inf }
 0x35b   : > { %16484 = vst [vmem:[#allocation113_spill] sm:$0xff] %v13477_v11  ;;  %v13479_v25 = vpop.f32.mrb[78].mxu1 }
 0x35c   : > { %16485 = vst [vmem:[#allocation114_spill] sm:$0xff] %v13479_v25  ;;  %v13483_v52 = vpop.f32.mrb[79].mxu1 }
 0x35d   : > { %16486 = vst [vmem:[#allocation115_spill] sm:$0xff] %v13483_v52  ;;  %4351 = vmax.xlane.f32.xlu1 %v4350_v1  ;;  %v13487_v29 = vpop.f32.mrb[94].mxu0 }
 0x35e   : > { %16487 = vst [vmem:[#allocation116_spill] sm:$0xff] %v13487_v29  ;;  %4348 = vmax.xlane.f32.xlu0 %v4347_v39  ;;  %v13489_v49 = vpop.f32.mrb[95].mxu0 }
 0x35f   : > { %16488 = vst [vmem:[#allocation117_spill] sm:$0xff] %v13489_v49  ;;  %v13491_v21 = vpop.f32.mrb[80].mxu1 }
 0x360   : > { %16489 = vst [vmem:[#allocation118_spill] sm:$0xff] %v13491_v21  ;;  %v13495_v18 = vpop.f32.mrb[81].mxu1 }
 0x361   : > { %16490 = vst [vmem:[#allocation119_spill] sm:$0xff] %v13495_v18  ;;  %4285 = vmax.xlane.f32.xlu1 %v4284_v22  ;;  %v13499_v1 = vpop.f32.mrb[96].mxu0 }
 0x362   : > { %16491 = vst [vmem:[#allocation120_spill] sm:$0xff] %v13499_v1  ;;  %4282 = vmax.xlane.f32.xlu0 %v4281_v47  ;;  %v13503_v39 = vpop.f32.mrb[97].mxu0  ;;  %v4290_v47 = vsel %vm4172_vm0, %v13409_v20, -inf  ;;  %v4371_v20 = vsel %vm4172_vm0, %v13417_v8, -inf  ;;  %v4392_v8 = vsel %vm4172_vm0, %v13427_v31, -inf }
 0x363   : > { %16492 = vst [vmem:[#allocation121_spill] sm:$0xff] %v13503_v39  ;;  %v13505_v61 = vpop.f32.mrb[82].mxu1 }
 0x364   : > { %16493 = vst [vmem:[#allocation122_spill] sm:$0xff] %v13505_v61  ;;  %v13507_v19 = vpop.f32.mrb[83].mxu1 }
 0x365   : > { %16494 = vst [vmem:[#allocation123_spill] sm:$0xff] %v13507_v19  ;;  %4369 = vmax.xlane.f32.xlu1 %v4368_v57  ;;  %v13511_v22 = vpop.f32.mrb[98].mxu0 }
 0x366   : > { %16495 = vst [vmem:[#allocation124_spill] sm:$0xff] %v13511_v22  ;;  %4366 = vmax.xlane.f32.xlu0 %v4365_v60  ;;  %v13513_v37 = vpop.f32.mrb[99].mxu0  ;;  %v4374_v60 = vsel %vm4172_vm0, %v13415_v15, -inf  ;;  %v4305_v15 = vsel %vm4172_vm0, %v13423_v6, -inf }
 0x367   : > { %16496 = vst [vmem:[#allocation125_spill] sm:$0xff] %v13513_v37  ;;  %v13515_v58 = vpop.f32.mrb[84].mxu1 }
 0x368   : > { %16497 = vst [vmem:[#allocation126_spill] sm:$0xff] %v13515_v58  ;;  %v13519_v62 = vpop.f32.mrb[85].mxu1 }
 0x369   : > { %16498 = vst [vmem:[#allocation127_spill] sm:$0xff] %v13519_v62  ;;  %4291 = vmax.xlane.f32.xlu1 %v4290_v47  ;;  %v13523_v57 = vpop.f32.mrb[100].mxu0 }
 0x36a   : > { %16499 = vst [vmem:[#allocation128_spill] sm:$0xff] %v13523_v57  ;;  %4288 = vmax.xlane.f32.xlu0 %v4287_v24  ;;  %v13525_v54 = vpop.f32.mrb[101].mxu0  ;;  %v4308_v24 = vsel %vm4172_vm0, %v13419_v59, -inf  ;;  %v4389_v59 = vsel %vm4172_vm0, %v13429_v55, -inf }
 0x36b   : > { %16500 = vst [vmem:[#allocation129_spill] sm:$0xff] %v13525_v54  ;;  %v13527_v45 = vpop.f32.mrb[86].mxu1 }
 0x36c   : > { %16501 = vst [vmem:[#allocation130_spill] sm:$0xff] %v13527_v45  ;;  %v13531_v33 = vpop.f32.mrb[87].mxu1 }
 0x36d   : > { %16502 = vst [vmem:[#allocation131_spill] sm:$0xff] %v13531_v33  ;;  %4375 = vmax.xlane.f32.xlu1 %v4374_v60  ;;  %v13535_v47 = vpop.f32.mrb[102].mxu0 }
 0x36e   : > { %16503 = vst [vmem:[#allocation132_spill] sm:$0xff] %v13535_v47  ;;  %4372 = vmax.xlane.f32.xlu0 %v4371_v20  ;;  %v13537_v5 = vpop.f32.mrb[103].mxu0 }
 0x36f   : > { %16504 = vst [vmem:[#allocation133_spill] sm:$0xff] %v13537_v5  ;;  %v13539_v62 = vpop.f32.mrb[88].mxu1 }
 0x370   : > { %16505 = vst [vmem:[#allocation134_spill] sm:$0xff] %v13539_v62  ;;  %v13543_v54 = vpop.f32.mrb[89].mxu1  ;;  %v16550_v10 = vld [vmem:[#allocation127_spill] sm:$0xff] }
 0x371   : > { %16506 = vst [vmem:[#allocation135_spill] sm:$0xff] %v13543_v54  ;;  %4309 = vmax.xlane.f32.xlu1 %v4308_v24  ;;  %v13547_v60 = vpop.f32.mrb[104].mxu0 }
 0x372   : > { %16507 = vst [vmem:[#allocation136_spill] sm:$0xff] %v13547_v60  ;;  %4306 = vmax.xlane.f32.xlu0 %v4305_v15  ;;  %v13551_v20 = vpop.f32.mrb[105].mxu0  ;;  %v4314_v15 = vsel %vm4172_vm0, %v13431_v0, -inf  ;;  %v4395_v0 = vsel %vm4172_vm0, %v13441_v3, -inf }
 0x373   : > { %16508 = vst [vmem:[#allocation137_spill] sm:$0xff] %v13551_v20  ;;  %v13553_v5 = vpop.f32.mrb[90].mxu1 }
 0x374   : > { %16509 = vst [vmem:[#allocation138_spill] sm:$0xff] %v13553_v5  ;;  %v13555_v33 = vpop.f32.mrb[91].mxu1 }
 0x375   : > { %16510 = vst [vmem:[#allocation139_spill] sm:$0xff] %v13555_v33  ;;  %4393 = vmax.xlane.f32.xlu1 %v4392_v8  ;;  %v13559_v24 = vpop.f32.mrb[106].mxu0  ;;  %v4311_v33 = vsel %vm4172_vm0, %v13435_v35, -inf }
 0x376   : > { %16511 = vst [vmem:[#allocation140_spill] sm:$0xff] %v13559_v24  ;;  %4390 = vmax.xlane.f32.xlu0 %v4389_v59  ;;  %v13561_v6 = vpop.f32.mrb[107].mxu0  ;;  %v4398_v59 = vsel %vm4172_vm0, %v13439_v38, -inf  ;;  %v4329_v38 = vsel %vm4172_vm0, %v13447_v41, -inf }
 0x377   : > { %16512 = vst [vmem:[#allocation141_spill] sm:$0xff] %v13561_v6  ;;  %v13563_v54 = vpop.f32.mrb[92].mxu1 }
 0x378   : > { %16513 = vst [vmem:[#allocation142_spill] sm:$0xff] %v13563_v54  ;;  %v13567_v31 = vpop.f32.mrb[93].mxu1 }
 0x379   : > { %16514 = vst [vmem:[#allocation143_spill] sm:$0xff] %v13567_v31  ;;  %4315 = vmax.xlane.f32.xlu1 %v4314_v15  ;;  %v13571_v8 = vpop.f32.mrb[108].mxu0 }
 0x37a   : > { %16515 = vst [vmem:[#allocation144_spill] sm:$0xff] %v13571_v8  ;;  %4312 = vmax.xlane.f32.xlu0 %v4311_v33  ;;  %v13573_v55 = vpop.f32.mrb[109].mxu0  ;;  %v4332_v33 = vsel %vm4172_vm0, %v13443_v34, -inf }
 0x37b   : > { %16516 = vst [vmem:[#allocation145_spill] sm:$0xff] %v13573_v55  ;;  %v13575_v24 = vpop.f32.mrb[94].mxu1 }
 0x37c   : > { %16517 = vst [vmem:[#allocation146_spill] sm:$0xff] %v13575_v24  ;;  %v13579_v54 = vpop.f32.mrb[95].mxu1 }
 0x37d   : > { %16518 = vst [vmem:[#allocation147_spill] sm:$0xff] %v13579_v54  ;;  %4399 = vmax.xlane.f32.xlu1 %v4398_v59  ;;  %v13583_v15 = vpop.f32.mrb[110].mxu0  ;;  %v4416_v59 = vsel %vm4172_vm0, %v13451_v51, -inf }
 0x37e   : > { %16519 = vst [vmem:[#allocation148_spill] sm:$0xff] %v13583_v15  ;;  %4396 = vmax.xlane.f32.xlu0 %v4395_v0  ;;  %v13585_v35 = vpop.f32.mrb[111].mxu0 }
 0x37f   : > { %16520 = vst [vmem:[#allocation149_spill] sm:$0xff] %v13585_v35  ;;  %v13587_v8 = vpop.f32.mrb[96].mxu1 }
 0x380   : > { %16521 = vst [vmem:[#allocation150_spill] sm:$0xff] %v13587_v8  ;;  %v13591_v24 = vpop.f32.mrb[97].mxu1  ;;  %v4413_v8 = vsel %vm4172_vm0, %v13455_v12, -inf }
 0x381   : > { %16522 = vst [vmem:[#allocation151_spill] sm:$0xff] %v13591_v24  ;;  %4333 = vmax.xlane.f32.xlu1 %v4332_v33  ;;  %v4338_v33 = vsel %vm4172_vm0, %v13457_v42, -inf }
 0x382   : > { %4330 = vmax.xlane.f32.xlu0 %v4329_v38  ;;  %v4335_v38 = vsel %vm4172_vm0, %v13459_v32, -inf }
 0x383   : > { %v13597_v3 = vpop.f32.mrb[98].mxu1 }
 0x384   : > { %16523 = vst [vmem:[#allocation152_spill] sm:$0xff] %v13597_v3  ;;  %v13599_v0 = vpop.f32.mrb[99].mxu1 }
 0x385   : > { %16524 = vst [vmem:[#allocation153_spill] sm:$0xff] %v13599_v0  ;;  %4417 = vmax.xlane.f32.xlu1 %v4416_v59  ;;  %v4422_v59 = vsel %vm4172_vm0, %v13463_v2, -inf  ;;  %v4356_v2 = vsel %vm4172_vm0, %v13467_v30, -inf  ;;  %v4353_v30 = vsel %vm4172_vm0, %v13471_v27, -inf }
 0x386   : > { %4414 = vmax.xlane.f32.xlu0 %v4413_v8  ;;  %v4419_v8 = vsel %vm4172_vm0, %v13465_v40, -inf }
 0x387   : > { %v13603_v34 = vpop.f32.mrb[100].mxu1 }
 0x388   : > { %16525 = vst [vmem:[#allocation154_spill] sm:$0xff] %v13603_v34  ;;  %v13607_v35 = vpop.f32.mrb[101].mxu1 }
 0x389   : > { %16526 = vst [vmem:[#allocation155_spill] sm:$0xff] %v13607_v35  ;;  %4339 = vmax.xlane.f32.xlu1 %v4338_v33 }
 0x38a   : > { %4336 = vmax.xlane.f32.xlu0 %v4335_v38  ;;  %v4440_v38 = vsel %vm4172_vm0, %v13475_v23, -inf  ;;  %v4362_v23 = vsel %vm4172_vm0, %v13479_v25, -inf  ;;  %v4437_v25 = vsel %vm4172_vm0, %v13477_v11, -inf }
 0x38b   : > { %v13611_v51 = vpop.f32.mrb[102].mxu1 }
 0x38c   : > { %16527 = vst [vmem:[#allocation156_spill] sm:$0xff] %v13611_v51  ;;  %v13615_v41 = vpop.f32.mrb[103].mxu1 }
 0x38d   : > { %16528 = vst [vmem:[#allocation157_spill] sm:$0xff] %v13615_v41  ;;  %4423 = vmax.xlane.f32.xlu1 %v4422_v59 }
 0x38e   : > { %v13619_v12 = vpop.xlane.xlu1 %4177  ;;  %4420 = vmax.xlane.f32.xlu0 %v4419_v8  ;;  %v4380_v8 = vsel %vm4172_vm0, %v13491_v21, -inf }
 0x38f   : > { %16529 = vst [vmem:[#allocation158_spill] sm:$0xff] %v13619_v12  ;;  %v13623_v42 = vpop.xlane.xlu0 %4174  ;;  %v13627_v32 = vpop.f32.mrb[104].mxu1 }
 0x390   : > { %16530 = vst [vmem:[#allocation159_spill] sm:$0xff] %v13627_v32  ;;  %v13631_v59 = vpop.f32.mrb[105].mxu1 }
 0x391   : > { %16531 = vst [vmem:[#allocation160_spill] sm:$0xff] %v13631_v59  ;;  %4357 = vmax.xlane.f32.xlu1 %v4356_v2 }
 0x392   : > { %v13633_v40 = vpop.xlane.xlu1 %4183  ;;  %4441 = vmax.xlane.f32.xlu0 %v4440_v38 }
 0x393   : > { %16532 = vst [vmem:[#allocation161_spill] sm:$0xff] %v13633_v40  ;;  %v13637_v33 = vpop.xlane.xlu0 %4180  ;;  %v13639_v12 = vpop.f32.mrb[106].mxu1 }
 0x394   : > { %16533 = vst [vmem:[#allocation162_spill] sm:$0xff] %v13639_v12  ;;  %v13643_v32 = vpop.f32.mrb[107].mxu1 }
 0x395   : > { %16534 = vst [vmem:[#allocation163_spill] sm:$0xff] %v13643_v32  ;;  %4363 = vmax.xlane.f32.xlu1 %v4362_v23 }
 0x396   : > { %v13647_v2 = vpop.xlane.xlu1 %4189  ;;  %4354 = vmax.xlane.f32.xlu0 %v4353_v30  ;;  %v4410_v30 = vsel %vm4172_vm0, %v13527_v45, -inf }
 0x397   : > { %v13649_v38 = vpop.xlane.xlu0 %4186  ;;  %v13651_v36 = vpop.f32.mrb[108].mxu1 }
 0x398   : > { %16535 = vst [vmem:[#allocation164_spill] sm:$0xff] %v13651_v36  ;;  %v13655_v12 = vpop.f32.mrb[109].mxu1  ;;  %v4386_v36 = vsel %vm4172_vm0, %v13505_v61, -inf  ;;  %v4404_v61 = vsel %vm4172_vm0, %v13515_v58, -inf }
 0x399   : > { %16536 = vst [vmem:[#allocation165_spill] sm:$0xff] %v13655_v12  ;;  %4381 = vmax.xlane.f32.xlu1 %v4380_v8  ;;  %v4446_v8 = vsel %vm4172_vm0, %v13487_v29, -inf }
 0x39a   : > { %v13659_v23 = vpop.xlane.xlu1 %4195  ;;  %4438 = vmax.xlane.f32.xlu0 %v4437_v25  ;;  %v4377_v25 = vsel %vm4172_vm0, %v13495_v18, -inf }
 0x39b   : > { %v13661_v27 = vpop.xlane.xlu0 %4192  ;;  %v13663_v40 = vpop.f32.mrb[110].mxu1 }
 0x39c   : > { %16537 = vst [vmem:[#allocation166_spill] sm:$0xff] %v13663_v40  ;;  %v13669_v21 = vpop.f32.mrb[111].mxu1 }
 0x39d   : > { %16538 = vst [vmem:[#allocation167_spill] sm:$0xff] %v13669_v21  ;;  %4387 = vmax.xlane.f32.xlu1 %v4386_v36  ;;  %v4359_v36 = vsel %vm4172_vm0, %v13483_v52, -inf }
 0x39e   : > { %v13673_v11 = vpop.xlane.xlu1 %4201  ;;  %4447 = vmax.xlane.f32.xlu0 %v4446_v8  ;;  %v4464_v8 = vsel %vm4172_vm0, %v13499_v1, -inf  ;;  %v4434_v1 = vsel %vm4172_vm0, %v13553_v5, -inf }
 0x39f   : > { %v13677_v7 = vpop.xlane.xlu0 %4198 }
 0x3a1   : > { %4405 = vmax.xlane.f32.xlu1 %v4404_v61  ;;  %v4443_v61 = vsel %vm4172_vm0, %v13489_v49, -inf }
 0x3a2   : > { %v13685_v40 = vpop.xlane.xlu1 %4207  ;;  %4360 = vmax.xlane.f32.xlu0 %v4359_v36  ;;  %v4449_v36 = vsel %vm4172_vm0, %v13567_v31, -inf }
 0x3a3   : > { %16539 = vst [vmem:[#allocation168_spill] sm:$0xff] %v13685_v40  ;;  %v13689_v29 = vpop.xlane.xlu0 %4204 }
 0x3a5   : > { %4411 = vmax.xlane.f32.xlu1 %v4410_v30  ;;  %v4428_v30 = vsel %vm4172_vm0, %v13539_v62, -inf }
 0x3a6   : > { %v13697_v58 = vpop.xlane.xlu1 %4213  ;;  %4444 = vmax.xlane.f32.xlu0 %v4443_v61  ;;  %v4455_v61 = vsel %vm4172_vm0, %v13579_v54, -inf }
 0x3a7   : > { %v13701_v52 = vpop.xlane.xlu0 %4210 }
 0x3a9   : > { %4429 = vmax.xlane.f32.xlu1 %v4428_v30 }
 0x3aa   : > { %v13709_v45 = vpop.xlane.xlu1 %4219  ;;  %4465 = vmax.xlane.f32.xlu0 %v4464_v8 }
 0x3ab   : > { %v13713_v49 = vpop.xlane.xlu0 %4216 }
 0x3ad   : > { %4435 = vmax.xlane.f32.xlu1 %v4434_v1  ;;  %v4461_v1 = vsel %vm4172_vm0, %v13503_v39, -inf }
 0x3ae   : > { %v13721_v62 = vpop.xlane.xlu1 %4225  ;;  %4378 = vmax.xlane.f32.xlu0 %v4377_v25  ;;  %v16545_v25 = vld [vmem:[#allocation63_spill] sm:$0xff] }
 0x3af   : > { %16540 = vst [vmem:[#allocation169_spill] sm:$0xff] %v13721_v62  ;;  %v13725_v30 = vpop.xlane.xlu0 %4222  ;;  %v16552_v62 = vld [vmem:[#allocation66_spill] sm:$0xff] }
 0x3b1   : > { %4450 = vmax.xlane.f32.xlu1 %v4449_v36  ;;  %v4470_v36 = vsel %vm4172_vm0, %v13511_v22, -inf }
 0x3b2   : > { %v13733_v5 = vpop.xlane.xlu1 %4273  ;;  %4462 = vmax.xlane.f32.xlu0 %v4461_v1  ;;  %v4473_v1 = vsel %vm4172_vm0, %v13591_v24, -inf  ;;  %v4479_v24 = vsel %vm4172_vm0, %v13599_v0, -inf }
 0x3b3   : > { %16541 = vst [vmem:[#allocation170_spill] sm:$0xff] %v13733_v5  ;;  %v13737_v18 = vpop.xlane.xlu0 %4270 }
 0x3b5   : > { %4456 = vmax.xlane.f32.xlu1 %v4455_v61  ;;  %v4383_v61 = vsel %vm4172_vm0, %v13507_v19, -inf }
 0x3b6   : > { %v13745_v31 = vpop.xlane.xlu1 %4231  ;;  %4471 = vmax.xlane.f32.xlu0 %v4470_v36  ;;  %v16544_v36 = vld [vmem:[#allocation62_spill] sm:$0xff] }
 0x3b7   : > { %16542 = vst [vmem:[#allocation171_spill] sm:$0xff] %v13745_v31  ;;  %v13751_v39 = vpop.xlane.xlu0 %4228 }
 0x3b9   : > { %4474 = vmax.xlane.f32.xlu1 %v4473_v1  ;;  %v4467_v1 = vsel %vm4172_vm0, %v13513_v37, -inf }
 0x3ba   : > { %v13757_v54 = vpop.xlane.xlu1 %4279  ;;  %4384 = vmax.xlane.f32.xlu0 %v4383_v61  ;;  %v4497_v61 = vsel %vm4172_vm0, %v13607_v35, -inf  ;;  %v16547_v35 = vld [vmem:[#allocation64_spill] sm:$0xff] }
 0x3bb   : > { %16543 = vst [vmem:[#allocation172_spill] sm:$0xff] %v13757_v54  ;;  %v13761_v22 = vpop.xlane.xlu0 %4276 }
 0x3bd   : > { %4480 = vmax.xlane.f32.xlu1 %v4479_v24  ;;  %v4488_v24 = vsel %vm4172_vm0, %v13523_v57, -inf  ;;  %v4401_v57 = vsel %vm4172_vm0, %v16550_v10, -inf  ;;  %v16554_v10 = vld [vmem:[#allocation129_spill] sm:$0xff] }
 0x3be   : > { %v13769_v8 = vpop.xlane.xlu1 %4237  ;;  %4468 = vmax.xlane.f32.xlu0 %v4467_v1  ;;  %v16546_v1 = vld [vmem:[#allocation52_spill] sm:$0xff]  ;;  %v4485_v19 = vsel %vm4172_vm0, %v16554_v10, -inf }
 0x3bf   : > { %v13775_v54 = vpop.xlane.xlu0 %4234  ;;  %v4557_v37 = vsub.f32 %v16546_v1, %v13623_v42  ;;  %v4521_v42 = vsel %vm4172_vm0, %v13631_v59, -inf  ;;  %v16551_v1 = vld [vmem:[#allocation54_spill] sm:$0xff]  ;;  %v16555_v59 = vld [vmem:[#allocation55_spill] sm:$0xff]  ;;  %v16575_v10 = vld [vmem:[#allocation76_spill] sm:$0xff] }
 0x3c0   : > { %v4559_v31 = vsub.f32 %v16551_v1, %v13637_v33  ;;  %v4562_v33 = vsub.f32 %v16555_v59, %v13647_v2  ;;  %v16556_v1 = vld [vmem:[#allocation68_spill] sm:$0xff] }
 0x3c1   : > { %4498 = vmax.xlane.f32.xlu1 %v4497_v61  ;;  %v4503_v61 = vsel %vm4172_vm0, %v13615_v41, -inf  ;;  %v16560_v2 = vld [vmem:[#allocation56_spill] sm:$0xff] }
 0x3c2   : > { %v13781_v0 = vpop.xlane.xlu1 %4297  ;;  %4489 = vmax.xlane.f32.xlu0 %v4488_v24  ;;  %v4685_v24 = vmul.f32 1.442695, %v4557_v37  ;;  %v4689_v37 = vmul.f32 1.442695, %v4559_v31  ;;  %v4545_v31 = vsel %vm4172_vm0, %v13655_v12, -inf  ;;  %v4561_v5 = vsub.f32 %v16560_v2, %v13649_v38  ;;  %v16565_v2 = vld [vmem:[#allocation72_spill] sm:$0xff] }
 0x3c3   : > { %v13787_v17 = vpop.xlane.xlu0 %4294  ;;  %v4695_v59 = vmul.f32 1.442695, %v4562_v33  ;;  %v16564_v33 = vld [vmem:[#allocation57_spill] sm:$0xff] }
 0x3c4   : > { %16548 = vst [vmem:[#allocation62_spill] sm:$0xff] %v13787_v17  ;;  %11444 = vpow2.f32 %v4685_v24  ;;  %v4564_v38 = vsub.f32 %v16564_v33, %v13659_v23 }
 0x3c5   : > { %4504 = vmax.xlane.f32.xlu1 %v4503_v61  ;;  %v16553_v61 = vld [vmem:[#allocation67_spill] sm:$0xff]  ;;  %11446 = vpow2.f32 %v4689_v37  ;;  %v4693_v37 = vmul.f32 1.442695, %v4561_v5 }
 0x3c6   : > { %v13795_v26 = vpop.xlane.xlu1 %4243  ;;  %4402 = vmax.xlane.f32.xlu0 %v4401_v57  ;;  %11448 = vpow2.f32 %v4695_v59  ;;  %v4699_v23 = vmul.f32 1.442695, %v4564_v38 }
 0x3c7   : > { %v13803_v17 = vpop.xlane.xlu0 %4240  ;;  %11450 = vpow2.f32 %v4693_v37  ;;  %v16574_v37 = vsub.f32 %v13261_v13, %v13661_v27  ;;  %v16580_v13 = vsub.f32 %v13269_v9, %v13677_v7  ;;  %v16585_v7 = vsub.f32 %v13277_v46, %v13689_v29 }
 0x3c8   : > { %11452 = vpow2.f32 %v4699_v23  ;;  %v16591_v46 = vsub.f32 %v13283_v16, %v13697_v58  ;;  %v16597_v58 = vsub.f32 %v13285_v14, %v13701_v52  ;;  %v16602_v52 = vsub.f32 %v13291_v50, %v13709_v45 }
 0x3c9   : > { %4522 = vmax.xlane.f32.xlu1 %v4521_v42  ;;  %v4527_v42 = vsel %vm4172_vm0, %v13643_v32, -inf  ;;  %v16572_v32 = vld [vmem:[#allocation75_spill] sm:$0xff]  ;;  %v4697_v38 = vmul.f32 1.442695, %v16574_v37  ;;  %v4701_v27 = vmul.f32 1.442695, %v16580_v13  ;;  %v16608_v50 = vsub.f32 %v13293_v44, %v13713_v49 }
 0x3ca   : > { %v13809_v57 = vpop.xlane.xlu1 %4303  ;;  %4486 = vmax.xlane.f32.xlu0 %v4485_v19  ;;  %v4494_v19 = vsel %vm4172_vm0, %v13535_v47, -inf  ;;  %v16563_v47 = vld [vmem:[#allocation131_spill] sm:$0xff]  ;;  %v16581_v37 = vld [vmem:[#allocation78_spill] sm:$0xff]  ;;  %v4705_v9 = vmul.f32 1.442695, %v16585_v7  ;;  %v16586_v13 = vld [vmem:[#allocation80_spill] sm:$0xff]  ;;  %v16614_v44 = vsub.f32 %v13303_v53, %v13725_v30  ;;  %v16619_v53 = vsub.f32 %v13305_v4, %v13737_v18 }
 0x3cb   : > { %v13815_v43 = vpop.xlane.xlu0 %4300  ;;  %11454 = vpow2.f32 %v4697_v38  ;;  %v4509_v38 = vsel %vm4172_vm0, %v13551_v20, -inf  ;;  %v4711_v29 = vmul.f32 1.442695, %v16591_v46  ;;  %v16592_v7 = vld [vmem:[#allocation82_spill] sm:$0xff]  ;;  %v4709_v16 = vmul.f32 1.442695, %v16597_v58 }
 0x3cc   : > { %16557 = vst [vmem:[#allocation63_spill] sm:$0xff] %v13815_v43  ;;  %11456 = vpow2.f32 %v4701_v27  ;;  %v16598_v46 = vld [vmem:[#allocation84_spill] sm:$0xff]  ;;  %v4715_v14 = vmul.f32 1.442695, %v16602_v52  ;;  %v16603_v58 = vld [vmem:[#allocation86_spill] sm:$0xff]  ;;  %v16625_v4 = vsub.f32 %v13317_v28, %v13751_v39  ;;  %v16630_v28 = vsub.f32 %v13319_v56, %v13761_v22 }
 0x3cd   : > { %4528 = vmax.xlane.f32.xlu1 %v4527_v42  ;;  %v16562_v42 = vld [vmem:[#allocation71_spill] sm:$0xff]  ;;  %11458 = vpow2.f32 %v4705_v9  ;;  %v4713_v45 = vmul.f32 1.442695, %v16608_v50  ;;  %v16609_v52 = vld [vmem:[#allocation88_spill] sm:$0xff]  ;;  %v4717_v49 = vmul.f32 1.442695, %v16614_v44  ;;  %v16636_v56 = vsub.f32 %v16544_v36, %v13769_v8 }
 0x3ce   : > { %v13823_v24 = vpop.xlane.xlu1 %4249  ;;  %4495 = vmax.xlane.f32.xlu0 %v4494_v19  ;;  %v4407_v19 = vsel %vm4172_vm0, %v16563_v47, -inf  ;;  %v13849_v47 = vpop.eup %11444  ;;  %11460 = vpow2.f32 %v4711_v29  ;;  %v4515_v29 = vsel %vm4172_vm0, %v13561_v6, -inf  ;;  %v16615_v50 = vld [vmem:[#allocation90_spill] sm:$0xff]  ;;  %v4749_v30 = vmul.f32 1.442695, %v16619_v53  ;;  %v16620_v44 = vld [vmem:[#allocation92_spill] sm:$0xff] }
 0x3cf   : > { %16559 = vst [vmem:[#allocation52_spill] sm:$0xff] %v13823_v24  ;;  %v13831_v43 = vpop.xlane.xlu0 %4246  ;;  %16568 = vst [vmem:[#allocation54_spill] sm:$0xff] %v13849_v47  ;;  %11462 = vpow2.f32 %v4709_v16  ;;  %v4721_v18 = vmul.f32 1.442695, %v16625_v4  ;;  %v16626_v53 = vld [vmem:[#allocation94_spill] sm:$0xff]  ;;  %v16631_v4 = vld [vmem:[#allocation96_spill] sm:$0xff]  ;;  %v16642_v8 = vsub.f32 %v16547_v35, %v13781_v0  ;;  %v16647_v35 = vsub.f32 %v16545_v25, %v13775_v54 }
 0x3d0   : > { %11464 = vpow2.f32 %v4715_v14  ;;  %v4753_v39 = vmul.f32 1.442695, %v16630_v28  ;;  %v4727_v22 = vmul.f32 1.442695, %v16636_v56  ;;  %v16637_v28 = vld [vmem:[#allocation98_spill] sm:$0xff]  ;;  %v16643_v56 = vld [vmem:[#allocation100_spill] sm:$0xff]  ;;  %v16653_v25 = vsub.f32 %v16552_v62, %v13795_v26 }
 0x3d1   : > { %4546 = vmax.xlane.f32.xlu1 %v4545_v31  ;;  %v4551_v31 = vsel %vm4172_vm0, %v13669_v21, -inf  ;;  %v4941_v21 = vsel %vm4172_vm0, %v13849_v47, 0.0  ;;  %11466 = vpow2.f32 %v4713_v45  ;;  %v4533_v45 = vsel %vm4172_vm0, %v13573_v55, -inf }
 0x3d2   : > { %v13837_v40 = vpop.xlane.xlu1 %4321  ;;  %4408 = vmax.xlane.f32.xlu0 %v4407_v19  ;;  %v16569_v19 = vld [vmem:[#allocation133_spill] sm:$0xff]  ;;  %11468 = vpow2.f32 %v4717_v49  ;;  %v4767_v36 = vmul.f32 1.442695, %v16642_v8  ;;  %v4725_v0 = vmul.f32 1.442695, %v16647_v35  ;;  %v16648_v8 = vld [vmem:[#allocation102_spill] sm:$0xff]  ;;  %v16659_v26 = vsub.f32 %v16556_v1, %v13809_v57 }
 0x3d3   : > { %v13843_v12 = vpop.xlane.xlu0 %4318  ;;  %v4491_v5 = vsel %vm4172_vm0, %v16569_v19, -inf  ;;  %v4512_v19 = vsel %vm4172_vm0, %v13547_v60, -inf  ;;  %11470 = vpow2.f32 %v4749_v30  ;;  %v4542_v30 = vsel %vm4172_vm0, %v13583_v15, -inf  ;;  %v16654_v35 = vld [vmem:[#allocation104_spill] sm:$0xff]  ;;  %v16667_v57 = vld [vmem:[#allocation159_spill] sm:$0xff] }
 0x3d4   : > { %16566 = vst [vmem:[#allocation64_spill] sm:$0xff] %v13843_v12  ;;  %11472 = vpow2.f32 %v4721_v18  ;;  %v4771_v62 = vmul.f32 1.442695, %v16659_v26  ;;  %v4524_v1 = vsel %vm4172_vm0, %v16667_v57, -inf  ;;  %v16673_v57 = vld [vmem:[#allocation109_spill] sm:$0xff] }
 0x3d5   : > { %4552 = vmax.xlane.f32.xlu1 %v4551_v31  ;;  %v13863_v31 = vpop.eup %11446  ;;  %11474 = vpow2.f32 %v4753_v39 }
 0x3d6   : > { %v13853_v59 = vpop.xlane.xlu1 %4255  ;;  %4492 = vmax.xlane.f32.xlu0 %v4491_v5  ;;  %16573 = vst [vmem:[#allocation67_spill] sm:$0xff] %v13863_v31  ;;  %v13880_v60 = vpop.eup %11448  ;;  %11476 = vpow2.f32 %v4727_v22  ;;  %v4482_v22 = vsel %vm4172_vm0, %v13597_v3, -inf }
 0x3d7   : > { %16570 = vst [vmem:[#allocation66_spill] sm:$0xff] %v13853_v59  ;;  %v13857_v41 = vpop.xlane.xlu0 %4252  ;;  %16578 = vst [vmem:[#allocation68_spill] sm:$0xff] %v13880_v60  ;;  %11478 = vpow2.f32 %v4767_v36  ;;  %v4731_v36 = vmul.f32 1.442695, %v16653_v25 }
 0x3d8   : > { %11480 = vpow2.f32 %v4725_v0  ;;  %v4506_v0 = vsel %vm4172_vm0, %v13611_v51, -inf }
 0x3d9   : > { %4942 = vadd.xlane.f32.xlu1 %v4941_v21  ;;  %v4947_v21 = vsel %vm4172_vm0, %v13863_v31, 0.0  ;;  %v16583_v31 = vld [vmem:[#allocation79_spill] sm:$0xff] }
 0x3da   : > { %v13867_v5 = vpop.xlane.xlu1 %4327  ;;  %4513 = vmax.xlane.f32.xlu0 %v4512_v19  ;;  %v16579_v19 = vld [vmem:[#allocation135_spill] sm:$0xff] }
 0x3db   : > { %v13874_v59 = vpop.xlane.xlu0 %4324  ;;  %v4425_v23 = vsel %vm4172_vm0, %v16579_v19, -inf  ;;  %v13897_v19 = vpop.eup %11450  ;;  %11482 = vpow2.f32 %v4731_v36 }
 0x3dc   : > { %16576 = vst [vmem:[#allocation55_spill] sm:$0xff] %v13874_v59  ;;  %16584 = vst [vmem:[#allocation71_spill] sm:$0xff] %v13897_v19  ;;  %v13914_v20 = vpop.eup %11452  ;;  %11484 = vpow2.f32 %v4771_v62  ;;  %v16677_v62 = vld [vmem:[#allocation110_spill] sm:$0xff] }
 0x3dd   : > { %4948 = vadd.xlane.f32.xlu1 %v4947_v21  ;;  %v4956_v21 = vsel %vm4172_vm0, %v13880_v60, 0.0  ;;  %16589 = vst [vmem:[#allocation72_spill] sm:$0xff] %v13914_v20 }
 0x3de   : > { %v13884_v24 = vpop.xlane.xlu1 %4261  ;;  %4426 = vmax.xlane.f32.xlu0 %v4425_v23 }
 0x3df   : > { %v13891_v12 = vpop.xlane.xlu0 %4258 }
 0x3e0   : > { %16582 = vst [vmem:[#allocation56_spill] sm:$0xff] %v13891_v12 }
 0x3e1   : > { %4957 = vadd.xlane.f32.xlu1 %v4956_v21  ;;  %v4953_v21 = vsel %vm4172_vm0, %v13897_v19, 0.0  ;;  %v16594_v19 = vld [vmem:[#allocation83_spill] sm:$0xff] }
 0x3e2   : > { %v13901_v23 = vpop.xlane.xlu1 %4345  ;;  %4510 = vmax.xlane.f32.xlu0 %v4509_v38  ;;  %v16590_v38 = vld [vmem:[#allocation140_spill] sm:$0xff] }
 0x3e3   : > { %v13908_v33 = vpop.xlane.xlu0 %4342  ;;  %v4518_v27 = vsel %vm4172_vm0, %v16590_v38, -inf  ;;  %v13931_v38 = vpop.eup %11454 }
 0x3e4   : > { %16587 = vst [vmem:[#allocation57_spill] sm:$0xff] %v13908_v33  ;;  %16595 = vst [vmem:[#allocation76_spill] sm:$0xff] %v13931_v38 }
 0x3e5   : > { %4954 = vadd.xlane.f32.xlu1 %v4953_v21  ;;  %v4962_v21 = vsel %vm4172_vm0, %v13914_v20, 0.0 }
 0x3e6   : > { %v13918_v12 = vpop.xlane.xlu1 %4267  ;;  %4519 = vmax.xlane.f32.xlu0 %v4518_v27  ;;  %v16596_v27 = vld [vmem:[#allocation139_spill] sm:$0xff] }
 0x3e7   : > { %v13925_v59 = vpop.xlane.xlu0 %4264  ;;  %v4431_v9 = vsel %vm4172_vm0, %v16596_v27, -inf  ;;  %v13948_v27 = vpop.eup %11456 }
 0x3e8   : > { %16593 = vst [vmem:[#allocation75_spill] sm:$0xff] %v13925_v59  ;;  %16601 = vst [vmem:[#allocation79_spill] sm:$0xff] %v13948_v27  ;;  %v13965_v6 = vpop.eup %11458 }
 0x3e9   : > { %4963 = vadd.xlane.f32.xlu1 %v4962_v21  ;;  %v4959_v21 = vsel %vm4172_vm0, %v13931_v38, 0.0  ;;  %16606 = vst [vmem:[#allocation82_spill] sm:$0xff] %v13965_v6 }
 0x3ea   : > { %v13935_v60 = vpop.xlane.xlu1 %4351  ;;  %4432 = vmax.xlane.f32.xlu0 %v4431_v9 }
 0x3eb   : > { %v13942_v47 = vpop.xlane.xlu0 %4348 }
 0x3ec   : > { %16599 = vst [vmem:[#allocation78_spill] sm:$0xff] %v13942_v47 }
 0x3ed   : > { %4960 = vadd.xlane.f32.xlu1 %v4959_v21  ;;  %v4965_v21 = vsel %vm4172_vm0, %v13948_v27, 0.0  ;;  %v16611_v27 = vld [vmem:[#allocation89_spill] sm:$0xff] }
 0x3ee   : > { %v13952_v9 = vpop.xlane.xlu1 %4285  ;;  %4516 = vmax.xlane.f32.xlu0 %v4515_v29  ;;  %v16607_v29 = vld [vmem:[#allocation142_spill] sm:$0xff] }
 0x3ef   : > { %v13959_v33 = vpop.xlane.xlu0 %4282  ;;  %v4452_v16 = vsel %vm4172_vm0, %v16607_v29, -inf  ;;  %v13982_v29 = vpop.eup %11460 }
 0x3f0   : > { %16604 = vst [vmem:[#allocation80_spill] sm:$0xff] %v13959_v33  ;;  %16612 = vst [vmem:[#allocation84_spill] sm:$0xff] %v13982_v29 }
 0x3f1   : > { %4966 = vadd.xlane.f32.xlu1 %v4965_v21  ;;  %v4971_v21 = vsel %vm4172_vm0, %v13965_v6, 0.0 }
 0x3f2   : > { %v13969_v20 = vpop.xlane.xlu1 %4369  ;;  %4453 = vmax.xlane.f32.xlu0 %v4452_v16  ;;  %v16613_v16 = vld [vmem:[#allocation144_spill] sm:$0xff] }
 0x3f3   : > { %v13976_v59 = vpop.xlane.xlu0 %4366  ;;  %v4536_v14 = vsel %vm4172_vm0, %v16613_v16, -inf  ;;  %v13999_v16 = vpop.eup %11462 }
 0x3f4   : > { %16610 = vst [vmem:[#allocation83_spill] sm:$0xff] %v13976_v59  ;;  %16618 = vst [vmem:[#allocation88_spill] sm:$0xff] %v13999_v16  ;;  %v14016_v55 = vpop.eup %11464 }
 0x3f5   : > { %4972 = vadd.xlane.f32.xlu1 %v4971_v21  ;;  %v4980_v21 = vsel %vm4172_vm0, %v13982_v29, 0.0  ;;  %v16622_v29 = vld [vmem:[#allocation93_spill] sm:$0xff]  ;;  %16623 = vst [vmem:[#allocation90_spill] sm:$0xff] %v14016_v55 }
 0x3f6   : > { %v13986_v38 = vpop.xlane.xlu1 %4291  ;;  %4537 = vmax.xlane.f32.xlu0 %v4536_v14 }
 0x3f7   : > { %v13993_v47 = vpop.xlane.xlu0 %4288 }
 0x3f8   : > { %16616 = vst [vmem:[#allocation86_spill] sm:$0xff] %v13993_v47 }
 0x3f9   : > { %4981 = vadd.xlane.f32.xlu1 %v4980_v21  ;;  %v4977_v21 = vsel %vm4172_vm0, %v13999_v16, 0.0 }
 0x3fa   : > { %v14003_v14 = vpop.xlane.xlu1 %4375  ;;  %4534 = vmax.xlane.f32.xlu0 %v4533_v45  ;;  %v16624_v45 = vld [vmem:[#allocation146_spill] sm:$0xff] }
 0x3fb   : > { %v14010_v33 = vpop.xlane.xlu0 %4372  ;;  %v4458_v49 = vsel %vm4172_vm0, %v16624_v45, -inf  ;;  %v14033_v45 = vpop.eup %11466 }
 0x3fc   : > { %16621 = vst [vmem:[#allocation89_spill] sm:$0xff] %v14010_v33  ;;  %16629 = vst [vmem:[#allocation93_spill] sm:$0xff] %v14033_v45  ;;  %v14050_v15 = vpop.eup %11468 }
 0x3fd   : > { %4978 = vadd.xlane.f32.xlu1 %v4977_v21  ;;  %v4986_v21 = vsel %vm4172_vm0, %v14016_v55, 0.0  ;;  %16634 = vst [vmem:[#allocation96_spill] sm:$0xff] %v14050_v15 }
 0x3fe   : > { %v14020_v6 = vpop.xlane.xlu1 %4309  ;;  %4459 = vmax.xlane.f32.xlu0 %v4458_v49 }
 0x3ff   : > { %v14027_v59 = vpop.xlane.xlu0 %4306 }
 0x400   : > { %16627 = vst [vmem:[#allocation92_spill] sm:$0xff] %v14027_v59 }
 0x401   : > { %4987 = vadd.xlane.f32.xlu1 %v4986_v21  ;;  %v4983_v21 = vsel %vm4172_vm0, %v14033_v45, 0.0  ;;  %v16639_v45 = vld [vmem:[#allocation99_spill] sm:$0xff] }
 0x402   : > { %v14037_v49 = vpop.xlane.xlu1 %4393  ;;  %4543 = vmax.xlane.f32.xlu0 %v4542_v30  ;;  %v16635_v30 = vld [vmem:[#allocation149_spill] sm:$0xff] }
 0x403   : > { %v14044_v47 = vpop.xlane.xlu0 %4390  ;;  %v4539_v18 = vsel %vm4172_vm0, %v16635_v30, -inf  ;;  %v14067_v30 = vpop.eup %11470 }
 0x404   : > { %16632 = vst [vmem:[#allocation94_spill] sm:$0xff] %v14044_v47  ;;  %16640 = vst [vmem:[#allocation99_spill] sm:$0xff] %v14067_v30 }
 0x405   : > { %4984 = vadd.xlane.f32.xlu1 %v4983_v21  ;;  %v4989_v21 = vsel %vm4172_vm0, %v14050_v15, 0.0  ;;  %v16645_v15 = vld [vmem:[#allocation101_spill] sm:$0xff] }
 0x406   : > { %v14054_v16 = vpop.xlane.xlu1 %4315  ;;  %4540 = vmax.xlane.f32.xlu0 %v4539_v18  ;;  %v16641_v18 = vld [vmem:[#allocation150_spill] sm:$0xff] }
 0x407   : > { %v14061_v33 = vpop.xlane.xlu0 %4312  ;;  %v4476_v39 = vsel %vm4172_vm0, %v16641_v18, -inf  ;;  %v14084_v18 = vpop.eup %11472 }
 0x408   : > { %16638 = vst [vmem:[#allocation98_spill] sm:$0xff] %v14061_v33  ;;  %16646 = vst [vmem:[#allocation101_spill] sm:$0xff] %v14084_v18  ;;  %v14101_v3 = vpop.eup %11474 }
 0x409   : > { %4990 = vadd.xlane.f32.xlu1 %v4989_v21  ;;  %v5037_v21 = vsel %vm4172_vm0, %v14067_v30, 0.0  ;;  %v16650_v30 = vld [vmem:[#allocation103_spill] sm:$0xff] }
 0x40a   : > { %v14071_v55 = vpop.xlane.xlu1 %4399  ;;  %4477 = vmax.xlane.f32.xlu0 %v4476_v39  ;;  %16651 = vst [vmem:[#allocation103_spill] sm:$0xff] %v14101_v3 }
 0x40b   : > { %v14078_v59 = vpop.xlane.xlu0 %4396 }
 0x40c   : > { %16644 = vst [vmem:[#allocation100_spill] sm:$0xff] %v14078_v59 }
 0x40d   : > { %5038 = vadd.xlane.f32.xlu1 %v5037_v21  ;;  %v4995_v21 = vsel %vm4172_vm0, %v14084_v18, 0.0 }
 0x40e   : > { %v14088_v39 = vpop.xlane.xlu1 %4333  ;;  %4483 = vmax.xlane.f32.xlu0 %v4482_v22  ;;  %v4500_v22 = vsel %vm4172_vm0, %v13603_v34, -inf  ;;  %v14118_v34 = vpop.eup %11476 }
 0x40f   : > { %v14095_v47 = vpop.xlane.xlu0 %4330  ;;  %16657 = vst [vmem:[#allocation174_spill] sm:$0xff] %v14118_v34  ;;  %v14138_v36 = vpop.eup %11478 }
 0x410   : > { %16649 = vst [vmem:[#allocation102_spill] sm:$0xff] %v14095_v47  ;;  %v16668_v47 = vsub.f32 %v16553_v61, %v13803_v17  ;;  %v14158_v25 = vpop.eup %11480  ;;  %v16675_v17 = vld [vmem:[#allocation162_spill] sm:$0xff] }
 0x411   : > { %4996 = vadd.xlane.f32.xlu1 %v4995_v21  ;;  %v5043_v21 = vsel %vm4172_vm0, %v14101_v3, 0.0  ;;  %v16662_v3 = vld [vmem:[#allocation51_spill] sm:$0xff] }
 0x412   : > { %v14105_v54 = vpop.xlane.xlu1 %4417  ;;  %4501 = vmax.xlane.f32.xlu0 %v4500_v22  ;;  %16666 = vst [vmem:[#allocation51_spill] sm:$0xff] %v14138_v36 }
 0x413   : > { %16652 = vst [vmem:[#allocation173_spill] sm:$0xff] %v14105_v54  ;;  %v14112_v33 = vpop.xlane.xlu0 %4414 }
 0x414   : > { %16655 = vst [vmem:[#allocation104_spill] sm:$0xff] %v14112_v33  ;;  %v16663_v33 = vld [vmem:[#allocation158_spill] sm:$0xff] }
 0x415   : > { %5044 = vadd.xlane.f32.xlu1 %v5043_v21  ;;  %v16664_v18 = vsub.f32 %v16662_v3, %v16663_v33  ;;  %v4729_v3 = vmul.f32 1.442695, %v16668_v47  ;;  %v16669_v33 = vld [vmem:[#allocation108_spill] sm:$0xff]  ;;  %16674 = vst [vmem:[#allocation158_spill] sm:$0xff] %v14158_v25  ;;  %v4530_v47 = vsel %vm4172_vm0, %v16675_v17, -inf }
 0x416   : > { %v14122_v22 = vpop.xlane.xlu1 %4339  ;;  %4507 = vmax.xlane.f32.xlu0 %v4506_v0  ;;  %v5004_v0 = vsel %vm4172_vm0, %v14118_v34, 0.0  ;;  %v16670_v34 = vld [vmem:[#allocation53_spill] sm:$0xff] }
 0x417   : > { %16658 = vst [vmem:[#allocation175_spill] sm:$0xff] %v14122_v22  ;;  %v14129_v59 = vpop.xlane.xlu0 %4336  ;;  %v4687_v21 = vmul.f32 1.442695, %v16664_v18  ;;  %v16680_v18 = vld [vmem:[#allocation112_spill] sm:$0xff] }
 0x418   : > { %16661 = vst [vmem:[#allocation176_spill] sm:$0xff] %v14129_v59  ;;  %v16671_v59 = vld [vmem:[#allocation161_spill] sm:$0xff] }
 0x419   : > { %5005 = vadd.xlane.f32.xlu1 %v5004_v0  ;;  %11486 = vpow2.f32 %v4687_v21  ;;  %v16672_v0 = vsub.f32 %v16670_v34, %v16671_v59  ;;  %v16676_v34 = vsub.f32 %v16565_v2, %v13837_v40  ;;  %v16682_v40 = vld [vmem:[#allocation164_spill] sm:$0xff] }
 0x41a   : > { %v14142_v26 = vpop.xlane.xlu1 %4423  ;;  %4525 = vmax.xlane.f32.xlu0 %v4524_v1  ;;  %v5064_v1 = vsel %vm4172_vm0, %v14138_v36, 0.0  ;;  %11488 = vpow2.f32 %v4729_v3  ;;  %v5001_v3 = vsel %vm4172_vm0, %v14158_v25, 0.0  ;;  %v4548_v2 = vsel %vm4172_vm0, %v16682_v40, -inf  ;;  %v16686_v21 = vld [vmem:[#allocation168_spill] sm:$0xff]  ;;  %v16688_v40 = vld [vmem:[#allocation111_spill] sm:$0xff]  ;;  %v16697_v25 = vld [vmem:[#allocation169_spill] sm:$0xff] }
 0x41b   : > { %v14149_v51 = vpop.xlane.xlu0 %4420  ;;  %v4691_v54 = vmul.f32 1.442695, %v16672_v0  ;;  %v4783_v59 = vmul.f32 1.442695, %v16676_v34 }
 0x41d   : > { %5065 = vadd.xlane.f32.xlu1 %v5064_v1  ;;  %11490 = vpow2.f32 %v4691_v54  ;;  %v16679_v1 = vsub.f32 %v13267_v63, %v13673_v11  ;;  %v16684_v54 = vsub.f32 %v16562_v42, %v13831_v43  ;;  %v16690_v43 = vld [vmem:[#allocation166_spill] sm:$0xff] }
 0x41e   : > { %v14162_v61 = vpop.xlane.xlu1 %4357  ;;  %4531 = vmax.xlane.f32.xlu0 %v4530_v47  ;;  %v14178_v47 = vpop.eup %11482  ;;  %11492 = vpow2.f32 %v4783_v59  ;;  %v4554_v42 = vsel %vm4172_vm0, %v16690_v43, -inf  ;;  %v16706_v63 = vld [vmem:[#allocation170_spill] sm:$0xff] }
 0x41f   : > { %v14169_v0 = vpop.xlane.xlu0 %4441  ;;  %v4703_v22 = vmul.f32 1.442695, %v16679_v1  ;;  %16681 = vst [vmem:[#allocation53_spill] sm:$0xff] %v14178_v47  ;;  %v4733_v11 = vmul.f32 1.442695, %v16684_v54 }
 0x420   : > { %16678 = vst [vmem:[#allocation108_spill] sm:$0xff] %v14169_v0  ;;  %v14198_v0 = vpop.eup %11484 }
 0x421   : > { %5002 = vadd.xlane.f32.xlu1 %v5001_v3  ;;  %11494 = vpow2.f32 %v4703_v22  ;;  %v16687_v3 = vsub.f32 %v13275_v48, %v16686_v21  ;;  %16689 = vst [vmem:[#allocation109_spill] sm:$0xff] %v14198_v0  ;;  %v16693_v48 = vsub.f32 %v16575_v10, %v13867_v5 }
 0x422   : > { %v14182_v34 = vpop.xlane.xlu1 %4363  ;;  %4549 = vmax.xlane.f32.xlu0 %v4548_v2  ;;  %v5010_v2 = vsel %vm4172_vm0, %v14178_v47, 0.0  ;;  %11496 = vpow2.f32 %v4733_v11  ;;  %v5070_v11 = vsel %vm4172_vm0, %v14198_v0, 0.0 }
 0x423   : > { %16683 = vst [vmem:[#allocation161_spill] sm:$0xff] %v14182_v34  ;;  %v14189_v36 = vpop.xlane.xlu0 %4354  ;;  %v4707_v17 = vmul.f32 1.442695, %v16687_v3  ;;  %v14202_v59 = vpop.eup %11486  ;;  %v4787_v22 = vmul.f32 1.442695, %v16693_v48  ;;  %v16699_v34 = vld [vmem:[#allocation113_spill] sm:$0xff] }
 0x424   : > { %16691 = vst [vmem:[#allocation110_spill] sm:$0xff] %v14202_v59  ;;  %v4944_v10 = vsel %vm4172_vm0, %v14202_v59, 0.0 }
 0x425   : > { %5011 = vadd.xlane.f32.xlu1 %v5010_v2  ;;  %11498 = vpow2.f32 %v4707_v17  ;;  %v16696_v2 = vld [vmem:[#allocation58_spill] sm:$0xff] }
 0x426   : > { %v14204_v54 = vpop.xlane.xlu1 %4381  ;;  %4555 = vmax.xlane.f32.xlu0 %v4554_v42  ;;  %v16698_v47 = vsub.f32 %v16696_v2, %v16697_v25  ;;  %v14220_v42 = vpop.eup %11488  ;;  %v16703_v25 = vsub.f32 %v16572_v32, %v13857_v41  ;;  %11500 = vpow2.f32 %v4787_v22  ;;  %v16715_v2 = vld [vmem:[#allocation171_spill] sm:$0xff] }
 0x427   : > { %16692 = vst [vmem:[#allocation112_spill] sm:$0xff] %v14204_v54  ;;  %v14211_v1 = vpop.xlane.xlu0 %4438  ;;  %16700 = vst [vmem:[#allocation111_spill] sm:$0xff] %v14220_v42  ;;  %v14224_v5 = vpop.eup %11490  ;;  %v16708_v54 = vld [vmem:[#allocation116_spill] sm:$0xff] }
 0x428   : > { %16695 = vst [vmem:[#allocation168_spill] sm:$0xff] %v14211_v1  ;;  %v4719_v43 = vmul.f32 1.442695, %v16698_v47  ;;  %16701 = vst [vmem:[#allocation58_spill] sm:$0xff] %v14224_v5  ;;  %v4737_v17 = vmul.f32 1.442695, %v16703_v25  ;;  %v14242_v1 = vpop.eup %11492 }
 0x429   : > { %5071 = vadd.xlane.f32.xlu1 %v5070_v11  ;;  %v16705_v11 = vld [vmem:[#allocation59_spill] sm:$0xff]  ;;  %16709 = vst [vmem:[#allocation113_spill] sm:$0xff] %v14242_v1  ;;  %v4950_v32 = vsel %vm4172_vm0, %v14224_v5, 0.0 }
 0x42a   : > { %v14226_v48 = vpop.xlane.xlu1 %4387  ;;  %4945 = vadd.xlane.f32.xlu0 %v4944_v10  ;;  %11502 = vpow2.f32 %v4719_v43  ;;  %v16707_v0 = vsub.f32 %v16705_v11, %v16706_v63  ;;  %v5007_v10 = vsel %vm4172_vm0, %v14220_v42, 0.0  ;;  %v16717_v42 = vld [vmem:[#allocation115_spill] sm:$0xff] }
 0x42b   : > { %16702 = vst [vmem:[#allocation169_spill] sm:$0xff] %v14226_v48  ;;  %v14233_v3 = vpop.xlane.xlu0 %4447  ;;  %v14246_v41 = vpop.eup %11494  ;;  %11504 = vpow2.f32 %v4737_v17  ;;  %v5088_v17 = vsel %vm4172_vm0, %v14242_v1, 0.0  ;;  %v16725_v48 = vld [vmem:[#allocation172_spill] sm:$0xff] }
 0x42c   : > { %v4751_v59 = vmul.f32 1.442695, %v16707_v0  ;;  %16710 = vst [vmem:[#allocation59_spill] sm:$0xff] %v14246_v41  ;;  %v16712_v0 = vsub.f32 %v16581_v37, %v13884_v24  ;;  %v4968_v24 = vsel %vm4172_vm0, %v14246_v41, 0.0 }
 0x42d   : > { %5008 = vadd.xlane.f32.xlu1 %v5007_v10  ;;  %v16714_v10 = vld [vmem:[#allocation60_spill] sm:$0xff] }
 0x42e   : > { %v14248_v22 = vpop.xlane.xlu1 %4405  ;;  %4951 = vadd.xlane.f32.xlu0 %v4950_v32  ;;  %v4743_v63 = vmul.f32 1.442695, %v16712_v0  ;;  %11506 = vpow2.f32 %v4751_v59  ;;  %v16716_v21 = vsub.f32 %v16714_v10, %v16715_v2  ;;  %v14264_v32 = vpop.eup %11496  ;;  %v16721_v59 = vsub.f32 %v16586_v13, %v13901_v23  ;;  %v16737_v2 = vld [vmem:[#allocation120_spill] sm:$0xff]  ;;  %v16744_v10 = vld [vmem:[#allocation63_spill] sm:$0xff] }
 0x42f   : > { %16711 = vst [vmem:[#allocation170_spill] sm:$0xff] %v14248_v22  ;;  %v14255_v11 = vpop.xlane.xlu0 %4360  ;;  %16718 = vst [vmem:[#allocation116_spill] sm:$0xff] %v14264_v32  ;;  %v14268_v37 = vpop.eup %11498  ;;  %v16727_v22 = vld [vmem:[#allocation117_spill] sm:$0xff] }
 0x430   : > { %v4723_v5 = vmul.f32 1.442695, %v16716_v21  ;;  %16719 = vst [vmem:[#allocation60_spill] sm:$0xff] %v14268_v37  ;;  %11508 = vpow2.f32 %v4743_v63  ;;  %v4799_v21 = vmul.f32 1.442695, %v16721_v59  ;;  %v5013_v63 = vsel %vm4172_vm0, %v14264_v32, 0.0 }
 0x431   : > { %5089 = vadd.xlane.f32.xlu1 %v5088_v17  ;;  %v16724_v17 = vld [vmem:[#allocation61_spill] sm:$0xff]  ;;  %v4974_v23 = vsel %vm4172_vm0, %v14268_v37, 0.0  ;;  %v16735_v32 = vld [vmem:[#allocation62_spill] sm:$0xff] }
 0x432   : > { %v14270_v0 = vpop.xlane.xlu1 %4411  ;;  %4969 = vadd.xlane.f32.xlu0 %v4968_v24  ;;  %11510 = vpow2.f32 %v4723_v5  ;;  %v16726_v1 = vsub.f32 %v16724_v17, %v16725_v48  ;;  %v14286_v24 = vpop.eup %11500  ;;  %v16731_v5 = vld [vmem:[#allocation56_spill] sm:$0xff] }
 0x433   : > { %16720 = vst [vmem:[#allocation171_spill] sm:$0xff] %v14270_v0  ;;  %v14277_v25 = vpop.xlane.xlu0 %4444  ;;  %16728 = vst [vmem:[#allocation61_spill] sm:$0xff] %v14286_v24  ;;  %11512 = vpow2.f32 %v4799_v21 }
 0x434   : > { %16723 = vst [vmem:[#allocation115_spill] sm:$0xff] %v14277_v25  ;;  %v4755_v41 = vmul.f32 1.442695, %v16726_v1  ;;  %v14290_v13 = vpop.eup %11502  ;;  %v16732_v1 = vsub.f32 %v16583_v31, %v16731_v5 }
 0x435   : > { %5014 = vadd.xlane.f32.xlu1 %v5013_v63  ;;  %16729 = vst [vmem:[#allocation172_spill] sm:$0xff] %v14290_v13  ;;  %v16734_v63 = vld [vmem:[#allocation65_spill] sm:$0xff]  ;;  %v14308_v25 = vpop.eup %11504  ;;  %v4992_v31 = vsel %vm4172_vm0, %v14290_v13, 0.0  ;;  %v16746_v13 = vld [vmem:[#allocation119_spill] sm:$0xff] }
 0x436   : > { %v14292_v59 = vpop.xlane.xlu1 %4429  ;;  %4975 = vadd.xlane.f32.xlu0 %v4974_v23  ;;  %v4741_v48 = vmul.f32 1.442695, %v16732_v1  ;;  %11514 = vpow2.f32 %v4755_v41  ;;  %v16736_v0 = vsub.f32 %v16734_v63, %v16735_v32  ;;  %v5094_v23 = vsel %vm4172_vm0, %v14286_v24, 0.0  ;;  %16738 = vst [vmem:[#allocation56_spill] sm:$0xff] %v14308_v25 }
 0x437   : > { %16730 = vst [vmem:[#allocation117_spill] sm:$0xff] %v14292_v59  ;;  %v14299_v43 = vpop.xlane.xlu0 %4465  ;;  %v16741_v41 = vsub.f32 %v16592_v7, %v13918_v12  ;;  %v16754_v59 = vld [vmem:[#allocation52_spill] sm:$0xff] }
 0x438   : > { %v4765_v37 = vmul.f32 1.442695, %v16736_v0  ;;  %v14312_v21 = vpop.eup %11506  ;;  %11516 = vpow2.f32 %v4741_v48  ;;  %v5019_v48 = vsel %vm4172_vm0, %v14308_v25, 0.0 }
 0x439   : > { %5095 = vadd.xlane.f32.xlu1 %v5094_v23  ;;  %16739 = vst [vmem:[#allocation65_spill] sm:$0xff] %v14312_v21  ;;  %v4747_v32 = vmul.f32 1.442695, %v16741_v41  ;;  %v16743_v23 = vld [vmem:[#allocation69_spill] sm:$0xff]  ;;  %v5040_v12 = vsel %vm4172_vm0, %v14312_v21, 0.0 }
 0x43a   : > { %v14314_v5 = vpop.xlane.xlu1 %4435  ;;  %4993 = vadd.xlane.f32.xlu0 %v4992_v31  ;;  %11518 = vpow2.f32 %v4765_v37  ;;  %v16745_v47 = vsub.f32 %v16743_v23, %v16744_v10  ;;  %v14330_v31 = vpop.eup %11508  ;;  %v16766_v10 = vld [vmem:[#allocation124_spill] sm:$0xff]  ;;  %v16773_v23 = vld [vmem:[#allocation66_spill] sm:$0xff] }
 0x43b   : > { %16740 = vst [vmem:[#allocation62_spill] sm:$0xff] %v14314_v5  ;;  %v14321_v63 = vpop.xlane.xlu0 %4378  ;;  %16747 = vst [vmem:[#allocation120_spill] sm:$0xff] %v14330_v31  ;;  %11520 = vpow2.f32 %v4747_v32  ;;  %v16756_v5 = vld [vmem:[#allocation121_spill] sm:$0xff]  ;;  %v5028_v32 = vsel %vm4172_vm0, %v14330_v31, 0.0  ;;  %v16764_v31 = vld [vmem:[#allocation64_spill] sm:$0xff] }
 0x43c   : > { %v4769_v24 = vmul.f32 1.442695, %v16745_v47  ;;  %v14334_v7 = vpop.eup %11510  ;;  %v16750_v47 = vsub.f32 %v16598_v46, %v13935_v60 }
 0x43d   : > { %5020 = vadd.xlane.f32.xlu1 %v5019_v48  ;;  %16748 = vst [vmem:[#allocation69_spill] sm:$0xff] %v14334_v7  ;;  %v16753_v48 = vld [vmem:[#allocation70_spill] sm:$0xff]  ;;  %v4998_v60 = vsel %vm4172_vm0, %v14334_v7, 0.0 }
 0x43e   : > { %v14336_v41 = vpop.xlane.xlu1 %4450  ;;  %5041 = vadd.xlane.f32.xlu0 %v5040_v12  ;;  %v4803_v37 = vmul.f32 1.442695, %v16750_v47  ;;  %11522 = vpow2.f32 %v4769_v24  ;;  %v16755_v25 = vsub.f32 %v16753_v48, %v16754_v59  ;;  %v14352_v12 = vpop.eup %11512  ;;  %v16760_v24 = vld [vmem:[#allocation75_spill] sm:$0xff]  ;;  %v16796_v48 = vld [vmem:[#allocation128_spill] sm:$0xff] }
 0x43f   : > { %16749 = vst [vmem:[#allocation63_spill] sm:$0xff] %v14336_v41  ;;  %v14343_v1 = vpop.xlane.xlu0 %4462  ;;  %16757 = vst [vmem:[#allocation70_spill] sm:$0xff] %v14352_v12 }
 0x440   : > { %16752 = vst [vmem:[#allocation119_spill] sm:$0xff] %v14343_v1  ;;  %v4735_v21 = vmul.f32 1.442695, %v16755_v25  ;;  %v14356_v46 = vpop.eup %11514  ;;  %v16761_v25 = vsub.f32 %v16594_v19, %v16760_v24  ;;  %11524 = vpow2.f32 %v4803_v37 }
 0x441   : > { %5029 = vadd.xlane.f32.xlu1 %v5028_v32  ;;  %16758 = vst [vmem:[#allocation52_spill] sm:$0xff] %v14356_v46  ;;  %v16763_v32 = vld [vmem:[#allocation73_spill] sm:$0xff]  ;;  %v5046_v19 = vsel %vm4172_vm0, %v14356_v46, 0.0  ;;  %v16775_v46 = vld [vmem:[#allocation123_spill] sm:$0xff] }
 0x442   : > { %v14358_v47 = vpop.xlane.xlu1 %4456  ;;  %4999 = vadd.xlane.f32.xlu0 %v4998_v60  ;;  %v4745_v59 = vmul.f32 1.442695, %v16761_v25  ;;  %11526 = vpow2.f32 %v4735_v21  ;;  %v16765_v41 = vsub.f32 %v16763_v32, %v16764_v31  ;;  %v5112_v60 = vsel %vm4172_vm0, %v14352_v12, 0.0  ;;  %v14374_v1 = vpop.eup %11516 }
 0x443   : > { %16759 = vst [vmem:[#allocation121_spill] sm:$0xff] %v14358_v47  ;;  %v14365_v0 = vpop.xlane.xlu0 %4471  ;;  %16767 = vst [vmem:[#allocation75_spill] sm:$0xff] %v14374_v1  ;;  %v16770_v21 = vsub.f32 %v16603_v58, %v13952_v9  ;;  %v16783_v47 = vld [vmem:[#allocation55_spill] sm:$0xff] }
 0x444   : > { %v4781_v7 = vmul.f32 1.442695, %v16765_v41  ;;  %v14378_v37 = vpop.eup %11518  ;;  %11528 = vpow2.f32 %v4745_v59  ;;  %v5025_v59 = vsel %vm4172_vm0, %v14374_v1, 0.0  ;;  %v16803_v41 = vld [vmem:[#allocation78_spill] sm:$0xff] }
 0x445   : > { %5113 = vadd.xlane.f32.xlu1 %v5112_v60  ;;  %16768 = vst [vmem:[#allocation73_spill] sm:$0xff] %v14378_v37  ;;  %v4759_v31 = vmul.f32 1.442695, %v16770_v21  ;;  %v16772_v60 = vld [vmem:[#allocation74_spill] sm:$0xff]  ;;  %v5061_v9 = vsel %vm4172_vm0, %v14378_v37, 0.0 }
 0x446   : > { %v14380_v24 = vpop.xlane.xlu1 %4474  ;;  %5047 = vadd.xlane.f32.xlu0 %v5046_v19  ;;  %11530 = vpow2.f32 %v4781_v7  ;;  %v16774_v17 = vsub.f32 %v16772_v60, %v16773_v23  ;;  %v14396_v19 = vpop.eup %11520 }
 0x447   : > { %16769 = vst [vmem:[#allocation64_spill] sm:$0xff] %v14380_v24  ;;  %v14387_v32 = vpop.xlane.xlu0 %4384  ;;  %16776 = vst [vmem:[#allocation124_spill] sm:$0xff] %v14396_v19  ;;  %11532 = vpow2.f32 %v4759_v31  ;;  %v5034_v31 = vsel %vm4172_vm0, %v14396_v19, 0.0 }
 0x448   : > { %v4739_v12 = vmul.f32 1.442695, %v16774_v17  ;;  %v14400_v58 = vpop.eup %11522  ;;  %v16779_v17 = vsub.f32 %v16609_v52, %v13969_v20 }
 0x449   : > { %5026 = vadd.xlane.f32.xlu1 %v5025_v59  ;;  %16777 = vst [vmem:[#allocation74_spill] sm:$0xff] %v14400_v58  ;;  %v16782_v59 = vld [vmem:[#allocation77_spill] sm:$0xff]  ;;  %v5067_v20 = vsel %vm4172_vm0, %v14400_v58, 0.0 }
 0x44a   : > { %v14402_v21 = vpop.xlane.xlu1 %4480  ;;  %5062 = vadd.xlane.f32.xlu0 %v5061_v9  ;;  %v4815_v7 = vmul.f32 1.442695, %v16779_v17  ;;  %11534 = vpow2.f32 %v4739_v12  ;;  %v16784_v1 = vsub.f32 %v16782_v59, %v16783_v47  ;;  %v14418_v9 = vpop.eup %11524  ;;  %v16789_v12 = vld [vmem:[#allocation87_spill] sm:$0xff]  ;;  %v16790_v47 = vld [vmem:[#allocation80_spill] sm:$0xff] }
 0x44b   : > { %16778 = vst [vmem:[#allocation66_spill] sm:$0xff] %v14402_v21  ;;  %v14409_v25 = vpop.xlane.xlu0 %4468  ;;  %16786 = vst [vmem:[#allocation77_spill] sm:$0xff] %v14418_v9  ;;  %v16794_v21 = vld [vmem:[#allocation57_spill] sm:$0xff] }
 0x44c   : > { %16781 = vst [vmem:[#allocation123_spill] sm:$0xff] %v14409_v25  ;;  %v4785_v37 = vmul.f32 1.442695, %v16784_v1  ;;  %v14422_v52 = vpop.eup %11526  ;;  %v16791_v1 = vsub.f32 %v16789_v12, %v16790_v47  ;;  %11536 = vpow2.f32 %v4815_v7 }
 0x44d   : > { %5035 = vadd.xlane.f32.xlu1 %v5034_v31  ;;  %16787 = vst [vmem:[#allocation55_spill] sm:$0xff] %v14422_v52  ;;  %v16793_v31 = vld [vmem:[#allocation81_spill] sm:$0xff]  ;;  %v5016_v7 = vsel %vm4172_vm0, %v14422_v52, 0.0  ;;  %v16805_v52 = vld [vmem:[#allocation127_spill] sm:$0xff] }
 0x44e   : > { %v14424_v17 = vpop.xlane.xlu1 %4498  ;;  %5068 = vadd.xlane.f32.xlu0 %v5067_v20  ;;  %v4757_v59 = vmul.f32 1.442695, %v16791_v1  ;;  %11538 = vpow2.f32 %v4785_v37  ;;  %v16795_v23 = vsub.f32 %v16793_v31, %v16794_v21  ;;  %v5118_v20 = vsel %vm4172_vm0, %v14418_v9, 0.0  ;;  %v14440_v24 = vpop.eup %11528 }
 0x44f   : > { %16788 = vst [vmem:[#allocation177_spill] sm:$0xff] %v14424_v17  ;;  %v14431_v19 = vpop.xlane.xlu0 %4489  ;;  %16797 = vst [vmem:[#allocation87_spill] sm:$0xff] %v14440_v24  ;;  %v16800_v37 = vsub.f32 %v16615_v50, %v13986_v38 }
 0x450   : > { %v4797_v58 = vmul.f32 1.442695, %v16795_v23  ;;  %v14444_v12 = vpop.eup %11530  ;;  %11540 = vpow2.f32 %v4757_v59  ;;  %v5031_v59 = vsel %vm4172_vm0, %v14440_v24, 0.0  ;;  %v16813_v24 = vld [vmem:[#allocation129_spill] sm:$0xff] }
 0x451   : > { %5119 = vadd.xlane.f32.xlu1 %v5118_v20  ;;  %16798 = vst [vmem:[#allocation80_spill] sm:$0xff] %v14444_v12  ;;  %v4763_v21 = vmul.f32 1.442695, %v16800_v37  ;;  %v16802_v20 = vld [vmem:[#allocation85_spill] sm:$0xff]  ;;  %v5085_v38 = vsel %vm4172_vm0, %v14444_v12, 0.0 }
 0x452   : > { %v14446_v47 = vpop.xlane.xlu1 %4504  ;;  %5017 = vadd.xlane.f32.xlu0 %v5016_v7  ;;  %11542 = vpow2.f32 %v4797_v58  ;;  %v16804_v25 = vsub.f32 %v16802_v20, %v16803_v41  ;;  %v14462_v7 = vpop.eup %11532  ;;  %v16809_v41 = vsub.f32 %v16620_v44, %v14003_v14  ;;  %v16823_v58 = vld [vmem:[#allocation132_spill] sm:$0xff] }
 0x453   : > { %16799 = vst [vmem:[#allocation81_spill] sm:$0xff] %v14446_v47  ;;  %v14453_v31 = vpop.xlane.xlu0 %4402  ;;  %16806 = vst [vmem:[#allocation57_spill] sm:$0xff] %v14462_v7  ;;  %11544 = vpow2.f32 %v4763_v21  ;;  %v5052_v21 = vsel %vm4172_vm0, %v14462_v7, 0.0  ;;  %v16830_v47 = vld [vmem:[#allocation92_spill] sm:$0xff] }
 0x454   : > { %v4801_v9 = vmul.f32 1.442695, %v16804_v25  ;;  %v14466_v50 = vpop.eup %11534  ;;  %v4819_v25 = vmul.f32 1.442695, %v16809_v41 }
 0x455   : > { %5032 = vadd.xlane.f32.xlu1 %v5031_v59  ;;  %16807 = vst [vmem:[#allocation128_spill] sm:$0xff] %v14466_v50  ;;  %v16811_v59 = vld [vmem:[#allocation83_spill] sm:$0xff]  ;;  %v5022_v14 = vsel %vm4172_vm0, %v14466_v50, 0.0 }
 0x456   : > { %v14468_v37 = vpop.xlane.xlu1 %4522  ;;  %5086 = vadd.xlane.f32.xlu0 %v5085_v38  ;;  %11546 = vpow2.f32 %v4801_v9  ;;  %v16812_v17 = vsub.f32 %v16611_v27, %v16811_v59  ;;  %v14484_v38 = vpop.eup %11536  ;;  %v16817_v9 = vld [vmem:[#allocation91_spill] sm:$0xff]  ;;  %v16818_v27 = vld [vmem:[#allocation86_spill] sm:$0xff] }
 0x457   : > { %16808 = vst [vmem:[#allocation85_spill] sm:$0xff] %v14468_v37  ;;  %v14475_v1 = vpop.xlane.xlu0 %4486  ;;  %16814 = vst [vmem:[#allocation78_spill] sm:$0xff] %v14484_v38  ;;  %11548 = vpow2.f32 %v4819_v25 }
 0x458   : > { %v4813_v12 = vmul.f32 1.442695, %v16812_v17  ;;  %v14488_v44 = vpop.eup %11538  ;;  %v16819_v17 = vsub.f32 %v16817_v9, %v16818_v27 }
 0x459   : > { %5053 = vadd.xlane.f32.xlu1 %v5052_v21  ;;  %16815 = vst [vmem:[#allocation127_spill] sm:$0xff] %v14488_v44  ;;  %v16821_v21 = vld [vmem:[#allocation89_spill] sm:$0xff]  ;;  %v5091_v25 = vsel %vm4172_vm0, %v14488_v44, 0.0  ;;  %v16832_v44 = vld [vmem:[#allocation131_spill] sm:$0xff] }
 0x45a   : > { %v14490_v41 = vpop.xlane.xlu1 %4528  ;;  %5023 = vadd.xlane.f32.xlu0 %v5022_v14  ;;  %v4761_v59 = vmul.f32 1.442695, %v16819_v17  ;;  %11550 = vpow2.f32 %v4813_v12  ;;  %v16822_v37 = vsub.f32 %v16622_v29, %v16821_v21  ;;  %v5136_v14 = vsel %vm4172_vm0, %v14484_v38, 0.0  ;;  %v14506_v60 = vpop.eup %11540 }
 0x45b   : > { %16816 = vst [vmem:[#allocation83_spill] sm:$0xff] %v14490_v41  ;;  %v14497_v7 = vpop.xlane.xlu0 %4495  ;;  %16824 = vst [vmem:[#allocation129_spill] sm:$0xff] %v14506_v60  ;;  %v16827_v29 = vsub.f32 %v16626_v53, %v14020_v6  ;;  %v16839_v41 = vld [vmem:[#allocation94_spill] sm:$0xff] }
 0x45c   : > { %v4817_v50 = vmul.f32 1.442695, %v16822_v37  ;;  %v14510_v9 = vpop.eup %11542  ;;  %11552 = vpow2.f32 %v4761_v59  ;;  %v5049_v59 = vsel %vm4172_vm0, %v14506_v60, 0.0 }
 0x45d   : > { %5137 = vadd.xlane.f32.xlu1 %v5136_v14  ;;  %16825 = vst [vmem:[#allocation91_spill] sm:$0xff] %v14510_v9  ;;  %v4775_v12 = vmul.f32 1.442695, %v16827_v29  ;;  %v16829_v14 = vld [vmem:[#allocation95_spill] sm:$0xff]  ;;  %v5109_v6 = vsel %vm4172_vm0, %v14510_v9, 0.0 }
 0x45e   : > { %v14512_v27 = vpop.xlane.xlu1 %4546  ;;  %5092 = vadd.xlane.f32.xlu0 %v5091_v25  ;;  %11554 = vpow2.f32 %v4817_v50  ;;  %v16831_v23 = vsub.f32 %v16829_v14, %v16830_v47  ;;  %v14528_v25 = vpop.eup %11544  ;;  %v16835_v50 = vsub.f32 %v16631_v4, %v14037_v49 }
 0x45f   : > { %16826 = vst [vmem:[#allocation86_spill] sm:$0xff] %v14512_v27  ;;  %v14519_v21 = vpop.xlane.xlu0 %4408  ;;  %16833 = vst [vmem:[#allocation89_spill] sm:$0xff] %v14528_v25  ;;  %11556 = vpow2.f32 %v4775_v12  ;;  %v16841_v27 = vld [vmem:[#allocation133_spill] sm:$0xff]  ;;  %v5058_v49 = vsel %vm4172_vm0, %v14528_v25, 0.0 }
 0x460   : > { %v4773_v38 = vmul.f32 1.442695, %v16831_v23  ;;  %v14532_v53 = vpop.eup %11546  ;;  %v4831_v29 = vmul.f32 1.442695, %v16835_v50 }
 0x461   : > { %5050 = vadd.xlane.f32.xlu1 %v5049_v59  ;;  %16834 = vst [vmem:[#allocation132_spill] sm:$0xff] %v14532_v53  ;;  %v16838_v59 = vld [vmem:[#allocation97_spill] sm:$0xff]  ;;  %v14550_v4 = vpop.eup %11548  ;;  %v5115_v12 = vsel %vm4172_vm0, %v14532_v53, 0.0 }
 0x462   : > { %v14537_v47 = vpop.xlane.xlu1 %4552  ;;  %5110 = vadd.xlane.f32.xlu0 %v5109_v6  ;;  %11558 = vpow2.f32 %v4773_v38  ;;  %v16840_v60 = vsub.f32 %v16838_v59, %v16839_v41  ;;  %16842 = vst [vmem:[#allocation92_spill] sm:$0xff] %v14550_v4  ;;  %v16845_v59 = vld [vmem:[#allocation98_spill] sm:$0xff]  ;;  %v5142_v53 = vsel %vm4172_vm0, %v14550_v4, 0.0 }
 0x463   : > { %16836 = vst [vmem:[#allocation95_spill] sm:$0xff] %v14537_v47  ;;  %v14541_v17 = vpop.xlane.xlu0 %4492  ;;  %11560 = vpow2.f32 %v4831_v29  ;;  %v16846_v14 = vsub.f32 %v16639_v45, %v16845_v59  ;;  %v16850_v45 = vsub.f32 %v16643_v56, %v14071_v55  ;;  %v16853_v59 = vld [vmem:[#allocation135_spill] sm:$0xff] }
 0x464   : > { %v4829_v9 = vmul.f32 1.442695, %v16840_v60  ;;  %v14554_v6 = vpop.eup %11550  ;;  %v16844_v60 = vsub.f32 %v16637_v28, %v14054_v16 }
 0x465   : > { %5059 = vadd.xlane.f32.xlu1 %v5058_v49  ;;  %16843 = vst [vmem:[#allocation131_spill] sm:$0xff] %v14554_v6  ;;  %v4777_v37 = vmul.f32 1.442695, %v16846_v14  ;;  %v16847_v49 = vld [vmem:[#allocation136_spill] sm:$0xff]  ;;  %v5133_v16 = vsel %vm4172_vm0, %v14554_v6, 0.0 }
 0x466   : > { %v4943_v38 = vpop.xlane.xlu1 %4942  ;;  %5116 = vadd.xlane.f32.xlu0 %v5115_v12  ;;  %v4779_v41 = vmul.f32 1.442695, %v16844_v60  ;;  %11562 = vpow2.f32 %v4829_v9  ;;  %v14568_v29 = vpop.eup %11552  ;;  %v4835_v14 = vmul.f32 1.442695, %v16850_v45  ;;  %v16851_v60 = vld [vmem:[#allocation100_spill] sm:$0xff] }
 0x467   : > { %v14559_v50 = vpop.xlane.xlu0 %4513  ;;  %16848 = vst [vmem:[#allocation97_spill] sm:$0xff] %v14568_v29  ;;  %11564 = vrcp.f32 %v4943_v38  ;;  %v16852_v38 = vsub.f32 %v16645_v15, %v16851_v60  ;;  %v5055_v4 = vsel %vm4172_vm0, %v14568_v29, 0.0  ;;  %v16858_v60 = vld [vmem:[#allocation102_spill] sm:$0xff] }
 0x468   : > { %v14572_v28 = vpop.eup %11554  ;;  %11566 = vpow2.f32 %v4779_v41  ;;  %v16855_v41 = vsub.f32 %v16648_v8, %v14088_v39  ;;  %v16860_v39 = vld [vmem:[#allocation137_spill] sm:$0xff] }
 0x469   : > { %5143 = vadd.xlane.f32.xlu1 %v5142_v53  ;;  %16849 = vst [vmem:[#allocation94_spill] sm:$0xff] %v14572_v28  ;;  %11568 = vpow2.f32 %v4777_v37  ;;  %v4833_v53 = vmul.f32 1.442695, %v16852_v38  ;;  %v14588_v6 = vpop.eup %11556  ;;  %v5139_v56 = vsel %vm4172_vm0, %v14572_v28, 0.0  ;;  %v16859_v38 = vsub.f32 %v16650_v30, %v16858_v60  ;;  %v16862_v30 = vld [vmem:[#allocation173_spill] sm:$0xff]  ;;  %v16865_v28 = vld [vmem:[#allocation104_spill] sm:$0xff] }
 0x46a   : > { %v14574_v9 = vpop.xlane.xlu1 %4948  ;;  %5134 = vadd.xlane.f32.xlu0 %v5133_v16  ;;  %16854 = vst [vmem:[#allocation133_spill] sm:$0xff] %v14588_v6  ;;  %v4791_v55 = vmul.f32 1.442695, %v16855_v41  ;;  %11570 = vpow2.f32 %v4835_v14  ;;  %v16863_v60 = vsub.f32 %v16654_v35, %v16862_v30  ;;  %v16870_v35 = vld [vmem:[#allocation106_spill] sm:$0xff]  ;;  %v16871_v30 = vld [vmem:[#allocation175_spill] sm:$0xff] }
 0x46b   : > { %v14579_v12 = vpop.xlane.xlu0 %4426  ;;  %11572 = vpow2.f32 %v4833_v53  ;;  %v4789_v25 = vmul.f32 1.442695, %v16859_v38 }
 0x46c   : > { %v14595_v37 = vpop.eup %11558  ;;  %11574 = vpow2.f32 %v4791_v55  ;;  %v4847_v38 = vmul.f32 1.442695, %v16863_v60 }
 0x46d   : > { %5056 = vadd.xlane.f32.xlu1 %v5055_v4  ;;  %16856 = vst [vmem:[#allocation98_spill] sm:$0xff] %v14595_v37  ;;  %v14599_v45 = vpop.eup %11560  ;;  %v5076_v4 = vsel %vm4172_vm0, %v14588_v6, 0.0  ;;  %v5073_v14 = vsel %vm4172_vm0, %v14595_v37, 0.0 }
 0x46e   : > { %v4958_v15 = vpop.xlane.xlu1 %4957  ;;  %5140 = vadd.xlane.f32.xlu0 %v5139_v56  ;;  %16857 = vst [vmem:[#allocation136_spill] sm:$0xff] %v14599_v45  ;;  %v5160_v55 = vsel %vm4172_vm0, %v14599_v45, 0.0 }
 0x46f   : > { %v14597_v16 = vpop.xlane.xlu0 %4510  ;;  %11576 = vrcp.f32 %v4958_v15  ;;  %v16867_v15 = vld [vmem:[#allocation140_spill] sm:$0xff] }
 0x470   : > { %v14610_v41 = vpop.eup %11562 }
 0x471   : > { %5077 = vadd.xlane.f32.xlu1 %v5076_v4  ;;  %16861 = vst [vmem:[#allocation100_spill] sm:$0xff] %v14610_v41  ;;  %v11565_v53 = vpop.eup %11564  ;;  %v16864_v4 = vld [vmem:[#allocation105_spill] sm:$0xff]  ;;  %v5157_v45 = vsel %vm4172_vm0, %v14610_v41, 0.0 }
 0x472   : > { %v4955_v56 = vpop.xlane.xlu1 %4954  ;;  %5074 = vadd.xlane.f32.xlu0 %v5073_v14  ;;  %v16866_v6 = vsub.f32 %v16864_v4, %v16865_v28  ;;  %v16868_v14 = vld [vmem:[#allocation54_spill] sm:$0xff]  ;;  %v14625_v23 = vpop.eup %11566  ;;  %v16875_v4 = vld [vmem:[#allocation176_spill] sm:$0xff]  ;;  %v16883_v41 = vld [vmem:[#allocation141_spill] sm:$0xff] }
 0x473   : > { %11578 = vrcp.f32 %v4955_v56  ;;  %v14615_v8 = vpop.xlane.xlu0 %4519  ;;  %v5453_v47 = vmul.f32 %v11565_v53, %v16868_v14  ;;  %16869 = vst [vmem:[#allocation135_spill] sm:$0xff] %v14625_v23  ;;  %v16872_v56 = vsub.f32 %v16870_v35, %v16871_v30  ;;  %v16874_v53 = vld [vmem:[#allocation107_spill] sm:$0xff]  ;;  %v5082_v30 = vsel %vm4172_vm0, %v14625_v23, 0.0 }
 0x474   : > { %11580 = vpow2.f32 %v4789_v25  ;;  %v4845_v37 = vmul.f32 1.442695, %v16866_v6  ;;  %v14632_v25 = vpop.eup %11568  ;;  %v16876_v14 = vsub.f32 %v16874_v53, %v16875_v4  ;;  %v16877_v35 = vld [vmem:[#allocation139_spill] sm:$0xff]  ;;  %v16881_v53 = vsub.f32 %v16669_v33, %v14142_v26 }
 0x475   : > { %v4795_v60 = vmul.f32 1.442695, %v16872_v56  ;;  %5161 = vadd.xlane.f32.xlu1 %v5160_v55  ;;  %16873 = vst [vmem:[#allocation102_spill] sm:$0xff] %v14632_v25  ;;  %10743 = vmatprep.mubr.msk.f32.mxu0 %vm4172_vm0, %v5453_v47  ;;  %11582 = vpow2.f32 %v4847_v38  ;;  %v14644_v56 = vpop.eup %11570  ;;  %v5079_v47 = vsel %vm4172_vm0, %v14632_v25, 0.0  ;;  %v16889_v25 = vld [vmem:[#allocation142_spill] sm:$0xff] }
 0x476   : > { %v4964_v6 = vpop.xlane.xlu1 %4963  ;;  %5158 = vadd.xlane.f32.xlu0 %v5157_v45  ;;  %11584 = vpow2.f32 %v4845_v37  ;;  %v4793_v29 = vmul.f32 1.442695, %v16876_v14  ;;  %16878 = vst [vmem:[#allocation137_spill] sm:$0xff] %v14644_v56  ;;  %v14648_v45 = vpop.eup %11572  ;;  %v4851_v4 = vmul.f32 1.442695, %v16881_v53 }
 0x477   : > { %v14635_v28 = vpop.xlane.xlu0 %4432  ;;  %11586 = vpow2.f32 %v4795_v60  ;;  %16879 = vst [vmem:[#allocation173_spill] sm:$0xff] %v14648_v45  ;;  %v14650_v38 = vpop.eup %11574  ;;  %v16882_v60 = vsub.f32 %v16673_v57, %v14149_v51  ;;  %v5163_v26 = vsel %vm4172_vm0, %v14648_v45, 0.0  ;;  %v16886_v51 = vsub.f32 %v16677_v62, %v14162_v61 }
 0x478   : > { %11588 = vrcp.f32 %v4964_v6  ;;  %16880 = vst [vmem:[#allocation105_spill] sm:$0xff] %v14650_v38 }
 0x479   : > { %5083 = vadd.xlane.f32.xlu1 %v5082_v30  ;;  %v11577_v55 = vpop.eup %11576  ;;  %v4849_v30 = vmul.f32 1.442695, %v16882_v60  ;;  %v4807_v57 = vmul.f32 1.442695, %v16886_v51  ;;  %v16887_v60 = vld [vmem:[#allocation68_spill] sm:$0xff] }
 0x47a   : > { %v4961_v37 = vpop.xlane.xlu1 %4960  ;;  %5080 = vadd.xlane.f32.xlu0 %v5079_v47  ;;  %v5166_v47 = vsel %vm4172_vm0, %v14644_v56, 0.0  ;;  %v5458_v6 = vmul.f32 %v11577_v55, %v16887_v60  ;;  %v16896_v60 = vld [vmem:[#allocation168_spill] sm:$0xff] }
 0x47b   : > { %11590 = vrcp.f32 %v4961_v37  ;;  %v14655_v14 = vpop.xlane.xlu0 %4516 }
 0x47c   : > { %11592 = vpow2.f32 %v4793_v29  ;;  %v16885_v29 = vld [vmem:[#allocation71_spill] sm:$0xff] }
 0x47d   : > { %v11579_v23 = vpop.eup %11578  ;;  %5167 = vadd.xlane.f32.xlu1 %v5166_v47  ;;  %11594 = vpow2.f32 %v4851_v4  ;;  %v16888_v47 = vsub.f32 %v16688_v40, %v14189_v36  ;;  %v16891_v36 = vld [vmem:[#allocation50_spill] sm:$0xff] }
 0x47e   : > { %v14666_v33 = vpop.eup %11580  ;;  %v14668_v37 = vpop.xlane.xlu1 %4966  ;;  %5164 = vadd.xlane.f32.xlu0 %v5163_v26  ;;  %v5457_v53 = vmul.f32 %v11579_v23, %v16885_v29  ;;  %11596 = vpow2.f32 %v4849_v30  ;;  %v5100_v23 = vsel %vm4172_vm0, %v14650_v38, 0.0  ;;  %v16893_v30 = vld [vmem:[#allocation108_spill] sm:$0xff]  ;;  %v16899_v38 = vld [vmem:[#allocation114_spill] sm:$0xff] }
 0x47f   : > { %16884 = vst [vmem:[#allocation104_spill] sm:$0xff] %v14666_v33  ;;  %v14675_v56 = vpop.xlane.xlu0 %4453  ;;  %v4805_v45 = vmul.f32 1.442695, %v16888_v47  ;;  %v14685_v4 = vpop.eup %11582  ;;  %v5097_v61 = vsel %vm4172_vm0, %v14666_v33, 0.0  ;;  %11598 = vpow2.f32 %v4807_v57  ;;  %v16894_v26 = vsub.f32 %v16680_v18, %v16893_v30  ;;  %v16900_v18 = vld [vmem:[#allocation161_spill] sm:$0xff] }
 0x480   : > { %10751 = vmatprep.mubr.msk.f32.mxu1 %vm4172_vm0, %v5457_v53  ;;  %16890 = vst [vmem:[#allocation140_spill] sm:$0xff] %v14685_v4  ;;  %v14690_v62 = vpop.eup %11584  ;;  %v16895_v53 = vld [vmem:[#allocation21_spill] sm:$0xff]  ;;  %v16897_v47 = vsub.f32 %v16699_v34, %v16896_v60  ;;  %v5184_v57 = vsel %vm4172_vm0, %v14685_v4, 0.0  ;;  %v16901_v30 = vsub.f32 %v16899_v38, %v16900_v18  ;;  %v16902_v34 = vld [vmem:[#allocation76_spill] sm:$0xff]  ;;  %v16904_v38 = vsub.f32 %v16717_v42, %v14255_v11 }
 0x481   : > { %5101 = vadd.xlane.f32.xlu1 %v5100_v23  ;;  %10752 = vmatmul.mubr.msk.f32.vlgmr.msra.gmra.mrb[112].mxu1 %vm4172_vm0, %v5458_v6  ;;  %v14695_v55 = vpop.eup %11586  ;;  %v4863_v29 = vmul.f32 1.442695, %v16894_v26  ;;  %11600 = vpow2.f32 %v4805_v45  ;;  %v5181_v33 = vsel %vm4172_vm0, %v14690_v62, 0.0  ;;  %v16906_v42 = vsub.f32 %v16708_v54, %v14233_v3 }
 0x482   : > { %10766 = vmatpush3.msra.mxu1 %v16891_v36  ;;  %v14693_v40 = vpop.xlane.xlu1 %4972  ;;  %5098 = vadd.xlane.f32.xlu0 %v5097_v61  ;;  %v11589_v51 = vpop.eup %11588  ;;  %v4861_v23 = vmul.f32 1.442695, %v16897_v47  ;;  %v16898_v36 = vld [vmem:[#allocation144_spill] sm:$0xff]  ;;  %v4811_v26 = vmul.f32 1.442695, %v16901_v30 }
 0x483   : > { %16892 = vst [vmem:[#allocation54_spill] sm:$0xff] %v14693_v40  ;;  %10781 = vmatprep.subr.mxu1 %v16895_v53  ;;  %v14701_v6 = vpop.xlane.xlu0 %4537  ;;  %11602 = vpow2.f32 %v4863_v29  ;;  %v16903_v61 = vld [vmem:[#allocation72_spill] sm:$0xff]  ;;  %v4809_v18 = vmul.f32 1.442695, %v16904_v38  ;;  %v4867_v11 = vmul.f32 1.442695, %v16906_v42 }
 0x484   : > { %v5460_v4 = vmul.f32 %v11589_v51, %v16903_v61  ;;  %11604 = vpow2.f32 %v4861_v23  ;;  %v16907_v23 = vld [vmem:[#allocation115_spill] sm:$0xff] }
 0x485   : > { %v11591_v20 = vpop.eup %11590  ;;  %5185 = vadd.xlane.f32.xlu1 %v5184_v57  ;;  %v5106_v57 = vsel %vm4172_vm0, %v14695_v55, 0.0  ;;  %11606 = vpow2.f32 %v4811_v26  ;;  %v16908_v61 = vsub.f32 %v16727_v22, %v16907_v23 }
 0x486   : > { %v14715_v45 = vpop.eup %11592  ;;  %v4982_v40 = vpop.xlane.xlu1 %4981  ;;  %5182 = vadd.xlane.f32.xlu0 %v5181_v33  ;;  %v5459_v60 = vmul.f32 %v11591_v20, %v16902_v34 }
 0x487   : > { %v14718_v47 = vpop.xlane.xlu0 %4534  ;;  %v14727_v30 = vpop.eup %11594  ;;  %v5103_v20 = vsel %vm4172_vm0, %v14715_v45, 0.0  ;;  %11608 = vrcp.f32 %v4982_v40  ;;  %v16909_v40 = vld [vmem:[#allocation118_spill] sm:$0xff] }
 0x488   : > { %10754 = vmatprep.mubr.msk.f32.mxu1 %vm4172_vm0, %v5459_v60  ;;  %16905 = vst [vmem:[#allocation106_spill] sm:$0xff] %v14727_v30  ;;  %v14732_v33 = vpop.eup %11596  ;;  %v5190_v26 = vsel %vm4172_vm0, %v14727_v30, 0.0  ;;  %v16910_v60 = vld [vmem:[#allocation112_spill] sm:$0xff] }
 0x489   : > { %5107 = vadd.xlane.f32.xlu1 %v5106_v57  ;;  %10755 = vmatmul.mubr.msk.f32.gmra.mrb[114].mxu1 %vm4172_vm0, %v5460_v4  ;;  %v4865_v4 = vmul.f32 1.442695, %v16908_v61  ;;  %v14744_v34 = vpop.eup %11598  ;;  %v16911_v38 = vsub.f32 %v16909_v40, %v16910_v60  ;;  %v5187_v54 = vsel %vm4172_vm0, %v14732_v33, 0.0 }
 0x48a   : > { %v4979_v29 = vpop.xlane.xlu1 %4978  ;;  %5104 = vadd.xlane.f32.xlu0 %v5103_v20  ;;  %v16912_v20 = vsub.f32 %v16746_v13, %v14321_v63  ;;  %v5124_v42 = vsel %vm4172_vm0, %v14744_v34, 0.0  ;;  %v16916_v13 = vsub.f32 %v16737_v2, %v14299_v43  ;;  %v16920_v2 = vld [vmem:[#allocation88_spill] sm:$0xff] }
 0x48b   : > { %11610 = vrcp.f32 %v4979_v29  ;;  %v14737_v51 = vpop.xlane.xlu0 %4459  ;;  %v4823_v57 = vmul.f32 1.442695, %v16911_v38  ;;  %v14751_v3 = vpop.eup %11600  ;;  %v16917_v38 = vld [vmem:[#allocation119_spill] sm:$0xff] }
 0x48c   : > { %11612 = vpow2.f32 %v4809_v18  ;;  %v4821_v29 = vmul.f32 1.442695, %v16912_v20  ;;  %v5121_v61 = vsel %vm4172_vm0, %v14751_v3, 0.0  ;;  %v4879_v63 = vmul.f32 1.442695, %v16916_v13  ;;  %v16922_v13 = vld [vmem:[#allocation169_spill] sm:$0xff] }
 0x48d   : > { %5191 = vadd.xlane.f32.xlu1 %v5190_v26  ;;  %11614 = vpow2.f32 %v4867_v11  ;;  %v14760_v23 = vpop.eup %11602 }
 0x48e   : > { %v4988_v18 = vpop.xlane.xlu1 %4987  ;;  %5188 = vadd.xlane.f32.xlu0 %v5187_v54  ;;  %11616 = vpow2.f32 %v4865_v4  ;;  %16913 = vst [vmem:[#allocation175_spill] sm:$0xff] %v14760_v23  ;;  %v14764_v26 = vpop.eup %11604 }
 0x48f   : > { %v14753_v22 = vpop.xlane.xlu0 %4543  ;;  %11618 = vpow2.f32 %v4823_v57  ;;  %16914 = vst [vmem:[#allocation107_spill] sm:$0xff] %v14764_v26  ;;  %v14766_v4 = vpop.eup %11606  ;;  %v16918_v57 = vsub.f32 %v16756_v5, %v16917_v38  ;;  %v16924_v38 = vld [vmem:[#allocation84_spill] sm:$0xff] }
 0x490   : > { %11620 = vrcp.f32 %v4988_v18  ;;  %16915 = vst [vmem:[#allocation176_spill] sm:$0xff] %v14766_v4  ;;  %v5208_v18 = vsel %vm4172_vm0, %v14760_v23, 0.0 }
 0x491   : > { %5125 = vadd.xlane.f32.xlu1 %v5124_v42  ;;  %v11609_v60 = vpop.eup %11608  ;;  %v4877_v54 = vmul.f32 1.442695, %v16918_v57  ;;  %v5205_v42 = vsel %vm4172_vm0, %v14764_v26, 0.0 }
 0x492   : > { %v4985_v11 = vpop.xlane.xlu1 %4984  ;;  %5122 = vadd.xlane.f32.xlu0 %v5121_v61  ;;  %v5466_v57 = vmul.f32 %v11609_v60, %v16924_v38  ;;  %v16931_v38 = vld [vmem:[#allocation123_spill] sm:$0xff] }
 0x493   : > { %11622 = vrcp.f32 %v4985_v11  ;;  %v14771_v40 = vpop.xlane.xlu0 %4540 }
 0x494   : > { %11624 = vpow2.f32 %v4821_v29  ;;  %v16921_v29 = vld [vmem:[#allocation122_spill] sm:$0xff] }
 0x495   : > { %v11611_v20 = vpop.eup %11610  ;;  %5209 = vadd.xlane.f32.xlu1 %v5208_v18  ;;  %v16923_v30 = vsub.f32 %v16921_v29, %v16922_v13  ;;  %11626 = vpow2.f32 %v4879_v63  ;;  %v16925_v18 = vsub.f32 %v16775_v46, %v14387_v32  ;;  %v16928_v32 = vsub.f32 %v16766_v10, %v14365_v0  ;;  %v16930_v13 = vld [vmem:[#allocation125_spill] sm:$0xff] }
 0x496   : > { %v14780_v61 = vpop.eup %11612  ;;  %v14782_v43 = vpop.xlane.xlu1 %4990  ;;  %5206 = vadd.xlane.f32.xlu0 %v5205_v42  ;;  %v5465_v11 = vmul.f32 %v11611_v20, %v16920_v2  ;;  %11628 = vpow2.f32 %v4877_v54  ;;  %v5130_v42 = vsel %vm4172_vm0, %v14766_v4, 0.0  ;;  %v16929_v2 = vld [vmem:[#allocation23_spill] sm:$0xff]  ;;  %v16935_v4 = vld [vmem:[#allocation170_spill] sm:$0xff] }
 0x497   : > { %16919 = vst [vmem:[#allocation139_spill] sm:$0xff] %v14780_v61  ;;  %v4827_v5 = vmul.f32 1.442695, %v16923_v30  ;;  %v14789_v23 = vpop.xlane.xlu0 %4477  ;;  %v4825_v26 = vmul.f32 1.442695, %v16925_v18  ;;  %v14797_v20 = vpop.eup %11614  ;;  %v5127_v30 = vsel %vm4172_vm0, %v14780_v61, 0.0 }
 0x498   : > { %10767 = vmatprep.mubr.msk.f32.mxu1 %vm4172_vm0, %v5465_v11  ;;  %16926 = vst [vmem:[#allocation141_spill] sm:$0xff] %v14797_v20  ;;  %v14802_v63 = vpop.eup %11616  ;;  %v4883_v54 = vmul.f32 1.442695, %v16928_v32  ;;  %v5214_v18 = vsel %vm4172_vm0, %v14797_v20, 0.0 }
 0x499   : > { %5131 = vadd.xlane.f32.xlu1 %v5130_v42  ;;  %10768 = vmatmul.mubr.msk.f32.vlgmr.msra.gmra.mrb[116].mxu1 %vm4172_vm0, %v5466_v57  ;;  %16927 = vst [vmem:[#allocation71_spill] sm:$0xff] %v14802_v63  ;;  %v14807_v46 = vpop.eup %11618  ;;  %11630 = vpow2.f32 %v4827_v5  ;;  %v16932_v57 = vsub.f32 %v16930_v13, %v16931_v38  ;;  %v5211_v5 = vsel %vm4172_vm0, %v14802_v63, 0.0 }
 0x49a   : > { %10782 = vmatpush3.msra.mxu1 %v16895_v53  ;;  %v14805_v60 = vpop.xlane.xlu1 %5038  ;;  %5128 = vadd.xlane.f32.xlu0 %v5127_v30  ;;  %v11621_v29 = vpop.eup %11620  ;;  %11632 = vpow2.f32 %v4825_v26  ;;  %v16933_v30 = vld [vmem:[#allocation93_spill] sm:$0xff]  ;;  %v16934_v26 = vld [vmem:[#allocation126_spill] sm:$0xff] }
 0x49b   : > { %10797 = vmatprep.subr.mxu1 %v16929_v2  ;;  %v14813_v11 = vpop.xlane.xlu0 %4483  ;;  %v4881_v53 = vmul.f32 1.442695, %v16932_v57  ;;  %v16936_v61 = vsub.f32 %v16934_v26, %v16935_v4  ;;  %11634 = vpow2.f32 %v4883_v54  ;;  %v16937_v57 = vld [vmem:[#allocation90_spill] sm:$0xff] }
 0x49c   : > { %v5468_v20 = vmul.f32 %v11621_v29, %v16937_v57  ;;  %v16942_v57 = vld [vmem:[#allocation171_spill] sm:$0xff] }
 0x49d   : > { %v11623_v42 = vpop.eup %11622  ;;  %5215 = vadd.xlane.f32.xlu1 %v5214_v18  ;;  %v4839_v13 = vmul.f32 1.442695, %v16936_v61  ;;  %11636 = vpow2.f32 %v4881_v53  ;;  %v16938_v18 = vsub.f32 %v16805_v52, %v14453_v31  ;;  %v16939_v52 = vsub.f32 %v16796_v48, %v14431_v19  ;;  %v16941_v19 = vld [vmem:[#allocation130_spill] sm:$0xff] }
 0x49e   : > { %v14822_v0 = vpop.eup %11624  ;;  %v14824_v10 = vpop.xlane.xlu1 %4996  ;;  %5212 = vadd.xlane.f32.xlu0 %v5211_v5  ;;  %v5467_v32 = vmul.f32 %v11623_v42, %v16933_v30  ;;  %v5148_v5 = vsel %vm4172_vm0, %v14807_v46, 0.0  ;;  %v16940_v53 = vsub.f32 %v16813_v24, %v14475_v1  ;;  %v16944_v1 = vsub.f32 %v16832_v44, %v14519_v21 }
 0x49f   : > { %v14830_v38 = vpop.xlane.xlu0 %4501  ;;  %v4837_v63 = vmul.f32 1.442695, %v16938_v18  ;;  %v14839_v42 = vpop.eup %11626  ;;  %v5145_v4 = vsel %vm4172_vm0, %v14822_v0, 0.0  ;;  %11638 = vpow2.f32 %v4839_v13  ;;  %v4895_v31 = vmul.f32 1.442695, %v16939_v52 }
 0x4a0   : > { %10770 = vmatprep.mubr.msk.f32.mxu1 %vm4172_vm0, %v5467_v32  ;;  %v14844_v61 = vpop.eup %11628  ;;  %v5232_v30 = vsel %vm4172_vm0, %v14839_v42, 0.0  ;;  %v16947_v21 = vsub.f32 %v16841_v27, %v14541_v17 }
 0x4a1   : > { %5149 = vadd.xlane.f32.xlu1 %v5148_v5  ;;  %10771 = vmatmul.mubr.msk.f32.gmra.mrb[118].mxu1 %vm4172_vm0, %v5468_v20  ;;  %11640 = vpow2.f32 %v4837_v63  ;;  %v4893_v20 = vmul.f32 1.442695, %v16940_v53  ;;  %v5229_v26 = vsel %vm4172_vm0, %v14844_v61, 0.0  ;;  %v16943_v63 = vsub.f32 %v16941_v19, %v16942_v57  ;;  %v16948_v57 = vld [vmem:[#allocation134_spill] sm:$0xff] }
 0x4a2   : > { %v14846_v54 = vpop.xlane.xlu1 %5044  ;;  %5146 = vadd.xlane.f32.xlu0 %v5145_v4  ;;  %11642 = vpow2.f32 %v4895_v31  ;;  %v4841_v5 = vmul.f32 1.442695, %v16944_v1  ;;  %v16946_v53 = vsub.f32 %v16823_v58, %v14497_v7  ;;  %v4897_v19 = vmul.f32 1.442695, %v16947_v21 }
 0x4a3   : > { %v14851_v29 = vpop.xlane.xlu0 %4507  ;;  %v14858_v32 = vpop.eup %11630  ;;  %v4843_v18 = vmul.f32 1.442695, %v16943_v63  ;;  %11644 = vpow2.f32 %v4893_v20  ;;  %v16949_v63 = vld [vmem:[#allocation117_spill] sm:$0xff] }
 0x4a4   : > { %v14862_v13 = vpop.eup %11632  ;;  %v5154_v4 = vsel %vm4172_vm0, %v14858_v32, 0.0  ;;  %v16950_v1 = vsub.f32 %v16948_v57, %v16949_v63 }
 0x4a5   : > { %5233 = vadd.xlane.f32.xlu1 %v5232_v30  ;;  %v14874_v52 = vpop.eup %11634  ;;  %v4899_v30 = vmul.f32 1.442695, %v16946_v53  ;;  %v5151_v31 = vsel %vm4172_vm0, %v14862_v13, 0.0  ;;  %11646 = vpow2.f32 %v4843_v18 }
 0x4a6   : > { %v5006_v48 = vpop.xlane.xlu1 %5005  ;;  %5230 = vadd.xlane.f32.xlu0 %v5229_v26  ;;  %16945 = vst [vmem:[#allocation68_spill] sm:$0xff] %v14874_v52  ;;  %11648 = vpow2.f32 %v4841_v5  ;;  %v5238_v7 = vsel %vm4172_vm0, %v14874_v52, 0.0  ;;  %v16951_v5 = vld [vmem:[#allocation138_spill] sm:$0xff] }
 0x4a7   : > { %v14867_v24 = vpop.xlane.xlu0 %4525  ;;  %v14881_v26 = vpop.eup %11636  ;;  %11650 = vpow2.f32 %v4899_v30  ;;  %v16954_v30 = vsub.f32 %v16853_v59, %v14579_v12  ;;  %v16956_v12 = vsub.f32 %v16860_v39, %v14597_v16 }
 0x4a8   : > { %v5235_v18 = vsel %vm4172_vm0, %v14881_v26, 0.0  ;;  %11652 = vrcp.f32 %v5006_v48 }
 0x4a9   : > { %5155 = vadd.xlane.f32.xlu1 %v5154_v4  ;;  %v14892_v58 = vpop.eup %11638  ;;  %v4855_v4 = vmul.f32 1.442695, %v16950_v1  ;;  %v16955_v1 = vsub.f32 %v16847_v49, %v14559_v50  ;;  %v4909_v59 = vmul.f32 1.442695, %v16956_v12 }
 0x4aa   : > { %v14883_v20 = vpop.xlane.xlu1 %5065  ;;  %5152 = vadd.xlane.f32.xlu0 %v5151_v31  ;;  %v16952_v31 = vld [vmem:[#allocation62_spill] sm:$0xff]  ;;  %v5172_v57 = vsel %vm4172_vm0, %v14892_v58, 0.0 }
 0x4ab   : > { %v14885_v44 = vpop.xlane.xlu0 %4531  ;;  %v14899_v53 = vpop.eup %11640  ;;  %v16953_v27 = vsub.f32 %v16951_v5, %v16952_v31  ;;  %v4911_v48 = vmul.f32 1.442695, %v16955_v1 }
 0x4ac   : > { %v14911_v63 = vpop.eup %11642 }
 0x4ad   : > { %5239 = vadd.xlane.f32.xlu1 %v5238_v7  ;;  %v4859_v17 = vmul.f32 1.442695, %v16953_v27  ;;  %v4853_v7 = vmul.f32 1.442695, %v16954_v30  ;;  %v14918_v5 = vpop.eup %11644  ;;  %v5256_v31 = vsel %vm4172_vm0, %v14911_v63, 0.0 }
 0x4ae   : > { %v5003_v21 = vpop.xlane.xlu1 %5002  ;;  %5236 = vadd.xlane.f32.xlu0 %v5235_v18  ;;  %v5169_v18 = vsel %vm4172_vm0, %v14899_v53, 0.0  ;;  %v5253_v16 = vsel %vm4172_vm0, %v14918_v5, 0.0 }
 0x4af   : > { %11654 = vrcp.f32 %v5003_v21  ;;  %v14904_v52 = vpop.xlane.xlu0 %4549  ;;  %v14931_v27 = vpop.eup %11646 }
 0x4b0   : > { %11656 = vpow2.f32 %v4897_v19  ;;  %v14935_v39 = vpop.eup %11648  ;;  %v5178_v21 = vsel %vm4172_vm0, %v14931_v27, 0.0 }
 0x4b1   : > { %11658 = vpow2.f32 %v4855_v4  ;;  %5173 = vadd.xlane.f32.xlu1 %v5172_v57  ;;  %v16957_v4 = vsub.f32 %v16877_v35, %v14635_v28  ;;  %v14939_v28 = vpop.eup %11650  ;;  %v5175_v1 = vsel %vm4172_vm0, %v14935_v39, 0.0 }
 0x4b2   : > { %11660 = vpow2.f32 %v4859_v17  ;;  %v5012_v19 = vpop.xlane.xlu1 %5011  ;;  %5170 = vadd.xlane.f32.xlu0 %v5169_v18  ;;  %v11653_v17 = vpop.eup %11652  ;;  %v16959_v18 = vsub.f32 %v16883_v41, %v14655_v14  ;;  %v5262_v41 = vsel %vm4172_vm0, %v14939_v28, 0.0 }
 0x4b3   : > { %11662 = vrcp.f32 %v14574_v9  ;;  %v4857_v50 = vmul.f32 1.442695, %v16957_v4  ;;  %v14927_v49 = vpop.xlane.xlu0 %4555 }
 0x4b4   : > { %11664 = vpow2.f32 %v4853_v7  ;;  %v16958_v7 = vsub.f32 %v16867_v15, %v14615_v8  ;;  %v4913_v12 = vmul.f32 1.442695, %v16959_v18  ;;  %v16961_v8 = vld [vmem:[#allocation174_spill] sm:$0xff] }
 0x4b5   : > { %11666 = vpow2.f32 %v4911_v48  ;;  %5257 = vadd.xlane.f32.xlu1 %v5256_v31  ;;  %v5474_v15 = vmul.f32 %v11653_v17, %v16961_v8  ;;  %v16968_v8 = vld [vmem:[#allocation54_spill] sm:$0xff] }
 0x4b6   : > { %11668 = vpow2.f32 %v4909_v59  ;;  %v14937_v9 = vpop.xlane.xlu1 %5071  ;;  %5254 = vadd.xlane.f32.xlu0 %v5253_v16  ;;  %v4915_v57 = vmul.f32 1.442695, %v16958_v7  ;;  %v16960_v59 = vld [vmem:[#allocation158_spill] sm:$0xff] }
 0x4b7   : > { %11670 = vpow2.f32 %v4857_v50  ;;  %v4946_v35 = vpop.xlane.xlu0 %4945 }
 0x4b8   : > { %11672 = vrcp.f32 %v14668_v37 }
 0x4b9   : > { %v11655_v30 = vpop.eup %11654  ;;  %11674 = vrcp.f32 %v4946_v35  ;;  %5179 = vadd.xlane.f32.xlu1 %v5178_v21  ;;  %v16963_v35 = vld [vmem:[#allocation63_spill] sm:$0xff] }
 0x4ba   : > { %v14949_v48 = vpop.eup %11656  ;;  %11676 = vrcp.f32 %v5012_v19  ;;  %v5009_v37 = vpop.xlane.xlu1 %5008  ;;  %5176 = vadd.xlane.f32.xlu0 %v5175_v1  ;;  %v5473_v4 = vmul.f32 %v11655_v30, %v16960_v59  ;;  %v16962_v19 = vld [vmem:[#allocation143_spill] sm:$0xff]  ;;  %v16965_v1 = vsub.f32 %v16889_v25, %v14675_v56 }
 0x4bb   : > { %v14955_v50 = vpop.eup %11658  ;;  %11678 = vrcp.f32 %v5009_v37  ;;  %v4952_v31 = vpop.xlane.xlu0 %4951  ;;  %v16964_v21 = vsub.f32 %v16962_v19, %v16963_v35  ;;  %v5259_v17 = vsel %vm4172_vm0, %v14949_v48, 0.0  ;;  %v16966_v37 = vld [vmem:[#allocation145_spill] sm:$0xff] }
 0x4bc   : > { %v14958_v16 = vpop.eup %11660  ;;  %11680 = vrcp.f32 %v4952_v31  ;;  %10783 = vmatprep.mubr.msk.f32.mxu1 %vm4172_vm0, %v5473_v4  ;;  %v4871_v18 = vmul.f32 1.442695, %v16965_v1  ;;  %v4677_v59 = vsub.f32 %v16966_v37, %v14718_v47  ;;  %v5196_v25 = vsel %vm4172_vm0, %v14955_v50, 0.0  ;;  %v16972_v1 = vld [vmem:[#allocation146_spill] sm:$0xff] }
 0x4bd   : > { %v11663_v14 = vpop.eup %11662  ;;  %v4869_v7 = vmul.f32 1.442695, %v16964_v21  ;;  %11682 = vpow2.f32 %v4915_v57  ;;  %5263 = vadd.xlane.f32.xlu1 %v5262_v41  ;;  %10784 = vmatmul.mubr.msk.f32.vlgmr.msra.gmra.mrb[120].mxu1 %vm4172_vm0, %v5474_v15  ;;  %v16969_v15 = vld [vmem:[#allocation25_spill] sm:$0xff]  ;;  %v16971_v47 = vsub.f32 %v16898_v36, %v14701_v6  ;;  %v4652_v37 = vsub.f32 %v16972_v1, %v14737_v51  ;;  %v16973_v6 = vld [vmem:[#allocation110_spill] sm:$0xff]  ;;  %v16975_v51 = vld [vmem:[#allocation67_spill] sm:$0xff] }
 0x4be   : > { %v14969_v30 = vpop.eup %11664  ;;  %11684 = vpow2.f32 %v4913_v12  ;;  %10798 = vmatpush3.msra.mxu1 %v16929_v2  ;;  %v14977_v4 = vpop.xlane.xlu1 %5089  ;;  %5260 = vadd.xlane.f32.xlu0 %v5259_v17  ;;  %v4925_v35 = vmul.f32 1.442695, %v4677_v59  ;;  %v16976_v1 = vld [vmem:[#allocation149_spill] sm:$0xff] }
 0x4bf   : > { %v14979_v57 = vpop.eup %11666  ;;  %11686 = vrcp.f32 %v16968_v8  ;;  %10813 = vmatprep.subr.mxu1 %v16969_v15  ;;  %v4970_v31 = vpop.xlane.xlu0 %4969  ;;  %v4927_v2 = vmul.f32 1.442695, %v16971_v47  ;;  %v5193_v41 = vsel %vm4172_vm0, %v14969_v30, 0.0 }
 0x4c0   : > { %16967 = vst [vmem:[#allocation142_spill] sm:$0xff] %v14979_v57  ;;  %v14983_v12 = vpop.eup %11668  ;;  %11688 = vrcp.f32 %v4970_v31  ;;  %v5280_v31 = vsel %vm4172_vm0, %v14979_v57, 0.0 }
 0x4c1   : > { %16970 = vst [vmem:[#allocation50_spill] sm:$0xff] %v14983_v12  ;;  %v14987_v56 = vpop.eup %11670  ;;  %11690 = vpow2.f32 %v4869_v7  ;;  %5197 = vadd.xlane.f32.xlu1 %v5196_v25  ;;  %v5277_v47 = vsel %vm4172_vm0, %v14983_v12, 0.0 }
 0x4c2   : > { %v11673_v19 = vpop.eup %11672  ;;  %11692 = vpow2.f32 %v4871_v18  ;;  %v14994_v21 = vpop.xlane.xlu1 %5014  ;;  %5194 = vadd.xlane.f32.xlu0 %v5193_v41  ;;  %v16974_v18 = vld [vmem:[#allocation148_spill] sm:$0xff]  ;;  %v5455_v41 = vmul.f32 %v11663_v14, %v16975_v51 }
 0x4c3   : > { %v11675_v17 = vpop.eup %11674  ;;  %11694 = vrcp.f32 %v14782_v43  ;;  %v4976_v7 = vpop.xlane.xlu0 %4975  ;;  %v4680_v59 = vsub.f32 %v16974_v18, %v14753_v22  ;;  %v4875_v22 = vmul.f32 1.442695, %v4652_v37 }
 0x4c4   : > { %v11677_v8 = vpop.eup %11676  ;;  %v5454_v36 = vmul.f32 %v11675_v17, %v16973_v6  ;;  %11696 = vrcp.f32 %v4976_v7  ;;  %v4679_v17 = vsub.f32 %v16976_v1, %v14771_v40  ;;  %v16981_v40 = vld [vmem:[#allocation53_spill] sm:$0xff]  ;;  %v16983_v1 = vld [vmem:[#allocation147_spill] sm:$0xff] }
 0x4c5   : > { %v11679_v25 = vpop.eup %11678  ;;  %11698 = vpow2.f32 %v4927_v2  ;;  %5281 = vadd.xlane.f32.xlu1 %v5280_v31  ;;  %v16977_v2 = vld [vmem:[#allocation111_spill] sm:$0xff]  ;;  %v16979_v31 = vld [vmem:[#allocation49_spill] sm:$0xff]  ;;  %v5476_v51 = vmul.f32 %v11677_v8, %v16981_v40  ;;  %v5199_v8 = vsel %vm4172_vm0, %v14987_v56, 0.0 }
 0x4c6   : > { %v11681_v43 = vpop.eup %11680  ;;  %11700 = vpow2.f32 %v4925_v35  ;;  %10744 = vmatmul.mubr.msk.f32.vlgmr.msra.gmra.mrb[112].mxu0 %vm4172_vm0, %v5454_v36  ;;  %v15010_v7 = vpop.xlane.xlu1 %5095  ;;  %5278 = vadd.xlane.f32.xlu0 %v5277_v47  ;;  %v5475_v6 = vmul.f32 %v11679_v25, %v16977_v2  ;;  %v16980_v35 = vld [vmem:[#allocation58_spill] sm:$0xff]  ;;  %v16984_v47 = vld [vmem:[#allocation121_spill] sm:$0xff] }
 0x4c7   : > { %v15013_v57 = vpop.eup %11682  ;;  %11702 = vrcp.f32 %v14824_v10  ;;  %10758 = vmatpush3.msra.mxu0 %v16979_v31  ;;  %10746 = vmatprep.mubr.msk.f32.mxu0 %vm4172_vm0, %v5455_v41  ;;  %v4994_v14 = vpop.xlane.xlu0 %4993  ;;  %v5456_v18 = vmul.f32 %v11681_v43, %v16980_v35  ;;  %v16985_v12 = vsub.f32 %v16983_v1, %v16984_v47  ;;  %v16986_v2 = vld [vmem:[#allocation22_spill] sm:$0xff]  ;;  %v5202_v10 = vsel %vm4172_vm0, %v14958_v16, 0.0  ;;  %v16987_v43 = vld [vmem:[#allocation79_spill] sm:$0xff] }
 0x4c8   : > { %16978 = vst [vmem:[#allocation108_spill] sm:$0xff] %v15013_v57  ;;  %v15020_v36 = vpop.eup %11684  ;;  %10773 = vmatprep.subr.mxu0 %v16986_v2  ;;  %11704 = vrcp.f32 %v4994_v14  ;;  %10786 = vmatprep.mubr.msk.f32.mxu1 %vm4172_vm0, %v5475_v6  ;;  %v4931_v41 = vmul.f32 1.442695, %v4680_v59  ;;  %v5461_v31 = vmul.f32 %v11673_v19, %v16987_v43  ;;  %v16989_v59 = vld [vmem:[#allocation150_spill] sm:$0xff]  ;;  %v16990_v1 = vld [vmem:[#allocation59_spill] sm:$0xff] }
 0x4c9   : > { %16982 = vst [vmem:[#allocation21_spill] sm:$0xff] %v15020_v36  ;;  %v4873_v25 = vmul.f32 1.442695, %v16985_v12  ;;  %v11687_v37 = vpop.eup %11686  ;;  %5203 = vadd.xlane.f32.xlu1 %v5202_v10  ;;  %10787 = vmatmul.mubr.msk.f32.gmra.mrb[122].mxu1 %vm4172_vm0, %v5476_v51  ;;  %v4929_v12 = vmul.f32 1.442695, %v4679_v17  ;;  %11706 = vpow2.f32 %v4875_v22  ;;  %v4658_v40 = vsub.f32 %v16989_v59, %v14789_v23  ;;  %v16992_v10 = vld [vmem:[#allocation152_spill] sm:$0xff] }
 0x4ca   : > { %v11689_v35 = vpop.eup %11688  ;;  %10747 = vmatmul.mubr.msk.f32.gmra.mrb[114].mxu0 %vm4172_vm0, %v5456_v18  ;;  %v15034_v14 = vpop.xlane.xlu1 %5020  ;;  %5200 = vadd.xlane.f32.xlu0 %v5199_v8  ;;  %v5286_v17 = vsel %vm4172_vm0, %v15013_v57, 0.0  ;;  %v4660_v22 = vsub.f32 %v16992_v10, %v14813_v11  ;;  %v5283_v23 = vsel %vm4172_vm0, %v15020_v36, 0.0  ;;  %v16993_v8 = vld [vmem:[#allocation82_spill] sm:$0xff] }
 0x4cb   : > { %v15036_v6 = vpop.eup %11690  ;;  %v5462_v51 = vmul.f32 %v11689_v35, %v16990_v1  ;;  %10759 = vmatprep.mubr.msk.f32.mxu0 %vm4172_vm0, %v5461_v31  ;;  %v15042_v47 = vpop.xlane.xlu0 %5041  ;;  %11708 = vpow2.f32 %v4873_v25  ;;  %v5463_v43 = vmul.f32 %v11687_v37, %v16993_v8  ;;  %v4887_v59 = vmul.f32 1.442695, %v4658_v40  ;;  %v16997_v37 = vld [vmem:[#allocation151_spill] sm:$0xff]  ;;  %v17000_v8 = vld [vmem:[#allocation24_spill] sm:$0xff] }
 0x4cc   : > { %16988 = vst [vmem:[#allocation168_spill] sm:$0xff] %v15036_v6  ;;  %v15044_v19 = vpop.eup %11692  ;;  %11710 = vpow2.f32 %v4931_v41  ;;  %v16995_v41 = vld [vmem:[#allocation60_spill] sm:$0xff] }
 0x4cd   : > { %16991 = vst [vmem:[#allocation144_spill] sm:$0xff] %v15044_v19  ;;  %v11695_v18 = vpop.eup %11694  ;;  %5287 = vadd.xlane.f32.xlu1 %v5286_v17  ;;  %11712 = vpow2.f32 %v4929_v12  ;;  %v16998_v12 = vld [vmem:[#allocation64_spill] sm:$0xff]  ;;  %v5220_v40 = vsel %vm4172_vm0, %v15044_v19, 0.0  ;;  %v17005_v19 = vld [vmem:[#allocation66_spill] sm:$0xff] }
 0x4ce   : > { %v11697_v31 = vpop.eup %11696  ;;  %10760 = vmatmul.mubr.msk.f32.vlgmr.msra.gmra.mrb[116].mxu0 %vm4172_vm0, %v5462_v51  ;;  %v5030_v35 = vpop.xlane.xlu1 %5029  ;;  %5284 = vadd.xlane.f32.xlu0 %v5283_v23  ;;  %11714 = vrcp.f32 %v14994_v21  ;;  %v16999_v10 = vsub.f32 %v16997_v37, %v16998_v12  ;;  %v4891_v23 = vmul.f32 1.442695, %v4660_v22  ;;  %v17003_v12 = vld [vmem:[#allocation172_spill] sm:$0xff] }
 0x4cf   : > { %v15054_v25 = vpop.eup %11698  ;;  %10774 = vmatpush3.msra.mxu0 %v16986_v2  ;;  %10762 = vmatprep.mubr.msk.f32.mxu0 %vm4172_vm0, %v5463_v43  ;;  %v5000_v11 = vpop.xlane.xlu0 %4999  ;;  %v5464_v1 = vmul.f32 %v11697_v31, %v16995_v41  ;;  %v5217_v2 = vsel %vm4172_vm0, %v15036_v6, 0.0  ;;  %v17001_v43 = vld [vmem:[#allocation96_spill] sm:$0xff] }
 0x4d0   : > { %16994 = vst [vmem:[#allocation114_spill] sm:$0xff] %v15054_v25  ;;  %v15060_v17 = vpop.eup %11700  ;;  %v4885_v51 = vmul.f32 1.442695, %v16999_v10  ;;  %10789 = vmatprep.subr.mxu0 %v17000_v8  ;;  %11716 = vrcp.f32 %v5000_v11  ;;  %v5469_v31 = vmul.f32 %v11695_v18, %v17001_v43  ;;  %v17002_v11 = vld [vmem:[#allocation154_spill] sm:$0xff] }
 0x4d1   : > { %16996 = vst [vmem:[#allocation161_spill] sm:$0xff] %v15060_v17  ;;  %v11703_v21 = vpop.eup %11702  ;;  %5221 = vadd.xlane.f32.xlu1 %v5220_v40  ;;  %11718 = vpow2.f32 %v4887_v59  ;;  %v4666_v37 = vsub.f32 %v17002_v11, %v14830_v38  ;;  %v17004_v40 = vld [vmem:[#allocation153_spill] sm:$0xff]  ;;  %v5301_v38 = vsel %vm4172_vm0, %v15060_v17, 0.0 }
 0x4d2   : > { %v11705_v41 = vpop.eup %11704  ;;  %10763 = vmatmul.mubr.msk.f32.gmra.mrb[118].mxu0 %vm4172_vm0, %v5464_v1  ;;  %v15072_v57 = vpop.xlane.xlu1 %5113  ;;  %5218 = vadd.xlane.f32.xlu0 %v5217_v2  ;;  %11720 = vpow2.f32 %v4885_v51  ;;  %v17006_v18 = vsub.f32 %v17004_v40, %v17005_v19  ;;  %v5304_v1 = vsel %vm4172_vm0, %v15054_v25, 0.0  ;;  %v17008_v59 = vld [vmem:[#allocation101_spill] sm:$0xff]  ;;  %v17013_v19 = vld [vmem:[#allocation156_spill] sm:$0xff] }
 0x4d3   : > { %v5470_v10 = vmul.f32 %v11705_v41, %v17003_v12  ;;  %10775 = vmatprep.mubr.msk.f32.mxu0 %vm4172_vm0, %v5469_v31  ;;  %v15078_v22 = vpop.xlane.xlu0 %5047  ;;  %v15085_v6 = vpop.eup %11706  ;;  %11722 = vpow2.f32 %v4891_v23  ;;  %v5471_v2 = vmul.f32 %v11703_v21, %v17008_v59  ;;  %v17010_v41 = vld [vmem:[#allocation155_spill] sm:$0xff]  ;;  %v17011_v51 = vld [vmem:[#allocation177_spill] sm:$0xff]  ;;  %v4668_v40 = vsub.f32 %v17013_v19, %v14851_v29 }
 0x4d4   : > { %v4889_v43 = vmul.f32 1.442695, %v17006_v18  ;;  %17007 = vst [vmem:[#allocation76_spill] sm:$0xff] %v15085_v6  ;;  %v17012_v11 = vsub.f32 %v17010_v41, %v17011_v51  ;;  %11724 = vrcp.f32 %v5030_v35  ;;  %v17016_v41 = vld [vmem:[#allocation157_spill] sm:$0xff] }
 0x4d5   : > { %5305 = vadd.xlane.f32.xlu1 %v5304_v1  ;;  %v15090_v31 = vpop.eup %11708  ;;  %v4903_v1 = vmul.f32 1.442695, %v4666_v37  ;;  %v17017_v29 = vld [vmem:[#allocation81_spill] sm:$0xff] }
 0x4d6   : > { %17009 = vst [vmem:[#allocation72_spill] sm:$0xff] %v15090_v31  ;;  %v4901_v12 = vmul.f32 1.442695, %v17012_v11  ;;  %10776 = vmatmul.mubr.msk.f32.vlgmr.msra.gmra.mrb[120].mxu0 %vm4172_vm0, %v5470_v10  ;;  %v5027_v18 = vpop.xlane.xlu1 %5026  ;;  %5302 = vadd.xlane.f32.xlu0 %v5301_v38  ;;  %v15098_v23 = vpop.eup %11710  ;;  %v17018_v35 = vsub.f32 %v17016_v41, %v17017_v29  ;;  %v17019_v10 = vld [vmem:[#allocation26_spill] sm:$0xff]  ;;  %v5226_v38 = vsel %vm4172_vm0, %v15085_v6, 0.0  ;;  %v17020_v11 = vld [vmem:[#allocation160_spill] sm:$0xff] }
 0x4d7   : > { %17014 = vst [vmem:[#allocation115_spill] sm:$0xff] %v15098_v23  ;;  %10790 = vmatpush3.msra.mxu0 %v17000_v8  ;;  %11726 = vrcp.f32 %v5027_v18  ;;  %10778 = vmatprep.mubr.msk.f32.mxu0 %vm4172_vm0, %v5471_v2  ;;  %v15102_v21 = vpop.xlane.xlu0 %5062  ;;  %v15104_v59 = vpop.eup %11712  ;;  %v17021_v8 = vld [vmem:[#allocation85_spill] sm:$0xff]  ;;  %v17023_v2 = vld [vmem:[#allocation159_spill] sm:$0xff]  ;;  %v4907_v41 = vmul.f32 1.442695, %v4668_v40 }
 0x4d8   : > { %17015 = vst [vmem:[#allocation118_spill] sm:$0xff] %v15104_v59  ;;  %11728 = vpow2.f32 %v4889_v43  ;;  %v4905_v51 = vmul.f32 1.442695, %v17018_v35  ;;  %10805 = vmatprep.subr.mxu0 %v17019_v10  ;;  %v11715_v37 = vpop.eup %11714  ;;  %v17022_v19 = vsub.f32 %v17020_v11, %v17021_v8  ;;  %v4674_v25 = vsub.f32 %v17023_v2, %v14867_v24  ;;  %v17024_v6 = vld [vmem:[#allocation69_spill] sm:$0xff]  ;;  %v17025_v8 = vld [vmem:[#allocation116_spill] sm:$0xff] }
 0x4d9   : > { %5227 = vadd.xlane.f32.xlu1 %v5226_v38  ;;  %v5223_v43 = vsel %vm4172_vm0, %v15090_v31, 0.0  ;;  %11730 = vpow2.f32 %v4901_v12  ;;  %v5310_v11 = vsel %vm4172_vm0, %v15098_v23, 0.0  ;;  %v5477_v24 = vmul.f32 %v11715_v37, %v17025_v8  ;;  %v17028_v37 = vld [vmem:[#allocation163_spill] sm:$0xff]  ;;  %v17031_v8 = vld [vmem:[#allocation165_spill] sm:$0xff] }
 0x4da   : > { %v4917_v18 = vmul.f32 1.442695, %v17022_v19  ;;  %v11717_v17 = vpop.eup %11716  ;;  %v5036_v29 = vpop.xlane.xlu1 %5035  ;;  %5224 = vadd.xlane.f32.xlu0 %v5223_v43  ;;  %11732 = vpow2.f32 %v4903_v1  ;;  %v4919_v19 = vmul.f32 1.442695, %v4674_v25  ;;  %v5307_v12 = vsel %vm4172_vm0, %v15104_v59, 0.0  ;;  %v17027_v1 = vld [vmem:[#allocation162_spill] sm:$0xff] }
 0x4db   : > { %v15119_v35 = vpop.xlane.xlu0 %5068  ;;  %v5472_v36 = vmul.f32 %v11717_v17, %v17024_v6  ;;  %11734 = vpow2.f32 %v4905_v51  ;;  %v15125_v38 = vpop.eup %11718  ;;  %v4676_v51 = vsub.f32 %v17027_v1, %v14885_v44  ;;  %v17036_v59 = vld [vmem:[#allocation120_spill] sm:$0xff] }
 0x4dc   : > { %17026 = vst [vmem:[#allocation112_spill] sm:$0xff] %v15125_v38  ;;  %11736 = vpow2.f32 %v4917_v18  ;;  %v15130_v40 = vpop.eup %11720  ;;  %v17029_v18 = vld [vmem:[#allocation83_spill] sm:$0xff] }
 0x4dd   : > { %5311 = vadd.xlane.f32.xlu1 %v5310_v11  ;;  %10779 = vmatmul.mubr.msk.f32.gmra.mrb[122].mxu0 %vm4172_vm0, %v5472_v36  ;;  %11738 = vpow2.f32 %v4907_v41  ;;  %v15135_v17 = vpop.eup %11722  ;;  %v17030_v2 = vsub.f32 %v17028_v37, %v17029_v18  ;;  %v5244_v41 = vsel %vm4172_vm0, %v15125_v38, 0.0  ;;  %v5241_v44 = vsel %vm4172_vm0, %v15130_v40, 0.0  ;;  %v17034_v37 = vld [vmem:[#allocation75_spill] sm:$0xff] }
 0x4de   : > { %v15132_v6 = vpop.xlane.xlu1 %5119  ;;  %5308 = vadd.xlane.f32.xlu0 %v5307_v12  ;;  %10791 = vmatprep.mubr.msk.f32.mxu0 %vm4172_vm0, %v5477_v24  ;;  %11740 = vrcp.f32 %v15034_v14  ;;  %v11725_v36 = vpop.eup %11724  ;;  %v17032_v24 = vld [vmem:[#allocation86_spill] sm:$0xff]  ;;  %v4923_v18 = vmul.f32 1.442695, %v4676_v51 }
 0x4df   : > { %v5018_v25 = vpop.xlane.xlu0 %5017  ;;  %v4921_v43 = vmul.f32 1.442695, %v17030_v2  ;;  %v17033_v12 = vsub.f32 %v17031_v8, %v17032_v24  ;;  %v17035_v2 = vld [vmem:[#allocation164_spill] sm:$0xff]  ;;  %v5482_v31 = vmul.f32 %v11725_v36, %v17036_v59 }
 0x4e0   : > { %11742 = vrcp.f32 %v5018_v25  ;;  %v4682_v38 = vsub.f32 %v17035_v2, %v14904_v52 }
 0x4e1   : > { %v11727_v11 = vpop.eup %11726  ;;  %v4933_v23 = vmul.f32 1.442695, %v17033_v12  ;;  %11744 = vpow2.f32 %v4919_v19  ;;  %5245 = vadd.xlane.f32.xlu1 %v5244_v41  ;;  %v17037_v41 = vld [vmem:[#allocation166_spill] sm:$0xff] }
 0x4e2   : > { %v15150_v14 = vpop.eup %11728  ;;  %11746 = vrcp.f32 %v5036_v29  ;;  %v5033_v1 = vpop.xlane.xlu1 %5032  ;;  %5242 = vadd.xlane.f32.xlu0 %v5241_v44  ;;  %v5481_v25 = vmul.f32 %v11727_v11, %v17034_v37  ;;  %v4684_v24 = vsub.f32 %v17037_v41, %v14927_v49  ;;  %v5250_v29 = vsel %vm4172_vm0, %v15135_v17, 0.0  ;;  %v17038_v11 = vld [vmem:[#allocation27_spill] sm:$0xff] }
 0x4e3   : > { %11748 = vrcp.f32 %v5033_v1  ;;  %v15156_v8 = vpop.xlane.xlu0 %5086  ;;  %v15158_v19 = vpop.eup %11730  ;;  %v5247_v52 = vsel %vm4172_vm0, %v15150_v14, 0.0 }
 0x4e4   : > { %11750 = vpow2.f32 %v4921_v43  ;;  %10799 = vmatprep.mubr.msk.f32.mxu1 %vm4172_vm0, %v5481_v25  ;;  %v15165_v51 = vpop.eup %11732  ;;  %v4935_v43 = vmul.f32 1.442695, %v4682_v38  ;;  %v4939_v12 = vmul.f32 1.442695, %v4684_v24  ;;  %v17039_v25 = vld [vmem:[#allocation55_spill] sm:$0xff] }
 0x4e5   : > { %11752 = vpow2.f32 %v4933_v23  ;;  %10800 = vmatmul.mubr.msk.f32.vlgmr.msra.gmra.mrb[124].mxu1 %vm4172_vm0, %v5482_v31  ;;  %5251 = vadd.xlane.f32.xlu1 %v5250_v29  ;;  %v15170_v59 = vpop.eup %11734  ;;  %v5268_v44 = vsel %vm4172_vm0, %v15165_v51, 0.0  ;;  %v17040_v24 = vld [vmem:[#allocation167_spill] sm:$0xff] }
 0x4e6   : > { %11754 = vrcp.f32 %v14805_v60  ;;  %10814 = vmatpush3.msra.mxu1 %v16969_v15  ;;  %v5054_v49 = vpop.xlane.xlu1 %5053  ;;  %5248 = vadd.xlane.f32.xlu0 %v5247_v52  ;;  %v15174_v36 = vpop.eup %11736  ;;  %v5265_v60 = vsel %vm4172_vm0, %v15158_v19, 0.0 }
 0x4e7   : > { %11756 = vpow2.f32 %v4923_v18  ;;  %10829 = vmatprep.subr.mxu1 %v17038_v11  ;;  %v5024_v23 = vpop.xlane.xlu0 %5023  ;;  %v15177_v31 = vpop.eup %11738 }
 0x4e8   : > { %11758 = vrcp.f32 %v5024_v23  ;;  %v11741_v1 = vpop.eup %11740  ;;  %v5274_v23 = vsel %vm4172_vm0, %v15177_v31, 0.0 }
 0x4e9   : > { %11760 = vrcp.f32 %v14846_v54  ;;  %5269 = vadd.xlane.f32.xlu1 %v5268_v44  ;;  %v17041_v54 = vld [vmem:[#allocation95_spill] sm:$0xff]  ;;  %v17043_v44 = vld [vmem:[#allocation56_spill] sm:$0xff] }
 0x4ea   : > { %v11743_v15 = vpop.eup %11742  ;;  %11762 = vrcp.f32 %v15042_v47  ;;  %v15185_v38 = vpop.xlane.xlu1 %5137  ;;  %5266 = vadd.xlane.f32.xlu0 %v5265_v60  ;;  %v17042_v29 = vsub.f32 %v17040_v24, %v17041_v54  ;;  %v5479_v60 = vmul.f32 %v11741_v1, %v17043_v44 }
 0x4eb   : > { %v15187_v37 = vpop.eup %11744  ;;  %11764 = vpow2.f32 %v4935_v43  ;;  %v5478_v18 = vmul.f32 %v11743_v15, %v17039_v25  ;;  %v15190_v2 = vpop.xlane.xlu0 %5092  ;;  %v5271_v43 = vsel %vm4172_vm0, %v15170_v59, 0.0  ;;  %v17045_v25 = vld [vmem:[#allocation87_spill] sm:$0xff] }
 0x4ec   : > { %v11747_v41 = vpop.eup %11746  ;;  %v4937_v52 = vmul.f32 1.442695, %v17042_v29  ;;  %11766 = vpow2.f32 %v4939_v12  ;;  %v17047_v29 = vld [vmem:[#allocation124_spill] sm:$0xff] }
 0x4ed   : > { %v11749_v47 = vpop.eup %11748  ;;  %11768 = vrcp.f32 %v15078_v22  ;;  %5275 = vadd.xlane.f32.xlu1 %v5274_v23  ;;  %10792 = vmatmul.mubr.msk.f32.vlgmr.msra.gmra.mrb[124].mxu0 %vm4172_vm0, %v5478_v18  ;;  %v17046_v22 = vld [vmem:[#allocation28_spill] sm:$0xff]  ;;  %v5484_v1 = vmul.f32 %v11747_v41, %v17047_v29 }
 0x4ee   : > { %v15202_v15 = vpop.eup %11750  ;;  %11770 = vrcp.f32 %v5054_v49  ;;  %10806 = vmatpush3.msra.mxu0 %v17019_v10  ;;  %v5051_v12 = vpop.xlane.xlu1 %5050  ;;  %5272 = vadd.xlane.f32.xlu0 %v5271_v43  ;;  %v5483_v24 = vmul.f32 %v11749_v47, %v17045_v25  ;;  %v5292_v10 = vsel %vm4172_vm0, %v15187_v37, 0.0  ;;  %v5289_v47 = vsel %vm4172_vm0, %v15174_v36, 0.0 }
 0x4ef   : > { %17044 = vst [vmem:[#allocation119_spill] sm:$0xff] %v15202_v15  ;;  %v15206_v54 = vpop.eup %11752  ;;  %11772 = vrcp.f32 %v5051_v12  ;;  %10794 = vmatprep.mubr.msk.f32.mxu0 %vm4172_vm0, %v5479_v60  ;;  %10821 = vmatprep.subr.mxu0 %v17046_v22  ;;  %v15210_v18 = vpop.xlane.xlu0 %5110  ;;  %v17049_v60 = vld [vmem:[#allocation128_spill] sm:$0xff] }
 0x4f0   : > { %v11755_v23 = vpop.eup %11754  ;;  %11774 = vpow2.f32 %v4937_v52  ;;  %10802 = vmatprep.mubr.msk.f32.mxu1 %vm4172_vm0, %v5483_v24  ;;  %v17050_v24 = vld [vmem:[#allocation99_spill] sm:$0xff] }
 0x4f1   : > { %v15216_v49 = vpop.eup %11756  ;;  %11776 = vrcp.f32 %v15102_v21  ;;  %10803 = vmatmul.mubr.msk.f32.gmra.mrb[126].mxu1 %vm4172_vm0, %v5484_v1  ;;  %5293 = vadd.xlane.f32.xlu1 %v5292_v10  ;;  %v5485_v29 = vmul.f32 %v11755_v23, %v17050_v24 }
 0x4f2   : > { %17048 = vst [vmem:[#allocation88_spill] sm:$0xff] %v15216_v49  ;;  %v11759_v43 = vpop.eup %11758  ;;  %v5060_v44 = vpop.xlane.xlu1 %5059  ;;  %5290 = vadd.xlane.f32.xlu0 %v5289_v47  ;;  %11778 = vrcp.f32 %v14883_v20  ;;  %v5298_v21 = vsel %vm4172_vm0, %v15216_v49, 0.0  ;;  %v5295_v20 = vsel %vm4172_vm0, %v15202_v15, 0.0  ;;  %v17055_v15 = vld [vmem:[#allocation57_spill] sm:$0xff] }
 0x4f3   : > { %v11761_v41 = vpop.eup %11760  ;;  %v15223_v52 = vpop.xlane.xlu0 %5116  ;;  %v5480_v12 = vmul.f32 %v11759_v43, %v17049_v60  ;;  %11780 = vrcp.f32 %v15119_v35  ;;  %v17052_v43 = vld [vmem:[#allocation65_spill] sm:$0xff] }
 0x4f4   : > { %v11763_v25 = vpop.eup %11762  ;;  %11782 = vrcp.f32 %v14937_v9 }
 0x4f5   : > { %v15230_v1 = vpop.eup %11764  ;;  %5299 = vadd.xlane.f32.xlu1 %v5298_v21  ;;  %10795 = vmatmul.mubr.msk.f32.gmra.mrb[126].mxu0 %vm4172_vm0, %v5480_v12  ;;  %v5486_v23 = vmul.f32 %v11763_v25, %v17052_v43  ;;  %11784 = vrcp.f32 %v15156_v8  ;;  %v17054_v25 = vld [vmem:[#allocation129_spill] sm:$0xff] }
 0x4f6   : > { %17051 = vst [vmem:[#allocation122_spill] sm:$0xff] %v15230_v1  ;;  %v15235_v10 = vpop.eup %11766  ;;  %v15237_v47 = vpop.xlane.xlu1 %5143  ;;  %5296 = vadd.xlane.f32.xlu0 %v5295_v20  ;;  %10807 = vmatprep.mubr.msk.f32.mxu0 %vm4172_vm0, %v5485_v29  ;;  %v5316_v12 = vsel %vm4172_vm0, %v15230_v1, 0.0  ;;  %11786 = vrcp.f32 %v14977_v4  ;;  %v5313_v29 = vsel %vm4172_vm0, %v15206_v54, 0.0  ;;  %v17053_v20 = vld [vmem:[#allocation103_spill] sm:$0xff] }
 0x4f7   : > { %v11769_v35 = vpop.eup %11768  ;;  %v5135_v60 = vpop.xlane.xlu0 %5134  ;;  %v5487_v9 = vmul.f32 %v11761_v41, %v17053_v20  ;;  %11788 = vrcp.f32 %v5060_v44  ;;  %v17057_v44 = vld [vmem:[#allocation52_spill] sm:$0xff] }
 0x4f8   : > { %v11771_v24 = vpop.eup %11770  ;;  %v5488_v41 = vmul.f32 %v11769_v35, %v17057_v44  ;;  %v17059_v35 = vld [vmem:[#allocation29_spill] sm:$0xff] }
 0x4f9   : > { %v11773_v21 = vpop.eup %11772  ;;  %5317 = vadd.xlane.f32.xlu1 %v5316_v12  ;;  %10808 = vmatmul.mubr.msk.f32.vlgmr.msra.gmra.mrb[128].mxu0 %vm4172_vm0, %v5486_v23  ;;  %v5490_v4 = vmul.f32 %v11771_v24, %v17055_v15  ;;  %v17056_v23 = vld [vmem:[#allocation30_spill] sm:$0xff] }
 0x4fa   : > { %v15250_v49 = vpop.eup %11774  ;;  %10822 = vmatpush3.msra.mxu0 %v17046_v22  ;;  %v5057_v8 = vpop.xlane.xlu1 %5056  ;;  %5314 = vadd.xlane.f32.xlu0 %v5313_v29  ;;  %v5489_v43 = vmul.f32 %v11773_v21, %v17054_v25  ;;  %v5322_v22 = vsel %vm4172_vm0, %v15235_v10, 0.0  ;;  %v17058_v29 = vld [vmem:[#allocation73_spill] sm:$0xff] }
 0x4fb   : > { %v11777_v1 = vpop.eup %11776  ;;  %11790 = vrcp.f32 %v5057_v8  ;;  %10810 = vmatprep.mubr.msk.f32.mxu0 %vm4172_vm0, %v5487_v9  ;;  %10837 = vmatprep.subr.mxu0 %v17056_v23  ;;  %v15257_v12 = vpop.xlane.xlu0 %5140  ;;  %v5319_v24 = vsel %vm4172_vm0, %v15250_v49, 0.0  ;;  %v17060_v9 = vld [vmem:[#allocation51_spill] sm:$0xff] }
 0x4fc   : > { %11792 = vrcp.f32 %v15190_v2  ;;  %10815 = vmatprep.mubr.msk.f32.mxu1 %vm4172_vm0, %v5489_v43  ;;  %v11779_v21 = vpop.eup %11778  ;;  %v5493_v20 = vmul.f32 %v11777_v1, %v17058_v29 }
 0x4fd   : > { %11794 = vrcp.f32 %v15010_v7  ;;  %10816 = vmatmul.mubr.msk.f32.vlgmr.msra.gmra.mrb[128].mxu1 %vm4172_vm0, %v5490_v4  ;;  %5323 = vadd.xlane.f32.xlu1 %v5322_v22  ;;  %v11781_v15 = vpop.eup %11780  ;;  %v5494_v8 = vmul.f32 %v11779_v21, %v17060_v9  ;;  %v17063_v21 = vld [vmem:[#allocation109_spill] sm:$0xff] }
 0x4fe   : > { %11796 = vrcp.f32 %v15210_v18  ;;  %10830 = vmatpush3.msra.mxu1 %v17038_v11  ;;  %10811 = vmatmul.mubr.msk.f32.gmra.mrb[130].mxu0 %vm4172_vm0, %v5488_v41  ;;  %v5078_v2 = vpop.xlane.xlu1 %5077  ;;  %v11783_v18 = vpop.eup %11782  ;;  %v17061_v11 = vld [vmem:[#allocation74_spill] sm:$0xff]  ;;  %v17062_v41 = vld [vmem:[#allocation32_spill] sm:$0xff] }
 0x4ff   : > { %10845 = vmatprep.subr.mxu1 %v17059_v35  ;;  %11798 = vrcp.f32 %v5078_v2  ;;  %5320 = vadd.xlane.f32.xlu0 %v5319_v24  ;;  %v5075_v7 = vpop.xlane.xlu0 %5074  ;;  %v5495_v25 = vmul.f32 %v11781_v15, %v17061_v11  ;;  %v11785_v43 = vpop.eup %11784  ;;  %v5496_v15 = vmul.f32 %v11783_v18, %v17063_v21  ;;  %v17064_v24 = vld [vmem:[#allocation80_spill] sm:$0xff] }
 0x500   : > { %10823 = vmatprep.mubr.msk.f32.mxu0 %vm4172_vm0, %v5493_v20  ;;  %11800 = vrcp.f32 %v5075_v7  ;;  %v11787_v22 = vpop.eup %11786  ;;  %v5501_v29 = vmul.f32 %v11785_v43, %v17064_v24 }
 0x501   : > { %11802 = vrcp.f32 %v15072_v57  ;;  %v11789_v44 = vpop.eup %11788 }
 0x502   : > { %10824 = vmatmul.mubr.msk.f32.vlgmr.msra.gmra.mrb[132].mxu0 %vm4172_vm0, %v5494_v8  ;;  %v15277_v4 = vpop.xlane.xlu1 %5161  ;;  %11804 = vrcp.f32 %v15223_v52  ;;  %v17066_v8 = vld [vmem:[#allocation89_spill] sm:$0xff] }
 0x503   : > { %10838 = vmatpush3.msra.mxu0 %v17056_v23  ;;  %10826 = vmatprep.mubr.msk.f32.mxu0 %vm4172_vm0, %v5495_v25  ;;  %v5159_v1 = vpop.xlane.xlu0 %5158  ;;  %11806 = vrcp.f32 %v15132_v6  ;;  %v17065_v23 = vld [vmem:[#allocation97_spill] sm:$0xff]  ;;  %v5492_v11 = vmul.f32 %v11789_v44, %v17066_v8 }
 0x504   : > { %10853 = vmatprep.subr.mxu0 %v17062_v41  ;;  %11808 = vrcp.f32 %v5135_v60  ;;  %v17067_v25 = vld [vmem:[#allocation113_spill] sm:$0xff]  ;;  %v17068_v60 = vld [vmem:[#allocation127_spill] sm:$0xff] }
 0x505   : > { %v11791_v2 = vpop.eup %11790  ;;  %v5502_v21 = vmul.f32 %v11787_v22, %v17067_v25  ;;  %v17069_v22 = vld [vmem:[#allocation98_spill] sm:$0xff] }
 0x506   : > { %v11793_v20 = vpop.eup %11792  ;;  %10827 = vmatmul.mubr.msk.f32.gmra.mrb[134].mxu0 %vm4172_vm0, %v5496_v15  ;;  %v5084_v57 = vpop.xlane.xlu1 %5083  ;;  %v5491_v7 = vmul.f32 %v11791_v2, %v17065_v23  ;;  %v17071_v23 = vld [vmem:[#allocation34_spill] sm:$0xff] }
 0x507   : > { %v11795_v9 = vpop.eup %11794  ;;  %11810 = vrcp.f32 %v5084_v57  ;;  %10839 = vmatprep.mubr.msk.f32.mxu0 %vm4172_vm0, %v5501_v29  ;;  %v5081_v52 = vpop.xlane.xlu0 %5080  ;;  %v5503_v43 = vmul.f32 %v11793_v20, %v17068_v60  ;;  %v17070_v29 = vld [vmem:[#allocation133_spill] sm:$0xff] }
 0x508   : > { %v11797_v18 = vpop.eup %11796  ;;  %11812 = vrcp.f32 %v5081_v52  ;;  %10818 = vmatprep.mubr.msk.f32.mxu1 %vm4172_vm0, %v5491_v7  ;;  %v17072_v20 = vld [vmem:[#allocation61_spill] sm:$0xff] }
 0x509   : > { %v11799_v6 = vpop.eup %11798  ;;  %10819 = vmatmul.mubr.msk.f32.gmra.mrb[130].mxu1 %vm4172_vm0, %v5492_v11  ;;  %11814 = vrcp.f32 %v15185_v38  ;;  %v5504_v7 = vmul.f32 %v11795_v9, %v17072_v20  ;;  %v17073_v38 = vld [vmem:[#allocation91_spill] sm:$0xff] }
 0x50a   : > { %v11801_v15 = vpop.eup %11800  ;;  %10840 = vmatmul.mubr.msk.f32.vlgmr.msra.gmra.mrb[136].mxu0 %vm4172_vm0, %v5502_v21  ;;  %v5168_v2 = vpop.xlane.xlu1 %5167  ;;  %11816 = vrcp.f32 %v15257_v12  ;;  %v5498_v57 = vmul.f32 %v11799_v6, %v17070_v29  ;;  %v17075_v6 = vld [vmem:[#allocation31_spill] sm:$0xff]  ;;  %v17078_v29 = vld [vmem:[#allocation36_spill] sm:$0xff] }
 0x50b   : > { %10854 = vmatpush3.msra.mxu0 %v17062_v41  ;;  %10842 = vmatprep.mubr.msk.f32.mxu0 %vm4172_vm0, %v5503_v43  ;;  %v5165_v44 = vpop.xlane.xlu0 %5164  ;;  %v5497_v24 = vmul.f32 %v11801_v15, %v17069_v22  ;;  %v11803_v52 = vpop.eup %11802  ;;  %11818 = vrcp.f32 %v15237_v47  ;;  %v5509_v41 = vmul.f32 %v11797_v18, %v17073_v38  ;;  %v17074_v47 = vld [vmem:[#allocation70_spill] sm:$0xff] }
 0x50c   : > { %10869 = vmatprep.subr.mxu0 %v17071_v23  ;;  %v11805_v8 = vpop.eup %11804  ;;  %11820 = vrcp.f32 %v5159_v1  ;;  %v5510_v21 = vmul.f32 %v11803_v52, %v17074_v47  ;;  %v17076_v1 = vld [vmem:[#allocation132_spill] sm:$0xff]  ;;  %v17077_v22 = vld [vmem:[#allocation102_spill] sm:$0xff] }
 0x50d   : > { %10831 = vmatprep.mubr.msk.f32.mxu1 %vm4172_vm0, %v5497_v24  ;;  %v11807_v12 = vpop.eup %11806  ;;  %v5511_v60 = vmul.f32 %v11805_v8, %v17076_v1 }
 0x50e   : > { %10843 = vmatmul.mubr.msk.f32.gmra.mrb[138].mxu0 %vm4172_vm0, %v5504_v7  ;;  %v5102_v11 = vpop.xlane.xlu1 %5101  ;;  %10832 = vmatmul.mubr.msk.f32.vlgmr.msra.gmra.mrb[132].mxu1 %vm4172_vm0, %v5498_v57  ;;  %v11809_v25 = vpop.eup %11808  ;;  %v17079_v57 = vld [vmem:[#allocation77_spill] sm:$0xff]  ;;  %v17080_v7 = vld [vmem:[#allocation135_spill] sm:$0xff] }
 0x50f   : > { %11822 = vrcp.f32 %v5102_v11  ;;  %10846 = vmatpush3.msra.mxu1 %v17059_v35  ;;  %10855 = vmatprep.mubr.msk.f32.mxu0 %vm4172_vm0, %v5509_v41  ;;  %v5099_v9 = vpop.xlane.xlu0 %5098  ;;  %v5512_v20 = vmul.f32 %v11807_v12, %v17079_v57  ;;  %v17081_v41 = vld [vmem:[#allocation131_spill] sm:$0xff]  ;;  %v17086_v57 = vld [vmem:[#allocation38_spill] sm:$0xff] }
 0x510   : > { %10861 = vmatprep.subr.mxu1 %v17075_v6  ;;  %11824 = vrcp.f32 %v5099_v9  ;;  %v17082_v9 = vld [vmem:[#allocation78_spill] sm:$0xff] }
 0x511   : > { %v11811_v18 = vpop.eup %11810  ;;  %11826 = vrcp.f32 %v15277_v4  ;;  %v5517_v4 = vmul.f32 %v11809_v25, %v17081_v41 }
 0x512   : > { %v11813_v43 = vpop.eup %11812  ;;  %10856 = vmatmul.mubr.msk.f32.vlgmr.msra.gmra.mrb[140].mxu0 %vm4172_vm0, %v5510_v21  ;;  %v5186_v15 = vpop.xlane.xlu1 %5185  ;;  %11828 = vrcp.f32 %v5165_v44  ;;  %v5500_v52 = vmul.f32 %v11811_v18, %v17080_v7  ;;  %v17083_v21 = vld [vmem:[#allocation94_spill] sm:$0xff] }
 0x513   : > { %10870 = vmatpush3.msra.mxu0 %v17071_v23  ;;  %10858 = vmatprep.mubr.msk.f32.mxu0 %vm4172_vm0, %v5511_v60  ;;  %v5183_v35 = vpop.xlane.xlu0 %5182  ;;  %v5499_v24 = vmul.f32 %v11813_v43, %v17077_v22  ;;  %v11815_v38 = vpop.eup %11814  ;;  %11830 = vrcp.f32 %v5168_v2  ;;  %v17084_v43 = vld [vmem:[#allocation104_spill] sm:$0xff]  ;;  %v17085_v22 = vld [vmem:[#allocation105_spill] sm:$0xff] }
 0x514   : > { %10885 = vmatprep.subr.mxu0 %v17078_v29  ;;  %v11817_v8 = vpop.eup %11816  ;;  %11832 = vrcp.f32 %v5183_v35  ;;  %v5518_v47 = vmul.f32 %v11815_v38, %v17082_v9  ;;  %v17088_v38 = vld [vmem:[#allocation100_spill] sm:$0xff]  ;;  %v17090_v9 = vld [vmem:[#allocation33_spill] sm:$0xff] }
 0x515   : > { %10834 = vmatprep.mubr.msk.f32.mxu1 %vm4172_vm0, %v5499_v24  ;;  %v11819_v44 = vpop.eup %11818  ;;  %v5519_v18 = vmul.f32 %v11817_v8, %v17083_v21 }
 0x516   : > { %10859 = vmatmul.mubr.msk.f32.gmra.mrb[142].mxu0 %vm4172_vm0, %v5512_v20  ;;  %v5108_v23 = vpop.xlane.xlu1 %5107  ;;  %10835 = vmatmul.mubr.msk.f32.gmra.mrb[134].mxu1 %vm4172_vm0, %v5500_v52  ;;  %v11821_v12 = vpop.eup %11820  ;;  %v17087_v20 = vld [vmem:[#allocation92_spill] sm:$0xff] }
 0x517   : > { %11834 = vrcp.f32 %v5108_v23  ;;  %10871 = vmatprep.mubr.msk.f32.mxu0 %vm4172_vm0, %v5517_v4  ;;  %v5105_v11 = vpop.xlane.xlu0 %5104  ;;  %v5520_v7 = vmul.f32 %v11819_v44, %v17087_v20  ;;  %v5525_v41 = vmul.f32 %v11821_v12, %v17088_v38  ;;  %v17089_v44 = vld [vmem:[#allocation136_spill] sm:$0xff] }
 0x518   : > { %11836 = vrcp.f32 %v5105_v11  ;;  %v17094_v38 = vld [vmem:[#allocation140_spill] sm:$0xff] }
 0x519   : > { %v11823_v2 = vpop.eup %11822  ;;  %11838 = vrcp.f32 %v5186_v15 }
 0x51a   : > { %v11825_v25 = vpop.eup %11824  ;;  %10872 = vmatmul.mubr.msk.f32.vlgmr.msra.gmra.mrb[144].mxu0 %vm4172_vm0, %v5518_v47  ;;  %v5192_v1 = vpop.xlane.xlu1 %5191  ;;  %v5506_v24 = vmul.f32 %v11823_v2, %v17085_v22  ;;  %v17091_v47 = vld [vmem:[#allocation173_spill] sm:$0xff] }
 0x51b   : > { %10886 = vmatpush3.msra.mxu0 %v17078_v29  ;;  %10874 = vmatprep.mubr.msk.f32.mxu0 %vm4172_vm0, %v5519_v18  ;;  %v5189_v60 = vpop.xlane.xlu0 %5188  ;;  %v5505_v35 = vmul.f32 %v11825_v25, %v17084_v43  ;;  %v11827_v52 = vpop.eup %11826 }
 0x51c   : > { %10901 = vmatprep.subr.mxu0 %v17086_v57  ;;  %11840 = vrcp.f32 %v5189_v60  ;;  %v11829_v15 = vpop.eup %11828  ;;  %v5526_v11 = vmul.f32 %v11827_v52, %v17089_v44  ;;  %v17093_v60 = vld [vmem:[#allocation137_spill] sm:$0xff] }
 0x51d   : > { %10847 = vmatprep.mubr.msk.f32.mxu1 %vm4172_vm0, %v5505_v35  ;;  %11842 = vrcp.f32 %v5192_v1  ;;  %v11831_v4 = vpop.eup %11830  ;;  %v5527_v2 = vmul.f32 %v11829_v15, %v17091_v47  ;;  %v17092_v1 = vld [vmem:[#allocation40_spill] sm:$0xff] }
 0x51e   : > { %10875 = vmatmul.mubr.msk.f32.gmra.mrb[146].mxu0 %vm4172_vm0, %v5520_v7  ;;  %v5126_v29 = vpop.xlane.xlu1 %5125  ;;  %10848 = vmatmul.mubr.msk.f32.vlgmr.msra.gmra.mrb[136].mxu1 %vm4172_vm0, %v5506_v24  ;;  %v11833_v23 = vpop.eup %11832  ;;  %v5528_v43 = vmul.f32 %v11831_v4, %v17093_v60 }
 0x51f   : > { %11844 = vrcp.f32 %v5126_v29  ;;  %10862 = vmatpush3.msra.mxu1 %v17075_v6  ;;  %10887 = vmatprep.mubr.msk.f32.mxu0 %vm4172_vm0, %v5525_v41  ;;  %v5123_v8 = vpop.xlane.xlu0 %5122  ;;  %v5533_v24 = vmul.f32 %v11833_v23, %v14690_v62  ;;  %v17096_v23 = vld [vmem:[#allocation106_spill] sm:$0xff] }
 0x520   : > { %10877 = vmatprep.subr.mxu1 %v17090_v9  ;;  %11846 = vrcp.f32 %v5123_v8 }
 0x521   : > { %v11835_v12 = vpop.eup %11834 }
 0x522   : > { %v11837_v21 = vpop.eup %11836  ;;  %10888 = vmatmul.mubr.msk.f32.vlgmr.msra.gmra.mrb[148].mxu0 %vm4172_vm0, %v5526_v11  ;;  %v5210_v18 = vpop.xlane.xlu1 %5209  ;;  %v5508_v35 = vmul.f32 %v11835_v12, %v14695_v55 }
 0x523   : > { %10902 = vmatpush3.msra.mxu0 %v17086_v57  ;;  %11848 = vrcp.f32 %v5210_v18  ;;  %10890 = vmatprep.mubr.msk.f32.mxu0 %vm4172_vm0, %v5527_v2  ;;  %v5207_v6 = vpop.xlane.xlu0 %5206  ;;  %v5507_v25 = vmul.f32 %v11837_v21, %v14715_v45  ;;  %v11839_v22 = vpop.eup %11838  ;;  %v17097_v2 = vld [vmem:[#allocation107_spill] sm:$0xff] }
 0x524   : > { %10917 = vmatprep.subr.mxu0 %v17092_v1  ;;  %11850 = vrcp.f32 %v5207_v6  ;;  %v5534_v55 = vmul.f32 %v11839_v22, %v17094_v38  ;;  %v17098_v21 = vld [vmem:[#allocation175_spill] sm:$0xff]  ;;  %v17101_v22 = vld [vmem:[#allocation44_spill] sm:$0xff] }
 0x525   : > { %10850 = vmatprep.mubr.msk.f32.mxu1 %vm4172_vm0, %v5507_v25  ;;  %v17099_v6 = vld [vmem:[#allocation35_spill] sm:$0xff] }
 0x526   : > { %v11841_v20 = vpop.eup %11840  ;;  %10891 = vmatmul.mubr.msk.f32.gmra.mrb[150].mxu0 %vm4172_vm0, %v5528_v43  ;;  %v5132_v57 = vpop.xlane.xlu1 %5131  ;;  %10851 = vmatmul.mubr.msk.f32.gmra.mrb[138].mxu1 %vm4172_vm0, %v5508_v35  ;;  %v17103_v38 = vld [vmem:[#allocation71_spill] sm:$0xff] }
 0x527   : > { %11852 = vrcp.f32 %v5132_v57  ;;  %10903 = vmatprep.mubr.msk.f32.mxu0 %vm4172_vm0, %v5533_v24  ;;  %v5129_v45 = vpop.xlane.xlu0 %5128  ;;  %v5535_v7 = vmul.f32 %v11841_v20, %v14732_v33  ;;  %v11843_v52 = vpop.eup %11842  ;;  %v17095_v33 = vld [vmem:[#allocation42_spill] sm:$0xff]  ;;  %v17102_v24 = vld [vmem:[#allocation176_spill] sm:$0xff] }
 0x528   : > { %11854 = vrcp.f32 %v5129_v45  ;;  %v5536_v44 = vmul.f32 %v11843_v52, %v17096_v23 }
 0x529   : > { %v11845_v41 = vpop.eup %11844 }
 0x52a   : > { %v11847_v15 = vpop.eup %11846  ;;  %10904 = vmatmul.mubr.msk.f32.vlgmr.msra.gmra.mrb[152].mxu0 %vm4172_vm0, %v5534_v55  ;;  %v5216_v62 = vpop.xlane.xlu1 %5215  ;;  %v5514_v8 = vmul.f32 %v11845_v41, %v14744_v34  ;;  %v17104_v41 = vld [vmem:[#allocation141_spill] sm:$0xff] }
 0x52b   : > { %10918 = vmatpush3.msra.mxu0 %v17092_v1  ;;  %11856 = vrcp.f32 %v5216_v62  ;;  %10906 = vmatprep.mubr.msk.f32.mxu0 %vm4172_vm0, %v5535_v7  ;;  %v5213_v29 = vpop.xlane.xlu0 %5212  ;;  %v5513_v4 = vmul.f32 %v11847_v15, %v14751_v3 }
 0x52c   : > { %10933 = vmatprep.subr.mxu0 %v17095_v33  ;;  %11858 = vrcp.f32 %v5213_v29 }
 0x52d   : > { %v11849_v11 = vpop.eup %11848  ;;  %10863 = vmatprep.mubr.msk.f32.mxu1 %vm4172_vm0, %v5513_v4 }
 0x52e   : > { %v11851_v12 = vpop.eup %11850  ;;  %10907 = vmatmul.mubr.msk.f32.gmra.mrb[154].mxu0 %vm4172_vm0, %v5536_v44  ;;  %v5150_v47 = vpop.xlane.xlu1 %5149  ;;  %10864 = vmatmul.mubr.msk.f32.vlgmr.msra.gmra.mrb[140].mxu1 %vm4172_vm0, %v5514_v8  ;;  %v5542_v18 = vmul.f32 %v11849_v11, %v17098_v21 }
 0x52f   : > { %11860 = vrcp.f32 %v5150_v47  ;;  %10878 = vmatpush3.msra.mxu1 %v17090_v9  ;;  %v5147_v3 = vpop.xlane.xlu0 %5146  ;;  %v5541_v34 = vmul.f32 %v11851_v12, %v17097_v2  ;;  %v17100_v9 = vld [vmem:[#allocation139_spill] sm:$0xff] }
 0x530   : > { %10893 = vmatprep.subr.mxu1 %v17099_v6  ;;  %11862 = vrcp.f32 %v5147_v3 }
 0x531   : > { %v11853_v25 = vpop.eup %11852  ;;  %10919 = vmatprep.mubr.msk.f32.mxu0 %vm4172_vm0, %v5541_v34  ;;  %v17105_v34 = vld [vmem:[#allocation37_spill] sm:$0xff] }
 0x532   : > { %v11855_v1 = vpop.eup %11854  ;;  %v5234_v60 = vpop.xlane.xlu1 %5233  ;;  %10920 = vmatmul.mubr.msk.f32.vlgmr.msra.gmra.mrb[156].mxu0 %vm4172_vm0, %v5542_v18  ;;  %v5516_v20 = vmul.f32 %v11853_v25, %v17102_v24  ;;  %v17106_v25 = vld [vmem:[#allocation46_spill] sm:$0xff] }
 0x533   : > { %11864 = vrcp.f32 %v5234_v60  ;;  %10934 = vmatpush3.msra.mxu0 %v17095_v33  ;;  %v5231_v43 = vpop.xlane.xlu0 %5230  ;;  %v5515_v35 = vmul.f32 %v11855_v1, %v17100_v9 }
 0x534   : > { %10949 = vmatprep.subr.mxu0 %v17101_v22  ;;  %11866 = vrcp.f32 %v5231_v43 }
 0x535   : > { %v11857_v57 = vpop.eup %11856  ;;  %10866 = vmatprep.mubr.msk.f32.mxu1 %vm4172_vm0, %v5515_v35  ;;  %v17107_v35 = vld [vmem:[#allocation68_spill] sm:$0xff] }
 0x536   : > { %v11859_v45 = vpop.eup %11858  ;;  %v5156_v7 = vpop.xlane.xlu1 %5155  ;;  %10867 = vmatmul.mubr.msk.f32.gmra.mrb[142].mxu1 %vm4172_vm0, %v5516_v20  ;;  %v5544_v15 = vmul.f32 %v11857_v57, %v17104_v41 }
 0x537   : > { %11868 = vrcp.f32 %v5156_v7  ;;  %v5153_v52 = vpop.xlane.xlu0 %5152  ;;  %v5543_v55 = vmul.f32 %v11859_v45, %v17103_v38 }
 0x538   : > { %11870 = vrcp.f32 %v5153_v52 }
 0x539   : > { %v11861_v62 = vpop.eup %11860  ;;  %10922 = vmatprep.mubr.msk.f32.mxu0 %vm4172_vm0, %v5543_v55 }
 0x53a   : > { %v11863_v29 = vpop.eup %11862  ;;  %v5240_v4 = vpop.xlane.xlu1 %5239  ;;  %10923 = vmatmul.mubr.msk.f32.gmra.mrb[158].mxu0 %vm4172_vm0, %v5544_v15  ;;  %v5522_v23 = vmul.f32 %v11861_v62, %v14807_v46  ;;  %v17108_v15 = vld [vmem:[#allocation39_spill] sm:$0xff] }
 0x53b   : > { %11872 = vrcp.f32 %v5240_v4  ;;  %v5237_v8 = vpop.xlane.xlu0 %5236  ;;  %v5521_v33 = vmul.f32 %v11863_v29, %v14822_v0 }
 0x53c   : > { %11874 = vrcp.f32 %v5237_v8  ;;  %v17109_v8 = vld [vmem:[#allocation48_spill] sm:$0xff] }
 0x53d   : > { %v11865_v44 = vpop.eup %11864  ;;  %10879 = vmatprep.mubr.msk.f32.mxu1 %vm4172_vm0, %v5521_v33 }
 0x53e   : > { %v11867_v11 = vpop.eup %11866  ;;  %v5174_v12 = vpop.xlane.xlu1 %5173  ;;  %10880 = vmatmul.mubr.msk.f32.vlgmr.msra.gmra.mrb[144].mxu1 %vm4172_vm0, %v5522_v23  ;;  %v5550_v2 = vmul.f32 %v11865_v44, %v14839_v42  ;;  %v17110_v23 = vld [vmem:[#allocation17_spill] sm:$0xff] }
 0x53f   : > { %11876 = vrcp.f32 %v5174_v12  ;;  %10894 = vmatpush3.msra.mxu1 %v17099_v6  ;;  %v5171_v47 = vpop.xlane.xlu0 %5170  ;;  %v5549_v3 = vmul.f32 %v11867_v11, %v14844_v61 }
 0x540   : > { %10909 = vmatprep.subr.mxu1 %v17105_v34  ;;  %11878 = vrcp.f32 %v5171_v47  ;;  %v17111_v47 = vld [vmem:[#allocation18_spill] sm:$0xff] }
 0x541   : > { %v11869_v46 = vpop.eup %11868  ;;  %10935 = vmatprep.mubr.msk.f32.mxu0 %vm4172_vm0, %v5549_v3 }
 0x542   : > { %v11871_v0 = vpop.eup %11870  ;;  %v5258_v21 = vpop.xlane.xlu1 %5257  ;;  %10936 = vmatmul.mubr.msk.f32.vlgmr.msra.gmra.mrb[160].mxu0 %vm4172_vm0, %v5550_v2  ;;  %v5524_v42 = vmul.f32 %v11869_v46, %v14858_v32 }
 0x543   : > { %11880 = vrcp.f32 %v5258_v21  ;;  %10950 = vmatpush3.msra.mxu0 %v17101_v22  ;;  %v5255_v18 = vpop.xlane.xlu0 %5254  ;;  %v5523_v6 = vmul.f32 %v11871_v0, %v14862_v13 }
 0x544   : > { %10965 = vmatprep.subr.mxu0 %v17106_v25  ;;  %11882 = vrcp.f32 %v5255_v18 }
 0x545   : > { %v11873_v61 = vpop.eup %11872  ;;  %10882 = vmatprep.mubr.msk.f32.mxu1 %vm4172_vm0, %v5523_v6 }
 0x546   : > { %v11875_v1 = vpop.eup %11874  ;;  %v5180_v60 = vpop.xlane.xlu1 %5179  ;;  %10883 = vmatmul.mubr.msk.f32.gmra.mrb[146].mxu1 %vm4172_vm0, %v5524_v42  ;;  %v5552_v22 = vmul.f32 %v11873_v61, %v17107_v35 }
 0x547   : > { %11884 = vrcp.f32 %v5180_v60  ;;  %v5177_v43 = vpop.xlane.xlu0 %5176  ;;  %v5551_v9 = vmul.f32 %v11875_v1, %v14881_v26  ;;  %v8910_v1 = vld [vmem:[#allocation8 + $0x8] sm:$0xff] }
 0x548   : > { %11886 = vrcp.f32 %v5177_v43 }
 0x549   : > { %v11877_v13 = vpop.eup %11876  ;;  %10938 = vmatprep.mubr.msk.f32.mxu0 %vm4172_vm0, %v5551_v9  ;;  %v17112_v9 = vld [vmem:[#allocation19_spill] sm:$0xff] }
 0x54a   : > { %v11879_v24 = vpop.eup %11878  ;;  %v5264_v20 = vpop.xlane.xlu1 %5263  ;;  %10939 = vmatmul.mubr.msk.f32.gmra.mrb[162].mxu0 %vm4172_vm0, %v5552_v22  ;;  %v5530_v45 = vmul.f32 %v11877_v13, %v14892_v58  ;;  %v17113_v13 = vld [vmem:[#allocation50_spill] sm:$0xff] }
 0x54b   : > { %11888 = vrcp.f32 %v5264_v20  ;;  %v5261_v32 = vpop.xlane.xlu0 %5260  ;;  %v5529_v57 = vmul.f32 %v11879_v24, %v14899_v53  ;;  %v17114_v20 = vld [vmem:[#allocation142_spill] sm:$0xff] }
 0x54c   : > { %11890 = vrcp.f32 %v5261_v32 }
 0x54d   : > { %v11881_v7 = vpop.eup %11880  ;;  %10895 = vmatprep.mubr.msk.f32.mxu1 %vm4172_vm0, %v5529_v57  ;;  %v17115_v57 = vld [vmem:[#allocation20_spill] sm:$0xff] }
 0x54e   : > { %v11883_v26 = vpop.eup %11882  ;;  %v5198_v52 = vpop.xlane.xlu1 %5197  ;;  %10896 = vmatmul.mubr.msk.f32.vlgmr.msra.gmra.mrb[148].mxu1 %vm4172_vm0, %v5530_v45  ;;  %v5558_v41 = vmul.f32 %v11881_v7, %v14911_v63 }
 0x54f   : > { %11892 = vrcp.f32 %v5198_v52  ;;  %10910 = vmatpush3.msra.mxu1 %v17105_v34  ;;  %v5195_v38 = vpop.xlane.xlu0 %5194  ;;  %v5557_v55 = vmul.f32 %v11883_v26, %v14918_v5  ;;  %v17116_v26 = vld [vmem:[#allocation41_spill] sm:$0xff] }
 0x550   : > { %10925 = vmatprep.subr.mxu1 %v17108_v15  ;;  %11894 = vrcp.f32 %v5195_v38 }
 0x551   : > { %v11885_v58 = vpop.eup %11884  ;;  %10951 = vmatprep.mubr.msk.f32.mxu0 %vm4172_vm0, %v5557_v55 }
 0x552   : > { %v11887_v53 = vpop.eup %11886  ;;  %v5282_v62 = vpop.xlane.xlu1 %5281  ;;  %10952 = vmatmul.mubr.msk.f32.vlgmr.msra.gmra.mrb[164].mxu0 %vm4172_vm0, %v5558_v41  ;;  %v5532_v5 = vmul.f32 %v11885_v58, %v14931_v27 }
 0x553   : > { %11896 = vrcp.f32 %v5282_v62  ;;  %10966 = vmatpush3.msra.mxu0 %v17106_v25  ;;  %v5279_v29 = vpop.xlane.xlu0 %5278  ;;  %v5531_v4 = vmul.f32 %v11887_v53, %v14935_v39 }
 0x554   : > { %10981 = vmatprep.subr.mxu0 %v17109_v8  ;;  %11898 = vrcp.f32 %v5279_v29  ;;  %v10753_v63 = vpop.f32.mrb[112].mxu1 }
 0x555   : > { %v11889_v33 = vpop.eup %11888  ;;  %v8690_v44 = vmul.f32 %v10753_v63, %v17110_v23  ;;  %v5756_v11 = vpop.f32.mrb[113].mxu1  ;;  %10898 = vmatprep.mubr.msk.f32.mxu1 %vm4172_vm0, %v5531_v4 }
 0x556   : > { %v11891_v12 = vpop.eup %11890  ;;  %v8689_v3 = vmul.f32 %v5756_v11, %v17111_v47  ;;  %v5204_v2 = vpop.xlane.xlu1 %5203  ;;  %10899 = vmatmul.mubr.msk.f32.gmra.mrb[150].mxu1 %vm4172_vm0, %v5532_v5  ;;  %v5560_v27 = vmul.f32 %v11889_v33, %v14939_v28  ;;  %v17117_v5 = vld [vmem:[#allocation21_spill] sm:$0xff] }
 0x557   : > { %11900 = vrcp.f32 %v5204_v2  ;;  %v5201_v39 = vpop.xlane.xlu0 %5200  ;;  %v5559_v34 = vmul.f32 %v11891_v12, %v14949_v48  ;;  %v8909_v48 = vld [vmem:[#allocation8] sm:$0xff] }
 0x558   : > { %v8816_v46 = vadd.f32 %v8690_v44, %v8689_v3  ;;  %11902 = vrcp.f32 %v5201_v39  ;;  %v15434_v24 = vpack.c.bf16 %v8910_v1, %v8909_v48  ;;  %v17119_v3 = vld [vmem:[#allocation168_spill] sm:$0xff]  ;;  %v17121_v1 = vld [vmem:[#allocation161_spill] sm:$0xff] }
 0x559   : > { %v11893_v0 = vpop.eup %11892  ;;  %10954 = vmatprep.mubr.msk.f32.mxu0 %vm4172_vm0, %v5559_v34  ;;  %v17120_v39 = vld [vmem:[#allocation144_spill] sm:$0xff] }
 0x55a   : > { %v11895_v21 = vpop.eup %11894  ;;  %v5288_v18 = vpop.xlane.xlu1 %5287  ;;  %10955 = vmatmul.mubr.msk.f32.gmra.mrb[166].mxu0 %vm4172_vm0, %v5560_v27  ;;  %v5538_v42 = vmul.f32 %v11893_v0, %v14955_v50 }
 0x55b   : > { %11904 = vrcp.f32 %v5288_v18  ;;  %v5285_v6 = vpop.xlane.xlu0 %5284  ;;  %v5537_v25 = vmul.f32 %v11895_v21, %v14969_v30  ;;  %v8911_v18 = vld [vmem:[#allocation8 + $0x10] sm:$0xff] }
 0x55c   : > { %11906 = vrcp.f32 %v5285_v6  ;;  %v10756_v61 = vpop.f32.mrb[114].mxu1  ;;  %v8912_v6 = vld [vmem:[#allocation8 + $0x18] sm:$0xff] }
 0x55d   : > { %v11897_v60 = vpop.eup %11896  ;;  %v5766_v43 = vpop.f32.mrb[115].mxu1  ;;  %10911 = vmatprep.mubr.msk.f32.mxu1 %vm4172_vm0, %v5537_v25  ;;  %v8692_v45 = vmul.f32 %v10756_v61, %v17115_v57 }
 0x55e   : > { %v11899_v28 = vpop.eup %11898  ;;  %v8691_v35 = vmul.f32 %v5766_v43, %v17112_v9  ;;  %v5222_v22 = vpop.xlane.xlu1 %5221  ;;  %10912 = vmatmul.mubr.msk.f32.vlgmr.msra.gmra.mrb[152].mxu1 %vm4172_vm0, %v5538_v42  ;;  %v5566_v32 = vmul.f32 %v11897_v60, %v17114_v20  ;;  %v17122_v43 = vld [vmem:[#allocation114_spill] sm:$0xff] }
 0x55f   : > { %11908 = vrcp.f32 %v5222_v22  ;;  %10926 = vmatpush3.msra.mxu1 %v17108_v15  ;;  %v5219_v30 = vpop.xlane.xlu0 %5218  ;;  %v5565_v50 = vmul.f32 %v11899_v28, %v17113_v13  ;;  %v17123_v22 = vld [vmem:[#allocation43_spill] sm:$0xff]  ;;  %v8914_v20 = vld [vmem:[#allocation8 + $0x28] sm:$0xff] }
 0x560   : > { %v8817_v7 = vadd.f32 %v8816_v46, %v8691_v35  ;;  %10941 = vmatprep.subr.mxu1 %v17116_v26  ;;  %11910 = vrcp.f32 %v5219_v30  ;;  %v11225_v30 = vpack.c.bf16 %v8912_v6, %v8911_v18  ;;  %v17128_v6 = vld [vmem:[#allocation112_spill] sm:$0xff] }
 0x561   : > { %v11901_v52 = vpop.eup %11900  ;;  %10967 = vmatprep.mubr.msk.f32.mxu0 %vm4172_vm0, %v5565_v50  ;;  %v8913_v50 = vld [vmem:[#allocation8 + $0x20] sm:$0xff] }
 0x562   : > { %v11903_v38 = vpop.eup %11902  ;;  %v15440_v55 = vadd.f32 %v8817_v7, %v8692_v45  ;;  %v5306_v41 = vpop.xlane.xlu1 %5305  ;;  %10968 = vmatmul.mubr.msk.f32.vlgmr.msra.gmra.mrb[168].mxu0 %vm4172_vm0, %v5566_v32  ;;  %v5540_v53 = vmul.f32 %v11901_v52, %v14958_v16 }
 0x563   : > { %11912 = vrcp.f32 %v5306_v41  ;;  %10982 = vmatpush3.msra.mxu0 %v17109_v8  ;;  %v5303_v15 = vpop.xlane.xlu0 %5302  ;;  %v5539_v58 = vmul.f32 %v11903_v38, %v14987_v56  ;;  %v17118_v8 = vld [vmem:[#allocation108_spill] sm:$0xff] }
 0x564   : > { %11914 = vrcp.f32 %v5303_v15  ;;  %11222 = vmatprep.subr.bf16.mxu0 %v15434_v24  ;;  %v17125_v41 = vld [vmem:[#allocation76_spill] sm:$0xff] }
 0x565   : > { %v11905_v62 = vpop.eup %11904  ;;  %10914 = vmatprep.mubr.msk.f32.mxu1 %vm4172_vm0, %v5539_v58  ;;  %v11229_v58 = vpack.c.bf16 %v8914_v20, %v8913_v50  ;;  %v8921_v20 = vld [vmem:[#allocation8 + $0x60] sm:$0xff] }
 0x566   : > { %v11907_v29 = vpop.eup %11906  ;;  %v5228_v4 = vpop.xlane.xlu1 %5227  ;;  %10915 = vmatmul.mubr.msk.f32.gmra.mrb[154].mxu1 %vm4172_vm0, %v5540_v53  ;;  %v5568_v44 = vmul.f32 %v11905_v62, %v17118_v8  ;;  %v8915_v53 = vld [vmem:[#allocation8 + $0x30] sm:$0xff]  ;;  %v8916_v62 = vld [vmem:[#allocation8 + $0x38] sm:$0xff]  ;;  %v17126_v8 = vld [vmem:[#allocation118_spill] sm:$0xff] }
 0x567   : > { %11916 = vrcp.f32 %v5228_v4  ;;  %v5225_v63 = vpop.xlane.xlu0 %5224  ;;  %v5567_v33 = vmul.f32 %v11907_v29, %v17117_v5 }
 0x568   : > { %11918 = vrcp.f32 %v5225_v63 }
 0x569   : > { %v11909_v56 = vpop.eup %11908  ;;  %10970 = vmatprep.mubr.msk.f32.mxu0 %vm4172_vm0, %v5567_v33 }
 0x56a   : > { %v11911_v16 = vpop.eup %11910  ;;  %v5312_v11 = vpop.xlane.xlu1 %5311  ;;  %10971 = vmatmul.mubr.msk.f32.gmra.mrb[170].mxu0 %vm4172_vm0, %v5568_v44  ;;  %v5546_v34 = vmul.f32 %v11909_v56, %v17120_v39  ;;  %v11233_v56 = vpack.c.bf16 %v8916_v62, %v8915_v53  ;;  %v8917_v39 = vld [vmem:[#allocation8 + $0x40] sm:$0xff] }
 0x56b   : > { %11920 = vrcp.f32 %v5312_v11  ;;  %v5309_v12 = vpop.xlane.xlu0 %5308  ;;  %v5545_v2 = vmul.f32 %v11911_v16, %v17119_v3 }
 0x56c   : > { %11922 = vrcp.f32 %v5309_v12  ;;  %v10769_v46 = vpop.f32.mrb[116].mxu1  ;;  %v17127_v12 = vld [vmem:[#allocation115_spill] sm:$0xff] }
 0x56d   : > { %v11913_v27 = vpop.eup %11912  ;;  %v8698_v0 = vmul.f32 %v10769_v46, %v17110_v23  ;;  %v5950_v21 = vpop.f32.mrb[117].mxu1  ;;  %10927 = vmatprep.mubr.msk.f32.mxu1 %vm4172_vm0, %v5545_v2 }
 0x56e   : > { %v11915_v25 = vpop.eup %11914  ;;  %v8697_v42 = vmul.f32 %v5950_v21, %v17111_v47  ;;  %v5246_v61 = vpop.xlane.xlu1 %5245  ;;  %10928 = vmatmul.mubr.msk.f32.vlgmr.msra.gmra.mrb[156].mxu1 %vm4172_vm0, %v5546_v34  ;;  %v5574_v28 = vmul.f32 %v11913_v27, %v17122_v43  ;;  %v8918_v34 = vld [vmem:[#allocation8 + $0x48] sm:$0xff] }
 0x56f   : > { %11924 = vrcp.f32 %v5246_v61  ;;  %10942 = vmatpush3.msra.mxu1 %v17116_v26  ;;  %v5243_v48 = vpop.xlane.xlu0 %5242  ;;  %v5573_v60 = vmul.f32 %v11915_v25, %v17121_v1  ;;  %v17124_v26 = vld [vmem:[#allocation72_spill] sm:$0xff] }
 0x570   : > { %v8822_v35 = vadd.f32 %v8698_v0, %v8697_v42  ;;  %10957 = vmatprep.subr.mxu1 %v17123_v22  ;;  %11926 = vrcp.f32 %v5243_v48  ;;  %v11237_v42 = vpack.c.bf16 %v8918_v34, %v8917_v39  ;;  %v8919_v48 = vld [vmem:[#allocation8 + $0x50] sm:$0xff]  ;;  %v8920_v1 = vld [vmem:[#allocation8 + $0x58] sm:$0xff] }
 0x571   : > { %v11917_v13 = vpop.eup %11916  ;;  %10983 = vmatprep.mubr.msk.f32.mxu0 %vm4172_vm0, %v5573_v60 }
 0x572   : > { %v11919_v32 = vpop.eup %11918  ;;  %v5252_v45 = vpop.xlane.xlu1 %5251  ;;  %10984 = vmatmul.mubr.msk.f32.vlgmr.msra.gmra.mrb[172].mxu0 %vm4172_vm0, %v5574_v28  ;;  %v5548_v15 = vmul.f32 %v11917_v13, %v17125_v41  ;;  %v11241_v13 = vpack.c.bf16 %v8920_v1, %v8919_v48  ;;  %v8924_v41 = vld [vmem:[#allocation8 + $0x78] sm:$0xff] }
 0x573   : > { %11928 = vrcp.f32 %v5252_v45  ;;  %v5249_v7 = vpop.xlane.xlu0 %5248  ;;  %v5547_v52 = vmul.f32 %v11919_v32, %v17124_v26  ;;  %11224 = vmatpush3.bf16.msra.mxu0 %v15434_v24  ;;  %v8922_v32 = vld [vmem:[#allocation8 + $0x68] sm:$0xff] }
 0x574   : > { %11930 = vrcp.f32 %v5249_v7  ;;  %v10772_v38 = vpop.f32.mrb[118].mxu1  ;;  %11226 = vmatprep.subr.bf16.mxu0 %v11225_v30 }
 0x575   : > { %v11921_v29 = vpop.eup %11920  ;;  %v5960_v4 = vpop.f32.mrb[119].mxu1  ;;  %10930 = vmatprep.mubr.msk.f32.mxu1 %vm4172_vm0, %v5547_v52  ;;  %v8700_v16 = vmul.f32 %v10772_v38, %v17115_v57  ;;  %v8923_v38 = vld [vmem:[#allocation8 + $0x70] sm:$0xff] }
 0x576   : > { %v11923_v63 = vpop.eup %11922  ;;  %v8699_v5 = vmul.f32 %v5960_v4, %v17112_v9  ;;  %v5270_v33 = vpop.xlane.xlu1 %5269  ;;  %10931 = vmatmul.mubr.msk.f32.gmra.mrb[158].mxu1 %vm4172_vm0, %v5548_v15  ;;  %v5576_v3 = vmul.f32 %v11921_v29, %v17127_v12  ;;  %v11249_v29 = vpack.c.bf16 %v8924_v41, %v8923_v38 }
 0x577   : > { %11932 = vrcp.f32 %v5270_v33  ;;  %v5267_v24 = vpop.xlane.xlu0 %5266  ;;  %v5575_v44 = vmul.f32 %v11923_v63, %v17126_v8  ;;  %11228 = vmatpush3.bf16.msra.mxu0 %v11225_v30 }
 0x578   : > { %v8823_v11 = vadd.f32 %v8822_v35, %v8699_v5  ;;  %11934 = vrcp.f32 %v5267_v24  ;;  %11230 = vmatprep.subr.bf16.mxu0 %v11229_v58  ;;  %v17129_v35 = vld [vmem:[#allocation45_spill] sm:$0xff] }
 0x579   : > { %v11925_v2 = vpop.eup %11924  ;;  %10986 = vmatprep.mubr.msk.f32.mxu0 %vm4172_vm0, %v5575_v44  ;;  %v17131_v44 = vld [vmem:[#allocation119_spill] sm:$0xff] }
 0x57a   : > { %v11927_v46 = vpop.eup %11926  ;;  %v5276_v27 = vpop.xlane.xlu1 %5275  ;;  %10987 = vmatmul.mubr.msk.f32.gmra.mrb[174].mxu0 %vm4172_vm0, %v5576_v3  ;;  %v15476_v0 = vadd.f32 %v8823_v11, %v8700_v16  ;;  %v5554_v25 = vmul.f32 %v11925_v2, %v17128_v6 }
 0x57b   : > { %11936 = vrcp.f32 %v5276_v27  ;;  %v5273_v21 = vpop.xlane.xlu0 %5272  ;;  %v5553_v18 = vmul.f32 %v11927_v46, %v15130_v40  ;;  %11232 = vmatpush3.bf16.msra.mxu0 %v11229_v58  ;;  %v17133_v46 = vld [vmem:[#allocation122_spill] sm:$0xff] }
 0x57c   : > { %11938 = vrcp.f32 %v5273_v21  ;;  %11234 = vmatprep.subr.bf16.mxu0 %v11233_v56 }
 0x57d   : > { %v11929_v61 = vpop.eup %11928  ;;  %10943 = vmatprep.mubr.msk.f32.mxu1 %vm4172_vm0, %v5553_v18 }
 0x57e   : > { %v11931_v60 = vpop.eup %11930  ;;  %v5294_v43 = vpop.xlane.xlu1 %5293  ;;  %10944 = vmatmul.mubr.msk.f32.vlgmr.msra.gmra.mrb[160].mxu1 %vm4172_vm0, %v5554_v25  ;;  %v5556_v30 = vmul.f32 %v11929_v61, %v15135_v17  ;;  %v11245_v17 = vpack.c.bf16 %v8922_v32, %v8921_v20 }
 0x57f   : > { %11940 = vrcp.f32 %v5294_v43  ;;  %10958 = vmatpush3.msra.mxu1 %v17123_v22  ;;  %v5291_v28 = vpop.xlane.xlu0 %5290  ;;  %v5555_v40 = vmul.f32 %v11931_v60, %v15150_v14  ;;  %11236 = vmatpush3.bf16.msra.mxu0 %v11233_v56 }
 0x580   : > { %10973 = vmatprep.subr.mxu1 %v17129_v35  ;;  %11942 = vrcp.f32 %v5291_v28  ;;  %11238 = vmatprep.subr.bf16.mxu0 %v11237_v42 }
 0x581   : > { %v11933_v50 = vpop.eup %11932  ;;  %10946 = vmatprep.mubr.msk.f32.mxu1 %vm4172_vm0, %v5555_v40 }
 0x582   : > { %v11935_v45 = vpop.eup %11934  ;;  %v5300_v7 = vpop.xlane.xlu1 %5299  ;;  %10947 = vmatmul.mubr.msk.f32.gmra.mrb[162].mxu1 %vm4172_vm0, %v5556_v30  ;;  %v5562_v26 = vmul.f32 %v11933_v50, %v15165_v51  ;;  %v17130_v51 = vld [vmem:[#allocation47_spill] sm:$0xff] }
 0x583   : > { %11944 = vrcp.f32 %v5300_v7  ;;  %v5297_v22 = vpop.xlane.xlu0 %5296  ;;  %v5561_v14 = vmul.f32 %v11935_v45, %v15158_v19  ;;  %11240 = vmatpush3.bf16.msra.mxu0 %v11237_v42 }
 0x584   : > { %11946 = vrcp.f32 %v5297_v22  ;;  %11242 = vmatprep.subr.bf16.mxu0 %v11241_v13 }
 0x585   : > { %v11937_v52 = vpop.eup %11936  ;;  %10959 = vmatprep.mubr.msk.f32.mxu1 %vm4172_vm0, %v5561_v14 }
 0x586   : > { %v11939_v15 = vpop.eup %11938  ;;  %v5318_v58 = vpop.xlane.xlu1 %5317  ;;  %10960 = vmatmul.mubr.msk.f32.vlgmr.msra.gmra.mrb[164].mxu1 %vm4172_vm0, %v5562_v26  ;;  %v5564_v62 = vmul.f32 %v11937_v52, %v15177_v31 }
 0x587   : > { %11948 = vrcp.f32 %v5318_v58  ;;  %10974 = vmatpush3.msra.mxu1 %v17129_v35  ;;  %v5315_v53 = vpop.xlane.xlu0 %5314  ;;  %v5563_v19 = vmul.f32 %v11939_v15, %v15170_v59  ;;  %11244 = vmatpush3.bf16.msra.mxu0 %v11241_v13 }
 0x588   : > { %10989 = vmatprep.subr.mxu1 %v17130_v51  ;;  %11950 = vrcp.f32 %v5315_v53  ;;  %11246 = vmatprep.subr.bf16.mxu0 %v11245_v17 }
 0x589   : > { %v11941_v4 = vpop.eup %11940  ;;  %10962 = vmatprep.mubr.msk.f32.mxu1 %vm4172_vm0, %v5563_v19 }
 0x58a   : > { %v11943_v63 = vpop.eup %11942  ;;  %v5324_v5 = vpop.xlane.xlu1 %5323  ;;  %10963 = vmatmul.mubr.msk.f32.gmra.mrb[166].mxu1 %vm4172_vm0, %v5564_v62  ;;  %v5570_v59 = vmul.f32 %v11941_v4, %v15187_v37 }
 0x58b   : > { %v5569_v33 = vmul.f32 %v11943_v63, %v15174_v36  ;;  %11248 = vmatpush3.bf16.msra.mxu0 %v11245_v17  ;;  %11952 = vrcp.f32 %v5324_v5  ;;  %v17132_v36 = vld [vmem:[#allocation88_spill] sm:$0xff] }
 0x58c   : > { %v5321_v24 = vpop.xlane.xlu0 %5320  ;;  %11250 = vmatprep.subr.bf16.mxu0 %v11249_v29 }
 0x58d   : > { %v11945_v8 = vpop.eup %11944  ;;  %11954 = vrcp.f32 %v5321_v24  ;;  %10975 = vmatprep.mubr.msk.f32.mxu1 %vm4172_vm0, %v5569_v33 }
 0x58e   : > { %v11947_v31 = vpop.eup %11946  ;;  %10976 = vmatmul.mubr.msk.f32.vlgmr.msra.gmra.mrb[168].mxu1 %vm4172_vm0, %v5570_v59  ;;  %v5572_v11 = vmul.f32 %v11945_v8, %v17132_v36 }
 0x58f   : > { %10990 = vmatpush3.msra.mxu1 %v17130_v51  ;;  %v5571_v56 = vmul.f32 %v11947_v31, %v17131_v44  ;;  %11252 = vmatpush3.bf16.msra.mxu0 %v11249_v29 }
 0x590   : > { %v10785_v16 = vpop.f32.mrb[120].mxu1 }
 0x591   : > { %v11949_v12 = vpop.eup %11948  ;;  %v8706_v37 = vmul.f32 %v10785_v16, %v17110_v23  ;;  %v6144_v3 = vpop.f32.mrb[121].mxu1  ;;  %10978 = vmatprep.mubr.msk.f32.mxu1 %vm4172_vm0, %v5571_v56 }
 0x592   : > { %v11951_v2 = vpop.eup %11950  ;;  %v8705_v39 = vmul.f32 %v6144_v3, %v17111_v47  ;;  %10979 = vmatmul.mubr.msk.f32.gmra.mrb[170].mxu1 %vm4172_vm0, %v5572_v11  ;;  %v5578_v27 = vmul.f32 %v11949_v12, %v17133_v46 }
 0x593   : > { %v5577_v34 = vmul.f32 %v11951_v2, %v15206_v54 }
 0x594   : > { %v8828_v21 = vadd.f32 %v8706_v37, %v8705_v39 }
 0x595   : > { %10991 = vmatprep.mubr.msk.f32.mxu1 %vm4172_vm0, %v5577_v34  ;;  %v11953_v18 = vpop.eup %11952 }
 0x596   : > { %10992 = vmatmul.mubr.msk.f32.vlgmr.msra.gmra.mrb[172].mxu1 %vm4172_vm0, %v5578_v27  ;;  %v5580_v61 = vmul.f32 %v11953_v18, %v15235_v10 }
 0x597   : > { %v11955_v6 = vpop.eup %11954 }
 0x598   : > { %v5579_v25 = vmul.f32 %v11955_v6, %v15250_v49 }
 0x599   : > { %v10745_v42 = vpop.f32.mrb[112].mxu0 }
 0x59a   : > { %v8686_v48 = vmul.f32 %v10745_v42, %v17110_v23  ;;  %v5659_v1 = vpop.f32.mrb[113].mxu0  ;;  %10994 = vmatprep.mubr.msk.f32.mxu1 %vm4172_vm0, %v5579_v25 }
 0x59b   : > { %v8685_v54 = vmul.f32 %v5659_v1, %v17111_v47  ;;  %10995 = vmatmul.mubr.msk.f32.gmra.mrb[174].mxu1 %vm4172_vm0, %v5580_v61 }
 0x59c   : > { %v10788_v60 = vpop.f32.mrb[122].mxu1 }
 0x59d   : > { %v8813_v43 = vadd.f32 %v8686_v48, %v8685_v54  ;;  %v10748_v28 = vpop.f32.mrb[114].mxu0  ;;  %v6154_v40 = vpop.f32.mrb[123].mxu1  ;;  %v8708_v10 = vmul.f32 %v10788_v60, %v17115_v57 }
 0x59e   : > { %v5669_v35 = vpop.f32.mrb[115].mxu0  ;;  %v8707_v30 = vmul.f32 %v6154_v40, %v17112_v9  ;;  %v8688_v50 = vmul.f32 %v10748_v28, %v17115_v57 }
 0x59f   : > { %v8687_v49 = vmul.f32 %v5669_v35, %v17112_v9 }
 0x5a0   : > { %v8829_v13 = vadd.f32 %v8828_v21, %v8707_v30 }
 0x5a1   : > { %v8814_v20 = vadd.f32 %v8813_v43, %v8687_v49  ;;  %v10761_v32 = vpop.f32.mrb[116].mxu0 }
 0x5a2   : > { %v8694_v45 = vmul.f32 %v10761_v32, %v17110_v23  ;;  %v5853_v7 = vpop.f32.mrb[117].mxu0  ;;  %v8830_v22 = vadd.f32 %v8829_v13, %v8708_v10 }
 0x5a3   : > { %v8693_v14 = vmul.f32 %v5853_v7, %v17111_v47  ;;  %v8815_v26 = vadd.f32 %v8814_v20, %v8688_v50 }
 0x5a5   : > { %v8819_v17 = vadd.f32 %v8694_v45, %v8693_v14  ;;  %v10764_v52 = vpop.f32.mrb[118].mxu0  ;;  %11029 = vmatprep.mubr.f32.mxu0 %v8815_v26 }
 0x5a6   : > { %v5863_v38 = vpop.f32.mrb[119].mxu0  ;;  %11030 = vmatmul.mubr.f32.vlgmr.msra.gmra.mrb[176].mxu0 %v15440_v55  ;;  %v8696_v15 = vmul.f32 %v10764_v52, %v17115_v57 }
 0x5a7   : > { %v8695_v41 = vmul.f32 %v5863_v38, %v17112_v9 }
 0x5a9   : > { %v8820_v58 = vadd.f32 %v8819_v17, %v8695_v41  ;;  %v10777_v53 = vpop.f32.mrb[120].mxu0 }
 0x5aa   : > { %v8702_v19 = vmul.f32 %v10777_v53, %v17110_v23  ;;  %v6047_v51 = vpop.f32.mrb[121].mxu0 }
 0x5ab   : > { %v8701_v62 = vmul.f32 %v6047_v51, %v17111_v47  ;;  %v8821_v29 = vadd.f32 %v8820_v58, %v8696_v15 }
 0x5ad   : > { %v8825_v4 = vadd.f32 %v8702_v19, %v8701_v62  ;;  %11032 = vmatprep.mubr.f32.mxu0 %v8821_v29 }
 0x5ae   : > { %11033 = vmatmul.mubr.f32.gmra.mrb[178].mxu0 %v15476_v0 }
 0x5b0   : > { %v10780_v63 = vpop.f32.mrb[122].mxu0 }
 0x5b1   : > { %v6057_v5 = vpop.f32.mrb[123].mxu0  ;;  %v8704_v33 = vmul.f32 %v10780_v63, %v17115_v57 }
 0x5b2   : > { %v8703_v55 = vmul.f32 %v6057_v5, %v17112_v9 }
 0x5b4   : > { %v8826_v59 = vadd.f32 %v8825_v4, %v8703_v55 }
 0x5b6   : > { %v8827_v24 = vadd.f32 %v8826_v59, %v8704_v33 }
 0x5b8   : > { %v10801_v8 = vpop.f32.mrb[124].mxu1  ;;  %11035 = vmatprep.mubr.f32.mxu0 %v8827_v24 }
 0x5b9   : > { %v8714_v31 = vmul.f32 %v10801_v8, %v17110_v23  ;;  %v6338_v44 = vpop.f32.mrb[125].mxu1  ;;  %11036 = vmatmul.mubr.f32.gmra.mrb[180].mxu0 %v8830_v22 }
 0x5ba   : > { %v8713_v56 = vmul.f32 %v6338_v44, %v17111_v47 }
 0x5bc   : > { %v8834_v16 = vadd.f32 %v8714_v31, %v8713_v56 }
 0x5c0   : > { %v10793_v36 = vpop.f32.mrb[124].mxu0 }
 0x5c1   : > { %v8710_v0 = vmul.f32 %v10793_v36, %v17110_v23  ;;  %v6241_v11 = vpop.f32.mrb[125].mxu0 }
 0x5c2   : > { %v8709_v12 = vmul.f32 %v6241_v11, %v17111_v47 }
 0x5c4   : > { %v8831_v37 = vadd.f32 %v8710_v0, %v8709_v12  ;;  %v10804_v3 = vpop.f32.mrb[126].mxu1 }
 0x5c5   : > { %v6348_v2 = vpop.f32.mrb[127].mxu1  ;;  %v8716_v34 = vmul.f32 %v10804_v3, %v17115_v57 }
 0x5c6   : > { %v8715_v39 = vmul.f32 %v6348_v2, %v17112_v9 }
 0x5c8   : > { %v8835_v46 = vadd.f32 %v8834_v16, %v8715_v39  ;;  %v10796_v27 = vpop.f32.mrb[126].mxu0 }
 0x5c9   : > { %v6251_v21 = vpop.f32.mrb[127].mxu0  ;;  %v8712_v25 = vmul.f32 %v10796_v27, %v17115_v57 }
 0x5ca   : > { %v8711_v18 = vmul.f32 %v6251_v21, %v17112_v9  ;;  %v8836_v6 = vadd.f32 %v8835_v46, %v8716_v34 }
 0x5cc   : > { %v8832_v42 = vadd.f32 %v8831_v37, %v8711_v18  ;;  %v10809_v61 = vpop.f32.mrb[128].mxu0 }
 0x5cd   : > { %v8718_v48 = vmul.f32 %v10809_v61, %v17110_v23  ;;  %v6435_v1 = vpop.f32.mrb[129].mxu0 }
 0x5ce   : > { %v8717_v54 = vmul.f32 %v6435_v1, %v17111_v47  ;;  %v8833_v60 = vadd.f32 %v8832_v42, %v8712_v25 }
 0x5d0   : > { %v8837_v43 = vadd.f32 %v8718_v48, %v8717_v54  ;;  %v10817_v28 = vpop.f32.mrb[128].mxu1  ;;  %11038 = vmatprep.mubr.f32.mxu0 %v8833_v60 }
 0x5d1   : > { %v10812_v40 = vpop.f32.mrb[130].mxu0  ;;  %v8722_v35 = vmul.f32 %v10817_v28, %v17110_v23  ;;  %v6532_v30 = vpop.f32.mrb[129].mxu1  ;;  %11039 = vmatmul.mubr.f32.gmra.mrb[182].mxu0 %v8836_v6 }
 0x5d2   : > { %v6445_v49 = vpop.f32.mrb[131].mxu0  ;;  %v8721_v10 = vmul.f32 %v6532_v30, %v17111_v47  ;;  %v8720_v20 = vmul.f32 %v10812_v40, %v17115_v57 }
 0x5d3   : > { %v8719_v13 = vmul.f32 %v6445_v49, %v17112_v9 }
 0x5d4   : > { %v8840_v50 = vadd.f32 %v8722_v35, %v8721_v10 }
 0x5d5   : > { %v8838_v32 = vadd.f32 %v8837_v43, %v8719_v13  ;;  %v10825_v45 = vpop.f32.mrb[132].mxu0 }
 0x5d6   : > { %v8726_v7 = vmul.f32 %v10825_v45, %v17110_v23  ;;  %v6629_v22 = vpop.f32.mrb[133].mxu0 }
 0x5d7   : > { %v8725_v14 = vmul.f32 %v6629_v22, %v17111_v47  ;;  %v8839_v26 = vadd.f32 %v8838_v32, %v8720_v20 }
 0x5d9   : > { %v8843_v17 = vadd.f32 %v8726_v7, %v8725_v14  ;;  %v10828_v52 = vpop.f32.mrb[134].mxu0  ;;  %11041 = vmatprep.mubr.f32.mxu0 %v8839_v26 }
 0x5da   : > { %v6639_v38 = vpop.f32.mrb[135].mxu0  ;;  %v8728_v58 = vmul.f32 %v10828_v52, %v17115_v57 }
 0x5db   : > { %v8727_v41 = vmul.f32 %v6639_v38, %v17112_v9 }
 0x5dc   : > { %v10820_v15 = vpop.f32.mrb[130].mxu1 }
 0x5dd   : > { %v8844_v53 = vadd.f32 %v8843_v17, %v8727_v41  ;;  %v10841_v19 = vpop.f32.mrb[136].mxu0  ;;  %v6542_v51 = vpop.f32.mrb[131].mxu1  ;;  %v8724_v55 = vmul.f32 %v10820_v15, %v17115_v57 }
 0x5de   : > { %v8734_v62 = vmul.f32 %v10841_v19, %v17110_v23  ;;  %v8723_v29 = vmul.f32 %v6542_v51, %v17112_v9  ;;  %v6823_v4 = vpop.f32.mrb[137].mxu0 }
 0x5df   : > { %v8733_v63 = vmul.f32 %v6823_v4, %v17111_v47  ;;  %v8845_v5 = vadd.f32 %v8844_v53, %v8728_v58 }
 0x5e0   : > { %v8841_v33 = vadd.f32 %v8840_v50, %v8723_v29 }
 0x5e1   : > { %v8849_v59 = vadd.f32 %v8734_v62, %v8733_v63  ;;  %v10844_v24 = vpop.f32.mrb[138].mxu0  ;;  %v10833_v8 = vpop.f32.mrb[132].mxu1 }
 0x5e2   : > { %v8730_v31 = vmul.f32 %v10833_v8, %v17110_v23  ;;  %v6833_v44 = vpop.f32.mrb[139].mxu0  ;;  %v6726_v56 = vpop.f32.mrb[133].mxu1  ;;  %v8842_v16 = vadd.f32 %v8841_v33, %v8724_v55  ;;  %v8736_v11 = vmul.f32 %v10844_v24, %v17115_v57 }
 0x5e3   : > { %v8735_v36 = vmul.f32 %v6833_v44, %v17112_v9  ;;  %v8729_v0 = vmul.f32 %v6726_v56, %v17111_v47 }
 0x5e4   : > { %11042 = vmatmul.mubr.f32.gmra.mrb[184].mxu0 %v8842_v16 }
 0x5e5   : > { %v8850_v12 = vadd.f32 %v8849_v59, %v8735_v36  ;;  %v8846_v37 = vadd.f32 %v8730_v31, %v8729_v0  ;;  %v10857_v3 = vpop.f32.mrb[140].mxu0  ;;  %11044 = vmatprep.mubr.f32.mxu0 %v8845_v5 }
 0x5e6   : > { %v8742_v2 = vmul.f32 %v10857_v3, %v17110_v23  ;;  %v7017_v39 = vpop.f32.mrb[141].mxu0 }
 0x5e7   : > { %v8741_v34 = vmul.f32 %v7017_v39, %v17111_v47  ;;  %v8851_v46 = vadd.f32 %v8850_v12, %v8736_v11 }
 0x5e9   : > { %v8855_v27 = vadd.f32 %v8742_v2, %v8741_v34  ;;  %v10860_v21 = vpop.f32.mrb[142].mxu0  ;;  %v10836_v18 = vpop.f32.mrb[134].mxu1 }
 0x5ea   : > { %v7027_v6 = vpop.f32.mrb[143].mxu0  ;;  %v6736_v25 = vpop.f32.mrb[135].mxu1  ;;  %v8744_v48 = vmul.f32 %v10860_v21, %v17115_v57  ;;  %v8732_v1 = vmul.f32 %v10836_v18, %v17115_v57 }
 0x5eb   : > { %v8743_v42 = vmul.f32 %v7027_v6, %v17112_v9  ;;  %v8731_v61 = vmul.f32 %v6736_v25, %v17112_v9 }
 0x5ed   : > { %v8856_v54 = vadd.f32 %v8855_v27, %v8743_v42  ;;  %v8847_v60 = vadd.f32 %v8846_v37, %v8731_v61  ;;  %v10873_v43 = vpop.f32.mrb[144].mxu0 }
 0x5ee   : > { %v8750_v28 = vmul.f32 %v10873_v43, %v17110_v23  ;;  %v7211_v40 = vpop.f32.mrb[145].mxu0 }
 0x5ef   : > { %v8749_v35 = vmul.f32 %v7211_v40, %v17111_v47  ;;  %v8848_v30 = vadd.f32 %v8847_v60, %v8732_v1  ;;  %v8857_v49 = vadd.f32 %v8856_v54, %v8744_v48 }
 0x5f1   : > { %v8861_v10 = vadd.f32 %v8750_v28, %v8749_v35  ;;  %v10876_v13 = vpop.f32.mrb[146].mxu0  ;;  %v10849_v50 = vpop.f32.mrb[136].mxu1  ;;  %11045 = vmatmul.mubr.f32.gmra.mrb[186].mxu0 %v8848_v30 }
 0x5f2   : > { %v8738_v20 = vmul.f32 %v10849_v50, %v17110_v23  ;;  %v7221_v32 = vpop.f32.mrb[147].mxu0  ;;  %v6920_v45 = vpop.f32.mrb[137].mxu1  ;;  %11047 = vmatprep.mubr.f32.mxu0 %v8851_v46  ;;  %v8752_v14 = vmul.f32 %v10876_v13, %v17115_v57 }
 0x5f3   : > { %v8751_v7 = vmul.f32 %v7221_v32, %v17112_v9  ;;  %v8737_v22 = vmul.f32 %v6920_v45, %v17111_v47 }
 0x5f5   : > { %v8862_v26 = vadd.f32 %v8861_v10, %v8751_v7  ;;  %v8852_v17 = vadd.f32 %v8738_v20, %v8737_v22  ;;  %v10889_v52 = vpop.f32.mrb[148].mxu0 }
 0x5f6   : > { %v8758_v38 = vmul.f32 %v10889_v52, %v17110_v23  ;;  %v7405_v41 = vpop.f32.mrb[149].mxu0 }
 0x5f7   : > { %v8757_v15 = vmul.f32 %v7405_v41, %v17111_v47  ;;  %v8863_v58 = vadd.f32 %v8862_v26, %v8752_v14 }
 0x5f9   : > { %v8867_v53 = vadd.f32 %v8758_v38, %v8757_v15  ;;  %v10892_v19 = vpop.f32.mrb[150].mxu0  ;;  %v10852_v51 = vpop.f32.mrb[138].mxu1 }
 0x5fa   : > { %v7415_v62 = vpop.f32.mrb[151].mxu0  ;;  %v6930_v29 = vpop.f32.mrb[139].mxu1  ;;  %v8760_v5 = vmul.f32 %v10892_v19, %v17115_v57  ;;  %v8740_v55 = vmul.f32 %v10852_v51, %v17115_v57 }
 0x5fb   : > { %v8759_v4 = vmul.f32 %v7415_v62, %v17112_v9  ;;  %v8739_v63 = vmul.f32 %v6930_v29, %v17112_v9 }
 0x5fd   : > { %v8868_v33 = vadd.f32 %v8867_v53, %v8759_v4  ;;  %v8853_v59 = vadd.f32 %v8852_v17, %v8739_v63  ;;  %v10905_v24 = vpop.f32.mrb[152].mxu0 }
 0x5fe   : > { %v8766_v8 = vmul.f32 %v10905_v24, %v17110_v23  ;;  %v7599_v31 = vpop.f32.mrb[153].mxu0 }
 0x5ff   : > { %v8765_v44 = vmul.f32 %v7599_v31, %v17111_v47  ;;  %v8854_v56 = vadd.f32 %v8853_v59, %v8740_v55  ;;  %v8869_v16 = vadd.f32 %v8868_v33, %v8760_v5 }
 0x601   : > { %v8873_v36 = vadd.f32 %v8766_v8, %v8765_v44  ;;  %v10908_v0 = vpop.f32.mrb[154].mxu0  ;;  %v10865_v11 = vpop.f32.mrb[140].mxu1  ;;  %11048 = vmatmul.mubr.f32.gmra.mrb[188].mxu0 %v8854_v56 }
 0x602   : > { %v8746_v12 = vmul.f32 %v10865_v11, %v17110_v23  ;;  %v7609_v37 = vpop.f32.mrb[155].mxu0  ;;  %v7114_v3 = vpop.f32.mrb[141].mxu1  ;;  %11050 = vmatprep.mubr.f32.mxu0 %v8857_v49  ;;  %v8768_v34 = vmul.f32 %v10908_v0, %v17115_v57 }
 0x603   : > { %v8767_v2 = vmul.f32 %v7609_v37, %v17112_v9  ;;  %v8745_v39 = vmul.f32 %v7114_v3, %v17111_v47 }
 0x605   : > { %v8874_v46 = vadd.f32 %v8873_v36, %v8767_v2  ;;  %v8858_v27 = vadd.f32 %v8746_v12, %v8745_v39  ;;  %v10921_v21 = vpop.f32.mrb[156].mxu0 }
 0x606   : > { %v8774_v18 = vmul.f32 %v10921_v21, %v17110_v23  ;;  %v7793_v6 = vpop.f32.mrb[157].mxu0 }
 0x607   : > { %v8773_v25 = vmul.f32 %v7793_v6, %v17111_v47  ;;  %v15585_v42 = vadd.f32 %v8874_v46, %v8768_v34 }
 0x609   : > { %v8879_v61 = vadd.f32 %v8774_v18, %v8773_v25  ;;  %v10868_v48 = vpop.f32.mrb[142].mxu1 }
 0x60a   : > { %v7124_v1 = vpop.f32.mrb[143].mxu1  ;;  %v8748_v60 = vmul.f32 %v10868_v48, %v17115_v57 }
 0x60b   : > { %v8747_v54 = vmul.f32 %v7124_v1, %v17112_v9 }
 0x60d   : > { %v8859_v43 = vadd.f32 %v8858_v27, %v8747_v54  ;;  %v10924_v28 = vpop.f32.mrb[158].mxu0 }
 0x60e   : > { %v7803_v40 = vpop.f32.mrb[159].mxu0  ;;  %v8776_v49 = vmul.f32 %v10924_v28, %v17115_v57 }
 0x60f   : > { %v8775_v35 = vmul.f32 %v7803_v40, %v17112_v9  ;;  %v8860_v30 = vadd.f32 %v8859_v43, %v8748_v60 }
 0x611   : > { %v8880_v10 = vadd.f32 %v8879_v61, %v8775_v35  ;;  %v10881_v13 = vpop.f32.mrb[144].mxu1  ;;  %11051 = vmatmul.mubr.f32.gmra.mrb[190].mxu0 %v8860_v30 }
 0x612   : > { %v8754_v50 = vmul.f32 %v10881_v13, %v17110_v23  ;;  %v7308_v20 = vpop.f32.mrb[145].mxu1  ;;  %11053 = vmatprep.mubr.f32.mxu0 %v8863_v58 }
 0x613   : > { %v8753_v32 = vmul.f32 %v7308_v20, %v17111_v47  ;;  %v15593_v45 = vadd.f32 %v8880_v10, %v8776_v49 }
 0x615   : > { %v8864_v7 = vadd.f32 %v8754_v50, %v8753_v32  ;;  %v10937_v22 = vpop.f32.mrb[160].mxu0 }
 0x616   : > { %v8782_v14 = vmul.f32 %v10937_v22, %v17110_v23  ;;  %v7987_v26 = vpop.f32.mrb[161].mxu0 }
 0x617   : > { %v8781_v17 = vmul.f32 %v7987_v26, %v17111_v47 }
 0x619   : > { %v8885_v52 = vadd.f32 %v8782_v14, %v8781_v17  ;;  %v10884_v38 = vpop.f32.mrb[146].mxu1 }
 0x61a   : > { %v7318_v41 = vpop.f32.mrb[147].mxu1  ;;  %v8756_v53 = vmul.f32 %v10884_v38, %v17115_v57 }
 0x61b   : > { %v8755_v15 = vmul.f32 %v7318_v41, %v17112_v9 }
 0x61d   : > { %v8865_v19 = vadd.f32 %v8864_v7, %v8755_v15  ;;  %v10940_v58 = vpop.f32.mrb[162].mxu0 }
 0x61e   : > { %v7997_v51 = vpop.f32.mrb[163].mxu0  ;;  %v8784_v4 = vmul.f32 %v10940_v58, %v17115_v57 }
 0x61f   : > { %v8783_v62 = vmul.f32 %v7997_v51, %v17112_v9  ;;  %v8866_v29 = vadd.f32 %v8865_v19, %v8756_v53 }
 0x621   : > { %v8886_v63 = vadd.f32 %v8885_v52, %v8783_v62  ;;  %v10897_v5 = vpop.f32.mrb[148].mxu1  ;;  %11054 = vmatmul.mubr.f32.gmra.mrb[192].mxu0 %v8866_v29 }
 0x622   : > { %v8762_v55 = vmul.f32 %v10897_v5, %v17110_v23  ;;  %v7502_v33 = vpop.f32.mrb[149].mxu1  ;;  %11056 = vmatprep.mubr.f32.mxu0 %v8869_v16 }
 0x623   : > { %v8761_v59 = vmul.f32 %v7502_v33, %v17111_v47  ;;  %v15603_v24 = vadd.f32 %v8886_v63, %v8784_v4 }
 0x625   : > { %v8870_v8 = vadd.f32 %v8762_v55, %v8761_v59  ;;  %v10953_v31 = vpop.f32.mrb[164].mxu0 }
 0x626   : > { %v8790_v44 = vmul.f32 %v10953_v31, %v17110_v23  ;;  %v8181_v56 = vpop.f32.mrb[165].mxu0 }
 0x627   : > { %v8789_v36 = vmul.f32 %v8181_v56, %v17111_v47 }
 0x629   : > { %v8891_v0 = vadd.f32 %v8790_v44, %v8789_v36  ;;  %v10900_v11 = vpop.f32.mrb[150].mxu1 }
 0x62a   : > { %v7512_v12 = vpop.f32.mrb[151].mxu1  ;;  %v8764_v3 = vmul.f32 %v10900_v11, %v17115_v57 }
 0x62b   : > { %v8763_v37 = vmul.f32 %v7512_v12, %v17112_v9 }
 0x62d   : > { %v8871_v2 = vadd.f32 %v8870_v8, %v8763_v37  ;;  %v10956_v16 = vpop.f32.mrb[166].mxu0 }
 0x62e   : > { %v8191_v39 = vpop.f32.mrb[167].mxu0  ;;  %v8792_v27 = vmul.f32 %v10956_v16, %v17115_v57 }
 0x62f   : > { %v8791_v34 = vmul.f32 %v8191_v39, %v17112_v9  ;;  %v8872_v46 = vadd.f32 %v8871_v2, %v8764_v3 }
 0x631   : > { %v8892_v21 = vadd.f32 %v8891_v0, %v8791_v34  ;;  %v10913_v18 = vpop.f32.mrb[152].mxu1  ;;  %11057 = vmatmul.mubr.f32.gmra.mrb[194].mxu0 %v8872_v46 }
 0x632   : > { %v8770_v6 = vmul.f32 %v10913_v18, %v17110_v23  ;;  %v7696_v25 = vpop.f32.mrb[153].mxu1  ;;  %11059 = vmatprep.mubr.f32.mxu0 %v15585_v42 }
 0x633   : > { %v8769_v61 = vmul.f32 %v7696_v25, %v17111_v47  ;;  %v15614_v48 = vadd.f32 %v8892_v21, %v8792_v27 }
 0x635   : > { %v8876_v1 = vadd.f32 %v8770_v6, %v8769_v61  ;;  %v10969_v54 = vpop.f32.mrb[168].mxu0 }
 0x636   : > { %v8798_v60 = vmul.f32 %v10969_v54, %v17110_v23  ;;  %v8375_v43 = vpop.f32.mrb[169].mxu0 }
 0x637   : > { %v8797_v28 = vmul.f32 %v8375_v43, %v17111_v47 }
 0x639   : > { %v8897_v40 = vadd.f32 %v8798_v60, %v8797_v28  ;;  %v10916_v35 = vpop.f32.mrb[154].mxu1 }
 0x63a   : > { %v7706_v30 = vpop.f32.mrb[155].mxu1  ;;  %v8772_v10 = vmul.f32 %v10916_v35, %v17115_v57 }
 0x63b   : > { %v8771_v49 = vmul.f32 %v7706_v30, %v17112_v9 }
 0x63d   : > { %v8877_v13 = vadd.f32 %v8876_v1, %v8771_v49  ;;  %v10972_v42 = vpop.f32.mrb[170].mxu0 }
 0x63e   : > { %v8385_v50 = vpop.f32.mrb[171].mxu0  ;;  %v8800_v7 = vmul.f32 %v10972_v42, %v17115_v57 }
 0x63f   : > { %v8799_v20 = vmul.f32 %v8385_v50, %v17112_v9  ;;  %v8878_v32 = vadd.f32 %v8877_v13, %v8772_v10 }
 0x641   : > { %v8898_v22 = vadd.f32 %v8897_v40, %v8799_v20  ;;  %v10929_v14 = vpop.f32.mrb[156].mxu1  ;;  %11060 = vmatmul.mubr.f32.gmra.mrb[196].mxu0 %v8878_v32 }
 0x642   : > { %v8778_v26 = vmul.f32 %v10929_v14, %v17110_v23  ;;  %v7890_v17 = vpop.f32.mrb[157].mxu1  ;;  %11062 = vmatprep.mubr.f32.mxu0 %v15593_v45 }
 0x643   : > { %v8777_v52 = vmul.f32 %v7890_v17, %v17111_v47  ;;  %v8899_v38 = vadd.f32 %v8898_v22, %v8800_v7 }
 0x645   : > { %v8882_v41 = vadd.f32 %v8778_v26, %v8777_v52  ;;  %v10985_v15 = vpop.f32.mrb[172].mxu0 }
 0x646   : > { %v8806_v53 = vmul.f32 %v10985_v15, %v17110_v23  ;;  %v8569_v19 = vpop.f32.mrb[173].mxu0 }
 0x647   : > { %v8805_v58 = vmul.f32 %v8569_v19, %v17111_v47 }
 0x649   : > { %v8903_v51 = vadd.f32 %v8806_v53, %v8805_v58  ;;  %v10932_v62 = vpop.f32.mrb[158].mxu1  ;;  %v9381_v58 = vld [vmem:[#allocation10] sm:$0xff] }
 0x64a   : > { %v7900_v29 = vpop.f32.mrb[159].mxu1  ;;  %v8780_v63 = vmul.f32 %v10932_v62, %v17115_v57  ;;  %v9383_v62 = vld [vmem:[#allocation10 + $0x10] sm:$0xff] }
 0x64b   : > { %v8779_v4 = vmul.f32 %v7900_v29, %v17112_v9  ;;  %v9384_v29 = vld [vmem:[#allocation10 + $0x18] sm:$0xff] }
 0x64d   : > { %v8883_v5 = vadd.f32 %v8882_v41, %v8779_v4  ;;  %v10988_v55 = vpop.f32.mrb[174].mxu0 }
 0x64e   : > { %v8579_v45 = vpop.f32.mrb[175].mxu0  ;;  %v8808_v8 = vmul.f32 %v10988_v55, %v17115_v57 }
 0x64f   : > { %v8807_v33 = vmul.f32 %v8579_v45, %v17112_v9  ;;  %v8884_v59 = vadd.f32 %v8883_v5, %v8780_v63  ;;  %v11257_v63 = vpack.c.bf16 %v9384_v29, %v9383_v62 }
 0x651   : > { %v8904_v31 = vadd.f32 %v8903_v51, %v8807_v33  ;;  %v10945_v44 = vpop.f32.mrb[160].mxu1  ;;  %11063 = vmatmul.mubr.f32.gmra.mrb[198].mxu0 %v8884_v59  ;;  %v9382_v51 = vld [vmem:[#allocation10 + $0x8] sm:$0xff] }
 0x652   : > { %v8786_v56 = vmul.f32 %v10945_v44, %v17110_v23  ;;  %v8084_v36 = vpop.f32.mrb[161].mxu1  ;;  %11065 = vmatprep.mubr.f32.mxu0 %v15603_v24  ;;  %v9385_v44 = vld [vmem:[#allocation10 + $0x20] sm:$0xff] }
 0x653   : > { %v8785_v0 = vmul.f32 %v8084_v36, %v17111_v47  ;;  %v8905_v11 = vadd.f32 %v8904_v31, %v8808_v8 }
 0x655   : > { %v8888_v12 = vadd.f32 %v8786_v56, %v8785_v0  ;;  %v10948_v37 = vpop.f32.mrb[162].mxu1  ;;  %v9386_v56 = vld [vmem:[#allocation10 + $0x28] sm:$0xff]  ;;  %v9387_v0 = vld [vmem:[#allocation10 + $0x30] sm:$0xff] }
 0x656   : > { %v8094_v3 = vpop.f32.mrb[163].mxu1  ;;  %v8788_v16 = vmul.f32 %v10948_v37, %v17115_v57  ;;  %v11261_v36 = vpack.c.bf16 %v9386_v56, %v9385_v44 }
 0x657   : > { %v8787_v2 = vmul.f32 %v8094_v3, %v17112_v9 }
 0x659   : > { %v8889_v39 = vadd.f32 %v8888_v12, %v8787_v2  ;;  %v10961_v34 = vpop.f32.mrb[164].mxu1 }
 0x65a   : > { %v8794_v46 = vmul.f32 %v10961_v34, %v17110_v23  ;;  %v8278_v27 = vpop.f32.mrb[165].mxu1 }
 0x65b   : > { %v8793_v21 = vmul.f32 %v8278_v27, %v17111_v47  ;;  %v8890_v18 = vadd.f32 %v8889_v39, %v8788_v16  ;;  %v9389_v16 = vld [vmem:[#allocation10 + $0x40] sm:$0xff]  ;;  %v9390_v39 = vld [vmem:[#allocation10 + $0x48] sm:$0xff] }
 0x65d   : > { %v8894_v6 = vadd.f32 %v8794_v46, %v8793_v21  ;;  %v10964_v24 = vpop.f32.mrb[166].mxu1  ;;  %11066 = vmatmul.mubr.f32.gmra.mrb[200].mxu0 %v8890_v18  ;;  %v11269_v46 = vpack.c.bf16 %v9390_v39, %v9389_v16  ;;  %v9391_v18 = vld [vmem:[#allocation10 + $0x50] sm:$0xff] }
 0x65e   : > { %v8288_v25 = vpop.f32.mrb[167].mxu1  ;;  %11068 = vmatprep.mubr.f32.mxu0 %v15614_v48  ;;  %v8796_v1 = vmul.f32 %v10964_v24, %v17115_v57 }
 0x65f   : > { %v8795_v61 = vmul.f32 %v8288_v25, %v17112_v9  ;;  %v9393_v25 = vld [vmem:[#allocation10 + $0x60] sm:$0xff] }
 0x661   : > { %v8895_v54 = vadd.f32 %v8894_v6, %v8795_v61  ;;  %v10977_v60 = vpop.f32.mrb[168].mxu1  ;;  %v9392_v6 = vld [vmem:[#allocation10 + $0x58] sm:$0xff]  ;;  %v9394_v61 = vld [vmem:[#allocation10 + $0x68] sm:$0xff] }
 0x662   : > { %v8802_v43 = vmul.f32 %v10977_v60, %v17110_v23  ;;  %v8472_v28 = vpop.f32.mrb[169].mxu1  ;;  %v11273_v24 = vpack.c.bf16 %v9392_v6, %v9391_v18  ;;  %v9396_v60 = vld [vmem:[#allocation10 + $0x78] sm:$0xff] }
 0x663   : > { %v8801_v40 = vmul.f32 %v8472_v28, %v17111_v47  ;;  %v8896_v35 = vadd.f32 %v8895_v54, %v8796_v1  ;;  %v11277_v1 = vpack.c.bf16 %v9394_v61, %v9393_v25  ;;  %v9395_v54 = vld [vmem:[#allocation10 + $0x70] sm:$0xff] }
 0x665   : > { %v8900_v30 = vadd.f32 %v8802_v43, %v8801_v40  ;;  %v10980_v49 = vpop.f32.mrb[170].mxu1  ;;  %11069 = vmatmul.mubr.f32.gmra.mrb[202].mxu0 %v8896_v35  ;;  %v11281_v43 = vpack.c.bf16 %v9396_v60, %v9395_v54 }
 0x666   : > { %v8482_v10 = vpop.f32.mrb[171].mxu1  ;;  %11071 = vmatprep.mubr.f32.mxu0 %v8899_v38  ;;  %v8804_v48 = vmul.f32 %v10980_v49, %v17115_v57 }
 0x667   : > { %v8803_v13 = vmul.f32 %v8482_v10, %v17112_v9 }
 0x669   : > { %v8901_v42 = vadd.f32 %v8900_v30, %v8803_v13  ;;  %v10993_v50 = vpop.f32.mrb[172].mxu1 }
 0x66a   : > { %v8810_v20 = vmul.f32 %v10993_v50, %v17110_v23  ;;  %v8666_v32 = vpop.f32.mrb[173].mxu1  ;;  %v15652_v23 = vld [vmem:[%s15976_s6] ss:$0 sm:$0xff] }
 0x66b   : > { %v8809_v7 = vmul.f32 %v8666_v32, %v17111_v47  ;;  %v8902_v22 = vadd.f32 %v8901_v42, %v8804_v48 }
 0x66d   : > { %v8906_v14 = vadd.f32 %v8810_v20, %v8809_v7  ;;  %11072 = vmatmul.mubr.f32.gmra.mrb[204].mxu0 %v8902_v22 }
 0x66e   : > { %v10996_v26 = vpop.f32.mrb[174].mxu1  ;;  %11074 = vmatprep.mubr.f32.mxu0 %v8905_v11  ;;  %v9388_v11 = vld [vmem:[#allocation10 + $0x38] sm:$0xff] }
 0x66f   : > { %v8676_v17 = vpop.f32.mrb[175].mxu1  ;;  %v8812_v38 = vmul.f32 %v10996_v26, %v17115_v57  ;;  %v11253_v57 = vpack.c.bf16 %v9382_v51, %v9381_v58  ;;  %v11265_v12 = vpack.c.bf16 %v9388_v11, %v9387_v0 }
 0x670   : > { %v8811_v52 = vmul.f32 %v8676_v17, %v17112_v9 }
 0x671   : > { %11254 = vmatprep.subr.bf16.mxu1 %v11253_v57 }
 0x672   : > { %v8907_v41 = vadd.f32 %v8906_v14, %v8811_v52  ;;  %11256 = vmatpush3.bf16.msra.mxu1 %v11253_v57 }
 0x673   : > { %11258 = vmatprep.subr.bf16.mxu1 %v11257_v63 }
 0x674   : > { %v8908_v15 = vadd.f32 %v8907_v41, %v8812_v38 }
 0x676   : > { %11075 = vmatmul.mubr.f32.gmra.mrb[206].mxu0 %v8908_v15  ;;  %11260 = vmatpush3.bf16.msra.mxu1 %v11257_v63 }
 0x677   : > { %11262 = vmatprep.subr.bf16.mxu1 %v11261_v36 }
 0x679   : > { %v11031_v53 = vpop.f32.mrb[176].mxu0 }
 0x67a   : > { %v15655_v47 = vadd.f32 %v11031_v53, %v15652_v23  ;;  %v8998_v19 = vpop.f32.mrb[177].mxu0  ;;  %11264 = vmatpush3.bf16.msra.mxu1 %v11261_v36 }
 0x67b   : > { %v15658_v9 = vadd.f32 %v15652_v23, %v8998_v19  ;;  %11266 = vmatprep.subr.bf16.mxu1 %v11265_v12 }
 0x67c   : > { %v9158_v4 = vmul.f32 %v15655_v47, %v15655_v47 }
 0x67d   : > { %v9157_v5 = vmul.f32 %v15658_v9, %v15658_v9 }
 0x67e   : > { %9191 = vadd.xlane.f32.xlu1 %v9158_v4  ;;  %11268 = vmatpush3.bf16.msra.mxu1 %v11265_v12 }
 0x67f   : > { %9189 = vadd.xlane.f32.xlu0 %v9157_v5  ;;  %11270 = vmatprep.subr.bf16.mxu1 %v11269_v46 }
 0x681   : > { %v11034_v55 = vpop.f32.mrb[178].mxu0 }
 0x682   : > { %v15665_v45 = vadd.f32 %v11034_v55, %v15652_v23  ;;  %v9008_v33 = vpop.f32.mrb[179].mxu0  ;;  %11272 = vmatpush3.bf16.msra.mxu1 %v11269_v46 }
 0x683   : > { %v15668_v59 = vadd.f32 %v15652_v23, %v9008_v33  ;;  %11274 = vmatprep.subr.bf16.mxu1 %v11273_v24 }
 0x684   : > { %v9160_v8 = vmul.f32 %v15665_v45, %v15665_v45 }
 0x685   : > { %v9159_v31 = vmul.f32 %v15668_v59, %v15668_v59 }
 0x686   : > { %9195 = vadd.xlane.f32.xlu1 %v9160_v8  ;;  %11276 = vmatpush3.bf16.msra.mxu1 %v11273_v24 }
 0x687   : > { %9193 = vadd.xlane.f32.xlu0 %v9159_v31  ;;  %11278 = vmatprep.subr.bf16.mxu1 %v11277_v1 }
 0x68a   : > { %11280 = vmatpush3.bf16.msra.mxu1 %v11277_v1 }
 0x68b   : > { %11282 = vmatprep.subr.bf16.mxu1 %v11281_v43 }
 0x68c   : > { %v11037_v37 = vpop.f32.mrb[180].mxu0 }
 0x68d   : > { %v15675_v3 = vadd.f32 %v11037_v37, %v15652_v23  ;;  %v9018_v2 = vpop.f32.mrb[181].mxu0 }
 0x68e   : > { %v15678_v34 = vadd.f32 %v15652_v23, %v9018_v2  ;;  %11284 = vmatpush3.bf16.msra.mxu1 %v11281_v43 }
 0x68f   : > { %v9162_v27 = vmul.f32 %v15675_v3, %v15675_v3 }
 0x690   : > { %v9161_v21 = vmul.f32 %v15678_v34, %v15678_v34 }
 0x691   : > { %9199 = vadd.xlane.f32.xlu1 %v9162_v27 }
 0x692   : > { %9197 = vadd.xlane.f32.xlu0 %v9161_v21 }
 0x6a4   : > { %v11040_v28 = vpop.f32.mrb[182].mxu0 }
 0x6a5   : > { %v15685_v40 = vadd.f32 %v11040_v28, %v15652_v23  ;;  %v9028_v35 = vpop.f32.mrb[183].mxu0 }
 0x6a6   : > { %v15688_v30 = vadd.f32 %v15652_v23, %v9028_v35 }
 0x6a7   : > { %v9164_v49 = vmul.f32 %v15685_v40, %v15685_v40 }
 0x6a8   : > { %v9163_v10 = vmul.f32 %v15688_v30, %v15688_v30 }
 0x6a9   : > { %9203 = vadd.xlane.f32.xlu1 %v9164_v49 }
 0x6aa   : > { %9201 = vadd.xlane.f32.xlu0 %v9163_v10 }
 0x6b7   : > { %v11043_v13 = vpop.f32.mrb[184].mxu0 }
 0x6b8   : > { %v15695_v48 = vadd.f32 %v11043_v13, %v15652_v23  ;;  %v9038_v42 = vpop.f32.mrb[185].mxu0 }
 0x6b9   : > { %v15698_v50 = vadd.f32 %v15652_v23, %v9038_v42 }
 0x6ba   : > { %v9166_v20 = vmul.f32 %v15695_v48, %v15695_v48 }
 0x6bb   : > { %v9165_v32 = vmul.f32 %v15698_v50, %v15698_v50 }
 0x6bc   : > { %9207 = vadd.xlane.f32.xlu1 %v9166_v20 }
 0x6bd   : > { %9205 = vadd.xlane.f32.xlu0 %v9165_v32 }
 0x6c4   : > { %v11046_v7 = vpop.f32.mrb[186].mxu0 }
 0x6c5   : > { %v15705_v22 = vadd.f32 %v11046_v7, %v15652_v23  ;;  %v9048_v14 = vpop.f32.mrb[187].mxu0 }
 0x6c6   : > { %v15708_v26 = vadd.f32 %v15652_v23, %v9048_v14 }
 0x6c7   : > { %v9168_v17 = vmul.f32 %v15705_v22, %v15705_v22 }
 0x6c8   : > { %v9167_v52 = vmul.f32 %v15708_v26, %v15708_v26 }
 0x6c9   : > { %9211 = vadd.xlane.f32.xlu1 %v9168_v17 }
 0x6ca   : > { %9209 = vadd.xlane.f32.xlu0 %v9167_v52 }
 0x6d4   : > { %v11049_v38 = vpop.f32.mrb[188].mxu0 }
 0x6d5   : > { %v15715_v41 = vadd.f32 %v11049_v38, %v15652_v23  ;;  %v9058_v15 = vpop.f32.mrb[189].mxu0 }
 0x6d6   : > { %v15718_v53 = vadd.f32 %v15652_v23, %v9058_v15 }
 0x6d7   : > { %v9170_v19 = vmul.f32 %v15715_v41, %v15715_v41 }
 0x6d8   : > { %v9169_v58 = vmul.f32 %v15718_v53, %v15718_v53 }
 0x6d9   : > { %9215 = vadd.xlane.f32.xlu1 %v9170_v19 }
 0x6da   : > { %9213 = vadd.xlane.f32.xlu0 %v9169_v58 }
 0x6e4   : > { %v11052_v51 = vpop.f32.mrb[190].mxu0 }
 0x6e5   : > { %v15725_v62 = vadd.f32 %v11052_v51, %v15652_v23  ;;  %v9068_v57 = vpop.f32.mrb[191].mxu0 }
 0x6e6   : > { %v15728_v29 = vadd.f32 %v15652_v23, %v9068_v57 }
 0x6e7   : > { %v9172_v4 = vmul.f32 %v15725_v62, %v15725_v62 }
 0x6e8   : > { %v9171_v63 = vmul.f32 %v15728_v29, %v15728_v29 }
 0x6e9   : > { %9219 = vadd.xlane.f32.xlu1 %v9172_v4 }
 0x6ea   : > { %9217 = vadd.xlane.f32.xlu0 %v9171_v63 }
 0x6f4   : > { %v11055_v5 = vpop.f32.mrb[192].mxu0 }
 0x6f5   : > { %v15735_v55 = vadd.f32 %v11055_v5, %v15652_v23  ;;  %v9078_v33 = vpop.f32.mrb[193].mxu0 }
 0x6f6   : > { %v15738_v8 = vadd.f32 %v15652_v23, %v9078_v33 }
 0x6f7   : > { %v9174_v31 = vmul.f32 %v15735_v55, %v15735_v55 }
 0x6f8   : > { %v9173_v44 = vmul.f32 %v15738_v8, %v15738_v8 }
 0x6f9   : > { %9223 = vadd.xlane.f32.xlu1 %v9174_v31 }
 0x6fa   : > { %9221 = vadd.xlane.f32.xlu0 %v9173_v44 }
 0x704   : > { %v11058_v56 = vpop.f32.mrb[194].mxu0 }
 0x705   : > { %v15745_v36 = vadd.f32 %v11058_v56, %v15652_v23  ;;  %v9088_v0 = vpop.f32.mrb[195].mxu0 }
 0x706   : > { %v15748_v11 = vadd.f32 %v15652_v23, %v9088_v0 }
 0x707   : > { %v9176_v12 = vmul.f32 %v15745_v36, %v15745_v36 }
 0x708   : > { %v9175_v37 = vmul.f32 %v15748_v11, %v15748_v11 }
 0x709   : > { %9227 = vadd.xlane.f32.xlu1 %v9176_v12 }
 0x70a   : > { %9225 = vadd.xlane.f32.xlu0 %v9175_v37 }
 0x70b   : > { %v9192_v2 = vpop.xlane.xlu1 %9191 }
 0x70c   : > { %v9254_v16 = vmul.f32 0.0078125, %v9192_v2  ;;  %v9190_v39 = vpop.xlane.xlu0 %9189 }
 0x70d   : > { %v9253_v46 = vmul.f32 0.0078125, %v9190_v39 }
 0x70e   : > { %v9286_v27 = vadd.f32 1e-08, %v9254_v16 }
 0x70f   : > { %v9285_v21 = vadd.f32 1e-08, %v9253_v46 }
 0x710   : > { %11956 = vrsqrt.f32 %v9286_v27 }
 0x711   : > { %11958 = vrsqrt.f32 %v9285_v21 }
 0x713   : > { %v9196_v18 = vpop.xlane.xlu1 %9195 }
 0x714   : > { %v9256_v6 = vmul.f32 0.0078125, %v9196_v18  ;;  %v9194_v24 = vpop.xlane.xlu0 %9193  ;;  %v11061_v25 = vpop.f32.mrb[196].mxu0 }
 0x715   : > { %v9255_v61 = vmul.f32 0.0078125, %v9194_v24  ;;  %v15755_v1 = vadd.f32 %v11061_v25, %v15652_v23  ;;  %v9098_v54 = vpop.f32.mrb[197].mxu0 }
 0x716   : > { %v9288_v60 = vadd.f32 1e-08, %v9256_v6  ;;  %v15758_v43 = vadd.f32 %v15652_v23, %v9098_v54 }
 0x717   : > { %v9287_v28 = vadd.f32 1e-08, %v9255_v61  ;;  %v9178_v35 = vmul.f32 %v15755_v1, %v15755_v1 }
 0x718   : > { %11960 = vrsqrt.f32 %v9288_v60  ;;  %v9177_v49 = vmul.f32 %v15758_v43, %v15758_v43 }
 0x719   : > { %11962 = vrsqrt.f32 %v9287_v28  ;;  %9231 = vadd.xlane.f32.xlu1 %v9178_v35 }
 0x71a   : > { %v11957_v10 = vpop.eup %11956  ;;  %9229 = vadd.xlane.f32.xlu0 %v9177_v49 }
 0x71b   : > { %v11959_v13 = vpop.eup %11958  ;;  %v9350_v20 = vmul.f32 %v11957_v10, %v15655_v47 }
 0x71c   : > { %v9349_v42 = vmul.f32 %v11959_v13, %v15658_v9 }
 0x71e   : > { %11109 = vmatprep.mubr.f32.mxu1 %v9349_v42  ;;  %v9200_v32 = vpop.xlane.xlu1 %9199 }
 0x71f   : > { %v9258_v7 = vmul.f32 0.0078125, %v9200_v32  ;;  %11110 = vmatmul.mubr.f32.vlgmr.msra.gmra.mrb[176].mxu1 %v9350_v20  ;;  %v9198_v14 = vpop.xlane.xlu0 %9197 }
 0x720   : > { %v9257_v17 = vmul.f32 0.0078125, %v9198_v14 }
 0x721   : > { %v9290_v52 = vadd.f32 1e-08, %v9258_v7 }
 0x722   : > { %v11961_v38 = vpop.eup %11960  ;;  %v9289_v15 = vadd.f32 1e-08, %v9257_v17 }
 0x723   : > { %v11963_v19 = vpop.eup %11962  ;;  %11964 = vrsqrt.f32 %v9290_v52  ;;  %v9352_v47 = vmul.f32 %v11961_v38, %v15665_v45 }
 0x724   : > { %11966 = vrsqrt.f32 %v9289_v15  ;;  %v11064_v58 = vpop.f32.mrb[198].mxu0  ;;  %v9351_v51 = vmul.f32 %v11963_v19, %v15668_v59 }
 0x725   : > { %v15768_v57 = vadd.f32 %v11064_v58, %v15652_v23  ;;  %v9108_v9 = vpop.f32.mrb[199].mxu0 }
 0x726   : > { %v15772_v4 = vadd.f32 %v15652_v23, %v9108_v9  ;;  %11112 = vmatprep.mubr.f32.mxu1 %v9351_v51 }
 0x727   : > { %v9180_v63 = vmul.f32 %v15768_v57, %v15768_v57  ;;  %11113 = vmatmul.mubr.f32.gmra.mrb[178].mxu1 %v9352_v47 }
 0x728   : > { %v9179_v5 = vmul.f32 %v15772_v4, %v15772_v4 }
 0x729   : > { %9235 = vadd.xlane.f32.xlu1 %v9180_v63 }
 0x72a   : > { %9233 = vadd.xlane.f32.xlu0 %v9179_v5 }
 0x72d   : > { %v11965_v59 = vpop.eup %11964 }
 0x72e   : > { %v11967_v33 = vpop.eup %11966  ;;  %v9354_v45 = vmul.f32 %v11965_v59, %v15675_v3 }
 0x72f   : > { %v9353_v31 = vmul.f32 %v11967_v33, %v15678_v34 }
 0x730   : > { %v11067_v44 = vpop.f32.mrb[200].mxu0 }
 0x731   : > { %v15781_v56 = vadd.f32 %v11067_v44, %v15652_v23  ;;  %v9118_v0 = vpop.f32.mrb[201].mxu0  ;;  %11115 = vmatprep.mubr.f32.mxu1 %v9353_v31 }
 0x732   : > { %v15784_v12 = vadd.f32 %v15652_v23, %v9118_v0  ;;  %11116 = vmatmul.mubr.f32.gmra.mrb[180].mxu1 %v9354_v45 }
 0x733   : > { %v9182_v37 = vmul.f32 %v15781_v56, %v15781_v56 }
 0x734   : > { %v9181_v2 = vmul.f32 %v15784_v12, %v15784_v12 }
 0x735   : > { %9239 = vadd.xlane.f32.xlu1 %v9182_v37 }
 0x736   : > { %v9204_v34 = vpop.xlane.xlu1 %9203  ;;  %9237 = vadd.xlane.f32.xlu0 %v9181_v2 }
 0x737   : > { %v9260_v16 = vmul.f32 0.0078125, %v9204_v34  ;;  %v9202_v3 = vpop.xlane.xlu0 %9201 }
 0x738   : > { %v9259_v39 = vmul.f32 0.0078125, %v9202_v3  ;;  %v11070_v46 = vpop.f32.mrb[202].mxu0 }
 0x739   : > { %v9292_v27 = vadd.f32 1e-08, %v9260_v16  ;;  %v15791_v21 = vadd.f32 %v11070_v46, %v15652_v23  ;;  %v9128_v18 = vpop.f32.mrb[203].mxu0 }
 0x73a   : > { %v9291_v6 = vadd.f32 1e-08, %v9259_v39  ;;  %v15794_v24 = vadd.f32 %v15652_v23, %v9128_v18 }
 0x73b   : > { %11968 = vrsqrt.f32 %v9292_v27  ;;  %v9184_v25 = vmul.f32 %v15791_v21, %v15791_v21 }
 0x73c   : > { %11970 = vrsqrt.f32 %v9291_v6  ;;  %v9183_v61 = vmul.f32 %v15794_v24, %v15794_v24 }
 0x73d   : > { %9243 = vadd.xlane.f32.xlu1 %v9184_v25 }
 0x73e   : > { %9241 = vadd.xlane.f32.xlu0 %v9183_v61 }
 0x740   : > { %v11073_v54 = vpop.f32.mrb[204].mxu0 }
 0x741   : > { %v15801_v60 = vadd.f32 %v11073_v54, %v15652_v23  ;;  %v9138_v28 = vpop.f32.mrb[205].mxu0 }
 0x742   : > { %v15804_v35 = vadd.f32 %v15652_v23, %v9138_v28 }
 0x743   : > { %v9186_v49 = vmul.f32 %v15801_v60, %v15801_v60 }
 0x744   : > { %v9185_v10 = vmul.f32 %v15804_v35, %v15804_v35 }
 0x745   : > { %v11969_v13 = vpop.eup %11968  ;;  %9247 = vadd.xlane.f32.xlu1 %v9186_v49 }
 0x746   : > { %v11971_v42 = vpop.eup %11970  ;;  %9245 = vadd.xlane.f32.xlu0 %v9185_v10  ;;  %v9356_v32 = vmul.f32 %v11969_v13, %v15685_v40 }
 0x747   : > { %v9355_v20 = vmul.f32 %v11971_v42, %v15688_v30 }
 0x749   : > { %v11076_v7 = vpop.f32.mrb[206].mxu0  ;;  %v9208_v14 = vpop.xlane.xlu1 %9207  ;;  %11118 = vmatprep.mubr.f32.mxu1 %v9355_v20 }
 0x74a   : > { %v15813_v17 = vadd.f32 %v11076_v7, %v15652_v23  ;;  %v9262_v52 = vmul.f32 0.0078125, %v9208_v14  ;;  %v9148_v38 = vpop.f32.mrb[207].mxu0  ;;  %11119 = vmatmul.mubr.f32.gmra.mrb[182].mxu1 %v9356_v32  ;;  %v9206_v15 = vpop.xlane.xlu0 %9205 }
 0x74b   : > { %v15816_v19 = vadd.f32 %v15652_v23, %v9148_v38  ;;  %v9261_v58 = vmul.f32 0.0078125, %v9206_v15 }
 0x74c   : > { %v9188_v51 = vmul.f32 %v15813_v17, %v15813_v17  ;;  %v9294_v30 = vadd.f32 1e-08, %v9262_v52 }
 0x74d   : > { %v9187_v40 = vmul.f32 %v15816_v19, %v15816_v19  ;;  %v9293_v9 = vadd.f32 1e-08, %v9261_v58 }
 0x74e   : > { %11972 = vrsqrt.f32 %v9294_v30  ;;  %9251 = vadd.xlane.f32.xlu1 %v9188_v51 }
 0x74f   : > { %11974 = vrsqrt.f32 %v9293_v9  ;;  %9249 = vadd.xlane.f32.xlu0 %v9187_v40 }
 0x756   : > { %v9212_v47 = vpop.xlane.xlu1 %9211 }
 0x757   : > { %v9264_v63 = vmul.f32 0.0078125, %v9212_v47  ;;  %v9210_v5 = vpop.xlane.xlu0 %9209 }
 0x758   : > { %v11973_v59 = vpop.eup %11972  ;;  %v9263_v33 = vmul.f32 0.0078125, %v9210_v5 }
 0x759   : > { %v11975_v23 = vpop.eup %11974  ;;  %v9296_v31 = vadd.f32 1e-08, %v9264_v63  ;;  %v9358_v0 = vmul.f32 %v11973_v59, %v15695_v48 }
 0x75a   : > { %v9295_v44 = vadd.f32 1e-08, %v9263_v33  ;;  %v9357_v45 = vmul.f32 %v11975_v23, %v15698_v50 }
 0x75b   : > { %11976 = vrsqrt.f32 %v9296_v31 }
 0x75c   : > { %11978 = vrsqrt.f32 %v9295_v44  ;;  %11121 = vmatprep.mubr.f32.mxu1 %v9357_v45 }
 0x75d   : > { %11122 = vmatmul.mubr.f32.gmra.mrb[184].mxu1 %v9358_v0 }
 0x765   : > { %v11977_v37 = vpop.eup %11976 }
 0x766   : > { %v11979_v2 = vpop.eup %11978  ;;  %v9216_v34 = vpop.xlane.xlu1 %9215  ;;  %v9360_v27 = vmul.f32 %v11977_v37, %v15705_v22 }
 0x767   : > { %v9266_v16 = vmul.f32 0.0078125, %v9216_v34  ;;  %v9214_v3 = vpop.xlane.xlu0 %9213  ;;  %v9359_v39 = vmul.f32 %v11979_v2, %v15708_v26 }
 0x768   : > { %v9265_v46 = vmul.f32 0.0078125, %v9214_v3 }
 0x769   : > { %v9298_v18 = vadd.f32 1e-08, %v9266_v16  ;;  %11124 = vmatprep.mubr.f32.mxu1 %v9359_v39 }
 0x76a   : > { %v9297_v6 = vadd.f32 1e-08, %v9265_v46  ;;  %11125 = vmatmul.mubr.f32.gmra.mrb[186].mxu1 %v9360_v27 }
 0x76b   : > { %11980 = vrsqrt.f32 %v9298_v18 }
 0x76c   : > { %11982 = vrsqrt.f32 %v9297_v6 }
 0x775   : > { %v11981_v48 = vpop.eup %11980 }
 0x776   : > { %v11983_v50 = vpop.eup %11982  ;;  %v9220_v25 = vpop.xlane.xlu1 %9219  ;;  %v9362_v10 = vmul.f32 %v11981_v48, %v15715_v41 }
 0x777   : > { %v9268_v61 = vmul.f32 0.0078125, %v9220_v25  ;;  %v9218_v54 = vpop.xlane.xlu0 %9217  ;;  %v9361_v28 = vmul.f32 %v11983_v50, %v15718_v53 }
 0x778   : > { %v9267_v49 = vmul.f32 0.0078125, %v9218_v54 }
 0x779   : > { %v9300_v26 = vadd.f32 1e-08, %v9268_v61  ;;  %11127 = vmatprep.mubr.f32.mxu1 %v9361_v28 }
 0x77a   : > { %v9299_v13 = vadd.f32 1e-08, %v9267_v49  ;;  %11128 = vmatmul.mubr.f32.gmra.mrb[188].mxu1 %v9362_v10 }
 0x77b   : > { %11984 = vrsqrt.f32 %v9300_v26 }
 0x77c   : > { %11986 = vrsqrt.f32 %v9299_v13 }
 0x785   : > { %v11985_v22 = vpop.eup %11984 }
 0x786   : > { %v11987_v42 = vpop.eup %11986  ;;  %v9224_v20 = vpop.xlane.xlu1 %9223  ;;  %v9364_v38 = vmul.f32 %v11985_v22, %v15725_v62 }
 0x787   : > { %v9270_v32 = vmul.f32 0.0078125, %v9224_v20  ;;  %v9222_v7 = vpop.xlane.xlu0 %9221  ;;  %v9363_v14 = vmul.f32 %v11987_v42, %v15728_v29 }
 0x788   : > { %v9269_v52 = vmul.f32 0.0078125, %v9222_v7 }
 0x789   : > { %v9302_v53 = vadd.f32 1e-08, %v9270_v32  ;;  %11130 = vmatprep.mubr.f32.mxu1 %v9363_v14 }
 0x78a   : > { %v9301_v15 = vadd.f32 1e-08, %v9269_v52  ;;  %11131 = vmatmul.mubr.f32.gmra.mrb[190].mxu1 %v9364_v38 }
 0x78b   : > { %11988 = vrsqrt.f32 %v9302_v53 }
 0x78c   : > { %11990 = vrsqrt.f32 %v9301_v15 }
 0x795   : > { %v11989_v41 = vpop.eup %11988 }
 0x796   : > { %v11991_v58 = vpop.eup %11990  ;;  %v9228_v51 = vpop.xlane.xlu1 %9227  ;;  %v9366_v63 = vmul.f32 %v11989_v41, %v15735_v55 }
 0x797   : > { %v9272_v30 = vmul.f32 0.0078125, %v9228_v51  ;;  %v9226_v40 = vpop.xlane.xlu0 %9225  ;;  %v9365_v9 = vmul.f32 %v11991_v58, %v15738_v8 }
 0x798   : > { %v9271_v47 = vmul.f32 0.0078125, %v9226_v40 }
 0x799   : > { %v9304_v29 = vadd.f32 1e-08, %v9272_v30  ;;  %11133 = vmatprep.mubr.f32.mxu1 %v9365_v9 }
 0x79a   : > { %v9303_v5 = vadd.f32 1e-08, %v9271_v47  ;;  %11134 = vmatmul.mubr.f32.gmra.mrb[192].mxu1 %v9366_v63 }
 0x79b   : > { %11992 = vrsqrt.f32 %v9304_v29 }
 0x79c   : > { %11994 = vrsqrt.f32 %v9303_v5 }
 0x7a5   : > { %v11993_v62 = vpop.eup %11992 }
 0x7a6   : > { %v11995_v59 = vpop.eup %11994  ;;  %v9232_v33 = vpop.xlane.xlu1 %9231  ;;  %v9368_v0 = vmul.f32 %v11993_v62, %v15745_v36 }
 0x7a7   : > { %v9274_v23 = vmul.f32 0.0078125, %v9232_v33  ;;  %v9230_v31 = vpop.xlane.xlu0 %9229  ;;  %v9367_v44 = vmul.f32 %v11995_v59, %v15748_v11 }
 0x7a8   : > { %v9273_v45 = vmul.f32 0.0078125, %v9230_v31  ;;  %v15849_v31 = vld [vmem:[%s15978_s8] ss:$0 sm:$0xff] }
 0x7a9   : > { %v9306_v8 = vadd.f32 1e-08, %v9274_v23  ;;  %11136 = vmatprep.mubr.f32.mxu1 %v9367_v44 }
 0x7aa   : > { %v9305_v37 = vadd.f32 1e-08, %v9273_v45  ;;  %11137 = vmatmul.mubr.f32.gmra.mrb[194].mxu1 %v9368_v0 }
 0x7ab   : > { %11996 = vrsqrt.f32 %v9306_v8 }
 0x7ac   : > { %11998 = vrsqrt.f32 %v9305_v37 }
 0x7b5   : > { %v11997_v55 = vpop.eup %11996 }
 0x7b6   : > { %v11999_v2 = vpop.eup %11998  ;;  %v9236_v34 = vpop.xlane.xlu1 %9235  ;;  %v9370_v27 = vmul.f32 %v11997_v55, %v15755_v1 }
 0x7b7   : > { %v9276_v16 = vmul.f32 0.0078125, %v9236_v34  ;;  %v9234_v3 = vpop.xlane.xlu0 %9233  ;;  %v9369_v39 = vmul.f32 %v11999_v2, %v15758_v43 }
 0x7b8   : > { %v9275_v46 = vmul.f32 0.0078125, %v9234_v3 }
 0x7b9   : > { %v9308_v11 = vadd.f32 1e-08, %v9276_v16  ;;  %11139 = vmatprep.mubr.f32.mxu1 %v9369_v39 }
 0x7ba   : > { %v9307_v18 = vadd.f32 1e-08, %v9275_v46  ;;  %11140 = vmatmul.mubr.f32.gmra.mrb[196].mxu1 %v9370_v27 }
 0x7bb   : > { %12000 = vrsqrt.f32 %v9308_v11 }
 0x7bc   : > { %12002 = vrsqrt.f32 %v9307_v18 }
 0x7c2   : > { %v9240_v36 = vpop.xlane.xlu1 %9239 }
 0x7c3   : > { %v9278_v6 = vmul.f32 0.0078125, %v9240_v36  ;;  %v9238_v48 = vpop.xlane.xlu0 %9237 }
 0x7c4   : > { %v9277_v50 = vmul.f32 0.0078125, %v9238_v48 }
 0x7c5   : > { %v12001_v25 = vpop.eup %12000  ;;  %v9310_v61 = vadd.f32 1e-08, %v9278_v6 }
 0x7c6   : > { %v12003_v54 = vpop.eup %12002  ;;  %v9309_v28 = vadd.f32 1e-08, %v9277_v50  ;;  %v9372_v1 = vmul.f32 %v12001_v25, %v15768_v57 }
 0x7c7   : > { %12004 = vrsqrt.f32 %v9310_v61  ;;  %v9371_v43 = vmul.f32 %v12003_v54, %v15772_v4 }
 0x7c8   : > { %12006 = vrsqrt.f32 %v9309_v28 }
 0x7c9   : > { %11142 = vmatprep.mubr.f32.mxu1 %v9371_v43 }
 0x7ca   : > { %v9244_v49 = vpop.xlane.xlu1 %9243  ;;  %11143 = vmatmul.mubr.f32.gmra.mrb[198].mxu1 %v9372_v1 }
 0x7cb   : > { %v9280_v10 = vmul.f32 0.0078125, %v9244_v49  ;;  %v9242_v26 = vpop.xlane.xlu0 %9241 }
 0x7cc   : > { %v9279_v13 = vmul.f32 0.0078125, %v9242_v26 }
 0x7cd   : > { %v9312_v22 = vadd.f32 1e-08, %v9280_v10 }
 0x7ce   : > { %v9311_v42 = vadd.f32 1e-08, %v9279_v13 }
 0x7cf   : > { %12008 = vrsqrt.f32 %v9312_v22 }
 0x7d0   : > { %12010 = vrsqrt.f32 %v9311_v42 }
 0x7d1   : > { %v12005_v20 = vpop.eup %12004 }
 0x7d2   : > { %v12007_v32 = vpop.eup %12006  ;;  %v9248_v7 = vpop.xlane.xlu1 %9247  ;;  %v9374_v57 = vmul.f32 %v12005_v20, %v15781_v56 }
 0x7d3   : > { %v9282_v14 = vmul.f32 0.0078125, %v9248_v7  ;;  %v9246_v52 = vpop.xlane.xlu0 %9245  ;;  %v9373_v4 = vmul.f32 %v12007_v32, %v15784_v12 }
 0x7d4   : > { %v9281_v38 = vmul.f32 0.0078125, %v9246_v52 }
 0x7d5   : > { %v9314_v53 = vadd.f32 1e-08, %v9282_v14  ;;  %11145 = vmatprep.mubr.f32.mxu1 %v9373_v4 }
 0x7d6   : > { %v9313_v15 = vadd.f32 1e-08, %v9281_v38  ;;  %11146 = vmatmul.mubr.f32.gmra.mrb[200].mxu1 %v9374_v57 }
 0x7d7   : > { %12012 = vrsqrt.f32 %v9314_v53 }
 0x7d8   : > { %12014 = vrsqrt.f32 %v9313_v15 }
 0x7d9   : > { %v12009_v41 = vpop.eup %12008 }
 0x7da   : > { %v12011_v58 = vpop.eup %12010  ;;  %v9376_v47 = vmul.f32 %v12009_v41, %v15791_v21 }
 0x7db   : > { %v9252_v51 = vpop.xlane.xlu1 %9251  ;;  %v9375_v30 = vmul.f32 %v12011_v58, %v15794_v24 }
 0x7dc   : > { %v9284_v40 = vmul.f32 0.0078125, %v9252_v51  ;;  %v9250_v9 = vpop.xlane.xlu0 %9249 }
 0x7dd   : > { %v9283_v63 = vmul.f32 0.0078125, %v9250_v9  ;;  %11148 = vmatprep.mubr.f32.mxu1 %v9375_v30 }
 0x7de   : > { %v9316_v12 = vadd.f32 1e-08, %v9284_v40  ;;  %11149 = vmatmul.mubr.f32.gmra.mrb[202].mxu1 %v9376_v47 }
 0x7df   : > { %v9315_v56 = vadd.f32 1e-08, %v9283_v63 }
 0x7e0   : > { %12016 = vrsqrt.f32 %v9316_v12 }
 0x7e1   : > { %v12013_v29 = vpop.eup %12012  ;;  %12018 = vrsqrt.f32 %v9315_v56 }
 0x7e2   : > { %v12015_v5 = vpop.eup %12014  ;;  %v9378_v59 = vmul.f32 %v12013_v29, %v15801_v60 }
 0x7e3   : > { %v9377_v62 = vmul.f32 %v12015_v5, %v15804_v35 }
 0x7e5   : > { %11151 = vmatprep.mubr.f32.mxu1 %v9377_v62 }
 0x7e6   : > { %11152 = vmatmul.mubr.f32.gmra.mrb[204].mxu1 %v9378_v59 }
 0x7ea   : > { %v12017_v24 = vpop.eup %12016 }
 0x7eb   : > { %v12019_v33 = vpop.eup %12018  ;;  %v9380_v23 = vmul.f32 %v12017_v24, %v15813_v17 }
 0x7ec   : > { %v9379_v21 = vmul.f32 %v12019_v33, %v15816_v19 }
 0x7ee   : > { %11154 = vmatprep.mubr.f32.mxu1 %v9379_v21 }
 0x7ef   : > { %11155 = vmatmul.mubr.f32.gmra.mrb[206].mxu1 %v9380_v23 }
 0x7f2   : > { %v11111_v44 = vpop.f32.mrb[176].mxu1 }
 0x7f3   : > { %v9476_v35 = vadd.f32 %v11111_v44, %v15849_v31  ;;  %v9470_v45 = vpop.f32.mrb[177].mxu1 }
 0x7f4   : > { %v9471_v60 = vadd.f32 %v15849_v31, %v9470_v45 }
 0x7f5   : > { %9630 = vst [vmem:[%s15855_s20 + $0x8] sm:$0xff] %v9476_v35 }
 0x7f6   : > { %9629 = vst [vmem:[%s15855_s20] sm:$0xff] %v9471_v60 }
 0x7fa   : > { %v11114_v17 = vpop.f32.mrb[178].mxu1 }
 0x7fb   : > { %v9486_v19 = vadd.f32 %v11114_v17, %v15849_v31  ;;  %v9480_v0 = vpop.f32.mrb[179].mxu1 }
 0x7fc   : > { %v9481_v8 = vadd.f32 %v15849_v31, %v9480_v0 }
 0x7fd   : > { %9632 = vst [vmem:[%s15855_s20 + $0x18] sm:$0xff] %v9486_v19 }
 0x7fe   : > { %9631 = vst [vmem:[%s15855_s20 + $0x10] sm:$0xff] %v9481_v8 }
 0x805   : > { %v11117_v37 = vpop.f32.mrb[180].mxu1 }
 0x806   : > { %v9496_v55 = vadd.f32 %v11117_v37, %v15849_v31  ;;  %v9490_v2 = vpop.f32.mrb[181].mxu1 }
 0x807   : > { %v9491_v34 = vadd.f32 %v15849_v31, %v9490_v2 }
 0x808   : > { %9634 = vst [vmem:[%s15855_s20 + $0x28] sm:$0xff] %v9496_v55 }
 0x809   : > { %9633 = vst [vmem:[%s15855_s20 + $0x20] sm:$0xff] %v9491_v34 }
 0x81d   : > { %v11120_v16 = vpop.f32.mrb[182].mxu1 }
 0x81e   : > { %v9506_v3 = vadd.f32 %v11120_v16, %v15849_v31  ;;  %v9500_v39 = vpop.f32.mrb[183].mxu1 }
 0x81f   : > { %v9501_v46 = vadd.f32 %v15849_v31, %v9500_v39 }
 0x820   : > { %9636 = vst [vmem:[%s15855_s20 + $0x38] sm:$0xff] %v9506_v3 }
 0x821   : > { %9635 = vst [vmem:[%s15855_s20 + $0x30] sm:$0xff] %v9501_v46 }
 0x830   : > { %v11123_v27 = vpop.f32.mrb[184].mxu1 }
 0x831   : > { %v9516_v11 = vadd.f32 %v11123_v27, %v15849_v31  ;;  %v9510_v18 = vpop.f32.mrb[185].mxu1 }
 0x832   : > { %v9511_v36 = vadd.f32 %v15849_v31, %v9510_v18 }
 0x833   : > { %9638 = vst [vmem:[%s15855_s20 + $0x48] sm:$0xff] %v9516_v11 }
 0x834   : > { %9637 = vst [vmem:[%s15855_s20 + $0x40] sm:$0xff] %v9511_v36 }
 0x83d   : > { %v11126_v6 = vpop.f32.mrb[186].mxu1 }
 0x83e   : > { %v9526_v48 = vadd.f32 %v11126_v6, %v15849_v31  ;;  %v9520_v50 = vpop.f32.mrb[187].mxu1 }
 0x83f   : > { %v9521_v25 = vadd.f32 %v15849_v31, %v9520_v50 }
 0x840   : > { %9640 = vst [vmem:[%s15855_s20 + $0x58] sm:$0xff] %v9526_v48 }
 0x841   : > { %9639 = vst [vmem:[%s15855_s20 + $0x50] sm:$0xff] %v9521_v25 }
 0x84d   : > { %v11129_v61 = vpop.f32.mrb[188].mxu1 }
 0x84e   : > { %v9536_v54 = vadd.f32 %v11129_v61, %v15849_v31  ;;  %v9530_v28 = vpop.f32.mrb[189].mxu1 }
 0x84f   : > { %v9531_v43 = vadd.f32 %v15849_v31, %v9530_v28 }
 0x850   : > { %9642 = vst [vmem:[%s15855_s20 + $0x68] sm:$0xff] %v9536_v54 }
 0x851   : > { %9641 = vst [vmem:[%s15855_s20 + $0x60] sm:$0xff] %v9531_v43 }
 0x85d   : > { %v11132_v1 = vpop.f32.mrb[190].mxu1 }
 0x85e   : > { %v9546_v49 = vadd.f32 %v11132_v1, %v15849_v31  ;;  %v9540_v10 = vpop.f32.mrb[191].mxu1 }
 0x85f   : > { %v9541_v26 = vadd.f32 %v15849_v31, %v9540_v10 }
 0x860   : > { %9644 = vst [vmem:[%s15855_s20 + $0x78] sm:$0xff] %v9546_v49 }
 0x861   : > { %9643 = vst [vmem:[%s15855_s20 + $0x70] sm:$0xff] %v9541_v26 }
 0x86d   : > { %v11135_v13 = vpop.f32.mrb[192].mxu1 }
 0x86e   : > { %v9556_v22 = vadd.f32 %v11135_v13, %v15849_v31  ;;  %v9550_v42 = vpop.f32.mrb[193].mxu1 }
 0x86f   : > { %v9551_v20 = vadd.f32 %v15849_v31, %v9550_v42 }
 0x870   : > { %9646 = vst [vmem:[%s15855_s20 + $0x88] sm:$0xff] %v9556_v22 }
 0x871   : > { %9645 = vst [vmem:[%s15855_s20 + $0x80] sm:$0xff] %v9551_v20 }
 0x87d   : > { %v11138_v32 = vpop.f32.mrb[194].mxu1 }
 0x87e   : > { %v9566_v7 = vadd.f32 %v11138_v32, %v15849_v31  ;;  %v9560_v14 = vpop.f32.mrb[195].mxu1 }
 0x87f   : > { %v9561_v52 = vadd.f32 %v15849_v31, %v9560_v14 }
 0x880   : > { %9648 = vst [vmem:[%s15855_s20 + $0x98] sm:$0xff] %v9566_v7 }
 0x881   : > { %9647 = vst [vmem:[%s15855_s20 + $0x90] sm:$0xff] %v9561_v52 }
 0x88d   : > { %v11141_v4 = vpop.f32.mrb[196].mxu1 }
 0x88e   : > { %v9576_v38 = vadd.f32 %v11141_v4, %v15849_v31  ;;  %v9570_v57 = vpop.f32.mrb[197].mxu1 }
 0x88f   : > { %v9571_v53 = vadd.f32 %v15849_v31, %v9570_v57 }
 0x890   : > { %9650 = vst [vmem:[%s15855_s20 + $0xa8] sm:$0xff] %v9576_v38 }
 0x891   : > { %9649 = vst [vmem:[%s15855_s20 + $0xa0] sm:$0xff] %v9571_v53 }
 0x89d   : > { %v11144_v15 = vpop.f32.mrb[198].mxu1 }
 0x89e   : > { %v9586_v41 = vadd.f32 %v11144_v15, %v15849_v31  ;;  %v9580_v58 = vpop.f32.mrb[199].mxu1 }
 0x89f   : > { %v9581_v51 = vadd.f32 %v15849_v31, %v9580_v58 }
 0x8a0   : > { %9652 = vst [vmem:[%s15855_s20 + $0xb8] sm:$0xff] %v9586_v41 }
 0x8a1   : > { %9651 = vst [vmem:[%s15855_s20 + $0xb0] sm:$0xff] %v9581_v51 }
 0x8a9   : > { %v11147_v30 = vpop.f32.mrb[200].mxu1 }
 0x8aa   : > { %v9596_v40 = vadd.f32 %v11147_v30, %v15849_v31  ;;  %v9590_v9 = vpop.f32.mrb[201].mxu1 }
 0x8ab   : > { %v9591_v47 = vadd.f32 %v15849_v31, %v9590_v9 }
 0x8ac   : > { %9654 = vst [vmem:[%s15855_s20 + $0xc8] sm:$0xff] %v9596_v40 }
 0x8ad   : > { %9653 = vst [vmem:[%s15855_s20 + $0xc0] sm:$0xff] %v9591_v47 }
 0x8b1   : > { %v11150_v63 = vpop.f32.mrb[202].mxu1 }
 0x8b2   : > { %v9606_v12 = vadd.f32 %v11150_v63, %v15849_v31  ;;  %v9600_v56 = vpop.f32.mrb[203].mxu1 }
 0x8b3   : > { %v9601_v29 = vadd.f32 %v15849_v31, %v9600_v56 }
 0x8b4   : > { %9656 = vst [vmem:[%s15855_s20 + $0xd8] sm:$0xff] %v9606_v12 }
 0x8b5   : > { %9655 = vst [vmem:[%s15855_s20 + $0xd0] sm:$0xff] %v9601_v29 }
 0x8b9   : > { %v11153_v5 = vpop.f32.mrb[204].mxu1 }
 0x8ba   : > { %v9616_v62 = vadd.f32 %v11153_v5, %v15849_v31  ;;  %v9610_v59 = vpop.f32.mrb[205].mxu1 }
 0x8bb   : > { %v9611_v24 = vadd.f32 %v15849_v31, %v9610_v59 }
 0x8bc   : > { %9658 = vst [vmem:[%s15855_s20 + $0xe8] sm:$0xff] %v9616_v62 }
 0x8bd   : > { %9657 = vst [vmem:[%s15855_s20 + $0xe0] sm:$0xff] %v9611_v24 }
 0x8c2   : > { %v11156_v33 = vpop.f32.mrb[206].mxu1 }
 0x8c3   : > { %v9626_v21 = vadd.f32 %v11156_v33, %v15849_v31  ;;  %v9620_v23 = vpop.f32.mrb[207].mxu1 }
 0x8c4   : > { %v9621_v44 = vadd.f32 %v15849_v31, %v9620_v23 }
 0x8c5   : > { %9660 = vst [vmem:[%s15855_s20 + $0xf8] sm:$0xff] %v9626_v21 }
 0x8c6   : > { %9659 = vst [vmem:[%s15855_s20 + $0xf0] sm:$0xff] %v9621_v44 }
 0x8c7   : > { %12175 = shalt.err (!%p12172_p13)
}
 0x8c8   : > { %s12176_s26 = scalar_lea.hbm %s15921_s16, 4096  ;;  %s12180_s29 = scalar_lea.hbm %s15979_s9, 8192 }
 0x8c9   : > { %p12177_p0 = scmp.ne.s32.totalorder %s15921_s16, %s12176_s26  ;;  %p12181_p9 = scmp.lt.u32.totalorder %s15921_s16, %s15979_s9 }
 0x8ca   : > { %p12182_p12 = scmp.lt.u32.totalorder %s12180_s29, %s12176_s26  ;;  %p12184_p4 = scmp.lt.u32.totalorder %s12176_s26, %s15921_s16 }
 0x8cb   : > { %p12178_p5 = pnand %p12177_p0, %p12460_p1 }
 0x8cc   : > { %p12183_p2 = por %p12182_p12, %p12181_p9 }
 0x8cd   : > { %p12179_p11 = pneg %p12178_p5 }
 0x8ce   : > { %p12185_p6 = por %p12184_p4, %p12183_p2 }
 0x8d0   : > { %p12186_p8 = pnand %p12185_p6, %p12179_p11 }
 0x8d2   : > { %12189 = shalt.err (!%p12186_p8)
}
 0x8d3   : > { %s12250_s23 = smov 128   ;;  %s12251_s24 = smov 8  }
 0x8d4   : > { %11303 = dma.vmem_to_hbm [thread:$0]  (%p12460_p1), %s15923_s19, 4096, %s15921_s16, %s9662_s13, %s12250_s23, %s12250_s23, %s12251_s24  }
 0x8d5 PF: > { %s17134_s15 = sld [smem:[#allocation16_spill]]  ;;  %s9690_s17 = sand.u32 1, %s12224_s30  }
 0x8d6   : > { %p17136_p7 = scmp.ge.s32.totalorder %s12236_s12, 2  ;;  %s9691_s25 = scalar_lea.sflag [#allocation4], %s9690_s17 }
 0x8db   : > { %p17135_p3 = scmp.ne.s32.totalorder %s17134_s15, 0 }
 0x8dd   : > { %p11323_p10 = pnand %p17136_p7, %p17135_p3 }
 0x8df   : > { %12219 = dma.done.wait (!%p11323_p10), %s9691_s25, 4096  }
 0x8e0   : > { %12221 = vsyncadd (!%p11323_p10), %s9691_s25, 4294963200  ;;  %p24_p13 = scmp.ge.s32.totalorder %s12450_s14, 4   ;;  %s17137_s30 = smov %s12228_s10 }
 0x8e1   : > { %s17138_s10 = smov %s12232_s11  ;;  %s17139_s11 = smov %s12466_s28 }
 0x8e2   : > { %s17140_s12 = smov %s12450_s14  ;;  %26 = sbr.rel (!%p24_p13) target bundleno = 10 (0xa), region = 117 }
 0x8e9   :  { %9696 = vsyncpa [#allocation3], 1 }
 0x8ea   :  { %9698 = vsyncpa [#allocation3 + $0x1], 1 }
 0x8eb   :  { %9699 = vsyncpa [#allocation6], 1 }
 0x8ec   :  { %9700 = vsyncpa [#allocation9], 1 }
 0x8ed   :  { %9701 = vsyncpa [#allocation4], 1 }
 0x8ee   :  { %9703 = vsyncpa [#allocation4 + $0x1], 1 }

</bundles_post_ra>
